<compile_context>
chip_gen: v5e
topology: v5e:2x2
jax: 0.10.0
libtpu: 0.0.40
codegen_flags: <defaults>
</compile_context>

<pallas_src>
import jax
import jax.numpy as jnp
import numpy as np
from jax.experimental import pallas as pl
from jax.experimental.pallas import tpu as pltpu

IN_FEATURES = 80 * 80 * 1  # 6400
HIDDEN = 256
OUT = 1


def pg_kernel(x_ref, w1_ref, b1_ref, w2_ref, b2_ref, w3_ref, b3_ref, o_ref):
    """Entire 3-layer MLP in one invocation (single grid step)."""
    # Layer 1: bf16 x bf16 -> f32 accumulation on the MXU (w1 streamed as bf16).
    x_bf = x_ref[...].astype(jnp.bfloat16)
    h1 = jnp.dot(x_bf, w1_ref[...], preferred_element_type=jnp.float32)
    h1 = jnp.maximum(h1 + b1_ref[...], 0.0)

    # Layer 2: f32 Linear + ReLU (weights tiny; f32 matmul is fine).
    h2 = jnp.dot(h1, w2_ref[...], preferred_element_type=jnp.float32)
    h2 = jnp.maximum(h2 + b2_ref[...], 0.0)

    # Layer 3: f32 Linear + Sigmoid.
    z = jnp.dot(h2, w3_ref[...], preferred_element_type=jnp.float32) + b3_ref[...]
    o_ref[...] = 1.0 / (1.0 + jnp.exp(-z))


@jax.jit
def policy_gradient_forward(x_nchw, w1_bf16, b1, w2, b2, w3, b3):
    """x_nchw: (B, 1, 80, 80) float32 -> (B, 1) float32 (sigmoid prob)."""
    B = x_nchw.shape[0]
    x = x_nchw.reshape(B, -1)  # (B, 6400), same as torch .reshape

    # Biases kept 2D so they are clean (sublane, lane) tiles in VMEM.
    b1_2d = b1.reshape(1, HIDDEN)
    b2_2d = b2.reshape(1, HIDDEN)
    b3_2d = b3.reshape(1, OUT)

    out = pl.pallas_call(
        pg_kernel,
        out_shape=jax.ShapeDtypeStruct((B, OUT), jnp.float32),
        grid_spec=pltpu.PrefetchScalarGridSpec(
            num_scalar_prefetch=0,
            grid=(1,),  # single step: whole problem as one block set
            in_specs=[
                pl.BlockSpec((B, IN_FEATURES), lambda k: (0, 0)),       # x
                pl.BlockSpec((IN_FEATURES, HIDDEN), lambda k: (0, 0)),  # w1 (bf16)
                pl.BlockSpec((1, HIDDEN), lambda k: (0, 0)),            # b1
                pl.BlockSpec((HIDDEN, HIDDEN), lambda k: (0, 0)),       # w2
                pl.BlockSpec((1, HIDDEN), lambda k: (0, 0)),            # b2
                pl.BlockSpec((HIDDEN, OUT), lambda k: (0, 0)),          # w3
                pl.BlockSpec((1, OUT), lambda k: (0, 0)),               # b3
            ],
            out_specs=pl.BlockSpec((B, OUT), lambda k: (0, 0)),
        ),
        compiler_params=pltpu.CompilerParams(
            dimension_semantics=("arbitrary",)),
    )(x, w1_bf16, b1_2d, w2, b2_2d, w3, b3_2d)
    return out


def init_params(key):
    """Deterministic init matching torch.nn.Linear default (Kaiming-uniform)."""
    ks = jax.random.split(key, 6)

    def linear(kw, kb, fan_in, fan_out):
        bound = 1.0 / np.sqrt(fan_in)
        w = jax.random.uniform(kw, (fan_in, fan_out), jnp.float32, -bound, bound)
        b = jax.random.uniform(kb, (fan_out,), jnp.float32, -bound, bound)
        return w, b

    w1, b1 = linear(ks[0], ks[1], IN_FEATURES, HIDDEN)
    w2, b2 = linear(ks[2], ks[3], HIDDEN, HIDDEN)
    w3, b3 = linear(ks[4], ks[5], HIDDEN, OUT)
    return w1, b1, w2, b2, w3, b3


def reference_forward(x_nchw, w1, b1, w2, b2, w3, b3, cast_x_bf16=False):
    x = x_nchw.reshape(x_nchw.shape[0], -1)
    if cast_x_bf16:
        x = x.astype(jnp.bfloat16).astype(jnp.float32)
    h1 = jnp.maximum(x @ w1 + b1, 0.0)
    h2 = jnp.maximum(h1 @ w2 + b2, 0.0)
    return jax.nn.sigmoid(h2 @ w3 + b3)


if __name__ == "__main__":
    key = jax.random.PRNGKey(0)
    k_x, k_p = jax.random.split(key)

    # Small deterministic input: batch=2, NCHW (2, 1, 80, 80) as the module's
    # 6400-feature flatten implies (80x80x1 Pong frame).
    x = jax.random.normal(k_x, (2, 1, 80, 80), dtype=jnp.float32)
    w1, b1, w2, b2, w3, b3 = init_params(k_p)

    # Store the big layer-1 weight in bf16 ONCE (outside the forward) so the
    # kernel streams half the bytes every call.
    w1_bf16 = w1.astype(jnp.bfloat16)

    out = policy_gradient_forward(x, w1_bf16, b1, w2, b2, w3, b3)
    out = jax.block_until_ready(out)

    # Tight check against a reference using the same bf16 layer-1 precision.
    ref_bf16 = reference_forward(x, w1_bf16.astype(jnp.float32), b1, w2, b2, w3,
                                 b3, cast_x_bf16=True)
    np.testing.assert_allclose(np.asarray(out), np.asarray(ref_bf16),
                               rtol=1e-3, atol=1e-3)

    # Loose sanity check against the exact f32 torch-equivalent forward
    # (bf16 weight storage shifts numerics slightly).
    ref_f32 = reference_forward(x, w1, b1, w2, b2, w3, b3)
    np.testing.assert_allclose(np.asarray(out), np.asarray(ref_f32),
                               rtol=2e-2, atol=2e-2)

    assert out.shape == (2, 1) and out.dtype == jnp.float32
    print("KERNEL_OK")
</pallas_src>

<mosaic_0001>
module attributes {stable_mosaic.version = 11 : i64} {
  func.func @pg_kernel(%arg0: i32, %arg1: memref<2x6400xf32, #tpu.memory_space<vmem>>, %arg2: memref<6400x256xbf16, #tpu.memory_space<vmem>>, %arg3: memref<1x256xf32, #tpu.memory_space<vmem>>, %arg4: memref<256x256xf32, #tpu.memory_space<vmem>>, %arg5: memref<1x256xf32, #tpu.memory_space<vmem>>, %arg6: memref<256x1xf32, #tpu.memory_space<vmem>>, %arg7: memref<1x1xf32, #tpu.memory_space<vmem>>, %arg8: memref<2x1xf32, #tpu.memory_space<vmem>>) attributes {dimension_semantics = [#tpu.dimension_semantics<arbitrary>], iteration_bounds = array<i64: 1>, scalar_prefetch = 0 : i64, scratch_operands = 0 : i64, tpu.core_type = #tpu.core_type<tc>, window_params = [{pipeline_mode = #tpu.pipeline_mode<synchronous>, transform_indices = @transform_0, window_bounds = array<i64: 2, 6400>}, {pipeline_mode = #tpu.pipeline_mode<synchronous>, transform_indices = @transform_1, window_bounds = array<i64: 6400, 256>}, {pipeline_mode = #tpu.pipeline_mode<synchronous>, transform_indices = @transform_2, window_bounds = array<i64: 1, 256>}, {pipeline_mode = #tpu.pipeline_mode<synchronous>, transform_indices = @transform_3, window_bounds = array<i64: 256, 256>}, {pipeline_mode = #tpu.pipeline_mode<synchronous>, transform_indices = @transform_4, window_bounds = array<i64: 1, 256>}, {pipeline_mode = #tpu.pipeline_mode<synchronous>, transform_indices = @transform_5, window_bounds = array<i64: 256, 1>}, {pipeline_mode = #tpu.pipeline_mode<synchronous>, transform_indices = @transform_6, window_bounds = array<i64: 1, 1>}, {pipeline_mode = #tpu.pipeline_mode<synchronous>, transform_indices = @transform_7, window_bounds = array<i64: 2, 1>}]} {
    %c0 = arith.constant 0 : index
    %c0_0 = arith.constant 0 : index
    %0 = vector.load %arg1[%c0, %c0_0] : memref<2x6400xf32, #tpu.memory_space<vmem>>, vector<2x6400xf32>
    %1 = arith.truncf %0 : vector<2x6400xf32> to vector<2x6400xbf16>
    %c0_1 = arith.constant 0 : index
    %c0_2 = arith.constant 0 : index
    %2 = vector.load %arg2[%c0_1, %c0_2] : memref<6400x256xbf16, #tpu.memory_space<vmem>>, vector<6400x256xbf16>
    %cst = arith.constant dense<0.000000e+00> : vector<2x256xf32>
    %3 = tpu.matmul %1, %2, %cst {dimension_numbers = #tpu.dot_dimension_numbers<[1], [0], [0], [1], [0, 0, 1, 1], [], []>} : vector<2x6400xbf16>, vector<6400x256xbf16>, vector<2x256xf32> -> vector<2x256xf32>
    %c0_3 = arith.constant 0 : index
    %c0_4 = arith.constant 0 : index
    %4 = vector.load %arg3[%c0_3, %c0_4] : memref<1x256xf32, #tpu.memory_space<vmem>>, vector<1x256xf32>
    %5 = vector.broadcast %4 : vector<1x256xf32> to vector<2x256xf32>
    %6 = arith.addf %3, %5 : vector<2x256xf32>
    %cst_5 = arith.constant 0.000000e+00 : f32
    %7 = vector.broadcast %cst_5 : f32 to vector<2x256xf32>
    %8 = arith.maximumf %6, %7 : vector<2x256xf32>
    %c0_6 = arith.constant 0 : index
    %c0_7 = arith.constant 0 : index
    %9 = vector.load %arg4[%c0_6, %c0_7] : memref<256x256xf32, #tpu.memory_space<vmem>>, vector<256x256xf32>
    %cst_8 = arith.constant dense<0.000000e+00> : vector<2x256xf32>
    %10 = tpu.matmul %8, %9, %cst_8 {dimension_numbers = #tpu.dot_dimension_numbers<[1], [0], [0], [1], [0, 0, 1, 1], [], []>} : vector<2x256xf32>, vector<256x256xf32>, vector<2x256xf32> -> vector<2x256xf32>
    %c0_9 = arith.constant 0 : index
    %c0_10 = arith.constant 0 : index
    %11 = vector.load %arg5[%c0_9, %c0_10] : memref<1x256xf32, #tpu.memory_space<vmem>>, vector<1x256xf32>
    %12 = vector.broadcast %11 : vector<1x256xf32> to vector<2x256xf32>
    %13 = arith.addf %10, %12 : vector<2x256xf32>
    %cst_11 = arith.constant 0.000000e+00 : f32
    %14 = vector.broadcast %cst_11 : f32 to vector<2x256xf32>
    %15 = arith.maximumf %13, %14 : vector<2x256xf32>
    %c0_12 = arith.constant 0 : index
    %c0_13 = arith.constant 0 : index
    %16 = vector.load %arg6[%c0_12, %c0_13] : memref<256x1xf32, #tpu.memory_space<vmem>>, vector<256x1xf32>
    %cst_14 = arith.constant dense<0.000000e+00> : vector<2x1xf32>
    %17 = tpu.matmul %15, %16, %cst_14 {dimension_numbers = #tpu.dot_dimension_numbers<[1], [0], [0], [1], [0, 0, 1, 1], [], []>} : vector<2x256xf32>, vector<256x1xf32>, vector<2x1xf32> -> vector<2x1xf32>
    %c0_15 = arith.constant 0 : index
    %c0_16 = arith.constant 0 : index
    %18 = vector.load %arg7[%c0_15, %c0_16] : memref<1x1xf32, #tpu.memory_space<vmem>>, vector<1x1xf32>
    %19 = vector.broadcast %18 : vector<1x1xf32> to vector<2x1xf32>
    %20 = arith.addf %17, %19 : vector<2x1xf32>
    %cst_17 = arith.constant 0.000000e+00 : f32
    %21 = vector.broadcast %cst_17 : f32 to vector<2x1xf32>
    %22 = arith.subf %21, %20 : vector<2x1xf32>
    %23 = math.exp %22 : vector<2x1xf32>
    %cst_18 = arith.constant 1.000000e+00 : f32
    %24 = vector.broadcast %cst_18 : f32 to vector<2x1xf32>
    %25 = arith.addf %24, %23 : vector<2x1xf32>
    %cst_19 = arith.constant 1.000000e+00 : f32
    %26 = vector.broadcast %cst_19 : f32 to vector<2x1xf32>
    %27 = arith.divf %26, %25 : vector<2x1xf32>
    %c0_20 = arith.constant 0 : index
    %c0_21 = arith.constant 0 : index
    %28 = vector.load %arg8[%c0_20, %c0_21] : memref<2x1xf32, #tpu.memory_space<vmem>>, vector<2x1xf32>
    tpu.vector_store %arg8[%c0_20, %c0_21], %27 {strides = array<i32>} : memref<2x1xf32, #tpu.memory_space<vmem>>, vector<2x1xf32>,
    return
  }
  func.func @transform_0(%arg0: i32) -> (i32, i32) {
    %c0_i32 = arith.constant 0 : i32
    %c0_i32_0 = arith.constant 0 : i32
    %c0_i32_1 = arith.constant 0 : i32
    return %c0_i32, %c0_i32_0 : i32, i32
  }
  func.func @transform_1(%arg0: i32) -> (i32, i32) {
    %c0_i32 = arith.constant 0 : i32
    %c0_i32_0 = arith.constant 0 : i32
    %c0_i32_1 = arith.constant 0 : i32
    return %c0_i32, %c0_i32_0 : i32, i32
  }
  func.func @transform_2(%arg0: i32) -> (i32, i32) {
    %c0_i32 = arith.constant 0 : i32
    %c0_i32_0 = arith.constant 0 : i32
    %c0_i32_1 = arith.constant 0 : i32
    return %c0_i32, %c0_i32_0 : i32, i32
  }
  func.func @transform_3(%arg0: i32) -> (i32, i32) {
    %c0_i32 = arith.constant 0 : i32
    %c0_i32_0 = arith.constant 0 : i32
    %c0_i32_1 = arith.constant 0 : i32
    return %c0_i32, %c0_i32_0 : i32, i32
  }
  func.func @transform_4(%arg0: i32) -> (i32, i32) {
    %c0_i32 = arith.constant 0 : i32
    %c0_i32_0 = arith.constant 0 : i32
    %c0_i32_1 = arith.constant 0 : i32
    return %c0_i32, %c0_i32_0 : i32, i32
  }
  func.func @transform_5(%arg0: i32) -> (i32, i32) {
    %c0_i32 = arith.constant 0 : i32
    %c0_i32_0 = arith.constant 0 : i32
    %c0_i32_1 = arith.constant 0 : i32
    return %c0_i32, %c0_i32_0 : i32, i32
  }
  func.func @transform_6(%arg0: i32) -> (i32, i32) {
    %c0_i32 = arith.constant 0 : i32
    %c0_i32_0 = arith.constant 0 : i32
    %c0_i32_1 = arith.constant 0 : i32
    return %c0_i32, %c0_i32_0 : i32, i32
  }
  func.func @transform_7(%arg0: i32) -> (i32, i32) {
    %c0_i32 = arith.constant 0 : i32
    %c0_i32_0 = arith.constant 0 : i32
    %c0_i32_1 = arith.constant 0 : i32
    return %c0_i32, %c0_i32_0 : i32, i32
  }
}

</mosaic_0001>

<bundles_post_ra>
// kernel: policy_gradient_forward.1
= control target key start
LH: loop header
LB: loop body
LE: loop exit
PB: predicated region body
PF: predicated region fallthrough
CT: control target
= control target key end

     0   :  { %s11239_s0 = inlined_call_operand.vmem [shape: f32[2,6400], index: 0, kind: input, shape index: {}]   ;;  %s11240_s1 = inlined_call_operand.hbm [shape: bf16[6400,256], index: 1, kind: input, shape index: {}]   ;;  %s11241_s2 = inlined_call_operand.hbm [shape: f32[1,256], index: 2, kind: input, shape index: {}]   ;;  %s11242_s3 = inlined_call_operand.hbm [shape: f32[256,256], index: 3, kind: input, shape index: {}]   ;;  %s11243_s4 = inlined_call_operand.hbm [shape: f32[1,256], index: 4, kind: input, shape index: {}]   ;;  %s11244_s5 = inlined_call_operand.vmem [shape: f32[256,1], index: 5, kind: input, shape index: {}]   ;;  %s11245_s6 = inlined_call_operand.<no memory space> [shape: f32[1,1], index: 6, kind: input, shape index: {}]   ;;  %s11246_s7 = inlined_call_operand.vmem [shape: f32[2,1], index: 7, kind: output, shape index: {}]  }
   0x1   :  { %v12_v0 = vstv %s11245_s6 }
   0x2   :  { %13 = vst [vmem:[#allocation2] sm:$0x1] %v12_v0 }
   0x3   :  { %14 = vsyncpa [#allocation4], 0 }
   0x4   :  { %15 = vsyncpa [#allocation6], 0  ;;  %s37_s28 = sshll.u32 %s11241_s2, 4  ;;  %s38_s28 = int_to_ptr.hbm [resolvable:$true] %s37_s28 }
   0x5   :  { %16 = vsyncpa [#allocation9], 0  ;;  %s10757_s29 = smov [#allocation5]   ;;  %s23_s10 = sshll.u32 %s11240_s1, 4  ;;  %s24_s10 = int_to_ptr.hbm [resolvable:$true] %s23_s10 }
   0x6   :  { %s39_s30 = sshll.u32 %s10757_s29, 4  ;;  %s10758_s11 = smov [#allocation3]   ;;  %s40_s30 = int_to_ptr.vmem [resolvable:$true] %s39_s30 }
   0x7   :  { %42 = dma.hbm_to_vmem [thread:$0]  %s38_s28, 32, %s40_s30, [#allocation6]  }
   0x8   :  { %s25_s6 = sshll.u32 %s10758_s11, 4  ;;  %s10759_s12 = smov 128   ;;  %s26_s6 = int_to_ptr.vmem [resolvable:$true] %s25_s6 }
   0x9   :  { %s10760_s13 = smov 8   ;;  %s47_s2 = sshll.u32 %s11242_s3, 4  ;;  %s48_s2 = int_to_ptr.hbm [resolvable:$true] %s47_s2 }
   0xa   :  { %31 = dma.hbm_to_vmem [thread:$0]  %s24_s10, 102400, %s26_s6, [#allocation4], %s10759_s12, %s10759_s12, %s10760_s13  }
   0xb   :  { %s10761_s16 = smov [#allocation7]   ;;  %s61_s1 = sshll.u32 %s11243_s4, 4  ;;  %s62_s1 = int_to_ptr.hbm [resolvable:$true] %s61_s1 }
   0xc   :  { %s49_s17 = sshll.u32 %s10761_s16, 4  ;;  %s10762_s20 = smov 256   ;;  %s50_s17 = int_to_ptr.vmem [resolvable:$true] %s49_s17 }
   0xd   :  { %s10763_s21 = smov 16   ;;  %s10764_s22 = smov [#allocation8]  }
   0xe   :  { %55 = dma.hbm_to_vmem [thread:$0]  %s48_s2, 8192, %s50_s17, [#allocation6], %s10762_s20, %s10762_s20, %s10763_s21  }
   0xf   :  { %s63_s23 = sshll.u32 %s10764_s22, 4  ;;  %s64_s23 = int_to_ptr.vmem [resolvable:$true] %s63_s23 }
  0x10   :  { %66 = dma.hbm_to_vmem [thread:$0]  %s62_s1, 32, %s64_s23, [#allocation9]  }
  0x11   :  { %10751 = dma.done.wait [#allocation4], 102400  }
  0x12   :  { %10752 = vsyncadd [#allocation4], 4294864896 }
  0x13   :  { %10753 = dma.done.wait [#allocation6], 8224  }
  0x14   :  { %10754 = vsyncadd [#allocation6], 4294959072 }
  0x15   :  { %10755 = dma.done.wait [#allocation9], 32  }
  0x16   :  { %10756 = vsyncadd [#allocation9], 4294967264  ;;  %v6699_v1 = vld [vmem:[#allocation3 + $0x70] sm:$0xf]  ;;  %v9856_v2 = vld [vmem:[#allocation3 + $0x74] sm:$0xf0] }
  0x17   :  { %v6763_v3 = vld [vmem:[#allocation3 + $0xf0] sm:$0xf]  ;;  %v6700_v4 = vor.u32 %v9856_v2, %v6699_v1  ;;  %v9872_v5 = vld [vmem:[#allocation3 + $0xf4] sm:$0xf0]  ;;  %v6691_v12 = vld [vmem:[#allocation3 + $0x60] sm:$0xf] }
  0x18   :  { %v6827_v6 = vld [vmem:[#allocation3 + $0x170] sm:$0xf]  ;;  %v9888_v7 = vld [vmem:[#allocation3 + $0x174] sm:$0xf0]  ;;  %v6764_v8 = vor.u32 %v9872_v5, %v6763_v3  ;;  %v9854_v14 = vld [vmem:[#allocation3 + $0x64] sm:$0xf0] }
  0x19   :  { %v6828_v9 = vor.u32 %v9888_v7, %v6827_v6  ;;  %v6891_v10 = vld [vmem:[#allocation3 + $0x1f0] sm:$0xf]  ;;  %v9904_v11 = vld [vmem:[#allocation3 + $0x1f4] sm:$0xf0]  ;;  %5083 = vmatpush.bf16.msra.mxu0 %v6700_v4  ;;  %v6755_v15 = vld [vmem:[#allocation3 + $0xe0] sm:$0xf]  ;;  %v6692_v17 = vor.u32 %v9854_v14, %v6691_v12 }
  0x1a   :  { %v6892_v13 = vor.u32 %v9904_v11, %v6891_v10  ;;  %v9870_v16 = vld [vmem:[#allocation3 + $0xe4] sm:$0xf0]  ;;  %5096 = vmatpush.bf16.msra.mxu1 %v6764_v8  ;;  %v6819_v19 = vld [vmem:[#allocation3 + $0x160] sm:$0xf]  ;;  %v6683_v24 = vld [vmem:[#allocation3 + $0x50] sm:$0xf] }
  0x1b   :  { %5109 = vmatpush.bf16.msra.mxu2 %v6828_v9  ;;  %v6756_v18 = vor.u32 %v9870_v16, %v6755_v15  ;;  %v9886_v20 = vld [vmem:[#allocation3 + $0x164] sm:$0xf0]  ;;  %v6883_v21 = vld [vmem:[#allocation3 + $0x1e0] sm:$0xf]  ;;  %v9852_v25 = vld [vmem:[#allocation3 + $0x54] sm:$0xf0] }
  0x1c   :  { %5122 = vmatpush.bf16.msra.mxu3 %v6892_v13  ;;  %v6820_v22 = vor.u32 %v9886_v20, %v6819_v19  ;;  %v9902_v23 = vld [vmem:[#allocation3 + $0x1e4] sm:$0xf0]  ;;  %v6747_v27 = vld [vmem:[#allocation3 + $0xd0] sm:$0xf]  ;;  %v9868_v28 = vld [vmem:[#allocation3 + $0xd4] sm:$0xf0]  ;;  %v6684_v30 = vor.u32 %v9852_v25, %v6683_v24 }
  0x1d   :  { %v6884_v26 = vor.u32 %v9902_v23, %v6883_v21  ;;  %v6811_v29 = vld [vmem:[#allocation3 + $0x150] sm:$0xf]  ;;  %5084 = vmatpush.bf16.msra.mxu0 %v6692_v17  ;;  %v9884_v31 = vld [vmem:[#allocation3 + $0x154] sm:$0xf0]  ;;  %v6748_v34 = vor.u32 %v9868_v28, %v6747_v27  ;;  %v6675_v36 = vld [vmem:[#allocation3 + $0x40] sm:$0xf] }
  0x1e   :  { %v6875_v32 = vld [vmem:[#allocation3 + $0x1d0] sm:$0xf]  ;;  %v9900_v33 = vld [vmem:[#allocation3 + $0x1d4] sm:$0xf0]  ;;  %5097 = vmatpush.bf16.msra.mxu1 %v6756_v18  ;;  %v6812_v35 = vor.u32 %v9884_v31, %v6811_v29  ;;  %v9850_v37 = vld [vmem:[#allocation3 + $0x44] sm:$0xf0] }
  0x1f   :  { %5110 = vmatpush.bf16.msra.mxu2 %v6820_v22  ;;  %v6739_v38 = vld [vmem:[#allocation3 + $0xc0] sm:$0xf]  ;;  %v6876_v39 = vor.u32 %v9900_v33, %v6875_v32  ;;  %v9866_v40 = vld [vmem:[#allocation3 + $0xc4] sm:$0xf0]  ;;  %v6676_v45 = vor.u32 %v9850_v37, %v6675_v36  ;;  %v6667_v48 = vld [vmem:[#allocation3 + $0x30] sm:$0xf] }
  0x20   :  { %5123 = vmatpush.bf16.msra.mxu3 %v6884_v26  ;;  %v6803_v41 = vld [vmem:[#allocation3 + $0x140] sm:$0xf]  ;;  %v9882_v42 = vld [vmem:[#allocation3 + $0x144] sm:$0xf0]  ;;  %v6740_v46 = vor.u32 %v9866_v40, %v6739_v38  ;;  %v9848_v49 = vld [vmem:[#allocation3 + $0x34] sm:$0xf0] }
  0x21   :  { %v6867_v43 = vld [vmem:[#allocation3 + $0x1c0] sm:$0xf]  ;;  %v9898_v44 = vld [vmem:[#allocation3 + $0x1c4] sm:$0xf0]  ;;  %5085 = vmatpush.bf16.msra.mxu0 %v6684_v30  ;;  %v6804_v47 = vor.u32 %v9882_v42, %v6803_v41  ;;  %v6731_v50 = vld [vmem:[#allocation3 + $0xb0] sm:$0xf]  ;;  %v6668_v57 = vor.u32 %v9848_v49, %v6667_v48 }
  0x22   :  { %5098 = vmatpush.bf16.msra.mxu1 %v6748_v34  ;;  %v6868_v51 = vor.u32 %v9898_v44, %v6867_v43  ;;  %v9864_v52 = vld [vmem:[#allocation3 + $0xb4] sm:$0xf0]  ;;  %v6795_v53 = vld [vmem:[#allocation3 + $0x130] sm:$0xf]  ;;  %v6659_v60 = vld [vmem:[#allocation3 + $0x20] sm:$0xf] }
  0x23   :  { %5111 = vmatpush.bf16.msra.mxu2 %v6812_v35  ;;  %v9880_v54 = vld [vmem:[#allocation3 + $0x134] sm:$0xf0]  ;;  %v6859_v55 = vld [vmem:[#allocation3 + $0x1b0] sm:$0xf]  ;;  %v6732_v58 = vor.u32 %v9864_v52, %v6731_v50  ;;  %v9846_v61 = vld [vmem:[#allocation3 + $0x24] sm:$0xf0] }
  0x24   :  { %5124 = vmatpush.bf16.msra.mxu3 %v6876_v39  ;;  %v9896_v56 = vld [vmem:[#allocation3 + $0x1b4] sm:$0xf0]  ;;  %v6796_v59 = vor.u32 %v9880_v54, %v6795_v53  ;;  %v6723_v62 = vld [vmem:[#allocation3 + $0xa0] sm:$0xf]  ;;  %v9862_v0 = vld [vmem:[#allocation3 + $0xa4] sm:$0xf0]  ;;  %v6660_v5 = vor.u32 %v9846_v61, %v6659_v60 }
  0x25   :  { %5086 = vmatpush.bf16.msra.mxu0 %v6676_v45  ;;  %v6860_v63 = vor.u32 %v9896_v56, %v6859_v55  ;;  %v6787_v1 = vld [vmem:[#allocation3 + $0x120] sm:$0xf]  ;;  %v9878_v2 = vld [vmem:[#allocation3 + $0x124] sm:$0xf0]  ;;  %v6724_v6 = vor.u32 %v9862_v0, %v6723_v62  ;;  %v6651_v8 = vld [vmem:[#allocation3 + $0x10] sm:$0xf] }
  0x26   :  { %5099 = vmatpush.bf16.msra.mxu1 %v6740_v46  ;;  %v6851_v3 = vld [vmem:[#allocation3 + $0x1a0] sm:$0xf]  ;;  %v9894_v4 = vld [vmem:[#allocation3 + $0x1a4] sm:$0xf0]  ;;  %v6788_v7 = vor.u32 %v9878_v2, %v6787_v1  ;;  %v9844_v9 = vld [vmem:[#allocation3 + $0x14] sm:$0xf0] }
  0x27   :  { %5112 = vmatpush.bf16.msra.mxu2 %v6804_v47  ;;  %v6715_v10 = vld [vmem:[#allocation3 + $0x90] sm:$0xf]  ;;  %v6852_v11 = vor.u32 %v9894_v4, %v6851_v3  ;;  %v9860_v12 = vld [vmem:[#allocation3 + $0x94] sm:$0xf0]  ;;  %v6652_v17 = vor.u32 %v9844_v9, %v6651_v8  ;;  %v6643_v18 = vld [vmem:[#allocation3] sm:$0xf] }
  0x28   :  { %5125 = vmatpush.bf16.msra.mxu3 %v6868_v51  ;;  %v6779_v13 = vld [vmem:[#allocation3 + $0x110] sm:$0xf]  ;;  %v9876_v14 = vld [vmem:[#allocation3 + $0x114] sm:$0xf0]  ;;  %v9842_v19 = vld [vmem:[#allocation3 + $0x4] sm:$0xf0]  ;;  %v6716_v20 = vor.u32 %v9860_v12, %v6715_v10 }
  0x29   :  { %5087 = vmatpush.bf16.msra.mxu0 %v6668_v57  ;;  %v6843_v15 = vld [vmem:[#allocation3 + $0x190] sm:$0xf]  ;;  %v9892_v16 = vld [vmem:[#allocation3 + $0x194] sm:$0xf0]  ;;  %v6780_v21 = vor.u32 %v9876_v14, %v6779_v13  ;;  %v6707_v22 = vld [vmem:[#allocation3 + $0x80] sm:$0xf]  ;;  %v6644_v32 = vor.u32 %v9842_v19, %v6643_v18 }
  0x2a   :  { %5100 = vmatpush.bf16.msra.mxu1 %v6732_v58  ;;  %v9858_v23 = vld [vmem:[#allocation3 + $0x84] sm:$0xf0]  ;;  %v6771_v24 = vld [vmem:[#allocation3 + $0x100] sm:$0xf]  ;;  %v6844_v25 = vor.u32 %v9892_v16, %v6843_v15  ;;  %v6955_v29 = vld [vmem:[#allocation3 + $0x270] sm:$0xf] }
  0x2b   :  { %5113 = vmatpush.bf16.msra.mxu2 %v6796_v59  ;;  %v9874_v26 = vld [vmem:[#allocation3 + $0x104] sm:$0xf0]  ;;  %v6835_v27 = vld [vmem:[#allocation3 + $0x180] sm:$0xf]  ;;  %v9920_v30 = vld [vmem:[#allocation3 + $0x274] sm:$0xf0]  ;;  %v6708_v36 = vor.u32 %v9858_v23, %v6707_v22 }
  0x2c   :  { %5126 = vmatpush.bf16.msra.mxu3 %v6860_v63  ;;  %v9890_v28 = vld [vmem:[#allocation3 + $0x184] sm:$0xf0]  ;;  %v7019_v31 = vld [vmem:[#allocation3 + $0x2f0] sm:$0xf]  ;;  %v9936_v33 = vld [vmem:[#allocation3 + $0x2f4] sm:$0xf0]  ;;  %v6772_v37 = vor.u32 %v9874_v26, %v6771_v24  ;;  %v6956_v41 = vor.u32 %v9920_v30, %v6955_v29 }
  0x2d   :  { %5088 = vmatpush.bf16.msra.mxu0 %v6660_v5  ;;  %v7083_v34 = vld [vmem:[#allocation3 + $0x370] sm:$0xf]  ;;  %v9952_v35 = vld [vmem:[#allocation3 + $0x374] sm:$0xf0]  ;;  %v6836_v40 = vor.u32 %v9890_v28, %v6835_v27  ;;  %v7020_v42 = vor.u32 %v9936_v33, %v7019_v31  ;;  %v6947_v44 = vld [vmem:[#allocation3 + $0x260] sm:$0xf] }
  0x2e   :  { %5101 = vmatpush.bf16.msra.mxu1 %v6724_v6  ;;  %v7147_v38 = vld [vmem:[#allocation3 + $0x3f0] sm:$0xf]  ;;  %v9968_v39 = vld [vmem:[#allocation3 + $0x3f4] sm:$0xf0]  ;;  %v7084_v43 = vor.u32 %v9952_v35, %v7083_v34  ;;  %v9918_v45 = vld [vmem:[#allocation3 + $0x264] sm:$0xf0] }
  0x2f   :  { %5114 = vmatpush.bf16.msra.mxu2 %v6788_v7  ;;  %v7011_v46 = vld [vmem:[#allocation3 + $0x2e0] sm:$0xf]  ;;  %v7148_v47 = vor.u32 %v9968_v39, %v7147_v38  ;;  %v9934_v48 = vld [vmem:[#allocation3 + $0x2e4] sm:$0xf0]  ;;  %v6948_v53 = vor.u32 %v9918_v45, %v6947_v44  ;;  %v6939_v56 = vld [vmem:[#allocation3 + $0x250] sm:$0xf] }
  0x30   :  { %5127 = vmatpush.bf16.msra.mxu3 %v6852_v11  ;;  %v7075_v49 = vld [vmem:[#allocation3 + $0x360] sm:$0xf]  ;;  %v9950_v50 = vld [vmem:[#allocation3 + $0x364] sm:$0xf0]  ;;  %v7012_v54 = vor.u32 %v9934_v48, %v7011_v46  ;;  %v9916_v57 = vld [vmem:[#allocation3 + $0x254] sm:$0xf0] }
  0x31   :  { %5089 = vmatpush.bf16.msra.mxu0 %v6652_v17  ;;  %v7139_v51 = vld [vmem:[#allocation3 + $0x3e0] sm:$0xf]  ;;  %v9966_v52 = vld [vmem:[#allocation3 + $0x3e4] sm:$0xf0]  ;;  %v7076_v55 = vor.u32 %v9950_v50, %v7075_v49  ;;  %v7003_v58 = vld [vmem:[#allocation3 + $0x2d0] sm:$0xf]  ;;  %v6940_v1 = vor.u32 %v9916_v57, %v6939_v56 }
  0x32   :  { %5102 = vmatpush.bf16.msra.mxu1 %v6716_v20  ;;  %v7140_v59 = vor.u32 %v9966_v52, %v7139_v51  ;;  %v9932_v60 = vld [vmem:[#allocation3 + $0x2d4] sm:$0xf0]  ;;  %v7067_v61 = vld [vmem:[#allocation3 + $0x350] sm:$0xf]  ;;  %v6931_v2 = vld [vmem:[#allocation3 + $0x240] sm:$0xf] }
  0x33   :  { %5115 = vmatpush.bf16.msra.mxu2 %v6780_v21  ;;  %v9948_v62 = vld [vmem:[#allocation3 + $0x354] sm:$0xf0]  ;;  %v7131_v63 = vld [vmem:[#allocation3 + $0x3d0] sm:$0xf]  ;;  %v7004_v4 = vor.u32 %v9932_v60, %v7003_v58  ;;  %v9914_v6 = vld [vmem:[#allocation3 + $0x244] sm:$0xf0] }
  0x34   :  { %5128 = vmatpush.bf16.msra.mxu3 %v6844_v25  ;;  %v9964_v0 = vld [vmem:[#allocation3 + $0x3d4] sm:$0xf0]  ;;  %v7068_v5 = vor.u32 %v9948_v62, %v7067_v61  ;;  %v6995_v7 = vld [vmem:[#allocation3 + $0x2c0] sm:$0xf]  ;;  %v9930_v9 = vld [vmem:[#allocation3 + $0x2c4] sm:$0xf0]  ;;  %v6932_v14 = vor.u32 %v9914_v6, %v6931_v2 }
  0x35   :  { %5090 = vmatpush.bf16.msra.mxu0 %v6644_v32  ;;  %v87_v3 = vld [vmem:[%s11239_s0] sm:$0xff]  ;;  %v7132_v8 = vor.u32 %v9964_v0, %v7131_v63  ;;  %v7059_v10 = vld [vmem:[#allocation3 + $0x340] sm:$0xf]  ;;  %v9946_v11 = vld [vmem:[#allocation3 + $0x344] sm:$0xf0]  ;;  %v6996_v17 = vor.u32 %v9930_v9, %v6995_v7  ;;  %vm6632_vm3 = vcmask 1024  }
  0x36   :  { %5103 = vmatpush.bf16.msra.mxu1 %v6708_v36  ;;  %113 = vst [vmem:[#allocation1] ss:$4 sm:$0xff] %v87_v3  ;;  %v7123_v12 = vld [vmem:[#allocation3 + $0x3c0] sm:$0xf]  ;;  %v9962_v13 = vld [vmem:[#allocation3 + $0x3c4] sm:$0xf0]  ;;  %v7060_v18 = vor.u32 %v9946_v11, %v7059_v10 }
  0x37   :  { %5116 = vmatpush.bf16.msra.mxu2 %v6772_v37  ;;  %v6923_v15 = vld [vmem:[#allocation3 + $0x230] sm:$0xf]  ;;  %v9912_v16 = vld [vmem:[#allocation3 + $0x234] sm:$0xf0]  ;;  %v7124_v22 = vor.u32 %v9962_v13, %v7123_v12  ;;  %v6915_v26 = vld [vmem:[#allocation3 + $0x220] sm:$0xf] }
  0x38   :  { %5129 = vmatpush.bf16.msra.mxu3 %v6836_v40  ;;  %v6987_v19 = vld [vmem:[#allocation3 + $0x2b0] sm:$0xf]  ;;  %v9928_v20 = vld [vmem:[#allocation3 + $0x2b4] sm:$0xf0]  ;;  %v9910_v27 = vld [vmem:[#allocation3 + $0x224] sm:$0xf0]  ;;  %v6924_v29 = vor.u32 %v9912_v16, %v6923_v15 }
  0x39   :  { %5135 = vmatpush.bf16.msrb.mxu0 %v6956_v41  ;;  %v7051_v21 = vld [vmem:[#allocation3 + $0x330] sm:$0xf]  ;;  %v9944_v23 = vld [vmem:[#allocation3 + $0x334] sm:$0xf0]  ;;  %v89_v28 = vld [vmem:[%s11239_s0 + $0x10] sm:$0xff]  ;;  %v6988_v30 = vor.u32 %v9928_v20, %v6987_v19 }
  0x3a   :  { %5148 = vmatpush.bf16.msrb.mxu1 %v7020_v42  ;;  %v7115_v24 = vld [vmem:[#allocation3 + $0x3b0] sm:$0xf]  ;;  %v9960_v25 = vld [vmem:[#allocation3 + $0x3b4] sm:$0xf0]  ;;  %v6979_v31 = vld [vmem:[#allocation3 + $0x2a0] sm:$0xf]  ;;  %v7052_v35 = vor.u32 %v9944_v23, %v7051_v21 }
  0x3b   :  { %5161 = vmatpush.bf16.msrb.mxu2 %v7084_v43  ;;  %v9926_v32 = vld [vmem:[#allocation3 + $0x2a4] sm:$0xf0]  ;;  %v7116_v40 = vor.u32 %v9960_v25, %v7115_v24  ;;  %v7043_v41 = vld [vmem:[#allocation3 + $0x320] sm:$0xf]  ;;  %v6907_v48 = vld [vmem:[#allocation3 + $0x210] sm:$0xf] }
  0x3c   :  { %5174 = vmatpush.bf16.msrb.mxu3 %v7148_v47  ;;  %v9942_v42 = vld [vmem:[#allocation3 + $0x324] sm:$0xf0]  ;;  %v7107_v45 = vld [vmem:[#allocation3 + $0x3a0] sm:$0xf]  ;;  %v6916_v47 = vor.u32 %v9910_v27, %v6915_v26  ;;  %v9908_v49 = vld [vmem:[#allocation3 + $0x214] sm:$0xf0]  ;;  %v6980_v50 = vor.u32 %v9926_v32, %v6979_v31 }
  0x3d   :  { %5136 = vmatpush.bf16.msrb.mxu0 %v6948_v53  ;;  %v118_v33 = vld.sshfl [vmem:[#allocation1 + $0x10] sm:$0xff pattern:$0x73625140]  ;;  %v116_v34 = vld.sshfl [vmem:[#allocation1] sm:$0xff pattern:$0x73625140]  ;;  %v7044_v51 = vor.u32 %v9942_v42, %v7043_v41  ;;  %v6908_v61 = vor.u32 %v9908_v49, %v6907_v48 }
  0x3e   :  { %5149 = vmatpush.bf16.msrb.mxu1 %v7012_v54  ;;  %v10826_v36 = vpack.c.bf16 %v118_v33, %v118_v33  ;;  %v10828_v37 = vpack.c.bf16 %v116_v34, %v116_v34  ;;  %v119_v38 = vld.sshfl [vmem:[#allocation1 + $0x18] sm:$0xff pattern:$0x73625140]  ;;  %v117_v39 = vld.sshfl [vmem:[#allocation1 + $0x8] sm:$0xff pattern:$0x73625140] }
  0x3f   :  { %5162 = vmatpush.bf16.msrb.mxu2 %v7076_v55  ;;  %v10830_v43 = vpack.c.bf16 %v119_v38, %v119_v38  ;;  %124 = vst [vmem:[#allocation1] ss:$4 sm:$0xff] %v89_v28  ;;  %v10832_v44 = vpack.c.bf16 %v117_v39, %v117_v39  ;;  %v9958_v46 = vld [vmem:[#allocation3 + $0x3a4] sm:$0xf0]  ;;  %v6971_v52 = vld [vmem:[#allocation3 + $0x290] sm:$0xf] }
  0x40   :  { %5175 = vmatpush.bf16.msrb.mxu3 %v7140_v59  ;;  %5117 = vmatmul.bf16.vlgmr.msra.gmra.mxu2 %v10826_v36  ;;  %v9924_v53 = vld [vmem:[#allocation3 + $0x294] sm:$0xf0]  ;;  %v7035_v54 = vld [vmem:[#allocation3 + $0x310] sm:$0xf]  ;;  %v7108_v55 = vor.u32 %v9958_v46, %v7107_v45  ;;  %v88_v58 = vld [vmem:[%s11239_s0 + $0x8] sm:$0xff] }
  0x41   :  { %5137 = vmatpush.bf16.msrb.mxu0 %v6940_v1  ;;  %5130 = vmatmul.bf16.vlgmr.msra.gmra.mxu3 %v10830_v43  ;;  %v9940_v56 = vld [vmem:[#allocation3 + $0x314] sm:$0xf0]  ;;  %v7099_v57 = vld [vmem:[#allocation3 + $0x390] sm:$0xf]  ;;  %v6899_v60 = vld [vmem:[#allocation3 + $0x200] sm:$0xf]  ;;  %v6972_v1 = vor.u32 %v9924_v53, %v6971_v52 }
  0x42   :  { %5150 = vmatpush.bf16.msrb.mxu1 %v7004_v4  ;;  %5091 = vmatmul.bf16.vlgmr.msra.gmra.mxu0 %v10828_v37  ;;  %v9956_v59 = vld [vmem:[#allocation3 + $0x394] sm:$0xf0]  ;;  %115 = vst [vmem:[#allocation1 + $0x20] ss:$4 sm:$0xff] %v88_v58  ;;  %v9906_v62 = vld [vmem:[#allocation3 + $0x204] sm:$0xf0]  ;;  %v7036_v2 = vor.u32 %v9940_v56, %v7035_v54 }
  0x43   :  { %5163 = vmatpush.bf16.msrb.mxu2 %v7068_v5  ;;  %5104 = vmatmul.bf16.vlgmr.msra.gmra.mxu1 %v10832_v44  ;;  %v6963_v63 = vld [vmem:[#allocation3 + $0x280] sm:$0xf]  ;;  %v9922_v0 = vld [vmem:[#allocation3 + $0x284] sm:$0xf0]  ;;  %v7100_v6 = vor.u32 %v9956_v59, %v7099_v57  ;;  %v9984_v9 = vld [vmem:[#allocation3 + $0x474] sm:$0xf0]  ;;  %v6900_v13 = vor.u32 %v9906_v62, %v6899_v60 }
  0x44   :  { %5176 = vmatpush.bf16.msrb.mxu3 %v7132_v8  ;;  %v7027_v3 = vld [vmem:[#allocation3 + $0x300] sm:$0xf]  ;;  %v9938_v4 = vld [vmem:[#allocation3 + $0x304] sm:$0xf0]  ;;  %v7211_v8 = vld [vmem:[#allocation3 + $0x470] sm:$0xf] }
  0x45   :  { %5138 = vmatpush.bf16.msrb.mxu0 %v6932_v14  ;;  %v7091_v5 = vld [vmem:[#allocation3 + $0x380] sm:$0xf]  ;;  %v9954_v7 = vld [vmem:[#allocation3 + $0x384] sm:$0xf0]  ;;  %v7275_v10 = vld [vmem:[#allocation3 + $0x4f0] sm:$0xf]  ;;  %v7212_v23 = vor.u32 %v9984_v9, %v7211_v8 }
  0x46   :  { %5151 = vmatpush.bf16.msrb.mxu1 %v6996_v17  ;;  %v10000_v11 = vld [vmem:[#allocation3 + $0x4f4] sm:$0xf0]  ;;  %v7339_v12 = vld [vmem:[#allocation3 + $0x570] sm:$0xf]  ;;  %v6964_v17 = vor.u32 %v9922_v0, %v6963_v63  ;;  %v7203_v19 = vld [vmem:[#allocation3 + $0x460] sm:$0xf] }
  0x47   :  { %5164 = vmatpush.bf16.msrb.mxu2 %v7060_v18  ;;  %v10016_v14 = vld [vmem:[#allocation3 + $0x574] sm:$0xf0]  ;;  %v7403_v15 = vld [vmem:[#allocation3 + $0x5f0] sm:$0xf]  ;;  %v7028_v18 = vor.u32 %v9938_v4, %v7027_v3  ;;  %v9982_v20 = vld [vmem:[#allocation3 + $0x464] sm:$0xf0]  ;;  %v7276_v28 = vor.u32 %v10000_v11, %v7275_v10 }
  0x48   :  { %5177 = vmatpush.bf16.msrb.mxu3 %v7124_v22  ;;  %v10032_v16 = vld [vmem:[#allocation3 + $0x5f4] sm:$0xf0]  ;;  %v90_v21 = vld [vmem:[%s11239_s0 + $0x18] sm:$0xff]  ;;  %v7092_v22 = vor.u32 %v9954_v7, %v7091_v5  ;;  %v7267_v24 = vld [vmem:[#allocation3 + $0x4e0] sm:$0xf]  ;;  %v7204_v42 = vor.u32 %v9982_v20, %v7203_v19 }
  0x49   :  { %5139 = vmatpush.bf16.msrb.mxu0 %v6924_v29  ;;  %v9998_v25 = vld [vmem:[#allocation3 + $0x4e4] sm:$0xf0]  ;;  %v120_v27 = vld.sshfl [vmem:[#allocation1 + $0x20] sm:$0xff pattern:$0x73625140]  ;;  %v7340_v29 = vor.u32 %v10016_v14, %v7339_v12  ;;  %v7404_v32 = vor.u32 %v10032_v16, %v7403_v15 }
  0x4a   :  { %5152 = vmatpush.bf16.msrb.mxu1 %v6988_v30  ;;  %v122_v26 = vld.sshfl [vmem:[#allocation1 + $0x30] sm:$0xff pattern:$0x73625140]  ;;  %v123_v30 = vld.sshfl [vmem:[#allocation1 + $0x38] sm:$0xff pattern:$0x73625140]  ;;  %v7268_v46 = vor.u32 %v9998_v25, %v7267_v24 }
  0x4b   :  { %5165 = vmatpush.bf16.msrb.mxu2 %v7052_v35  ;;  %v121_v31 = vld.sshfl [vmem:[#allocation1 + $0x28] sm:$0xff pattern:$0x73625140]  ;;  %v10014_v34 = vld [vmem:[#allocation3 + $0x564] sm:$0xf0]  ;;  %v10844_v35 = vpack.c.bf16 %v122_v26, %v122_v26  ;;  %v10848_v41 = vpack.c.bf16 %v123_v30, %v123_v30 }
  0x4c   :  { %5178 = vmatpush.bf16.msrb.mxu3 %v7116_v40  ;;  %v7331_v33 = vld [vmem:[#allocation3 + $0x560] sm:$0xf]  ;;  %125 = vst [vmem:[#allocation1 + $0x20] ss:$4 sm:$0xff] %v90_v21  ;;  %v10030_v39 = vld [vmem:[#allocation3 + $0x5e4] sm:$0xf0]  ;;  %v10846_v40 = vpack.c.bf16 %v120_v27, %v120_v27  ;;  %v10850_v45 = vpack.c.bf16 %v121_v31, %v121_v31 }
  0x4d   :  { %5140 = vmatpush.bf16.msrb.mxu0 %v6916_v47  ;;  %v7395_v38 = vld [vmem:[#allocation3 + $0x5e0] sm:$0xf]  ;;  %v7332_v47 = vor.u32 %v10014_v34, %v7331_v33  ;;  %v7195_v48 = vld [vmem:[#allocation3 + $0x450] sm:$0xf]  ;;  %v9980_v49 = vld [vmem:[#allocation3 + $0x454] sm:$0xf0] }
  0x4e   :  { %5153 = vmatpush.bf16.msrb.mxu1 %v6980_v50  ;;  %v7259_v50 = vld [vmem:[#allocation3 + $0x4d0] sm:$0xf]  ;;  %v9996_v52 = vld [vmem:[#allocation3 + $0x4d4] sm:$0xf0]  ;;  %v7196_v57 = vor.u32 %v9980_v49, %v7195_v48  ;;  %v7187_v60 = vld [vmem:[#allocation3 + $0x440] sm:$0xf] }
  0x4f   :  { %5166 = vmatpush.bf16.msrb.mxu2 %v7044_v51  ;;  %v7396_v51 = vor.u32 %v10030_v39, %v7395_v38  ;;  %v7323_v53 = vld [vmem:[#allocation3 + $0x550] sm:$0xf]  ;;  %v10012_v54 = vld [vmem:[#allocation3 + $0x554] sm:$0xf0]  ;;  %v7260_v58 = vor.u32 %v9996_v52, %v7259_v50  ;;  %v7251_v62 = vld [vmem:[#allocation3 + $0x4c0] sm:$0xf] }
  0x50   :  { %5179 = vmatpush.bf16.msrb.mxu3 %v7108_v55  ;;  %v7387_v55 = vld [vmem:[#allocation3 + $0x5d0] sm:$0xf]  ;;  %v10028_v56 = vld [vmem:[#allocation3 + $0x5d4] sm:$0xf0]  ;;  %v7324_v59 = vor.u32 %v10012_v54, %v7323_v53  ;;  %v9994_v0 = vld [vmem:[#allocation3 + $0x4c4] sm:$0xf0] }
  0x51   :  { %5141 = vmatpush.bf16.msrb.mxu0 %v6908_v61  ;;  %v9978_v61 = vld [vmem:[#allocation3 + $0x444] sm:$0xf0]  ;;  %v7388_v63 = vor.u32 %v10028_v56, %v7387_v55  ;;  %v7379_v3 = vld [vmem:[#allocation3 + $0x5c0] sm:$0xf]  ;;  %v7179_v8 = vld [vmem:[#allocation3 + $0x430] sm:$0xf] }
  0x52   :  { %5154 = vmatpush.bf16.msrb.mxu1 %v6972_v1  ;;  %v7315_v1 = vld [vmem:[#allocation3 + $0x540] sm:$0xf]  ;;  %v10026_v4 = vld [vmem:[#allocation3 + $0x5c4] sm:$0xf0]  ;;  %v7188_v5 = vor.u32 %v9978_v61, %v7187_v60  ;;  %v9976_v9 = vld [vmem:[#allocation3 + $0x434] sm:$0xf0] }
  0x53   :  { %5167 = vmatpush.bf16.msrb.mxu2 %v7036_v2  ;;  %v10010_v2 = vld [vmem:[#allocation3 + $0x544] sm:$0xf0]  ;;  %v7243_v10 = vld [vmem:[#allocation3 + $0x4b0] sm:$0xf]  ;;  %v7380_v11 = vor.u32 %v10026_v4, %v7379_v3  ;;  %v9992_v12 = vld [vmem:[#allocation3 + $0x4b4] sm:$0xf0] }
  0x54   :  { %5180 = vmatpush.bf16.msrb.mxu3 %v7100_v6  ;;  %v7252_v6 = vor.u32 %v9994_v0, %v7251_v62  ;;  %v7316_v7 = vor.u32 %v10010_v2, %v7315_v1  ;;  %v10008_v14 = vld [vmem:[#allocation3 + $0x534] sm:$0xf0]  ;;  %v7371_v15 = vld [vmem:[#allocation3 + $0x5b0] sm:$0xf]  ;;  %v7171_v20 = vld [vmem:[#allocation3 + $0x420] sm:$0xf] }
  0x55   :  { %5142 = vmatpush.bf16.msrb.mxu0 %v6900_v13  ;;  %v7307_v13 = vld [vmem:[#allocation3 + $0x530] sm:$0xf]  ;;  %v10024_v16 = vld [vmem:[#allocation3 + $0x5b4] sm:$0xf0]  ;;  %v9974_v21 = vld [vmem:[#allocation3 + $0x424] sm:$0xf0] }
  0x56   :  { %5155 = vmatpush.bf16.msrb.mxu1 %v6964_v17  ;;  %v7180_v17 = vor.u32 %v9976_v9, %v7179_v8  ;;  %v7308_v19 = vor.u32 %v10008_v14, %v7307_v13  ;;  %v9990_v24 = vld [vmem:[#allocation3 + $0x4a4] sm:$0xf0]  ;;  %v7299_v25 = vld [vmem:[#allocation3 + $0x520] sm:$0xf]  ;;  %v9972_v33 = vld [vmem:[#allocation3 + $0x414] sm:$0xf0] }
  0x57   :  { %5168 = vmatpush.bf16.msrb.mxu2 %v7028_v18  ;;  %v7244_v18 = vor.u32 %v9992_v12, %v7243_v10  ;;  %v10006_v26 = vld [vmem:[#allocation3 + $0x524] sm:$0xf0]  ;;  %v7363_v27 = vld [vmem:[#allocation3 + $0x5a0] sm:$0xf]  ;;  %v7227_v34 = vld [vmem:[#allocation3 + $0x490] sm:$0xf] }
  0x58   :  { %5181 = vmatpush.bf16.msrb.mxu3 %v7092_v22  ;;  %5143 = vmatmul.bf16.vlgmr.msrb.gmra.mxu0 %v10846_v40  ;;  %v7235_v22 = vld [vmem:[#allocation3 + $0x4a0] sm:$0xf]  ;;  %v7300_v31 = vor.u32 %v10006_v26, %v7299_v25  ;;  %v9988_v39 = vld [vmem:[#allocation3 + $0x494] sm:$0xf0]  ;;  %v9986_v53 = vld [vmem:[#allocation3 + $0x484] sm:$0xf0] }
  0x59   :  { %5187 = vmatpush.bf16.msra.mxu0 %v7212_v23  ;;  %5156 = vmatmul.bf16.vlgmr.msrb.gmra.mxu1 %v10850_v45  ;;  %v7372_v23 = vor.u32 %v10024_v16, %v7371_v15  ;;  %v7236_v30 = vor.u32 %v9990_v24, %v7235_v22  ;;  %v10020_v48 = vld [vmem:[#allocation3 + $0x594] sm:$0xf0]  ;;  %v7155_v49 = vld [vmem:[#allocation3 + $0x400] sm:$0xf]  ;;  %v7228_v54 = vor.u32 %v9988_v39, %v7227_v34  ;;  %v10018_v60 = vld [vmem:[#allocation3 + $0x584] sm:$0xf0] }
  0x5a   :  { %5200 = vmatpush.bf16.msra.mxu1 %v7276_v28  ;;  %5169 = vmatmul.bf16.vlgmr.msrb.gmra.mxu2 %v10844_v35  ;;  %v10022_v28 = vld [vmem:[#allocation3 + $0x5a4] sm:$0xf0]  ;;  %v7219_v52 = vld [vmem:[#allocation3 + $0x480] sm:$0xf]  ;;  %v7467_v61 = vld [vmem:[#allocation3 + $0x670] sm:$0xf] }
  0x5b   :  { %5213 = vmatpush.bf16.msra.mxu2 %v7340_v29  ;;  %5182 = vmatmul.bf16.vlgmr.msrb.gmra.mxu3 %v10848_v41  ;;  %v7172_v29 = vor.u32 %v9974_v21, %v7171_v20  ;;  %v7364_v38 = vor.u32 %v10022_v28, %v7363_v27  ;;  %v7283_v56 = vld [vmem:[#allocation3 + $0x500] sm:$0xf]  ;;  %v10048_v62 = vld [vmem:[#allocation3 + $0x674] sm:$0xf0]  ;;  %v7595_v1 = vld [vmem:[#allocation3 + $0x770] sm:$0xf] }
  0x5c   :  { %5226 = vmatpush.bf16.msra.mxu3 %v7404_v32  ;;  %v7163_v32 = vld [vmem:[#allocation3 + $0x410] sm:$0xf]  ;;  %v10064_v0 = vld [vmem:[#allocation3 + $0x6f4] sm:$0xf0]  ;;  %v7459_v16 = vld [vmem:[#allocation3 + $0x660] sm:$0xf] }
  0x5d   :  { %5188 = vmatpush.bf16.msra.mxu0 %v7204_v42  ;;  %v7291_v42 = vld [vmem:[#allocation3 + $0x510] sm:$0xf]  ;;  %v7164_v50 = vor.u32 %v9972_v33, %v7163_v32  ;;  %v10080_v3 = vld [vmem:[#allocation3 + $0x774] sm:$0xf0]  ;;  %v10062_v21 = vld [vmem:[#allocation3 + $0x6e4] sm:$0xf0] }
  0x5e   :  { %5201 = vmatpush.bf16.msra.mxu1 %v7268_v46  ;;  %v10004_v46 = vld [vmem:[#allocation3 + $0x514] sm:$0xf0]  ;;  %v7659_v4 = vld [vmem:[#allocation3 + $0x7f0] sm:$0xf]  ;;  %v7596_v15 = vor.u32 %v10080_v3, %v7595_v1  ;;  %v7587_v22 = vld [vmem:[#allocation3 + $0x760] sm:$0xf] }
  0x5f   :  { %5214 = vmatpush.bf16.msra.mxu2 %v7332_v47  ;;  %v7355_v47 = vld [vmem:[#allocation3 + $0x590] sm:$0xf]  ;;  %v7292_v55 = vor.u32 %v10004_v46, %v7291_v42  ;;  %v126_v8 = vld.sshfl [vmem:[#allocation1] sm:$0xff pattern:$0x73625140] }
  0x60   :  { %5227 = vmatpush.bf16.msra.mxu3 %v7396_v51  ;;  %v9970_v51 = vld [vmem:[#allocation3 + $0x404] sm:$0xf0]  ;;  %v127_v12 = vld.sshfl [vmem:[#allocation1 + $0x8] sm:$0xff pattern:$0x73625140]  ;;  %v10856_v20 = vpack.c.bf16 %v126_v8, %v126_v8 }
  0x61   :  { %5189 = vmatpush.bf16.msra.mxu0 %v7196_v57  ;;  %v10002_v57 = vld [vmem:[#allocation3 + $0x504] sm:$0xf0]  ;;  %v7156_v2 = vor.u32 %v9970_v51, %v7155_v49  ;;  %v129_v13 = vld.sshfl [vmem:[#allocation1 + $0x18] sm:$0xff pattern:$0x73625140]  ;;  %v10860_v25 = vpack.c.bf16 %v127_v12, %v127_v12 }
  0x62   :  { %5202 = vmatpush.bf16.msra.mxu1 %v7260_v58  ;;  %v7347_v58 = vld [vmem:[#allocation3 + $0x580] sm:$0xf]  ;;  %v128_v9 = vld.sshfl [vmem:[#allocation1 + $0x10] sm:$0xff pattern:$0x73625140]  ;;  %v10862_v28 = vpack.c.bf16 %v129_v13, %v129_v13 }
  0x63   :  { %5215 = vmatpush.bf16.msra.mxu2 %v7324_v59  ;;  %v7356_v59 = vor.u32 %v10020_v48, %v7355_v47  ;;  %v7348_v10 = vor.u32 %v10018_v60, %v7347_v58  ;;  %v10858_v24 = vpack.c.bf16 %v128_v9, %v128_v9  ;;  %v7651_v26 = vld [vmem:[#allocation3 + $0x7e0] sm:$0xf]  ;;  %v10094_v27 = vld [vmem:[#allocation3 + $0x7e4] sm:$0xf0]  ;;  %v7451_v32 = vld [vmem:[#allocation3 + $0x650] sm:$0xf] }
  0x64   :  { %5228 = vmatpush.bf16.msra.mxu3 %v7388_v63  ;;  %v7531_v63 = vld [vmem:[#allocation3 + $0x6f0] sm:$0xf]  ;;  %v10044_v33 = vld [vmem:[#allocation3 + $0x654] sm:$0xf0]  ;;  %v10074_v58 = vld [vmem:[#allocation3 + $0x744] sm:$0xf0] }
  0x65   :  { %5190 = vmatpush.bf16.msra.mxu0 %v7188_v5  ;;  %v10096_v5 = vld [vmem:[#allocation3 + $0x7f4] sm:$0xf0]  ;;  %v7532_v14 = vor.u32 %v10064_v0, %v7531_v63  ;;  %v7515_v34 = vld [vmem:[#allocation3 + $0x6d0] sm:$0xf]  ;;  %v7452_v49 = vor.u32 %v10044_v33, %v7451_v32  ;;  %v10090_v60 = vld [vmem:[#allocation3 + $0x7c4] sm:$0xf0] }
  0x66   :  { %5203 = vmatpush.bf16.msra.mxu1 %v7252_v6  ;;  %v7220_v6 = vor.u32 %v9986_v53, %v7219_v52  ;;  %v10060_v39 = vld [vmem:[#allocation3 + $0x6d4] sm:$0xf0]  ;;  %v7579_v42 = vld [vmem:[#allocation3 + $0x750] sm:$0xf]  ;;  %v7443_v52 = vld [vmem:[#allocation3 + $0x640] sm:$0xf] }
  0x67   :  { %5216 = vmatpush.bf16.msra.mxu2 %v7316_v7  ;;  %v7284_v7 = vor.u32 %v10002_v57, %v7283_v56  ;;  %v10076_v46 = vld [vmem:[#allocation3 + $0x754] sm:$0xf0]  ;;  %v7643_v47 = vld [vmem:[#allocation3 + $0x7d0] sm:$0xf]  ;;  %v10042_v53 = vld [vmem:[#allocation3 + $0x644] sm:$0xf0] }
  0x68   :  { %5229 = vmatpush.bf16.msra.mxu3 %v7380_v11  ;;  %v7468_v11 = vor.u32 %v10048_v62, %v7467_v61  ;;  %v10092_v48 = vld [vmem:[#allocation3 + $0x7d4] sm:$0xf0]  ;;  %v7580_v51 = vor.u32 %v10076_v46, %v7579_v42  ;;  %v10058_v56 = vld [vmem:[#allocation3 + $0x6c4] sm:$0xf0]  ;;  %v7571_v57 = vld [vmem:[#allocation3 + $0x740] sm:$0xf]  ;;  %v7444_v61 = vor.u32 %v10042_v53, %v7443_v52 }
  0x69   :  { %5191 = vmatpush.bf16.msra.mxu0 %v7180_v17  ;;  %v10046_v17 = vld [vmem:[#allocation3 + $0x664] sm:$0xf0]  ;;  %v7572_v63 = vor.u32 %v10074_v58, %v7571_v57  ;;  %v7435_v0 = vld [vmem:[#allocation3 + $0x630] sm:$0xf]  ;;  %v10040_v1 = vld [vmem:[#allocation3 + $0x634] sm:$0xf0] }
  0x6a   :  { %5204 = vmatpush.bf16.msra.mxu1 %v7244_v18  ;;  %v7523_v18 = vld [vmem:[#allocation3 + $0x6e0] sm:$0xf]  ;;  %v10088_v8 = vld [vmem:[#allocation3 + $0x7b4] sm:$0xf0]  ;;  %v7436_v9 = vor.u32 %v10040_v1, %v7435_v0  ;;  %v10038_v13 = vld [vmem:[#allocation3 + $0x624] sm:$0xf0] }
  0x6b   :  { %5217 = vmatpush.bf16.msra.mxu2 %v7308_v19  ;;  %v7660_v19 = vor.u32 %v10096_v5, %v7659_v4  ;;  %v10056_v4 = vld [vmem:[#allocation3 + $0x6b4] sm:$0xf0]  ;;  %v7563_v5 = vld [vmem:[#allocation3 + $0x730] sm:$0xf]  ;;  %v7427_v12 = vld [vmem:[#allocation3 + $0x620] sm:$0xf] }
  0x6c   :  { %5230 = vmatpush.bf16.msra.mxu3 %v7372_v23  ;;  %v10078_v23 = vld [vmem:[#allocation3 + $0x764] sm:$0xf0]  ;;  %v7547_v32 = vld [vmem:[#allocation3 + $0x710] sm:$0xf]  ;;  %v7411_v42 = vld [vmem:[#allocation3 + $0x600] sm:$0xf] }
  0x6d   :  { %5192 = vmatpush.bf16.msra.mxu0 %v7172_v29  ;;  %v7460_v29 = vor.u32 %v10046_v17, %v7459_v16  ;;  %v10054_v16 = vld [vmem:[#allocation3 + $0x6a4] sm:$0xf0]  ;;  %v7555_v17 = vld [vmem:[#allocation3 + $0x720] sm:$0xf]  ;;  %v10112_v58 = vld [vmem:[#allocation3 + $0x874] sm:$0xf0] }
  0x6e   :  { %5205 = vmatpush.bf16.msra.mxu1 %v7236_v30  ;;  %v7524_v30 = vor.u32 %v10062_v21, %v7523_v18  ;;  %v10070_v18 = vld [vmem:[#allocation3 + $0x724] sm:$0xf0]  ;;  %v7915_v1 = vld [vmem:[#allocation3 + $0x9f0] sm:$0xf] }
  0x6f   :  { %5218 = vmatpush.bf16.msra.mxu2 %v7300_v31  ;;  %v7588_v31 = vor.u32 %v10078_v23, %v7587_v22  ;;  %v10086_v21 = vld [vmem:[#allocation3 + $0x7a4] sm:$0xf0]  ;;  %v7428_v22 = vor.u32 %v10038_v13, %v7427_v12  ;;  %v7419_v23 = vld [vmem:[#allocation3 + $0x610] sm:$0xf]  ;;  %v7715_v13 = vld [vmem:[#allocation3 + $0x860] sm:$0xf] }
  0x70   :  { %5231 = vmatpush.bf16.msra.mxu3 %v7364_v38  ;;  %v7652_v38 = vor.u32 %v10094_v27, %v7651_v26  ;;  %v10036_v26 = vld [vmem:[#allocation3 + $0x614] sm:$0xf0]  ;;  %v10034_v46 = vld [vmem:[#allocation3 + $0x604] sm:$0xf0] }
  0x71   :  { %5193 = vmatpush.bf16.msra.mxu0 %v7164_v50  ;;  %v7516_v50 = vor.u32 %v10060_v39, %v7515_v34  ;;  %v10068_v34 = vld [vmem:[#allocation3 + $0x714] sm:$0xf0]  ;;  %v7412_v0 = vor.u32 %v10034_v46, %v7411_v42  ;;  %v7835_v46 = vld [vmem:[#allocation3 + $0x950] sm:$0xf] }
  0x72   :  { %5206 = vmatpush.bf16.msra.mxu1 %v7228_v54  ;;  %v7507_v54 = vld [vmem:[#allocation3 + $0x6c0] sm:$0xf]  ;;  %v10084_v39 = vld [vmem:[#allocation3 + $0x794] sm:$0xf0]  ;;  %v7548_v53 = vor.u32 %v10068_v34, %v7547_v32 }
  0x73   :  { %5219 = vmatpush.bf16.msra.mxu2 %v7292_v55  ;;  %v7644_v55 = vor.u32 %v10092_v48, %v7643_v47  ;;  %v7508_v62 = vor.u32 %v10058_v56, %v7507_v54  ;;  %v7420_v47 = vor.u32 %v10036_v26, %v7419_v23  ;;  %v7475_v48 = vld [vmem:[#allocation3 + $0x680] sm:$0xf]  ;;  %v7723_v56 = vld [vmem:[#allocation3 + $0x870] sm:$0xf]  ;;  %v10108_v34 = vld [vmem:[#allocation3 + $0x854] sm:$0xf0] }
  0x74   :  { %5232 = vmatpush.bf16.msra.mxu3 %v7356_v59  ;;  %v7635_v59 = vld [vmem:[#allocation3 + $0x7c0] sm:$0xf]  ;;  %v10124_v42 = vld [vmem:[#allocation3 + $0x8d4] sm:$0xf0] }
  0x75   :  { %5194 = vmatpush.bf16.msra.mxu0 %v7156_v2  ;;  %v7499_v2 = vld [vmem:[#allocation3 + $0x6b0] sm:$0xf]  ;;  %v7636_v3 = vor.u32 %v10090_v60, %v7635_v59  ;;  %v7603_v54 = vld [vmem:[#allocation3 + $0x780] sm:$0xf]  ;;  %v10128_v60 = vld [vmem:[#allocation3 + $0x8f4] sm:$0xf0] }
  0x76   :  { %5207 = vmatpush.bf16.msra.mxu1 %v7220_v6  ;;  %v10072_v6 = vld [vmem:[#allocation3 + $0x734] sm:$0xf0]  ;;  %v7787_v59 = vld [vmem:[#allocation3 + $0x8f0] sm:$0xf]  ;;  %v7907_v26 = vld [vmem:[#allocation3 + $0x9e0] sm:$0xf] }
  0x77   :  { %5220 = vmatpush.bf16.msra.mxu2 %v7284_v7  ;;  %v7627_v7 = vld [vmem:[#allocation3 + $0x7b0] sm:$0xf] }
  0x78   :  { %5233 = vmatpush.bf16.msra.mxu3 %v7348_v10  ;;  %5195 = vmatmul.bf16.vlgmr.msra.gmra.mxu0 %v10856_v20  ;;  %v7500_v10 = vor.u32 %v10056_v4, %v7499_v2  ;;  %v10160_v2 = vld [vmem:[#allocation3 + $0x9f4] sm:$0xf0] }
  0x79   :  { %5239 = vmatpush.bf16.msrb.mxu0 %v7468_v11  ;;  %5208 = vmatmul.bf16.vlgmr.msra.gmra.mxu1 %v10860_v25  ;;  %v7564_v11 = vor.u32 %v10072_v6, %v7563_v5  ;;  %v130_v5 = vld.sshfl [vmem:[#allocation1 + $0x20] sm:$0xff pattern:$0x73625140]  ;;  %v132_v6 = vld.sshfl [vmem:[#allocation1 + $0x30] sm:$0xff pattern:$0x73625140] }
  0x7a   :  { %5252 = vmatpush.bf16.msrb.mxu1 %v7532_v14  ;;  %5221 = vmatmul.bf16.vlgmr.msra.gmra.mxu2 %v10858_v24  ;;  %v7491_v14 = vld [vmem:[#allocation3 + $0x6a0] sm:$0xf] }
  0x7b   :  { %5265 = vmatpush.bf16.msrb.mxu2 %v7596_v15  ;;  %5234 = vmatmul.bf16.vlgmr.msra.gmra.mxu3 %v10862_v28  ;;  %v7628_v15 = vor.u32 %v10088_v8, %v7627_v7  ;;  %v7492_v27 = vor.u32 %v10054_v16, %v7491_v14  ;;  %v7724_v8 = vor.u32 %v10112_v58, %v7723_v56  ;;  %v10110_v14 = vld [vmem:[#allocation3 + $0x864] sm:$0xf0]  ;;  %v7827_v58 = vld [vmem:[#allocation3 + $0x940] sm:$0xf] }
  0x7c   :  { %5278 = vmatpush.bf16.msrb.mxu3 %v7660_v19  ;;  %v7619_v19 = vld [vmem:[#allocation3 + $0x7a0] sm:$0xf]  ;;  %v7916_v16 = vor.u32 %v10160_v2, %v7915_v1  ;;  %v7691_v1 = vld [vmem:[#allocation3 + $0x830] sm:$0xf]  ;;  %v10104_v2 = vld [vmem:[#allocation3 + $0x834] sm:$0xf0] }
  0x7d   :  { %5240 = vmatpush.bf16.msrb.mxu0 %v7460_v29  ;;  %v7556_v29 = vor.u32 %v10070_v18, %v7555_v17  ;;  %v7620_v33 = vor.u32 %v10086_v21, %v7619_v19  ;;  %v10871_v17 = vpack.c.bf16 %v130_v5, %v130_v5  ;;  %v10126_v18 = vld [vmem:[#allocation3 + $0x8e4] sm:$0xf0]  ;;  %v7843_v19 = vld [vmem:[#allocation3 + $0x960] sm:$0xf]  ;;  %v10120_v5 = vld [vmem:[#allocation3 + $0x8b4] sm:$0xf0] }
  0x7e   :  { %5253 = vmatpush.bf16.msrb.mxu1 %v7524_v30  ;;  %v7483_v30 = vld [vmem:[#allocation3 + $0x690] sm:$0xf]  ;;  %v10142_v21 = vld [vmem:[#allocation3 + $0x964] sm:$0xf0] }
  0x7f   :  { %5266 = vmatpush.bf16.msrb.mxu2 %v7588_v31  ;;  %v10052_v31 = vld [vmem:[#allocation3 + $0x694] sm:$0xf0]  ;;  %v7844_v32 = vor.u32 %v10142_v21, %v7843_v19  ;;  %v7811_v19 = vld [vmem:[#allocation3 + $0x920] sm:$0xf]  ;;  %v10134_v21 = vld [vmem:[#allocation3 + $0x924] sm:$0xf0] }
  0x80   :  { %5279 = vmatpush.bf16.msrb.mxu3 %v7652_v38  ;;  %v7611_v38 = vld [vmem:[#allocation3 + $0x790] sm:$0xf]  ;;  %v7484_v52 = vor.u32 %v10052_v31, %v7483_v30  ;;  %v7716_v30 = vor.u32 %v10110_v14, %v7715_v13  ;;  %v7683_v13 = vld [vmem:[#allocation3 + $0x820] sm:$0xf]  ;;  %v10102_v14 = vld [vmem:[#allocation3 + $0x824] sm:$0xf0] }
  0x81   :  { %5241 = vmatpush.bf16.msrb.mxu0 %v7452_v49  ;;  %v10050_v49 = vld [vmem:[#allocation3 + $0x684] sm:$0xf0]  ;;  %v7612_v57 = vor.u32 %v10084_v39, %v7611_v38  ;;  %v7771_v38 = vld [vmem:[#allocation3 + $0x8d0] sm:$0xf] }
  0x82   :  { %5254 = vmatpush.bf16.msrb.mxu1 %v7516_v50  ;;  %v7539_v50 = vld [vmem:[#allocation3 + $0x700] sm:$0xf] }
  0x83   :  { %5267 = vmatpush.bf16.msrb.mxu2 %v7580_v51  ;;  %v10066_v51 = vld [vmem:[#allocation3 + $0x704] sm:$0xf0] }
  0x84   :  { %5280 = vmatpush.bf16.msrb.mxu3 %v7644_v55  ;;  %v10082_v55 = vld [vmem:[#allocation3 + $0x784] sm:$0xf0]  ;;  %v7540_v4 = vor.u32 %v10066_v51, %v7539_v50  ;;  %v7772_v51 = vor.u32 %v10124_v42, %v7771_v38  ;;  %v7739_v38 = vld [vmem:[#allocation3 + $0x890] sm:$0xf] }
  0x85   :  { %5242 = vmatpush.bf16.msrb.mxu0 %v7444_v61  ;;  %v7851_v61 = vld [vmem:[#allocation3 + $0x970] sm:$0xf]  ;;  %v7604_v7 = vor.u32 %v10082_v55, %v7603_v54  ;;  %v10106_v54 = vld [vmem:[#allocation3 + $0x844] sm:$0xf0]  ;;  %v7763_v55 = vld [vmem:[#allocation3 + $0x8c0] sm:$0xf] }
  0x86   :  { %5255 = vmatpush.bf16.msrb.mxu1 %v7508_v62  ;;  %v10144_v62 = vld [vmem:[#allocation3 + $0x974] sm:$0xf0] }
  0x87   :  { %5268 = vmatpush.bf16.msrb.mxu2 %v7572_v63  ;;  %v91_v63 = vld [vmem:[%s11239_s0 + $0x20] sm:$0xff]  ;;  %v7852_v12 = vor.u32 %v10144_v62, %v7851_v61  ;;  %v10154_v61 = vld [vmem:[#allocation3 + $0x9c4] sm:$0xf0] }
  0x88   :  { %5281 = vmatpush.bf16.msrb.mxu3 %v7636_v3  ;;  %134 = vst [vmem:[#allocation1] ss:$4 sm:$0xff] %v91_v63  ;;  %v7476_v3 = vor.u32 %v10050_v49, %v7475_v48  ;;  %v7899_v48 = vld [vmem:[#allocation3 + $0x9d0] sm:$0xf]  ;;  %v10156_v49 = vld [vmem:[#allocation3 + $0x9d4] sm:$0xf0] }
  0x89   :  { %5243 = vmatpush.bf16.msrb.mxu0 %v7436_v9  ;;  %v131_v9 = vld.sshfl [vmem:[#allocation1 + $0x28] sm:$0xff pattern:$0x73625140]  ;;  %v7900_v56 = vor.u32 %v10156_v49, %v7899_v48  ;;  %v7867_v48 = vld [vmem:[#allocation3 + $0x990] sm:$0xf] }
  0x8a   :  { %5256 = vmatpush.bf16.msrb.mxu1 %v7500_v10  ;;  %v133_v10 = vld.sshfl [vmem:[#allocation1 + $0x38] sm:$0xff pattern:$0x73625140]  ;;  %v10875_v23 = vpack.c.bf16 %v131_v9, %v131_v9  ;;  %v10152_v9 = vld [vmem:[#allocation3 + $0x9b4] sm:$0xf0] }
  0x8b   :  { %5269 = vmatpush.bf16.msrb.mxu2 %v7564_v11  ;;  %v7788_v11 = vor.u32 %v10128_v60, %v7787_v59  ;;  %v10138_v59 = vld [vmem:[#allocation3 + $0x944] sm:$0xf0]  ;;  %v7891_v60 = vld [vmem:[#allocation3 + $0x9c0] sm:$0xf]  ;;  %v10148_v49 = vld [vmem:[#allocation3 + $0x994] sm:$0xf0] }
  0x8c   :  { %5282 = vmatpush.bf16.msrb.mxu3 %v7628_v15  ;;  %v7779_v15 = vld [vmem:[#allocation3 + $0x8e0] sm:$0xf] }
  0x8d   :  { %5244 = vmatpush.bf16.msrb.mxu0 %v7428_v22  ;;  %v10873_v22 = vpack.c.bf16 %v132_v6, %v132_v6  ;;  %v7780_v31 = vor.u32 %v10126_v18, %v7779_v15  ;;  %v7819_v6 = vld [vmem:[#allocation3 + $0x930] sm:$0xf]  ;;  %v7747_v15 = vld [vmem:[#allocation3 + $0x8a0] sm:$0xf]  ;;  %v10118_v18 = vld [vmem:[#allocation3 + $0x8a4] sm:$0xf0] }
  0x8e   :  { %5257 = vmatpush.bf16.msrb.mxu1 %v7492_v27  ;;  %v10158_v27 = vld [vmem:[#allocation3 + $0x9e4] sm:$0xf0] }
  0x8f   :  { %5270 = vmatpush.bf16.msrb.mxu2 %v7556_v29  ;;  %v10877_v29 = vpack.c.bf16 %v133_v10, %v133_v10  ;;  %v7908_v39 = vor.u32 %v10158_v27, %v7907_v26  ;;  %v7692_v10 = vor.u32 %v10104_v2, %v7691_v1  ;;  %v7875_v26 = vld [vmem:[#allocation3 + $0x9a0] sm:$0xf]  ;;  %v10150_v27 = vld [vmem:[#allocation3 + $0x9a4] sm:$0xf0]  ;;  %v10192_v1 = vld [vmem:[#allocation3 + $0xaf4] sm:$0xf0] }
  0x90   :  { %5283 = vmatpush.bf16.msrb.mxu3 %v7620_v33  ;;  %v7707_v33 = vld [vmem:[#allocation3 + $0x850] sm:$0xf]  ;;  %v7876_v42 = vor.u32 %v10150_v27, %v7875_v26  ;;  %v8035_v26 = vld [vmem:[#allocation3 + $0xae0] sm:$0xf] }
  0x91   :  { %5245 = vmatpush.bf16.msrb.mxu0 %v7420_v47  ;;  %v10140_v47 = vld [vmem:[#allocation3 + $0x954] sm:$0xf0]  ;;  %v7708_v50 = vor.u32 %v10108_v34, %v7707_v33  ;;  %v7812_v33 = vor.u32 %v10134_v21, %v7811_v19  ;;  %v8107_v2 = vld [vmem:[#allocation3 + $0xb70] sm:$0xf]  ;;  %v7971_v19 = vld [vmem:[#allocation3 + $0xa60] sm:$0xf] }
  0x92   :  { %5258 = vmatpush.bf16.msrb.mxu1 %v7484_v52  ;;  %v7836_v52 = vor.u32 %v10140_v47, %v7835_v46  ;;  %v10100_v34 = vld [vmem:[#allocation3 + $0x814] sm:$0xf0]  ;;  %v7803_v46 = vld [vmem:[#allocation3 + $0x910] sm:$0xf]  ;;  %v10174_v21 = vld [vmem:[#allocation3 + $0xa64] sm:$0xf0] }
  0x93   :  { %5271 = vmatpush.bf16.msrb.mxu2 %v7548_v53  ;;  %v7699_v53 = vld [vmem:[#allocation3 + $0x840] sm:$0xf]  ;;  %v10132_v47 = vld [vmem:[#allocation3 + $0x914] sm:$0xf0] }
  0x94   :  { %5284 = vmatpush.bf16.msrb.mxu3 %v7612_v57  ;;  %v10122_v57 = vld [vmem:[#allocation3 + $0x8c4] sm:$0xf0]  ;;  %v7700_v62 = vor.u32 %v10106_v54, %v7699_v53  ;;  %v7731_v53 = vld [vmem:[#allocation3 + $0x880] sm:$0xf] }
  0x95   :  { %5246 = vmatpush.bf16.msrb.mxu0 %v7412_v0  ;;  %v7764_v63 = vor.u32 %v10122_v57, %v7763_v55  ;;  %v7828_v0 = vor.u32 %v10138_v59, %v7827_v58  ;;  %v10114_v54 = vld [vmem:[#allocation3 + $0x884] sm:$0xf0]  ;;  %v7795_v55 = vld [vmem:[#allocation3 + $0x900] sm:$0xf]  ;;  %v7804_v58 = vor.u32 %v10132_v47, %v7803_v46  ;;  %v7972_v47 = vor.u32 %v10174_v21, %v7971_v19  ;;  %v10216_v19 = vld [vmem:[#allocation3 + $0xbb4] sm:$0xf0] }
  0x96   :  { %5259 = vmatpush.bf16.msrb.mxu1 %v7476_v3  ;;  %v7755_v3 = vld [vmem:[#allocation3 + $0x8b0] sm:$0xf]  ;;  %v7859_v59 = vld [vmem:[#allocation3 + $0x980] sm:$0xf] }
  0x97   :  { %5272 = vmatpush.bf16.msrb.mxu2 %v7540_v4  ;;  %v7892_v4 = vor.u32 %v10154_v61, %v7891_v60  ;;  %v10146_v60 = vld [vmem:[#allocation3 + $0x984] sm:$0xf0]  ;;  %v7979_v61 = vld [vmem:[#allocation3 + $0xa70] sm:$0xf] }
  0x98   :  { %5285 = vmatpush.bf16.msrb.mxu3 %v7604_v7  ;;  %5247 = vmatmul.bf16.vlgmr.msrb.gmra.mxu0 %v10871_v17  ;;  %v10136_v7 = vld [vmem:[#allocation3 + $0x934] sm:$0xf0] }
  0x99   :  { %5291 = vmatpush.bf16.msra.mxu0 %v7724_v8  ;;  %5260 = vmatmul.bf16.vlgmr.msrb.gmra.mxu1 %v10875_v23  ;;  %v7883_v8 = vld [vmem:[#allocation3 + $0x9b0] sm:$0xf] }
  0x9a   :  { %5304 = vmatpush.bf16.msra.mxu1 %v7788_v11  ;;  %5273 = vmatmul.bf16.vlgmr.msrb.gmra.mxu2 %v10873_v22  ;;  %v7756_v11 = vor.u32 %v10120_v5, %v7755_v3  ;;  %v10208_v3 = vld [vmem:[#allocation3 + $0xb74] sm:$0xf0] }
  0x9b   :  { %5317 = vmatpush.bf16.msra.mxu2 %v7852_v12  ;;  %5286 = vmatmul.bf16.vlgmr.msrb.gmra.mxu3 %v10877_v29  ;;  %v7820_v12 = vor.u32 %v10136_v7, %v7819_v6  ;;  %v8171_v6 = vld [vmem:[#allocation3 + $0xbf0] sm:$0xf]  ;;  %v10224_v7 = vld [vmem:[#allocation3 + $0xbf4] sm:$0xf0] }
  0x9c   :  { %5330 = vmatpush.bf16.msra.mxu3 %v7916_v16  ;;  %v7884_v16 = vor.u32 %v10152_v9, %v7883_v8  ;;  %v7732_v8 = vor.u32 %v10114_v54, %v7731_v53  ;;  %v8172_v27 = vor.u32 %v10224_v7, %v8171_v6  ;;  %v10188_v54 = vld [vmem:[#allocation3 + $0xad4] sm:$0xf0]  ;;  %v10218_v6 = vld [vmem:[#allocation3 + $0xbc4] sm:$0xf0] }
  0x9d   :  { %5292 = vmatpush.bf16.msra.mxu0 %v7716_v30  ;;  %v7684_v30 = vor.u32 %v10102_v14, %v7683_v13  ;;  %v137_v14 = vld.sshfl [vmem:[#allocation1 + $0x8] sm:$0xff pattern:$0x73625140] }
  0x9e   :  { %5305 = vmatpush.bf16.msra.mxu1 %v7780_v31  ;;  %v7675_v31 = vld [vmem:[#allocation3 + $0x810] sm:$0xf] }
  0x9f   :  { %5318 = vmatpush.bf16.msra.mxu2 %v7844_v32  ;;  %v7748_v32 = vor.u32 %v10118_v18, %v7747_v15  ;;  %v139_v15 = vld.sshfl [vmem:[#allocation1 + $0x18] sm:$0xff pattern:$0x73625140]  ;;  %v8108_v18 = vor.u32 %v10208_v3, %v8107_v2  ;;  %v10186_v2 = vld [vmem:[#allocation3 + $0xac4] sm:$0xf0] }
  0xa0   :  { %5331 = vmatpush.bf16.msra.mxu3 %v7908_v39  ;;  %v10116_v39 = vld [vmem:[#allocation3 + $0x894] sm:$0xf0]  ;;  %v10892_v46 = vpack.c.bf16 %v139_v15, %v139_v15  ;;  %v8083_v3 = vld [vmem:[#allocation3 + $0xb40] sm:$0xf]  ;;  %v8075_v15 = vld [vmem:[#allocation3 + $0xb30] sm:$0xf] }
  0xa1   :  { %5293 = vmatpush.bf16.msra.mxu0 %v7708_v50  ;;  %v7667_v50 = vld [vmem:[#allocation3 + $0x800] sm:$0xf]  ;;  %v7740_v57 = vor.u32 %v10116_v39, %v7739_v38  ;;  %v10890_v38 = vpack.c.bf16 %v137_v14, %v137_v14  ;;  %v10184_v14 = vld [vmem:[#allocation3 + $0xab4] sm:$0xf0] }
  0xa2   :  { %5306 = vmatpush.bf16.msra.mxu1 %v7772_v51  ;;  %v10098_v51 = vld [vmem:[#allocation3 + $0x804] sm:$0xf0]  ;;  %v8163_v39 = vld [vmem:[#allocation3 + $0xbe0] sm:$0xf] }
  0xa3   :  { %5319 = vmatpush.bf16.msra.mxu2 %v7836_v52  ;;  %v7676_v52 = vor.u32 %v10100_v34, %v7675_v31  ;;  %v7668_v5 = vor.u32 %v10098_v51, %v7667_v50  ;;  %v10190_v31 = vld [vmem:[#allocation3 + $0xae4] sm:$0xf0]  ;;  %v7963_v50 = vld [vmem:[#allocation3 + $0xa50] sm:$0xf]  ;;  %v10172_v51 = vld [vmem:[#allocation3 + $0xa54] sm:$0xf0] }
  0xa4   :  { %5332 = vmatpush.bf16.msra.mxu3 %v7900_v56  ;;  %v10130_v56 = vld [vmem:[#allocation3 + $0x904] sm:$0xf0] }
  0xa5   :  { %5294 = vmatpush.bf16.msra.mxu0 %v7700_v62  ;;  %v7868_v62 = vor.u32 %v10148_v49, %v7867_v48  ;;  %v7796_v9 = vor.u32 %v10130_v56, %v7795_v55  ;;  %v8036_v48 = vor.u32 %v10190_v31, %v8035_v26  ;;  %v8091_v55 = vld [vmem:[#allocation3 + $0xb50] sm:$0xf]  ;;  %v10204_v56 = vld [vmem:[#allocation3 + $0xb54] sm:$0xf0]  ;;  %v7939_v26 = vld [vmem:[#allocation3 + $0xa20] sm:$0xf] }
  0xa6   :  { %5307 = vmatpush.bf16.msra.mxu1 %v7764_v63  ;;  %v10176_v63 = vld [vmem:[#allocation3 + $0xa74] sm:$0xf0] }
  0xa7   :  { %5320 = vmatpush.bf16.msra.mxu2 %v7828_v0  ;;  %v8043_v0 = vld [vmem:[#allocation3 + $0xaf0] sm:$0xf]  ;;  %v7980_v13 = vor.u32 %v10176_v63, %v7979_v61  ;;  %v8092_v61 = vor.u32 %v10204_v56, %v8091_v55  ;;  %v10170_v63 = vld [vmem:[#allocation3 + $0xa44] sm:$0xf0] }
  0xa8   :  { %5333 = vmatpush.bf16.msra.mxu3 %v7892_v4  ;;  %v92_v4 = vld [vmem:[%s11239_s0 + $0x28] sm:$0xff] }
  0xa9   :  { %5295 = vmatpush.bf16.msra.mxu0 %v7692_v10  ;;  %135 = vst [vmem:[#allocation1 + $0x20] ss:$4 sm:$0xff] %v92_v4  ;;  %v136_v10 = vld.sshfl [vmem:[#allocation1] sm:$0xff pattern:$0x73625140] }
  0xaa   :  { %5308 = vmatpush.bf16.msra.mxu1 %v7756_v11  ;;  %v138_v11 = vld.sshfl [vmem:[#allocation1 + $0x10] sm:$0xff pattern:$0x73625140] }
  0xab   :  { %5321 = vmatpush.bf16.msra.mxu2 %v7820_v12  ;;  %v7860_v12 = vor.u32 %v10146_v60, %v7859_v59  ;;  %v10888_v34 = vpack.c.bf16 %v138_v11, %v138_v11  ;;  %v7964_v59 = vor.u32 %v10172_v51, %v7963_v50  ;;  %v10202_v4 = vld [vmem:[#allocation3 + $0xb44] sm:$0xf0]  ;;  %v10168_v11 = vld [vmem:[#allocation3 + $0xa34] sm:$0xf0]  ;;  %v8131_v50 = vld [vmem:[#allocation3 + $0xba0] sm:$0xf] }
  0xac   :  { %5334 = vmatpush.bf16.msra.mxu3 %v7884_v16  ;;  %v8044_v16 = vor.u32 %v10192_v1, %v8043_v0  ;;  %v8019_v0 = vld [vmem:[#allocation3 + $0xac0] sm:$0xf]  ;;  %v10214_v51 = vld [vmem:[#allocation3 + $0xba4] sm:$0xf0] }
  0xad   :  { %5296 = vmatpush.bf16.msra.mxu0 %v7684_v30  ;;  %v10886_v30 = vpack.c.bf16 %v136_v10, %v136_v10  ;;  %v7947_v10 = vld [vmem:[#allocation3 + $0xa30] sm:$0xf] }
  0xae   :  { %5309 = vmatpush.bf16.msra.mxu1 %v7748_v32  ;;  %v8099_v32 = vld [vmem:[#allocation3 + $0xb60] sm:$0xf]  ;;  %v7948_v21 = vor.u32 %v10168_v11, %v7947_v10 }
  0xaf   :  { %5322 = vmatpush.bf16.msra.mxu2 %v7812_v33  ;;  %v10206_v33 = vld [vmem:[#allocation3 + $0xb64] sm:$0xf0]  ;;  %v8115_v11 = vld [vmem:[#allocation3 + $0xb80] sm:$0xf] }
  0xb0   :  { %5335 = vmatpush.bf16.msra.mxu3 %v7876_v42  ;;  %v10222_v42 = vld [vmem:[#allocation3 + $0xbe4] sm:$0xf0]  ;;  %v8100_v49 = vor.u32 %v10206_v33, %v8099_v32  ;;  %v8003_v33 = vld [vmem:[#allocation3 + $0xaa0] sm:$0xf] }
  0xb1   :  { %5297 = vmatpush.bf16.msra.mxu0 %v7676_v52  ;;  %v8027_v52 = vld [vmem:[#allocation3 + $0xad0] sm:$0xf]  ;;  %v8164_v53 = vor.u32 %v10222_v42, %v8163_v39  ;;  %v10166_v32 = vld [vmem:[#allocation3 + $0xa24] sm:$0xf0] }
  0xb2   :  { %5310 = vmatpush.bf16.msra.mxu1 %v7740_v57  ;;  %v8155_v57 = vld [vmem:[#allocation3 + $0xbd0] sm:$0xf]  ;;  %v8028_v60 = vor.u32 %v10188_v54, %v8027_v52  ;;  %v10182_v39 = vld [vmem:[#allocation3 + $0xaa4] sm:$0xf0]  ;;  %v7940_v52 = vor.u32 %v10166_v32, %v7939_v26  ;;  %v10164_v54 = vld [vmem:[#allocation3 + $0xa14] sm:$0xf0] }
  0xb3   :  { %5323 = vmatpush.bf16.msra.mxu2 %v7804_v58  ;;  %v10220_v58 = vld [vmem:[#allocation3 + $0xbd4] sm:$0xf0]  ;;  %v8004_v55 = vor.u32 %v10182_v39, %v8003_v33  ;;  %v8427_v33 = vld [vmem:[#allocation3 + $0xdf0] sm:$0xf] }
  0xb4   :  { %5336 = vmatpush.bf16.msra.mxu3 %v7868_v62  ;;  %v7955_v62 = vld [vmem:[#allocation3 + $0xa40] sm:$0xf]  ;;  %v8156_v1 = vor.u32 %v10220_v58, %v8155_v57  ;;  %v7995_v57 = vld [vmem:[#allocation3 + $0xa90] sm:$0xf]  ;;  %v10180_v58 = vld [vmem:[#allocation3 + $0xa94] sm:$0xf0] }
  0xb5   :  { %5298 = vmatpush.bf16.msra.mxu0 %v7668_v5  ;;  %v8147_v5 = vld [vmem:[#allocation3 + $0xbc0] sm:$0xf]  ;;  %v7956_v7 = vor.u32 %v10170_v63, %v7955_v62  ;;  %v10196_v62 = vld [vmem:[#allocation3 + $0xb14] sm:$0xf0]  ;;  %v8123_v63 = vld [vmem:[#allocation3 + $0xb90] sm:$0xf] }
  0xb6   :  { %5311 = vmatpush.bf16.msra.mxu1 %v7732_v8  ;;  %v8020_v8 = vor.u32 %v10186_v2, %v8019_v0  ;;  %v10212_v0 = vld [vmem:[#allocation3 + $0xb94] sm:$0xf0]  ;;  %v10162_v2 = vld [vmem:[#allocation3 + $0xa04] sm:$0xf0] }
  0xb7   :  { %5324 = vmatpush.bf16.msra.mxu2 %v7796_v9  ;;  %v8084_v9 = vor.u32 %v10202_v4, %v8083_v3  ;;  %v7987_v4 = vld [vmem:[#allocation3 + $0xa80] sm:$0xf]  ;;  %v10272_v26 = vld [vmem:[#allocation3 + $0xd74] sm:$0xf0] }
  0xb8   :  { %5337 = vmatpush.bf16.msra.mxu3 %v7860_v12  ;;  %5299 = vmatmul.bf16.vlgmr.msra.gmra.mxu0 %v10886_v30  ;;  %v8011_v12 = vld [vmem:[#allocation3 + $0xab0] sm:$0xf]  ;;  %v10288_v39 = vld [vmem:[#allocation3 + $0xdf4] sm:$0xf0] }
  0xb9   :  { %5343 = vmatpush.bf16.msrb.mxu0 %v7980_v13  ;;  %5312 = vmatmul.bf16.vlgmr.msra.gmra.mxu1 %v10890_v38  ;;  %v8148_v13 = vor.u32 %v10218_v6, %v8147_v5  ;;  %v10178_v5 = vld [vmem:[#allocation3 + $0xa84] sm:$0xf0]  ;;  %v8051_v6 = vld [vmem:[#allocation3 + $0xb00] sm:$0xf] }
  0xba   :  { %5356 = vmatpush.bf16.msrb.mxu1 %v8044_v16  ;;  %5325 = vmatmul.bf16.vlgmr.msra.gmra.mxu2 %v10888_v34  ;;  %v10200_v16 = vld [vmem:[#allocation3 + $0xb34] sm:$0xf0] }
  0xbb   :  { %5369 = vmatpush.bf16.msrb.mxu2 %v8108_v18  ;;  %5338 = vmatmul.bf16.vlgmr.msra.gmra.mxu3 %v10892_v46  ;;  %v8139_v18 = vld [vmem:[#allocation3 + $0xbb0] sm:$0xf]  ;;  %v8076_v31 = vor.u32 %v10200_v16, %v8075_v15  ;;  %v8124_v15 = vor.u32 %v10212_v0, %v8123_v63  ;;  %v10240_v16 = vld [vmem:[#allocation3 + $0xc74] sm:$0xf0]  ;;  %v8428_v63 = vor.u32 %v10288_v39, %v8427_v33 }
  0xbc   :  { %5382 = vmatpush.bf16.msrb.mxu3 %v8172_v27  ;;  %v8012_v27 = vor.u32 %v10184_v14, %v8011_v12  ;;  %v8140_v42 = vor.u32 %v10216_v19, %v8139_v18  ;;  %v10210_v12 = vld [vmem:[#allocation3 + $0xb84] sm:$0xf0]  ;;  %v8299_v18 = vld [vmem:[#allocation3 + $0xcf0] sm:$0xf]  ;;  %v10256_v19 = vld [vmem:[#allocation3 + $0xcf4] sm:$0xf0] }
  0xbd   :  { %5344 = vmatpush.bf16.msrb.mxu0 %v7972_v47  ;;  %v8067_v47 = vld [vmem:[#allocation3 + $0xb20] sm:$0xf] }
  0xbe   :  { %5357 = vmatpush.bf16.msrb.mxu1 %v8036_v48  ;;  %v10198_v48 = vld [vmem:[#allocation3 + $0xb24] sm:$0xf0] }
  0xbf   :  { %5370 = vmatpush.bf16.msrb.mxu2 %v8100_v49  ;;  %v1077_v49 = vld [vmem:[#allocation5] sm:$0x3]  ;;  %v8068_v56 = vor.u32 %v10198_v48, %v8067_v47  ;;  %v7988_v47 = vor.u32 %v10178_v5, %v7987_v4 }
  0xc0   :  { %5383 = vmatpush.bf16.msrb.mxu3 %v8164_v53  ;;  %v7931_v53 = vld [vmem:[#allocation3 + $0xa10] sm:$0xf] }
  0xc1   :  { %5345 = vmatpush.bf16.msrb.mxu0 %v7964_v59  ;;  %v1079_v59 = vperm.slane %v1077_v49, 0  ;;  %v7932_v3 = vor.u32 %v10164_v54, %v7931_v53  ;;  %v140_v49 = vld.sshfl [vmem:[#allocation1 + $0x20] sm:$0xff pattern:$0x73625140] }
  0xc2   :  { %5358 = vmatpush.bf16.msrb.mxu1 %v8028_v60  ;;  %v8132_v60 = vor.u32 %v10214_v51, %v8131_v50  ;;  %v142_v50 = vld.sshfl [vmem:[#allocation1 + $0x30] sm:$0xff pattern:$0x73625140]  ;;  %v8116_v51 = vor.u32 %v10210_v12, %v8115_v11  ;;  %v141_v53 = vld.sshfl [vmem:[#allocation1 + $0x28] sm:$0xff pattern:$0x73625140]  ;;  %v10901_v0 = vpack.c.bf16 %v140_v49, %v140_v49 }
  0xc3   :  { %5371 = vmatpush.bf16.msrb.mxu2 %v8092_v61  ;;  %v8059_v61 = vld [vmem:[#allocation3 + $0xb10] sm:$0xf]  ;;  %v10903_v5 = vpack.c.bf16 %v142_v50, %v142_v50  ;;  %v10234_v49 = vld [vmem:[#allocation3 + $0xc44] sm:$0xf0]  ;;  %v8275_v50 = vld [vmem:[#allocation3 + $0xcc0] sm:$0xf] }
  0xc4   :  { %5384 = vmatpush.bf16.msrb.mxu3 %v8156_v1  ;;  %v7923_v1 = vld [vmem:[#allocation3 + $0xa00] sm:$0xf]  ;;  %v8060_v10 = vor.u32 %v10196_v62, %v8059_v61  ;;  %v143_v54 = vld.sshfl [vmem:[#allocation1 + $0x38] sm:$0xff pattern:$0x73625140]  ;;  %v5131_v62 = vpop.f32.mrf.mxu3 }
  0xc5   :  { %5346 = vmatpush.bf16.msrb.mxu0 %v7956_v7  ;;  %v10194_v7 = vld [vmem:[#allocation3 + $0xb04] sm:$0xf0]  ;;  %v7924_v32 = vor.u32 %v10162_v2, %v7923_v1  ;;  %v8355_v2 = vld [vmem:[#allocation3 + $0xd60] sm:$0xf] }
  0xc6   :  { %5359 = vmatpush.bf16.msrb.mxu1 %v8020_v8  ;;  %v5092_v8 = vpop.f32.mrf.mxu0  ;;  %v8052_v48 = vor.u32 %v10194_v7, %v8051_v6  ;;  %v10254_v1 = vld [vmem:[#allocation3 + $0xce4] sm:$0xf0]  ;;  %v10905_v6 = vpack.c.bf16 %v141_v53, %v141_v53  ;;  %v8419_v7 = vld [vmem:[#allocation3 + $0xde0] sm:$0xf] }
  0xc7   :  { %5372 = vmatpush.bf16.msrb.mxu2 %v8084_v9  ;;  %v7996_v9 = vor.u32 %v10180_v58, %v7995_v57  ;;  %v5093_v14 = vadd.f32 %v5092_v8, %v1079_v59  ;;  %v8227_v58 = vld [vmem:[#allocation3 + $0xc60] sm:$0xf]  ;;  %v10238_v59 = vld [vmem:[#allocation3 + $0xc64] sm:$0xf0] }
  0xc8   :  { %5385 = vmatpush.bf16.msrb.mxu3 %v8148_v13  ;;  %v8235_v13 = vld [vmem:[#allocation3 + $0xc70] sm:$0xf]  ;;  %v10286_v8 = vld [vmem:[#allocation3 + $0xde4] sm:$0xf0]  ;;  %v8228_v11 = vor.u32 %v10238_v59, %v8227_v58 }
  0xc9   :  { %5347 = vmatpush.bf16.msrb.mxu0 %v7948_v21  ;;  %v8363_v21 = vld [vmem:[#allocation3 + $0xd70] sm:$0xf]  ;;  %v10250_v53 = vld [vmem:[#allocation3 + $0xcc4] sm:$0xf0] }
  0xca   :  { %5360 = vmatpush.bf16.msrb.mxu1 %v8012_v27  ;;  %v5105_v27 = vpop.f32.mrf.mxu1  ;;  %v8364_v57 = vor.u32 %v10272_v26, %v8363_v21  ;;  %v10252_v21 = vld [vmem:[#allocation3 + $0xcd4] sm:$0xf0]  ;;  %v8347_v26 = vld [vmem:[#allocation3 + $0xd50] sm:$0xf] }
  0xcb   :  { %5373 = vmatpush.bf16.msrb.mxu2 %v8076_v31  ;;  %v93_v31 = vld [vmem:[%s11239_s0 + $0x30] sm:$0xff] }
  0xcc   :  { %5386 = vmatpush.bf16.msrb.mxu3 %v8140_v42  ;;  %v5106_v42 = vadd.f32 %v5105_v27, %v5093_v14  ;;  %144 = vst [vmem:[#allocation1] ss:$4 sm:$0xff] %v93_v31  ;;  %v8219_v14 = vld [vmem:[#allocation3 + $0xc50] sm:$0xf]  ;;  %v10268_v27 = vld [vmem:[#allocation3 + $0xd54] sm:$0xf0] }
  0xcd   :  { %5348 = vmatpush.bf16.msrb.mxu0 %v7940_v52  ;;  %v8236_v52 = vor.u32 %v10240_v16, %v8235_v13  ;;  %v8283_v16 = vld [vmem:[#allocation3 + $0xcd0] sm:$0xf] }
  0xce   :  { %5361 = vmatpush.bf16.msrb.mxu1 %v8004_v55  ;;  %v5118_v55 = vpop.f32.mrf.mxu2  ;;  %v5094_v4 = vpop.f32.mrf.mxu0  ;;  %v8411_v31 = vld [vmem:[#allocation3 + $0xdd0] sm:$0xf] }
  0xcf   :  { %5374 = vmatpush.bf16.msrb.mxu2 %v8068_v56  ;;  %v8300_v56 = vor.u32 %v10256_v19, %v8299_v18  ;;  %v5119_v61 = vadd.f32 %v5118_v55, %v5106_v42  ;;  %v8420_v19 = vor.u32 %v10286_v8, %v8419_v7  ;;  %v8284_v42 = vor.u32 %v10252_v21, %v8283_v16  ;;  %v10266_v55 = vld [vmem:[#allocation3 + $0xd44] sm:$0xf0]  ;;  %v10248_v7 = vld [vmem:[#allocation3 + $0xcb4] sm:$0xf0]  ;;  %v8331_v8 = vld [vmem:[#allocation3 + $0xd30] sm:$0xf] }
  0xd0   :  { %5387 = vmatpush.bf16.msrb.mxu3 %v8132_v60  ;;  %v8291_v60 = vld [vmem:[#allocation3 + $0xce0] sm:$0xf]  ;;  %v10230_v21 = vld [vmem:[#allocation3 + $0xc24] sm:$0xf0] }
  0xd1   :  { %5349 = vmatpush.bf16.msrb.mxu0 %v7932_v3  ;;  %v10270_v3 = vld [vmem:[#allocation3 + $0xd64] sm:$0xf0]  ;;  %v8292_v12 = vor.u32 %v10254_v1, %v8291_v60  ;;  %v8276_v60 = vor.u32 %v10250_v53, %v8275_v50  ;;  %v8267_v1 = vld [vmem:[#allocation3 + $0xcb0] sm:$0xf] }
  0xd2   :  { %5362 = vmatpush.bf16.msrb.mxu1 %v7996_v9  ;;  %v5132_v9 = vadd.f32 %v5131_v62, %v5119_v61  ;;  %v8356_v13 = vor.u32 %v10270_v3, %v8355_v2  ;;  %v5107_v18 = vpop.f32.mrf.mxu1  ;;  %v8203_v62 = vld [vmem:[#allocation3 + $0xc30] sm:$0xf]  ;;  %v8268_v16 = vor.u32 %v10248_v7, %v8267_v1  ;;  %v8179_v1 = vld [vmem:[#allocation3 + $0xc00] sm:$0xf]  ;;  %v10242_v7 = vld [vmem:[#allocation3 + $0xc84] sm:$0xf0] }
  0xd3   :  { %5375 = vmatpush.bf16.msrb.mxu2 %v8060_v10  ;;  %v10907_v10 = vpack.c.bf16 %v143_v54, %v143_v54  ;;  %v8339_v54 = vld [vmem:[#allocation3 + $0xd40] sm:$0xf]  ;;  %v8187_v50 = vld [vmem:[#allocation3 + $0xc10] sm:$0xf] }
  0xd4   :  { %5388 = vmatpush.bf16.msrb.mxu3 %v8124_v15  ;;  %v10236_v15 = vld [vmem:[#allocation3 + $0xc54] sm:$0xf0]  ;;  %v8340_v61 = vor.u32 %v10266_v55, %v8339_v54 }
  0xd5   :  { %5350 = vmatpush.bf16.msrb.mxu0 %v7924_v32  ;;  %v10284_v32 = vld [vmem:[#allocation3 + $0xdd4] sm:$0xf0]  ;;  %v8220_v33 = vor.u32 %v10236_v15, %v8219_v14 }
  0xd6   :  { %5363 = vmatpush.bf16.msrb.mxu1 %v7988_v47  ;;  %v5120_v39 = vpop.f32.mrf.mxu2  ;;  %v8348_v47 = vor.u32 %v10268_v27, %v8347_v26  ;;  %v5144_v59 = vpop.f32.mrf.mxu0  ;;  %v8259_v26 = vld [vmem:[#allocation3 + $0xca0] sm:$0xf]  ;;  %v10228_v55 = vld [vmem:[#allocation3 + $0xc14] sm:$0xf0] }
  0xd7   :  { %5376 = vmatpush.bf16.msrb.mxu2 %v8052_v48  ;;  %v8211_v48 = vld [vmem:[#allocation3 + $0xc40] sm:$0xf]  ;;  %v5145_v2 = vadd.f32 %v5144_v59, %v5132_v9 }
  0xd8   :  { %5389 = vmatpush.bf16.msrb.mxu3 %v8116_v51  ;;  %5351 = vmatmul.bf16.vlgmr.msrb.gmra.mxu0 %v10901_v0  ;;  %v5133_v51 = vpop.f32.mrf.mxu3  ;;  %v8212_v58 = vor.u32 %v10234_v49, %v8211_v48  ;;  %v10278_v48 = vld [vmem:[#allocation3 + $0xda4] sm:$0xf0] }
  0xd9   :  { %5395 = vmatpush.bf16.msra.mxu0 %v8236_v52  ;;  %5364 = vmatmul.bf16.vlgmr.msrb.gmra.mxu1 %v10905_v6  ;;  %v8412_v52 = vor.u32 %v10284_v32, %v8411_v31  ;;  %v10246_v31 = vld [vmem:[#allocation3 + $0xca4] sm:$0xf0]  ;;  %v8323_v32 = vld [vmem:[#allocation3 + $0xd20] sm:$0xf] }
  0xda   :  { %5408 = vmatpush.bf16.msra.mxu1 %v8300_v56  ;;  %5377 = vmatmul.bf16.vlgmr.msrb.gmra.mxu2 %v10903_v5  ;;  %v8403_v56 = vld [vmem:[#allocation3 + $0xdc0] sm:$0xf]  ;;  %v5157_v3 = vpop.f32.mrf.mxu1  ;;  %v8260_v53 = vor.u32 %v10246_v31, %v8259_v26  ;;  %v8555_v26 = vld [vmem:[#allocation3 + $0xef0] sm:$0xf] }
  0xdb   :  { %5421 = vmatpush.bf16.msra.mxu2 %v8364_v57  ;;  %5390 = vmatmul.bf16.vlgmr.msrb.gmra.mxu3 %v10907_v10  ;;  %v10282_v57 = vld [vmem:[#allocation3 + $0xdc4] sm:$0xf0]  ;;  %v5158_v14 = vadd.f32 %v5157_v3, %v5145_v2  ;;  %v8188_v3 = vor.u32 %v10228_v55, %v8187_v50  ;;  %v8619_v31 = vld [vmem:[#allocation3 + $0xf70] sm:$0xf] }
  0xdc   :  { %5434 = vmatpush.bf16.msra.mxu3 %v8428_v63  ;;  %v10232_v63 = vld [vmem:[#allocation3 + $0xc34] sm:$0xf0]  ;;  %v8404_v4 = vor.u32 %v10282_v57, %v8403_v56  ;;  %v8251_v56 = vld [vmem:[#allocation3 + $0xc90] sm:$0xf]  ;;  %v10226_v2 = vld [vmem:[#allocation3 + $0xc04] sm:$0xf0] }
  0xdd   :  { %5396 = vmatpush.bf16.msra.mxu0 %v8228_v11  ;;  %v10264_v11 = vld [vmem:[#allocation3 + $0xd34] sm:$0xf0]  ;;  %v8204_v15 = vor.u32 %v10232_v63, %v8203_v62  ;;  %v8379_v62 = vld [vmem:[#allocation3 + $0xd90] sm:$0xf] }
  0xde   :  { %5409 = vmatpush.bf16.msra.mxu1 %v8292_v12  ;;  %v8395_v12 = vld [vmem:[#allocation3 + $0xdb0] sm:$0xf]  ;;  %v8332_v18 = vor.u32 %v10264_v11, %v8331_v8  ;;  %v5170_v27 = vpop.f32.mrf.mxu2  ;;  %v10244_v57 = vld [vmem:[#allocation3 + $0xc94] sm:$0xf0]  ;;  %v8307_v8 = vld [vmem:[#allocation3 + $0xd00] sm:$0xf] }
  0xdf   :  { %5422 = vmatpush.bf16.msra.mxu2 %v8356_v13  ;;  %v10280_v13 = vld [vmem:[#allocation3 + $0xdb4] sm:$0xf0]  ;;  %v5171_v39 = vadd.f32 %v5170_v27, %v5158_v14  ;;  %v10258_v11 = vld [vmem:[#allocation3 + $0xd04] sm:$0xf0]  ;;  %v8371_v14 = vld [vmem:[#allocation3 + $0xd80] sm:$0xf] }
  0xe0   :  { %5435 = vmatpush.bf16.msra.mxu3 %v8420_v19  ;;  %v8195_v19 = vld [vmem:[#allocation3 + $0xc20] sm:$0xf]  ;;  %v8396_v9 = vor.u32 %v10280_v13, %v8395_v12  ;;  %v10276_v63 = vld [vmem:[#allocation3 + $0xd94] sm:$0xf0]  ;;  %v8252_v12 = vor.u32 %v10244_v57, %v8251_v56 }
  0xe1   :  { %5397 = vmatpush.bf16.msra.mxu0 %v8220_v33  ;;  %v10262_v33 = vld [vmem:[#allocation3 + $0xd24] sm:$0xf0]  ;;  %v8196_v49 = vor.u32 %v10230_v21, %v8195_v19  ;;  %v8380_v19 = vor.u32 %v10276_v63, %v8379_v62  ;;  %v10304_v21 = vld [vmem:[#allocation3 + $0xe74] sm:$0xf0] }
  0xe2   :  { %5410 = vmatpush.bf16.msra.mxu1 %v8284_v42  ;;  %v5183_v42 = vpop.f32.mrf.mxu3  ;;  %v8324_v54 = vor.u32 %v10262_v33, %v8323_v32  ;;  %v10320_v27 = vld [vmem:[#allocation3 + $0xef4] sm:$0xf0]  ;;  %v94_v33 = vld [vmem:[%s11239_s0 + $0x38] sm:$0xff]  ;;  %v147_v55 = vld.sshfl [vmem:[#allocation1 + $0x8] sm:$0xff pattern:$0x73625140] }
  0xe3   :  { %5423 = vmatpush.bf16.msra.mxu2 %v8348_v47  ;;  %v8387_v47 = vld [vmem:[#allocation3 + $0xda0] sm:$0xf]  ;;  %v10913_v51 = vadd.f32 %v5183_v42, %v5171_v39  ;;  %v10336_v32 = vld [vmem:[#allocation3 + $0xf74] sm:$0xf0]  ;;  %v8180_v39 = vor.u32 %v10226_v2, %v8179_v1  ;;  %v8683_v42 = vld [vmem:[#allocation3 + $0xff0] sm:$0xf]  ;;  %v8556_v57 = vor.u32 %v10320_v27, %v8555_v26 }
  0xe4   :  { %5436 = vmatpush.bf16.msra.mxu3 %v8412_v52  ;;  %v5146_v52 = vpop.f32.mrf.mxu0  ;;  %v8388_v59 = vor.u32 %v10278_v48, %v8387_v47  ;;  %v10352_v47 = vld [vmem:[#allocation3 + $0xff4] sm:$0xf0]  ;;  %145 = vst [vmem:[#allocation1 + $0x20] ss:$4 sm:$0xff] %v94_v33  ;;  %v10318_v1 = vld [vmem:[#allocation3 + $0xee4] sm:$0xf0] }
  0xe5   :  { %5398 = vmatpush.bf16.msra.mxu0 %v8212_v58  ;;  %v5159_v58 = vpop.f32.mrf.mxu1  ;;  %v146_v50 = vld.sshfl [vmem:[#allocation1] sm:$0xff pattern:$0x73625140]  ;;  %v148_v52 = vld.sshfl [vmem:[#allocation1 + $0x10] sm:$0xff pattern:$0x73625140]  ;;  %v8684_v62 = vor.u32 %v10352_v47, %v8683_v42 }
  0xe6   :  { %5411 = vmatpush.bf16.msra.mxu1 %v8276_v60  ;;  %v8315_v60 = vld [vmem:[#allocation3 + $0xd10] sm:$0xf]  ;;  %v8620_v58 = vor.u32 %v10336_v32, %v8619_v31  ;;  %v10918_v63 = vpack.c.bf16 %v146_v50, %v146_v50  ;;  %v8611_v2 = vld [vmem:[#allocation3 + $0xf60] sm:$0xf]  ;;  %v10316_v26 = vld [vmem:[#allocation3 + $0xed4] sm:$0xf0] }
  0xe7   :  { %5424 = vmatpush.bf16.msra.mxu2 %v8340_v61  ;;  %v10260_v61 = vld [vmem:[#allocation3 + $0xd14] sm:$0xf0]  ;;  %v149_v56 = vld.sshfl [vmem:[#allocation1 + $0x18] sm:$0xff pattern:$0x73625140] }
  0xe8   :  { %5437 = vmatpush.bf16.msra.mxu3 %v8404_v4  ;;  %v8243_v4 = vld [vmem:[#allocation3 + $0xc80] sm:$0xf]  ;;  %v8316_v13 = vor.u32 %v10260_v61, %v8315_v60  ;;  %v10302_v60 = vld [vmem:[#allocation3 + $0xe64] sm:$0xf0]  ;;  %v8603_v27 = vld [vmem:[#allocation3 + $0xf50] sm:$0xf] }
  0xe9   :  { %5399 = vmatpush.bf16.msra.mxu0 %v8204_v15  ;;  %v10274_v15 = vld [vmem:[#allocation3 + $0xd84] sm:$0xf0]  ;;  %v8244_v48 = vor.u32 %v10242_v7, %v8243_v4  ;;  %v8547_v61 = vld [vmem:[#allocation3 + $0xee0] sm:$0xf]  ;;  %v10920_v4 = vpack.c.bf16 %v148_v52, %v148_v52  ;;  %v10922_v7 = vpack.c.bf16 %v147_v55, %v147_v55  ;;  %v8667_v31 = vld [vmem:[#allocation3 + $0xfd0] sm:$0xf] }
  0xea   :  { %5412 = vmatpush.bf16.msra.mxu1 %v8268_v16  ;;  %v8491_v16 = vld [vmem:[#allocation3 + $0xe70] sm:$0xf]  ;;  %v10348_v32 = vld [vmem:[#allocation3 + $0xfd4] sm:$0xf0]  ;;  %v8467_v47 = vld [vmem:[#allocation3 + $0xe40] sm:$0xf] }
  0xeb   :  { %5425 = vmatpush.bf16.msra.mxu2 %v8332_v18  ;;  %v5172_v18 = vpop.f32.mrf.mxu2  ;;  %v8668_v50 = vor.u32 %v10348_v32, %v8667_v31  ;;  %v10314_v52 = vld [vmem:[#allocation3 + $0xec4] sm:$0xf0] }
  0xec   :  { %5438 = vmatpush.bf16.msra.mxu3 %v8396_v9  ;;  %v5185_v9 = vpop.f32.mrf.mxu3  ;;  %v10300_v18 = vld [vmem:[#allocation3 + $0xe54] sm:$0xf0] }
  0xed   :  { %5400 = vmatpush.bf16.msra.mxu0 %v8196_v49  ;;  %v8308_v49 = vor.u32 %v10258_v11, %v8307_v8  ;;  %v8675_v8 = vld [vmem:[#allocation3 + $0xfe0] sm:$0xf]  ;;  %v10350_v11 = vld [vmem:[#allocation3 + $0xfe4] sm:$0xf0]  ;;  %v10332_v9 = vld [vmem:[#allocation3 + $0xf54] sm:$0xf0] }
  0xee   :  { %5413 = vmatpush.bf16.msra.mxu1 %v8260_v53  ;;  %v8372_v53 = vor.u32 %v10274_v15, %v8371_v14  ;;  %v8548_v14 = vor.u32 %v10318_v1, %v8547_v61  ;;  %v8604_v42 = vor.u32 %v10332_v9, %v8603_v27  ;;  %v8459_v1 = vld [vmem:[#allocation3 + $0xe30] sm:$0xf]  ;;  %v10294_v27 = vld [vmem:[#allocation3 + $0xe24] sm:$0xf0]  ;;  %v8515_v9 = vld [vmem:[#allocation3 + $0xea0] sm:$0xf] }
  0xef   :  { %5426 = vmatpush.bf16.msra.mxu2 %v8324_v54  ;;  %v8492_v54 = vor.u32 %v10304_v21, %v8491_v16  ;;  %v8475_v16 = vld [vmem:[#allocation3 + $0xe50] sm:$0xf]  ;;  %v8676_v21 = vor.u32 %v10350_v11, %v8675_v8 }
  0xf0   :  { %5439 = vmatpush.bf16.msra.mxu3 %v8388_v59  ;;  %v8483_v59 = vld [vmem:[#allocation3 + $0xe60] sm:$0xf]  ;;  %v8476_v33 = vor.u32 %v10300_v18, %v8475_v16  ;;  %v8651_v16 = vld [vmem:[#allocation3 + $0xfb0] sm:$0xf]  ;;  %v10344_v18 = vld [vmem:[#allocation3 + $0xfb4] sm:$0xf0] }
  0xf1   :  { %5401 = vmatpush.bf16.msra.mxu0 %v8188_v3  ;;  %v10334_v3 = vld [vmem:[#allocation3 + $0xf64] sm:$0xf0]  ;;  %v8652_v31 = vor.u32 %v10344_v18, %v8651_v16  ;;  %v8563_v18 = vld [vmem:[#allocation3 + $0xf00] sm:$0xf] }
  0xf2   :  { %5414 = vmatpush.bf16.msra.mxu1 %v8252_v12  ;;  %v10924_v12 = vpack.c.bf16 %v149_v56, %v149_v56  ;;  %v8612_v15 = vor.u32 %v10334_v3, %v8611_v2  ;;  %v8659_v56 = vld [vmem:[#allocation3 + $0xfc0] sm:$0xf]  ;;  %v10296_v2 = vld [vmem:[#allocation3 + $0xe34] sm:$0xf0]  ;;  %v8523_v3 = vld [vmem:[#allocation3 + $0xeb0] sm:$0xf] }
  0xf3   :  { %5427 = vmatpush.bf16.msra.mxu2 %v8316_v13  ;;  %v8484_v13 = vor.u32 %v10302_v60, %v8483_v59  ;;  %v10306_v16 = vld [vmem:[#allocation3 + $0xe84] sm:$0xf0] }
  0xf4   :  { %5440 = vmatpush.bf16.msra.mxu3 %v8380_v19  ;;  %v8539_v19 = vld [vmem:[#allocation3 + $0xed0] sm:$0xf] }
  0xf5   :  { %5402 = vmatpush.bf16.msra.mxu0 %v8180_v39  ;;  %v8540_v39 = vor.u32 %v10316_v26, %v8539_v19  ;;  %v5196_v55 = vpop.f32.mrf.mxu0  ;;  %v8460_v19 = vor.u32 %v10296_v2, %v8459_v1  ;;  %v8451_v26 = vld [vmem:[#allocation3 + $0xe20] sm:$0xf]  ;;  %v8571_v1 = vld [vmem:[#allocation3 + $0xf10] sm:$0xf]  ;;  %v10324_v2 = vld [vmem:[#allocation3 + $0xf14] sm:$0xf0] }
  0xf6   :  { %5415 = vmatpush.bf16.msra.mxu1 %v8244_v48  ;;  %v10298_v48 = vld [vmem:[#allocation3 + $0xe44] sm:$0xf0]  ;;  %v5209_v60 = vpop.f32.mrf.mxu1 }
  0xf7   :  { %5428 = vmatpush.bf16.msra.mxu2 %v8308_v49  ;;  %v8531_v49 = vld [vmem:[#allocation3 + $0xec0] sm:$0xf]  ;;  %v8468_v59 = vor.u32 %v10298_v48, %v8467_v47 }
  0xf8   :  { %5441 = vmatpush.bf16.msra.mxu3 %v8372_v53  ;;  %5403 = vmatmul.bf16.vlgmr.msra.gmra.mxu0 %v10918_v63  ;;  %v8595_v53 = vld [vmem:[#allocation3 + $0xf40] sm:$0xf]  ;;  %v8532_v61 = vor.u32 %v10314_v52, %v8531_v49 }
  0xf9   :  { %5447 = vmatpush.bf16.msrb.mxu0 %v8492_v54  ;;  %5416 = vmatmul.bf16.vlgmr.msra.gmra.mxu1 %v10922_v7  ;;  %v10330_v54 = vld [vmem:[#allocation3 + $0xf44] sm:$0xf0]  ;;  %v8643_v49 = vld [vmem:[#allocation3 + $0xfa0] sm:$0xf] }
  0xfa   :  { %5460 = vmatpush.bf16.msrb.mxu1 %v8556_v57  ;;  %5429 = vmatmul.bf16.vlgmr.msra.gmra.mxu2 %v10920_v4  ;;  %v10346_v57 = vld [vmem:[#allocation3 + $0xfc4] sm:$0xf0] }
  0xfb   :  { %5473 = vmatpush.bf16.msrb.mxu2 %v8620_v58  ;;  %5442 = vmatmul.bf16.vlgmr.msra.gmra.mxu3 %v10924_v12  ;;  %v5197_v58 = vadd.f32 %v5196_v55, %v10913_v51  ;;  %v8660_v8 = vor.u32 %v10346_v57, %v8659_v56 }
  0xfc   :  { %5486 = vmatpush.bf16.msrb.mxu3 %v8684_v62  ;;  %v8596_v62 = vor.u32 %v10330_v54, %v8595_v53  ;;  %v8452_v53 = vor.u32 %v10294_v27, %v8451_v26  ;;  %v8443_v54 = vld [vmem:[#allocation3 + $0xe10] sm:$0xf]  ;;  %v8627_v26 = vld [vmem:[#allocation3 + $0xf80] sm:$0xf]  ;;  %v10338_v27 = vld [vmem:[#allocation3 + $0xf84] sm:$0xf0] }
  0xfd   :  { %5448 = vmatpush.bf16.msrb.mxu0 %v8484_v13  ;;  %v5210_v11 = vadd.f32 %v5209_v60, %v5197_v58  ;;  %v10312_v13 = vld [vmem:[#allocation3 + $0xeb4] sm:$0xf0]  ;;  %v5222_v32 = vpop.f32.mrf.mxu2  ;;  %v5198_v52 = vpop.f32.mrf.mxu0  ;;  %v8507_v60 = vld [vmem:[#allocation3 + $0xe90] sm:$0xf] }
  0xfe   :  { %5461 = vmatpush.bf16.msrb.mxu1 %v8548_v14  ;;  %v8587_v14 = vld [vmem:[#allocation3 + $0xf30] sm:$0xf]  ;;  %v8524_v51 = vor.u32 %v10312_v13, %v8523_v3  ;;  %v5235_v48 = vpop.f32.mrf.mxu3  ;;  %v5211_v55 = vpop.f32.mrf.mxu1  ;;  %v10290_v13 = vld [vmem:[#allocation3 + $0xe04] sm:$0xf0] }
  0xff   :  { %5474 = vmatpush.bf16.msrb.mxu2 %v8612_v15  ;;  %v10328_v15 = vld [vmem:[#allocation3 + $0xf34] sm:$0xf0]  ;;  %v5223_v47 = vadd.f32 %v5222_v32, %v5210_v11  ;;  %v8635_v3 = vld [vmem:[#allocation3 + $0xf90] sm:$0xf]  ;;  %v8435_v11 = vld [vmem:[#allocation3 + $0xe00] sm:$0xf] }
 0x100   :  { %5487 = vmatpush.bf16.msrb.mxu3 %v8676_v21  ;;  %v8588_v21 = vor.u32 %v10328_v15, %v8587_v14  ;;  %v8499_v15 = vld [vmem:[#allocation3 + $0xe80] sm:$0xf]  ;;  %v10368_v32 = vld [vmem:[#allocation3 + $0x1074] sm:$0xf0]  ;;  %v8436_v52 = vor.u32 %v10290_v13, %v8435_v11 }
 0x101   :  { %5449 = vmatpush.bf16.msrb.mxu0 %v8476_v33  ;;  %v10310_v33 = vld [vmem:[#allocation3 + $0xea4] sm:$0xf0]  ;;  %v10931_v56 = vadd.f32 %v5235_v48, %v5223_v47  ;;  %v8875_v47 = vld [vmem:[#allocation3 + $0x1170] sm:$0xf]  ;;  %v10400_v48 = vld [vmem:[#allocation3 + $0x1174] sm:$0xf0]  ;;  %v8500_v55 = vor.u32 %v10306_v16, %v8499_v15 }
 0x102   :  { %5462 = vmatpush.bf16.msrb.mxu1 %v8540_v39  ;;  %v8579_v39 = vld [vmem:[#allocation3 + $0xf20] sm:$0xf]  ;;  %v8516_v57 = vor.u32 %v10310_v33, %v8515_v9  ;;  %v8747_v9 = vld [vmem:[#allocation3 + $0x1070] sm:$0xf]  ;;  %v10398_v15 = vld [vmem:[#allocation3 + $0x1164] sm:$0xf0] }
 0x103   :  { %5475 = vmatpush.bf16.msrb.mxu2 %v8604_v42  ;;  %v10326_v42 = vld [vmem:[#allocation3 + $0xf24] sm:$0xf0]  ;;  %v8811_v33 = vld [vmem:[#allocation3 + $0x10f0] sm:$0xf] }
 0x104   :  { %5488 = vmatpush.bf16.msrb.mxu3 %v8668_v50  ;;  %v10342_v50 = vld [vmem:[#allocation3 + $0xfa4] sm:$0xf0]  ;;  %v8580_v58 = vor.u32 %v10326_v42, %v8579_v39  ;;  %v10384_v39 = vld [vmem:[#allocation3 + $0x10f4] sm:$0xf0] }
 0x105   :  { %5450 = vmatpush.bf16.msrb.mxu0 %v8468_v59  ;;  %v10292_v59 = vld [vmem:[#allocation3 + $0xe14] sm:$0xf0]  ;;  %v5224_v42 = vpop.f32.mrf.mxu2 }
 0x106   :  { %5463 = vmatpush.bf16.msrb.mxu1 %v8532_v61  ;;  %v10308_v61 = vld [vmem:[#allocation3 + $0xe94] sm:$0xf0]  ;;  %v8444_v14 = vor.u32 %v10292_v59, %v8443_v54  ;;  %v152_v59 = vld.sshfl [vmem:[#allocation1 + $0x30] sm:$0xff pattern:$0x73625140] }
 0x107   :  { %5476 = vmatpush.bf16.msrb.mxu2 %v8596_v62  ;;  %v8644_v62 = vor.u32 %v10342_v50, %v8643_v49  ;;  %v5237_v49 = vpop.f32.mrf.mxu3  ;;  %v95_v50 = vld [vmem:[%s11239_s0 + $0x40] sm:$0xff]  ;;  %v10366_v42 = vld [vmem:[#allocation3 + $0x1064] sm:$0xf0]  ;;  %v10938_v16 = vpack.c.bf16 %v152_v59, %v152_v59  ;;  %v8723_v59 = vld [vmem:[#allocation3 + $0x1040] sm:$0xf] }
 0x108   :  { %5489 = vmatpush.bf16.msrb.mxu3 %v8660_v8  ;;  %v10340_v8 = vld [vmem:[#allocation3 + $0xf94] sm:$0xf0]  ;;  %154 = vst [vmem:[#allocation1] ss:$4 sm:$0xff] %v95_v50  ;;  %v8859_v50 = vld [vmem:[#allocation3 + $0x1150] sm:$0xf] }
 0x109   :  { %5451 = vmatpush.bf16.msrb.mxu0 %v8460_v19  ;;  %v10322_v19 = vld [vmem:[#allocation3 + $0xf04] sm:$0xf0]  ;;  %v10416_v54 = vld [vmem:[#allocation3 + $0x11f4] sm:$0xf0]  ;;  %11264 = vst [vmem:[#allocation13_spill] sm:$0xff] %v10938_v16 }
 0x10a   :  { %5464 = vmatpush.bf16.msrb.mxu1 %v8524_v51  ;;  %v8508_v51 = vor.u32 %v10308_v61, %v8507_v60  ;;  %v8628_v60 = vor.u32 %v10338_v27, %v8627_v26  ;;  %v8748_v61 = vor.u32 %v10368_v32, %v8747_v9  ;;  %v10414_v26 = vld [vmem:[#allocation3 + $0x11e4] sm:$0xf0]  ;;  %v10380_v49 = vld [vmem:[#allocation3 + $0x10d4] sm:$0xf0] }
 0x10b   :  { %5477 = vmatpush.bf16.msrb.mxu2 %v8588_v21  ;;  %v8572_v21 = vor.u32 %v10324_v2, %v8571_v1  ;;  %v153_v1 = vld.sshfl [vmem:[#allocation1 + $0x38] sm:$0xff pattern:$0x73625140]  ;;  %v8812_v2 = vor.u32 %v10384_v39, %v8811_v33  ;;  %v10364_v39 = vld [vmem:[#allocation3 + $0x1054] sm:$0xf0] }
 0x10c   :  { %5490 = vmatpush.bf16.msrb.mxu3 %v8652_v31  ;;  %v8636_v31 = vor.u32 %v10340_v8, %v8635_v3  ;;  %v8876_v3 = vor.u32 %v10400_v48, %v8875_v47  ;;  %v8739_v8 = vld [vmem:[#allocation3 + $0x1060] sm:$0xf]  ;;  %v10942_v27 = vpack.c.bf16 %v153_v1, %v153_v1  ;;  %v8731_v33 = vld [vmem:[#allocation3 + $0x1050] sm:$0xf]  ;;  %v10378_v1 = vld [vmem:[#allocation3 + $0x10c4] sm:$0xf0] }
 0x10d   :  { %5452 = vmatpush.bf16.msrb.mxu0 %v8452_v53  ;;  %v8939_v53 = vld [vmem:[#allocation3 + $0x11f0] sm:$0xf]  ;;  %v8740_v9 = vor.u32 %v10366_v42, %v8739_v8  ;;  %v8915_v42 = vld [vmem:[#allocation3 + $0x11c0] sm:$0xf] }
 0x10e   :  { %5465 = vmatpush.bf16.msrb.mxu1 %v8516_v57  ;;  %v8564_v57 = vor.u32 %v10322_v19, %v8563_v18  ;;  %v8940_v11 = vor.u32 %v10416_v54, %v8939_v53  ;;  %v8931_v19 = vld [vmem:[#allocation3 + $0x11e0] sm:$0xf]  ;;  %11266 = vst [vmem:[#allocation15_spill] sm:$0xff] %v10942_v27  ;;  %v8795_v47 = vld [vmem:[#allocation3 + $0x10d0] sm:$0xf] }
 0x10f   :  { %5478 = vmatpush.bf16.msrb.mxu2 %v8580_v58  ;;  %v150_v58 = vld.sshfl [vmem:[#allocation1 + $0x20] sm:$0xff pattern:$0x73625140]  ;;  %v8932_v48 = vor.u32 %v10414_v26, %v8931_v19  ;;  %v8923_v53 = vld [vmem:[#allocation3 + $0x11d0] sm:$0xf] }
 0x110   :  { %5491 = vmatpush.bf16.msrb.mxu3 %v8644_v62  ;;  %v151_v62 = vld.sshfl [vmem:[#allocation1 + $0x28] sm:$0xff pattern:$0x73625140]  ;;  %v10936_v13 = vpack.c.bf16 %v150_v58, %v150_v58  ;;  %v10412_v54 = vld [vmem:[#allocation3 + $0x11d4] sm:$0xf0] }
 0x111   :  { %5453 = vmatpush.bf16.msrb.mxu0 %v8444_v14  ;;  %v8803_v14 = vld [vmem:[#allocation3 + $0x10e0] sm:$0xf]  ;;  %v10940_v18 = vpack.c.bf16 %v151_v62, %v151_v62  ;;  %v8924_v62 = vor.u32 %v10412_v54, %v8923_v53  ;;  %v8715_v26 = vld [vmem:[#allocation3 + $0x1030] sm:$0xf] }
 0x112   :  { %5466 = vmatpush.bf16.msrb.mxu1 %v8508_v51  ;;  %v10382_v51 = vld [vmem:[#allocation3 + $0x10e4] sm:$0xf0]  ;;  %v8707_v54 = vld [vmem:[#allocation3 + $0x1020] sm:$0xf] }
 0x113   :  { %5479 = vmatpush.bf16.msrb.mxu2 %v8572_v21  ;;  %v8867_v21 = vld [vmem:[#allocation3 + $0x1160] sm:$0xf]  ;;  %11265 = vst [vmem:[#allocation14_spill] sm:$0xff] %v10940_v18 }
 0x114   :  { %5492 = vmatpush.bf16.msrb.mxu3 %v8636_v31  ;;  %v8804_v31 = vor.u32 %v10382_v51, %v8803_v14  ;;  %v8868_v32 = vor.u32 %v10398_v15, %v8867_v21  ;;  %v10410_v14 = vld [vmem:[#allocation3 + $0x11c4] sm:$0xf0] }
 0x115   :  { %5454 = vmatpush.bf16.msrb.mxu0 %v8436_v52  ;;  %v10396_v52 = vld [vmem:[#allocation3 + $0x1154] sm:$0xf0]  ;;  %v5248_v8 = vpop.f32.mrf.mxu0 }
 0x116   :  { %5467 = vmatpush.bf16.msrb.mxu1 %v8500_v55  ;;  %v8732_v55 = vor.u32 %v10364_v39, %v8731_v33  ;;  %v8860_v58 = vor.u32 %v10396_v52, %v8859_v50  ;;  %v5261_v21 = vpop.f32.mrf.mxu1  ;;  %v10376_v39 = vld [vmem:[#allocation3 + $0x10b4] sm:$0xf0] }
 0x117   :  { %5480 = vmatpush.bf16.msrb.mxu2 %v8564_v57  ;;  %v8796_v57 = vor.u32 %v10380_v49, %v8795_v47  ;;  %v8843_v47 = vld [vmem:[#allocation3 + $0x1130] sm:$0xf]  ;;  %v10408_v50 = vld [vmem:[#allocation3 + $0x11b4] sm:$0xf0] }
 0x118   :  { %5493 = vmatpush.bf16.msrb.mxu3 %v8628_v60  ;;  %5455 = vmatmul.bf16.vlgmr.msrb.gmra.mxu0 %v10936_v13  ;;  %v10362_v60 = vld [vmem:[#allocation3 + $0x1044] sm:$0xf0]  ;;  %v8907_v49 = vld [vmem:[#allocation3 + $0x11b0] sm:$0xf] }
 0x119   :  { %5499 = vmatpush.bf16.msra.mxu0 %v8748_v61  ;;  %5468 = vmatmul.bf16.vlgmr.msrb.gmra.mxu1 %v10940_v18  ;;  %v8787_v61 = vld [vmem:[#allocation3 + $0x10c0] sm:$0xf]  ;;  %v8724_v51 = vor.u32 %v10362_v60, %v8723_v59  ;;  %v10374_v60 = vld [vmem:[#allocation3 + $0x10a4] sm:$0xf0] }
 0x11a   :  { %5512 = vmatpush.bf16.msra.mxu1 %v8812_v2  ;;  %5481 = vmatmul.bf16.vlgmr.msrb.gmra.mxu2 %v10938_v16  ;;  %v8851_v2 = vld [vmem:[#allocation3 + $0x1140] sm:$0xf]  ;;  %v8788_v15 = vor.u32 %v10378_v1, %v8787_v61  ;;  %v10430_v18 = vld [vmem:[#allocation3 + $0x1264] sm:$0xf0] }
 0x11b   :  { %5525 = vmatpush.bf16.msra.mxu2 %v8876_v3  ;;  %5494 = vmatmul.bf16.vlgmr.msrb.gmra.mxu3 %v10942_v27  ;;  %v10394_v3 = vld [vmem:[#allocation3 + $0x1144] sm:$0xf0]  ;;  %v8835_v61 = vld [vmem:[#allocation3 + $0x1120] sm:$0xf] }
 0x11c   :  { %5538 = vmatpush.bf16.msra.mxu3 %v8940_v11  ;;  %v5249_v11 = vadd.f32 %v5248_v8, %v10931_v56  ;;  %v8852_v19 = vor.u32 %v10394_v3, %v8851_v2  ;;  %v8899_v3 = vld [vmem:[#allocation3 + $0x11a0] sm:$0xf]  ;;  %v10406_v8 = vld [vmem:[#allocation3 + $0x11a4] sm:$0xf0] }
 0x11d   :  { %5500 = vmatpush.bf16.msra.mxu0 %v8740_v9  ;;  %v10360_v9 = vld [vmem:[#allocation3 + $0x1034] sm:$0xf0]  ;;  %v5274_v59 = vpop.f32.mrf.mxu2  ;;  %v8995_v16 = vld [vmem:[#allocation3 + $0x1260] sm:$0xf] }
 0x11e   :  { %5513 = vmatpush.bf16.msra.mxu1 %v8804_v31  ;;  %v8779_v31 = vld [vmem:[#allocation3 + $0x10b0] sm:$0xf]  ;;  %v5262_v33 = vadd.f32 %v5261_v21, %v5249_v11  ;;  %v8716_v52 = vor.u32 %v10360_v9, %v8715_v26  ;;  %v5287_v2 = vpop.f32.mrf.mxu3  ;;  %v10356_v26 = vld [vmem:[#allocation3 + $0x1014] sm:$0xf0] }
 0x11f   :  { %5526 = vmatpush.bf16.msra.mxu2 %v8868_v32  ;;  %v8916_v32 = vor.u32 %v10410_v14, %v8915_v42  ;;  %v8780_v56 = vor.u32 %v10376_v39, %v8779_v31  ;;  %v5250_v42 = vpop.f32.mrf.mxu0  ;;  %v8699_v11 = vld [vmem:[#allocation3 + $0x1010] sm:$0xf]  ;;  %v10372_v31 = vld [vmem:[#allocation3 + $0x1094] sm:$0xf0] }
 0x120   :  { %5539 = vmatpush.bf16.msra.mxu3 %v8932_v48  ;;  %v10392_v48 = vld [vmem:[#allocation3 + $0x1134] sm:$0xf0]  ;;  %v5275_v1 = vadd.f32 %v5274_v59, %v5262_v33  ;;  %v8763_v9 = vld [vmem:[#allocation3 + $0x1090] sm:$0xf] }
 0x121   :  { %5501 = vmatpush.bf16.msra.mxu0 %v8732_v55  ;;  %v8844_v53 = vor.u32 %v10392_v48, %v8843_v47  ;;  %v10358_v55 = vld [vmem:[#allocation3 + $0x1024] sm:$0xf0]  ;;  %v8827_v33 = vld [vmem:[#allocation3 + $0x1110] sm:$0xf]  ;;  %v10388_v39 = vld [vmem:[#allocation3 + $0x1114] sm:$0xf0] }
 0x122   :  { %5514 = vmatpush.bf16.msra.mxu1 %v8796_v57  ;;  %v8771_v57 = vld [vmem:[#allocation3 + $0x10a0] sm:$0xf]  ;;  %v8708_v14 = vor.u32 %v10358_v55, %v8707_v54  ;;  %v10949_v21 = vadd.f32 %v5287_v2, %v5275_v1  ;;  %v8891_v47 = vld [vmem:[#allocation3 + $0x1190] sm:$0xf]  ;;  %v10404_v48 = vld [vmem:[#allocation3 + $0x1194] sm:$0xf0]  ;;  %v8828_v59 = vor.u32 %v10388_v39, %v8827_v33 }
 0x123   :  { %5527 = vmatpush.bf16.msra.mxu2 %v8860_v58  ;;  %v8908_v58 = vor.u32 %v10408_v50, %v8907_v49  ;;  %v8691_v49 = vld [vmem:[#allocation3 + $0x1000] sm:$0xf]  ;;  %v10354_v50 = vld [vmem:[#allocation3 + $0x1004] sm:$0xf0]  ;;  %v10432_v1 = vld [vmem:[#allocation3 + $0x1274] sm:$0xf0] }
 0x124   :  { %5540 = vmatpush.bf16.msra.mxu3 %v8924_v62  ;;  %v10390_v62 = vld [vmem:[#allocation3 + $0x1124] sm:$0xf0]  ;;  %v8755_v54 = vld [vmem:[#allocation3 + $0x1080] sm:$0xf]  ;;  %v9067_v2 = vld [vmem:[#allocation3 + $0x12f0] sm:$0xf] }
 0x125   :  { %5502 = vmatpush.bf16.msra.mxu0 %v8724_v51  ;;  %v5263_v51 = vpop.f32.mrf.mxu1  ;;  %v10386_v55 = vld [vmem:[#allocation3 + $0x1104] sm:$0xf0]  ;;  %v9131_v42 = vld [vmem:[#allocation3 + $0x1370] sm:$0xf] }
 0x126   :  { %5515 = vmatpush.bf16.msra.mxu1 %v8788_v15  ;;  %v8772_v15 = vor.u32 %v10374_v60, %v8771_v57  ;;  %v8764_v57 = vor.u32 %v10372_v31, %v8763_v9  ;;  %v8883_v60 = vld [vmem:[#allocation3 + $0x1180] sm:$0xf]  ;;  %v158_v33 = vld.sshfl [vmem:[#allocation1 + $0x10] sm:$0xff pattern:$0x73625140] }
 0x127   :  { %5528 = vmatpush.bf16.msra.mxu2 %v8852_v19  ;;  %v8836_v19 = vor.u32 %v10390_v62, %v8835_v61  ;;  %v10402_v61 = vld [vmem:[#allocation3 + $0x1184] sm:$0xf0]  ;;  %v8892_v62 = vor.u32 %v10404_v48, %v8891_v47  ;;  %v96_v51 = vld [vmem:[%s11239_s0 + $0x48] sm:$0xff] }
 0x128   :  { %5541 = vmatpush.bf16.msra.mxu3 %v8916_v32  ;;  %v8900_v32 = vor.u32 %v10406_v8, %v8899_v3  ;;  %v10448_v3 = vld [vmem:[#allocation3 + $0x12f4] sm:$0xf0]  ;;  %v5276_v8 = vpop.f32.mrf.mxu2  ;;  %155 = vst [vmem:[#allocation1 + $0x20] ss:$4 sm:$0xff] %v96_v51  ;;  %v8884_v39 = vor.u32 %v10402_v61, %v8883_v60  ;;  %v10478_v60 = vld [vmem:[#allocation3 + $0x13e4] sm:$0xf0] }
 0x129   :  { %5503 = vmatpush.bf16.msra.mxu0 %v8716_v52  ;;  %v8700_v52 = vor.u32 %v10356_v26, %v8699_v11  ;;  %v5289_v11 = vpop.f32.mrf.mxu3  ;;  %v10480_v26 = vld [vmem:[#allocation3 + $0x13f4] sm:$0xf0]  ;;  %v157_v48 = vld.sshfl [vmem:[#allocation1 + $0x8] sm:$0xff pattern:$0x73625140] }
 0x12a   :  { %5516 = vmatpush.bf16.msra.mxu1 %v8780_v56  ;;  %v10370_v56 = vld [vmem:[#allocation3 + $0x1084] sm:$0xf0]  ;;  %v159_v8 = vld.sshfl [vmem:[#allocation1 + $0x18] sm:$0xff pattern:$0x73625140]  ;;  %v9068_v11 = vor.u32 %v10448_v3, %v9067_v2 }
 0x12b   :  { %5529 = vmatpush.bf16.msra.mxu2 %v8844_v53  ;;  %v8819_v53 = vld [vmem:[#allocation3 + $0x1100] sm:$0xf]  ;;  %v8756_v9 = vor.u32 %v10370_v56, %v8755_v54  ;;  %v10462_v54 = vld [vmem:[#allocation3 + $0x1364] sm:$0xf0]  ;;  %v10956_v56 = vpack.c.bf16 %v158_v33, %v158_v33  ;;  %v10960_v61 = vpack.c.bf16 %v159_v8, %v159_v8  ;;  %v8987_v2 = vld [vmem:[#allocation3 + $0x1250] sm:$0xf] }
 0x12c   :  { %5542 = vmatpush.bf16.msra.mxu3 %v8908_v58  ;;  %v9003_v58 = vld [vmem:[#allocation3 + $0x1270] sm:$0xf]  ;;  %v8820_v31 = vor.u32 %v10386_v55, %v8819_v53  ;;  %v10958_v53 = vpack.c.bf16 %v157_v48, %v157_v48  ;;  %v9187_v55 = vld [vmem:[#allocation3 + $0x13e0] sm:$0xf]  ;;  %v10428_v3 = vld [vmem:[#allocation3 + $0x1254] sm:$0xf0] }
 0x12d   :  { %5504 = vmatpush.bf16.msra.mxu0 %v8708_v14  ;;  %v10464_v14 = vld [vmem:[#allocation3 + $0x1374] sm:$0xf0]  ;;  %v9004_v47 = vor.u32 %v10432_v1, %v9003_v58  ;;  %11268 = vst [vmem:[#allocation17_spill] sm:$0xff] %v10956_v56  ;;  %v8996_v58 = vor.u32 %v10430_v18, %v8995_v16  ;;  %v8988_v18 = vor.u32 %v10428_v3, %v8987_v2  ;;  %v9043_v33 = vld [vmem:[#allocation3 + $0x12c0] sm:$0xf] }
 0x12e   :  { %5517 = vmatpush.bf16.msra.mxu1 %v8772_v15  ;;  %v8692_v15 = vor.u32 %v10354_v50, %v8691_v49  ;;  %v9132_v27 = vor.u32 %v10464_v14, %v9131_v42  ;;  %11269 = vst [vmem:[#allocation18_spill] sm:$0xff] %v10958_v53  ;;  %v9051_v42 = vld [vmem:[#allocation3 + $0x12d0] sm:$0xf]  ;;  %v9188_v14 = vor.u32 %v10478_v60, %v9187_v55  ;;  %v10444_v51 = vld [vmem:[#allocation3 + $0x12d4] sm:$0xf0] }
 0x12f   :  { %5530 = vmatpush.bf16.msra.mxu2 %v8836_v19  ;;  %v9195_v19 = vld [vmem:[#allocation3 + $0x13f0] sm:$0xf]  ;;  %11270 = vst [vmem:[#allocation19_spill] sm:$0xff] %v10960_v61  ;;  %v10476_v16 = vld [vmem:[#allocation3 + $0x13d4] sm:$0xf0] }
 0x130   :  { %5543 = vmatpush.bf16.msra.mxu3 %v8900_v32  ;;  %v156_v32 = vld.sshfl [vmem:[#allocation1] sm:$0xff pattern:$0x73625140]  ;;  %v9196_v49 = vor.u32 %v10480_v26, %v9195_v19  ;;  %v9179_v26 = vld [vmem:[#allocation3 + $0x13d0] sm:$0xf] }
 0x131   :  { %5505 = vmatpush.bf16.msra.mxu0 %v8700_v52  ;;  %v9059_v52 = vld [vmem:[#allocation3 + $0x12e0] sm:$0xf]  ;;  %v10954_v50 = vpack.c.bf16 %v156_v32, %v156_v32  ;;  %v10460_v19 = vld [vmem:[#allocation3 + $0x1354] sm:$0xf0]  ;;  %v10426_v32 = vld [vmem:[#allocation3 + $0x1244] sm:$0xf0] }
 0x132   :  { %5518 = vmatpush.bf16.msra.mxu1 %v8764_v57  ;;  %v10446_v57 = vld [vmem:[#allocation3 + $0x12e4] sm:$0xf0]  ;;  %v9107_v48 = vld [vmem:[#allocation3 + $0x1340] sm:$0xf] }
 0x133   :  { %5531 = vmatpush.bf16.msra.mxu2 %v8828_v59  ;;  %11267 = vst [vmem:[#allocation16_spill] sm:$0xff] %v10954_v50  ;;  %v9123_v59 = vld [vmem:[#allocation3 + $0x1360] sm:$0xf]  ;;  %v10458_v8 = vld [vmem:[#allocation3 + $0x1344] sm:$0xf0] }
 0x134   :  { %5544 = vmatpush.bf16.msra.mxu3 %v8892_v62  ;;  %v9060_v62 = vor.u32 %v10446_v57, %v9059_v52  ;;  %v9124_v1 = vor.u32 %v10462_v54, %v9123_v59  ;;  %v9171_v52 = vld [vmem:[#allocation3 + $0x13c0] sm:$0xf]  ;;  %v9108_v60 = vor.u32 %v10458_v8, %v9107_v48 }
 0x135   :  { %5506 = vmatpush.bf16.msra.mxu0 %v8692_v15  ;;  %v9115_v15 = vld [vmem:[#allocation3 + $0x1350] sm:$0xf] }
 0x136   :  { %5519 = vmatpush.bf16.msra.mxu1 %v8756_v9  ;;  %v9116_v9 = vor.u32 %v10460_v19, %v9115_v15  ;;  %v5313_v54 = vpop.f32.mrf.mxu1  ;;  %v9163_v15 = vld [vmem:[#allocation3 + $0x13b0] sm:$0xf]  ;;  %v10472_v19 = vld [vmem:[#allocation3 + $0x13b4] sm:$0xf0] }
 0x137   :  { %5532 = vmatpush.bf16.msra.mxu2 %v8820_v31  ;;  %v8979_v31 = vld [vmem:[#allocation3 + $0x1240] sm:$0xf] }
 0x138   :  { %5545 = vmatpush.bf16.msra.mxu3 %v8884_v39  ;;  %5507 = vmatmul.bf16.vlgmr.msra.gmra.mxu0 %v10954_v50  ;;  %v9180_v39 = vor.u32 %v10476_v16, %v9179_v26  ;;  %v8980_v59 = vor.u32 %v10426_v32, %v8979_v31  ;;  %v9164_v31 = vor.u32 %v10472_v19, %v9163_v15  ;;  %v10468_v15 = vld [vmem:[#allocation3 + $0x1394] sm:$0xf0]  ;;  %v8947_v19 = vld [vmem:[#allocation3 + $0x1200] sm:$0xf]  ;;  %v10494_v50 = vld [vmem:[#allocation3 + $0x1464] sm:$0xf0] }
 0x139   :  { %5551 = vmatpush.bf16.msrb.mxu0 %v9004_v47  ;;  %5520 = vmatmul.bf16.vlgmr.msra.gmra.mxu1 %v10958_v53  ;;  %v10442_v47 = vld [vmem:[#allocation3 + $0x12c4] sm:$0xf0]  ;;  %v9251_v53 = vld [vmem:[#allocation3 + $0x1460] sm:$0xf] }
 0x13a   :  { %5564 = vmatpush.bf16.msrb.mxu1 %v9068_v11  ;;  %5533 = vmatmul.bf16.vlgmr.msra.gmra.mxu2 %v10956_v56  ;;  %v5300_v11 = vpop.f32.mrf.mxu0  ;;  %v9044_v55 = vor.u32 %v10442_v47, %v9043_v33  ;;  %v10438_v33 = vld [vmem:[#allocation3 + $0x12a4] sm:$0xf0] }
 0x13b   :  { %5577 = vmatpush.bf16.msrb.mxu2 %v9132_v27  ;;  %5546 = vmatmul.bf16.vlgmr.msra.gmra.mxu3 %v10960_v61  ;;  %v9052_v27 = vor.u32 %v10444_v51, %v9051_v42  ;;  %v5301_v57 = vadd.f32 %v5300_v11, %v10949_v21  ;;  %v10440_v42 = vld [vmem:[#allocation3 + $0x12b4] sm:$0xf0]  ;;  %v10454_v47 = vld [vmem:[#allocation3 + $0x1324] sm:$0xf0]  ;;  %v9155_v11 = vld [vmem:[#allocation3 + $0x13a0] sm:$0xf] }
 0x13c   :  { %5590 = vmatpush.bf16.msrb.mxu3 %v9196_v49  ;;  %v10474_v49 = vld [vmem:[#allocation3 + $0x13c4] sm:$0xf0]  ;;  %v10456_v51 = vld [vmem:[#allocation3 + $0x1334] sm:$0xf0] }
 0x13d   :  { %5552 = vmatpush.bf16.msrb.mxu0 %v8996_v58  ;;  %v8971_v58 = vld [vmem:[#allocation3 + $0x1230] sm:$0xf]  ;;  %v9172_v2 = vor.u32 %v10474_v49, %v9171_v52  ;;  %v5314_v3 = vadd.f32 %v5313_v54, %v5301_v57  ;;  %v5326_v32 = vpop.f32.mrf.mxu2  ;;  %v10470_v52 = vld [vmem:[#allocation3 + $0x13a4] sm:$0xf0] }
 0x13e   :  { %5565 = vmatpush.bf16.msrb.mxu1 %v9060_v62  ;;  %v10424_v62 = vld [vmem:[#allocation3 + $0x1234] sm:$0xf0]  ;;  %v5339_v8 = vpop.f32.mrf.mxu3  ;;  %v5315_v54 = vpop.f32.mrf.mxu1 }
 0x13f   :  { %5578 = vmatpush.bf16.msrb.mxu2 %v9124_v1  ;;  %v9035_v1 = vld [vmem:[#allocation3 + $0x12b0] sm:$0xf]  ;;  %v8972_v26 = vor.u32 %v10424_v62, %v8971_v58  ;;  %v5327_v48 = vadd.f32 %v5326_v32, %v5314_v3  ;;  %v10420_v62 = vld [vmem:[#allocation3 + $0x1214] sm:$0xf0]  ;;  %v10450_v32 = vld [vmem:[#allocation3 + $0x1304] sm:$0xf0] }
 0x140   :  { %5591 = vmatpush.bf16.msrb.mxu3 %v9188_v14  ;;  %v9099_v14 = vld [vmem:[#allocation3 + $0x1330] sm:$0xf]  ;;  %v9036_v21 = vor.u32 %v10440_v42, %v9035_v1  ;;  %v9156_v42 = vor.u32 %v10470_v52, %v9155_v11  ;;  %v10512_v52 = vld [vmem:[#allocation3 + $0x14f4] sm:$0xf0] }
 0x141   :  { %5553 = vmatpush.bf16.msrb.mxu0 %v8988_v18  ;;  %v9100_v16 = vor.u32 %v10456_v51, %v9099_v14  ;;  %v8963_v18 = vld [vmem:[#allocation3 + $0x1220] sm:$0xf]  ;;  %v9019_v1 = vld [vmem:[#allocation3 + $0x1290] sm:$0xf]  ;;  %v10452_v14 = vld [vmem:[#allocation3 + $0x1314] sm:$0xf0] }
 0x142   :  { %5566 = vmatpush.bf16.msrb.mxu1 %v9052_v27  ;;  %v10422_v27 = vld [vmem:[#allocation3 + $0x1224] sm:$0xf0]  ;;  %v5302_v49 = vpop.f32.mrf.mxu0  ;;  %v9083_v3 = vld [vmem:[#allocation3 + $0x1310] sm:$0xf] }
 0x143   :  { %5579 = vmatpush.bf16.msrb.mxu2 %v9116_v9  ;;  %v9027_v9 = vld [vmem:[#allocation3 + $0x12a0] sm:$0xf]  ;;  %v8964_v57 = vor.u32 %v10422_v27, %v8963_v18  ;;  %v9147_v51 = vld [vmem:[#allocation3 + $0x1390] sm:$0xf] }
 0x144   :  { %5592 = vmatpush.bf16.msrb.mxu3 %v9180_v39  ;;  %v9091_v39 = vld [vmem:[#allocation3 + $0x1320] sm:$0xf]  ;;  %v9323_v11 = vld [vmem:[#allocation3 + $0x14f0] sm:$0xf] }
 0x145   :  { %5554 = vmatpush.bf16.msrb.mxu0 %v8980_v59  ;;  %v8955_v59 = vld [vmem:[#allocation3 + $0x1210] sm:$0xf]  ;;  %v9092_v58 = vor.u32 %v10454_v47, %v9091_v39  ;;  %v9011_v27 = vld [vmem:[#allocation3 + $0x1280] sm:$0xf]  ;;  %v10466_v47 = vld [vmem:[#allocation3 + $0x1384] sm:$0xf0]  ;;  %v5328_v49 = vpop.f32.mrf.mxu2  ;;  %v9324_v61 = vor.u32 %v10512_v52, %v9323_v11 }
 0x146   :  { %5567 = vmatpush.bf16.msrb.mxu1 %v9044_v55  ;;  %v10967_v55 = vadd.f32 %v5339_v8, %v5327_v48  ;;  %v8956_v18 = vor.u32 %v10420_v62, %v8955_v59  ;;  %v9139_v39 = vld [vmem:[#allocation3 + $0x1380] sm:$0xf]  ;;  %v9148_v48 = vor.u32 %v10468_v15, %v9147_v51  ;;  %v10496_v8 = vld [vmem:[#allocation3 + $0x1474] sm:$0xf0]  ;;  %v9387_v54 = vld [vmem:[#allocation3 + $0x1570] sm:$0xf]  ;;  %v5341_v59 = vpop.f32.mrf.mxu3 }
 0x147   :  { %5580 = vmatpush.bf16.msrb.mxu2 %v9108_v60  ;;  %v9028_v60 = vor.u32 %v10438_v33, %v9027_v9  ;;  %v9084_v33 = vor.u32 %v10452_v14, %v9083_v3  ;;  %v97_v62 = vld [vmem:[%s11239_s0 + $0x50] sm:$0xff]  ;;  %v160_v3 = vld.sshfl [vmem:[#allocation1 + $0x20] sm:$0xff pattern:$0x73625140]  ;;  %v9140_v51 = vor.u32 %v10466_v47, %v9139_v39  ;;  %v9243_v11 = vld [vmem:[#allocation3 + $0x1450] sm:$0xf] }
 0x148   :  { %5593 = vmatpush.bf16.msrb.mxu3 %v9172_v2  ;;  %v10436_v2 = vld [vmem:[#allocation3 + $0x1294] sm:$0xf0]  ;;  %164 = vst [vmem:[#allocation1] ss:$4 sm:$0xff] %v97_v62  ;;  %v10542_v39 = vld [vmem:[#allocation3 + $0x15e4] sm:$0xf0] }
 0x149   :  { %5555 = vmatpush.bf16.msrb.mxu0 %v8972_v26  ;;  %v10418_v26 = vld [vmem:[#allocation3 + $0x1204] sm:$0xf0]  ;;  %v9020_v9 = vor.u32 %v10436_v2, %v9019_v1  ;;  %v10544_v1 = vld [vmem:[#allocation3 + $0x15f4] sm:$0xf0] }
 0x14a   :  { %5568 = vmatpush.bf16.msrb.mxu1 %v9036_v21  ;;  %v10434_v21 = vld [vmem:[#allocation3 + $0x1284] sm:$0xf0]  ;;  %v161_v49 = vld.sshfl [vmem:[#allocation1 + $0x28] sm:$0xff pattern:$0x73625140] }
 0x14b   :  { %5581 = vmatpush.bf16.msrb.mxu2 %v9100_v16  ;;  %v9075_v16 = vld [vmem:[#allocation3 + $0x1300] sm:$0xf]  ;;  %v9012_v2 = vor.u32 %v10434_v21, %v9011_v27  ;;  %v162_v14 = vld.sshfl [vmem:[#allocation1 + $0x30] sm:$0xff pattern:$0x73625140] }
 0x14c   :  { %5594 = vmatpush.bf16.msrb.mxu3 %v9164_v31  ;;  %v9259_v31 = vld [vmem:[#allocation3 + $0x1470] sm:$0xf]  ;;  %v10526_v27 = vld [vmem:[#allocation3 + $0x1564] sm:$0xf0]  ;;  %v10974_v21 = vpack.c.bf16 %v162_v14, %v162_v14  ;;  %v10492_v52 = vld [vmem:[#allocation3 + $0x1454] sm:$0xf0] }
 0x14d   :  { %5556 = vmatpush.bf16.msrb.mxu0 %v8964_v57  ;;  %v10528_v57 = vld [vmem:[#allocation3 + $0x1574] sm:$0xf0]  ;;  %v9260_v15 = vor.u32 %v10496_v8, %v9259_v31  ;;  %v163_v59 = vld.sshfl [vmem:[#allocation1 + $0x38] sm:$0xff pattern:$0x73625140]  ;;  %v9252_v31 = vor.u32 %v10494_v50, %v9251_v53 }
 0x14e   :  { %5569 = vmatpush.bf16.msrb.mxu1 %v9028_v60  ;;  %v8948_v60 = vor.u32 %v10418_v26, %v8947_v19  ;;  %v9388_v56 = vor.u32 %v10528_v57, %v9387_v54  ;;  %v10972_v26 = vpack.c.bf16 %v160_v3, %v160_v3  ;;  %11272 = vst [vmem:[#allocation21_spill] sm:$0xff] %v10974_v21  ;;  %v9307_v54 = vld [vmem:[#allocation3 + $0x14d0] sm:$0xf]  ;;  %v10508_v62 = vld [vmem:[#allocation3 + $0x14d4] sm:$0xf0] }
 0x14f   :  { %5582 = vmatpush.bf16.msrb.mxu2 %v9092_v58  ;;  %v9451_v58 = vld [vmem:[#allocation3 + $0x15f0] sm:$0xf]  ;;  %v10978_v47 = vpack.c.bf16 %v163_v59, %v163_v59  ;;  %v10540_v50 = vld [vmem:[#allocation3 + $0x15d4] sm:$0xf0]  ;;  %v9308_v53 = vor.u32 %v10508_v62, %v9307_v54  ;;  %v9299_v3 = vld [vmem:[#allocation3 + $0x14c0] sm:$0xf] }
 0x150   :  { %5595 = vmatpush.bf16.msrb.mxu3 %v9156_v42  ;;  %v9076_v42 = vor.u32 %v10450_v32, %v9075_v16  ;;  %v9452_v19 = vor.u32 %v10544_v1, %v9451_v58  ;;  %11271 = vst [vmem:[#allocation20_spill] sm:$0xff] %v10972_v26  ;;  %v10976_v16 = vpack.c.bf16 %v161_v49, %v161_v49  ;;  %v9443_v32 = vld [vmem:[#allocation3 + $0x15e0] sm:$0xf]  ;;  %v10524_v58 = vld [vmem:[#allocation3 + $0x1554] sm:$0xf0] }
 0x151   :  { %5557 = vmatpush.bf16.msrb.mxu0 %v8956_v18  ;;  %v9315_v18 = vld [vmem:[#allocation3 + $0x14e0] sm:$0xf]  ;;  %11274 = vst [vmem:[#allocation23_spill] sm:$0xff] %v10978_v47  ;;  %v9444_v57 = vor.u32 %v10542_v39, %v9443_v32  ;;  %v9435_v1 = vld [vmem:[#allocation3 + $0x15d0] sm:$0xf] }
 0x152   :  { %5570 = vmatpush.bf16.msrb.mxu1 %v9020_v9  ;;  %v10510_v9 = vld [vmem:[#allocation3 + $0x14e4] sm:$0xf0]  ;;  %11273 = vst [vmem:[#allocation22_spill] sm:$0xff] %v10976_v16  ;;  %v9436_v14 = vor.u32 %v10540_v50, %v9435_v1  ;;  %v10504_v54 = vld [vmem:[#allocation3 + $0x14b4] sm:$0xf0] }
 0x153   :  { %5583 = vmatpush.bf16.msrb.mxu2 %v9084_v33  ;;  %v9379_v33 = vld [vmem:[#allocation3 + $0x1560] sm:$0xf]  ;;  %v10522_v49 = vld [vmem:[#allocation3 + $0x1544] sm:$0xf0]  ;;  %v10520_v62 = vld [vmem:[#allocation3 + $0x1534] sm:$0xf0] }
 0x154   :  { %5596 = vmatpush.bf16.msrb.mxu3 %v9148_v48  ;;  %v9316_v48 = vor.u32 %v10510_v9, %v9315_v18  ;;  %v9380_v8 = vor.u32 %v10526_v27, %v9379_v33  ;;  %v9427_v18 = vld [vmem:[#allocation3 + $0x15c0] sm:$0xf] }
 0x155   :  { %5558 = vmatpush.bf16.msrb.mxu0 %v8948_v60  ;;  %v9371_v60 = vld [vmem:[#allocation3 + $0x1550] sm:$0xf]  ;;  %v5352_v59 = vpop.f32.mrf.mxu0 }
 0x156   :  { %5571 = vmatpush.bf16.msrb.mxu1 %v9012_v2  ;;  %v9235_v2 = vld [vmem:[#allocation3 + $0x1440] sm:$0xf]  ;;  %v5353_v9 = vadd.f32 %v5352_v59, %v10967_v55  ;;  %v5365_v27 = vpop.f32.mrf.mxu1 }
 0x157   :  { %5584 = vmatpush.bf16.msrb.mxu2 %v9076_v42  ;;  %v10490_v42 = vld [vmem:[#allocation3 + $0x1444] sm:$0xf0]  ;;  %v9411_v59 = vld [vmem:[#allocation3 + $0x15a0] sm:$0xf] }
 0x158   :  { %5597 = vmatpush.bf16.msrb.mxu3 %v9140_v51  ;;  %5559 = vmatmul.bf16.vlgmr.msrb.gmra.mxu0 %v10972_v26  ;;  %v10506_v51 = vld [vmem:[#allocation3 + $0x14c4] sm:$0xf0]  ;;  %v9236_v33 = vor.u32 %v10490_v42, %v9235_v2 }
 0x159   :  { %5603 = vmatpush.bf16.msra.mxu0 %v9260_v15  ;;  %5572 = vmatmul.bf16.vlgmr.msrb.gmra.mxu1 %v10976_v16  ;;  %v9363_v15 = vld [vmem:[#allocation3 + $0x1540] sm:$0xf]  ;;  %v9300_v32 = vor.u32 %v10506_v51, %v9299_v3  ;;  %v10502_v3 = vld [vmem:[#allocation3 + $0x14a4] sm:$0xf0] }
 0x15a   :  { %5616 = vmatpush.bf16.msra.mxu1 %v9324_v61  ;;  %5585 = vmatmul.bf16.vlgmr.msrb.gmra.mxu2 %v10974_v21  ;;  %v9372_v61 = vor.u32 %v10524_v58, %v9371_v60  ;;  %v9364_v39 = vor.u32 %v10522_v49, %v9363_v15  ;;  %v9419_v60 = vld [vmem:[#allocation3 + $0x15b0] sm:$0xf]  ;;  %v10536_v58 = vld [vmem:[#allocation3 + $0x15b4] sm:$0xf0]  ;;  %v10518_v51 = vld [vmem:[#allocation3 + $0x1524] sm:$0xf0] }
 0x15b   :  { %5629 = vmatpush.bf16.msra.mxu2 %v9388_v56  ;;  %5598 = vmatmul.bf16.vlgmr.msrb.gmra.mxu3 %v10978_v47  ;;  %v9244_v56 = vor.u32 %v10492_v52, %v9243_v11  ;;  %v5366_v52 = vadd.f32 %v5365_v27, %v5353_v9  ;;  %v9420_v2 = vor.u32 %v10536_v58, %v9419_v60  ;;  %v10532_v60 = vld [vmem:[#allocation3 + $0x1594] sm:$0xf0]  ;;  %v9203_v58 = vld [vmem:[#allocation3 + $0x1400] sm:$0xf]  ;;  %v10558_v26 = vld [vmem:[#allocation3 + $0x1664] sm:$0xf0] }
 0x15c   :  { %5642 = vmatpush.bf16.msra.mxu3 %v9452_v19  ;;  %v10538_v19 = vld [vmem:[#allocation3 + $0x15c4] sm:$0xf0]  ;;  %v9507_v16 = vld [vmem:[#allocation3 + $0x1660] sm:$0xf] }
 0x15d   :  { %5604 = vmatpush.bf16.msra.mxu0 %v9252_v31  ;;  %v9227_v31 = vld [vmem:[#allocation3 + $0x1430] sm:$0xf]  ;;  %v9428_v11 = vor.u32 %v10538_v19, %v9427_v18  ;;  %v5378_v42 = vpop.f32.mrf.mxu2  ;;  %v10534_v18 = vld [vmem:[#allocation3 + $0x15a4] sm:$0xf0]  ;;  %v5354_v19 = vpop.f32.mrf.mxu0 }
 0x15e   :  { %5617 = vmatpush.bf16.msra.mxu1 %v9316_v48  ;;  %v10488_v48 = vld [vmem:[#allocation3 + $0x1434] sm:$0xf0]  ;;  %v5379_v15 = vadd.f32 %v5378_v42, %v5366_v52  ;;  %v5391_v49 = vpop.f32.mrf.mxu3  ;;  %v5367_v27 = vpop.f32.mrf.mxu1  ;;  %v9339_v52 = vld [vmem:[#allocation3 + $0x1510] sm:$0xf]  ;;  %v10514_v42 = vld [vmem:[#allocation3 + $0x1504] sm:$0xf0] }
 0x15f   :  { %5630 = vmatpush.bf16.msra.mxu2 %v9380_v8  ;;  %v9291_v8 = vld [vmem:[#allocation3 + $0x14b0] sm:$0xf]  ;;  %v9228_v1 = vor.u32 %v10488_v48, %v9227_v31  ;;  %v10484_v48 = vld [vmem:[#allocation3 + $0x1414] sm:$0xf0] }
 0x160   :  { %5643 = vmatpush.bf16.msra.mxu3 %v9444_v57  ;;  %v9355_v57 = vld [vmem:[#allocation3 + $0x1530] sm:$0xf]  ;;  %v9292_v55 = vor.u32 %v10504_v54, %v9291_v8  ;;  %v9412_v54 = vor.u32 %v10534_v18, %v9411_v59  ;;  %v10576_v18 = vld [vmem:[#allocation3 + $0x16f4] sm:$0xf0] }
 0x161   :  { %5605 = vmatpush.bf16.msra.mxu0 %v9244_v56  ;;  %v9356_v50 = vor.u32 %v10520_v62, %v9355_v57  ;;  %v9219_v56 = vld [vmem:[#allocation3 + $0x1420] sm:$0xf]  ;;  %v9275_v8 = vld [vmem:[#allocation3 + $0x1490] sm:$0xf]  ;;  %v10516_v57 = vld [vmem:[#allocation3 + $0x1514] sm:$0xf0] }
 0x162   :  { %5618 = vmatpush.bf16.msra.mxu1 %v9308_v53  ;;  %v10486_v53 = vld [vmem:[#allocation3 + $0x1424] sm:$0xf0]  ;;  %v9403_v62 = vld [vmem:[#allocation3 + $0x1590] sm:$0xf] }
 0x163   :  { %5631 = vmatpush.bf16.msra.mxu2 %v9372_v61  ;;  %v9283_v61 = vld [vmem:[#allocation3 + $0x14a0] sm:$0xf]  ;;  %v9220_v9 = vor.u32 %v10486_v53, %v9219_v56  ;;  %v9579_v59 = vld [vmem:[#allocation3 + $0x16f0] sm:$0xf] }
 0x164   :  { %5644 = vmatpush.bf16.msra.mxu3 %v9436_v14  ;;  %v9347_v14 = vld [vmem:[#allocation3 + $0x1520] sm:$0xf]  ;;  %v9643_v27 = vld [vmem:[#allocation3 + $0x1770] sm:$0xf]  ;;  %v9580_v47 = vor.u32 %v10576_v18, %v9579_v59  ;;  %v10556_v18 = vld [vmem:[#allocation3 + $0x1654] sm:$0xf0] }
 0x165   :  { %5606 = vmatpush.bf16.msra.mxu0 %v9236_v33  ;;  %v9211_v33 = vld [vmem:[#allocation3 + $0x1410] sm:$0xf]  ;;  %v9348_v31 = vor.u32 %v10518_v51, %v9347_v14  ;;  %v9267_v53 = vld [vmem:[#allocation3 + $0x1480] sm:$0xf]  ;;  %v10530_v51 = vld [vmem:[#allocation3 + $0x1584] sm:$0xf0]  ;;  %v5380_v19 = vpop.f32.mrf.mxu2 }
 0x166   :  { %5619 = vmatpush.bf16.msra.mxu1 %v9300_v32  ;;  %v10985_v32 = vadd.f32 %v5391_v49, %v5379_v15  ;;  %v9212_v56 = vor.u32 %v10484_v48, %v9211_v33  ;;  %v9395_v14 = vld [vmem:[#allocation3 + $0x1580] sm:$0xf]  ;;  %v9404_v15 = vor.u32 %v10532_v60, %v9403_v62  ;;  %v10560_v49 = vld [vmem:[#allocation3 + $0x1674] sm:$0xf0]  ;;  %v5393_v33 = vpop.f32.mrf.mxu3  ;;  %v98_v48 = vld [vmem:[%s11239_s0 + $0x58] sm:$0xff] }
 0x167   :  { %5632 = vmatpush.bf16.msra.mxu2 %v9364_v39  ;;  %v9284_v39 = vor.u32 %v10502_v3, %v9283_v61  ;;  %v9340_v3 = vor.u32 %v10516_v57, %v9339_v52  ;;  %165 = vst [vmem:[#allocation1 + $0x20] ss:$4 sm:$0xff] %v98_v48  ;;  %v166_v52 = vld.sshfl [vmem:[#allocation1] sm:$0xff pattern:$0x73625140]  ;;  %v9396_v62 = vor.u32 %v10530_v51, %v9395_v14 }
 0x168   :  { %5645 = vmatpush.bf16.msra.mxu3 %v9428_v11  ;;  %v10500_v11 = vld [vmem:[#allocation3 + $0x1494] sm:$0xf0]  ;;  %v168_v57 = vld.sshfl [vmem:[#allocation1 + $0x10] sm:$0xff pattern:$0x73625140] }
 0x169   :  { %5607 = vmatpush.bf16.msra.mxu0 %v9228_v1  ;;  %v10482_v1 = vld [vmem:[#allocation3 + $0x1404] sm:$0xf0]  ;;  %v9276_v61 = vor.u32 %v10500_v11, %v9275_v8  ;;  %v10608_v8 = vld [vmem:[#allocation3 + $0x17f4] sm:$0xf0]  ;;  %v9499_v59 = vld [vmem:[#allocation3 + $0x1650] sm:$0xf] }
 0x16a   :  { %5620 = vmatpush.bf16.msra.mxu1 %v9292_v55  ;;  %v10498_v55 = vld [vmem:[#allocation3 + $0x1484] sm:$0xf0]  ;;  %v167_v19 = vld.sshfl [vmem:[#allocation1 + $0x8] sm:$0xff pattern:$0x73625140] }
 0x16b   :  { %5633 = vmatpush.bf16.msra.mxu2 %v9356_v50  ;;  %v9331_v50 = vld [vmem:[#allocation3 + $0x1500] sm:$0xf]  ;;  %v9268_v11 = vor.u32 %v10498_v55, %v9267_v53  ;;  %v169_v33 = vld.sshfl [vmem:[#allocation1 + $0x18] sm:$0xff pattern:$0x73625140]  ;;  %v10992_v55 = vpack.c.bf16 %v168_v57, %v168_v57 }
 0x16c   :  { %5646 = vmatpush.bf16.msra.mxu3 %v9420_v2  ;;  %v9515_v2 = vld [vmem:[#allocation3 + $0x1670] sm:$0xf]  ;;  %v10590_v53 = vld [vmem:[#allocation3 + $0x1764] sm:$0xf0]  ;;  %v10996_v51 = vpack.c.bf16 %v169_v33, %v169_v33  ;;  %v10572_v48 = vld [vmem:[#allocation3 + $0x16d4] sm:$0xf0] }
 0x16d   :  { %5608 = vmatpush.bf16.msra.mxu0 %v9220_v9  ;;  %v10592_v9 = vld [vmem:[#allocation3 + $0x1774] sm:$0xf0]  ;;  %v9516_v60 = vor.u32 %v10560_v49, %v9515_v2  ;;  %11276 = vst [vmem:[#allocation25_spill] sm:$0xff] %v10992_v55  ;;  %v10606_v14 = vld [vmem:[#allocation3 + $0x17e4] sm:$0xf0]  ;;  %v9508_v2 = vor.u32 %v10558_v26, %v9507_v16 }
 0x16e   :  { %5621 = vmatpush.bf16.msra.mxu1 %v9284_v39  ;;  %v9204_v39 = vor.u32 %v10482_v1, %v9203_v58  ;;  %v9644_v21 = vor.u32 %v10592_v9, %v9643_v27  ;;  %v10990_v1 = vpack.c.bf16 %v166_v52, %v166_v52  ;;  %11278 = vst [vmem:[#allocation27_spill] sm:$0xff] %v10996_v51  ;;  %v9563_v27 = vld [vmem:[#allocation3 + $0x16d0] sm:$0xf]  ;;  %v10604_v26 = vld [vmem:[#allocation3 + $0x17d4] sm:$0xf0] }
 0x16f   :  { %5634 = vmatpush.bf16.msra.mxu2 %v9348_v31  ;;  %v9707_v31 = vld [vmem:[#allocation3 + $0x17f0] sm:$0xf]  ;;  %v9564_v16 = vor.u32 %v10572_v48, %v9563_v27  ;;  %v9555_v52 = vld [vmem:[#allocation3 + $0x16c0] sm:$0xf]  ;;  %v10568_v27 = vld [vmem:[#allocation3 + $0x16b4] sm:$0xf0] }
 0x170   :  { %5647 = vmatpush.bf16.msra.mxu3 %v9412_v54  ;;  %v9332_v54 = vor.u32 %v10514_v42, %v9331_v50  ;;  %v9708_v58 = vor.u32 %v10608_v8, %v9707_v31  ;;  %11275 = vst [vmem:[#allocation24_spill] sm:$0xff] %v10990_v1  ;;  %v10994_v50 = vpack.c.bf16 %v167_v19, %v167_v19  ;;  %v9699_v42 = vld [vmem:[#allocation3 + $0x17e0] sm:$0xf]  ;;  %v10588_v31 = vld [vmem:[#allocation3 + $0x1754] sm:$0xf0] }
 0x171   :  { %5609 = vmatpush.bf16.msra.mxu0 %v9212_v56  ;;  %v9571_v56 = vld [vmem:[#allocation3 + $0x16e0] sm:$0xf]  ;;  %v9700_v9 = vor.u32 %v10606_v14, %v9699_v42  ;;  %v9691_v8 = vld [vmem:[#allocation3 + $0x17d0] sm:$0xf]  ;;  %v10586_v19 = vld [vmem:[#allocation3 + $0x1744] sm:$0xf0] }
 0x172   :  { %5622 = vmatpush.bf16.msra.mxu1 %v9276_v61  ;;  %v10574_v61 = vld [vmem:[#allocation3 + $0x16e4] sm:$0xf0]  ;;  %11277 = vst [vmem:[#allocation26_spill] sm:$0xff] %v10994_v50  ;;  %v9692_v57 = vor.u32 %v10604_v26, %v9691_v8  ;;  %v10584_v48 = vld [vmem:[#allocation3 + $0x1734] sm:$0xf0] }
 0x173   :  { %5635 = vmatpush.bf16.msra.mxu2 %v9340_v3  ;;  %v9635_v3 = vld [vmem:[#allocation3 + $0x1760] sm:$0xf] }
 0x174   :  { %5648 = vmatpush.bf16.msra.mxu3 %v9404_v15  ;;  %v9572_v15 = vor.u32 %v10574_v61, %v9571_v56  ;;  %v9636_v49 = vor.u32 %v10590_v53, %v9635_v3  ;;  %v9683_v56 = vld [vmem:[#allocation3 + $0x17c0] sm:$0xf] }
 0x175   :  { %5610 = vmatpush.bf16.msra.mxu0 %v9204_v39  ;;  %v9627_v39 = vld [vmem:[#allocation3 + $0x1750] sm:$0xf]  ;;  %v5404_v33 = vpop.f32.mrf.mxu0 }
 0x176   :  { %5623 = vmatpush.bf16.msra.mxu1 %v9268_v11  ;;  %v9491_v11 = vld [vmem:[#allocation3 + $0x1640] sm:$0xf]  ;;  %v5405_v61 = vadd.f32 %v5404_v33, %v10985_v32  ;;  %v5417_v53 = vpop.f32.mrf.mxu1 }
 0x177   :  { %5636 = vmatpush.bf16.msra.mxu2 %v9332_v54  ;;  %v10554_v54 = vld [vmem:[#allocation3 + $0x1644] sm:$0xf0]  ;;  %v9667_v33 = vld [vmem:[#allocation3 + $0x17a0] sm:$0xf] }
 0x178   :  { %5649 = vmatpush.bf16.msra.mxu3 %v9396_v62  ;;  %5611 = vmatmul.bf16.vlgmr.msra.gmra.mxu0 %v10990_v1  ;;  %v10570_v62 = vld [vmem:[#allocation3 + $0x16c4] sm:$0xf0]  ;;  %v9492_v3 = vor.u32 %v10554_v54, %v9491_v11 }
 0x179   :  { %5655 = vmatpush.bf16.msrb.mxu0 %v9516_v60  ;;  %5624 = vmatmul.bf16.vlgmr.msra.gmra.mxu1 %v10994_v50  ;;  %v9619_v60 = vld [vmem:[#allocation3 + $0x1740] sm:$0xf]  ;;  %v9556_v42 = vor.u32 %v10570_v62, %v9555_v52  ;;  %v10566_v52 = vld [vmem:[#allocation3 + $0x16a4] sm:$0xf0] }
 0x17a   :  { %5668 = vmatpush.bf16.msrb.mxu1 %v9580_v47  ;;  %5637 = vmatmul.bf16.vlgmr.msra.gmra.mxu2 %v10992_v55  ;;  %v9628_v47 = vor.u32 %v10588_v31, %v9627_v39  ;;  %v9620_v14 = vor.u32 %v10586_v19, %v9619_v60  ;;  %v9675_v39 = vld [vmem:[#allocation3 + $0x17b0] sm:$0xf]  ;;  %v10600_v31 = vld [vmem:[#allocation3 + $0x17b4] sm:$0xf0]  ;;  %v10582_v62 = vld [vmem:[#allocation3 + $0x1724] sm:$0xf0] }
 0x17b   :  { %5681 = vmatpush.bf16.msrb.mxu2 %v9644_v21  ;;  %5650 = vmatmul.bf16.vlgmr.msra.gmra.mxu3 %v10996_v51  ;;  %v9500_v21 = vor.u32 %v10556_v18, %v9499_v59  ;;  %v5418_v18 = vadd.f32 %v5417_v53, %v5405_v61  ;;  %v9676_v11 = vor.u32 %v10600_v31, %v9675_v39  ;;  %v10596_v39 = vld [vmem:[#allocation3 + $0x1794] sm:$0xf0]  ;;  %v9459_v31 = vld [vmem:[#allocation3 + $0x1600] sm:$0xf]  ;;  %v10622_v1 = vld [vmem:[#allocation3 + $0x1864] sm:$0xf0] }
 0x17c   :  { %5694 = vmatpush.bf16.msrb.mxu3 %v9708_v58  ;;  %v10602_v58 = vld [vmem:[#allocation3 + $0x17c4] sm:$0xf0]  ;;  %v9763_v50 = vld [vmem:[#allocation3 + $0x1860] sm:$0xf] }
 0x17d   :  { %5656 = vmatpush.bf16.msrb.mxu0 %v9508_v2  ;;  %v9483_v2 = vld [vmem:[#allocation3 + $0x1630] sm:$0xf]  ;;  %v9684_v59 = vor.u32 %v10602_v58, %v9683_v56  ;;  %v5430_v54 = vpop.f32.mrf.mxu2  ;;  %v10598_v56 = vld [vmem:[#allocation3 + $0x17a4] sm:$0xf0]  ;;  %v5406_v58 = vpop.f32.mrf.mxu0 }
 0x17e   :  { %5669 = vmatpush.bf16.msrb.mxu1 %v9572_v15  ;;  %v10552_v15 = vld [vmem:[#allocation3 + $0x1634] sm:$0xf0]  ;;  %v5431_v60 = vadd.f32 %v5430_v54, %v5418_v18  ;;  %v5443_v19 = vpop.f32.mrf.mxu3  ;;  %v5419_v53 = vpop.f32.mrf.mxu1  ;;  %v9595_v18 = vld [vmem:[#allocation3 + $0x1710] sm:$0xf]  ;;  %v10578_v54 = vld [vmem:[#allocation3 + $0x1704] sm:$0xf0] }
 0x17f   :  { %5682 = vmatpush.bf16.msrb.mxu2 %v9636_v49  ;;  %v9547_v49 = vld [vmem:[#allocation3 + $0x16b0] sm:$0xf]  ;;  %v9484_v8 = vor.u32 %v10552_v15, %v9483_v2  ;;  %v10548_v15 = vld [vmem:[#allocation3 + $0x1614] sm:$0xf0]  ;;  %v9855_v53 = vld [vmem:[#allocation3 + $0x74] sm:$0xf] }
 0x180   :  { %5695 = vmatpush.bf16.msrb.mxu3 %v9700_v9  ;;  %v9611_v9 = vld [vmem:[#allocation3 + $0x1730] sm:$0xf]  ;;  %v9548_v32 = vor.u32 %v10568_v27, %v9547_v49  ;;  %v9668_v27 = vor.u32 %v10598_v56, %v9667_v33  ;;  %v10640_v56 = vld [vmem:[#allocation3 + $0x18f4] sm:$0xf0] }
 0x181   :  { %5657 = vmatpush.bf16.msrb.mxu0 %v9500_v21  ;;  %v9612_v26 = vor.u32 %v10584_v48, %v9611_v9  ;;  %v9475_v21 = vld [vmem:[#allocation3 + $0x1620] sm:$0xf]  ;;  %v9531_v49 = vld [vmem:[#allocation3 + $0x1690] sm:$0xf]  ;;  %v10580_v9 = vld [vmem:[#allocation3 + $0x1714] sm:$0xf0] }
 0x182   :  { %5670 = vmatpush.bf16.msrb.mxu1 %v9564_v16  ;;  %v10550_v16 = vld [vmem:[#allocation3 + $0x1624] sm:$0xf0]  ;;  %v9659_v48 = vld [vmem:[#allocation3 + $0x1790] sm:$0xf] }
 0x183   :  { %5683 = vmatpush.bf16.msrb.mxu2 %v9628_v47  ;;  %v9539_v47 = vld [vmem:[#allocation3 + $0x16a0] sm:$0xf]  ;;  %v9476_v61 = vor.u32 %v10550_v16, %v9475_v21  ;;  %v9835_v33 = vld [vmem:[#allocation3 + $0x18f0] sm:$0xf] }
 0x184   :  { %5696 = vmatpush.bf16.msrb.mxu3 %v9692_v57  ;;  %v9603_v57 = vld [vmem:[#allocation3 + $0x1720] sm:$0xf]  ;;  %v9836_v51 = vor.u32 %v10640_v56, %v9835_v33  ;;  %v9755_v33 = vld [vmem:[#allocation3 + $0x1850] sm:$0xf]  ;;  %v10620_v56 = vld [vmem:[#allocation3 + $0x1854] sm:$0xf0] }
 0x185   :  { %5658 = vmatpush.bf16.msrb.mxu0 %v9492_v3  ;;  %v9467_v3 = vld [vmem:[#allocation3 + $0x1610] sm:$0xf]  ;;  %v9604_v2 = vor.u32 %v10582_v62, %v9603_v57  ;;  %v9523_v16 = vld [vmem:[#allocation3 + $0x1680] sm:$0xf]  ;;  %v10594_v62 = vld [vmem:[#allocation3 + $0x1784] sm:$0xf0]  ;;  %v5432_v58 = vpop.f32.mrf.mxu2 }
 0x186   :  { %5671 = vmatpush.bf16.msrb.mxu1 %v9556_v42  ;;  %v11003_v42 = vadd.f32 %v5443_v19, %v5431_v60  ;;  %v9468_v21 = vor.u32 %v10548_v15, %v9467_v3  ;;  %v9651_v57 = vld [vmem:[#allocation3 + $0x1780] sm:$0xf]  ;;  %v9660_v60 = vor.u32 %v10596_v39, %v9659_v48  ;;  %v10624_v19 = vld [vmem:[#allocation3 + $0x1874] sm:$0xf0]  ;;  %v5445_v3 = vpop.f32.mrf.mxu3 }
 0x187   :  { %5684 = vmatpush.bf16.msrb.mxu2 %v9620_v14  ;;  %v9540_v14 = vor.u32 %v10566_v52, %v9539_v47  ;;  %v9596_v52 = vor.u32 %v10580_v9, %v9595_v18  ;;  %v99_v15 = vld [vmem:[%s11239_s0 + $0x60] sm:$0xf]  ;;  %v172_v9 = vld.sshfl [vmem:[#allocation1 + $0x30] sm:$0xff pattern:$0x73625140]  ;;  %v9652_v48 = vor.u32 %v10594_v62, %v9651_v57 }
 0x188   :  { %5697 = vmatpush.bf16.msrb.mxu3 %v9684_v59  ;;  %v10564_v59 = vld [vmem:[#allocation3 + $0x1694] sm:$0xf0]  ;;  %174 = vst [vmem:[#allocation1] ss:$4 sm:$0xff] %v99_v15  ;;  %v6757_v57 = vld [vmem:[#allocation3 + $0xe8] sm:$0xf0] }
 0x189   :  { %5659 = vmatpush.bf16.msrb.mxu0 %v9484_v8  ;;  %v10546_v8 = vld [vmem:[#allocation3 + $0x1604] sm:$0xf0]  ;;  %v9532_v47 = vor.u32 %v10564_v59, %v9531_v49  ;;  %v6765_v49 = vld [vmem:[#allocation3 + $0xf8] sm:$0xf0]  ;;  %v10636_v15 = vld [vmem:[#allocation3 + $0x18d4] sm:$0xf0] }
 0x18a   :  { %5672 = vmatpush.bf16.msrb.mxu1 %v9548_v32  ;;  %v10562_v32 = vld [vmem:[#allocation3 + $0x1684] sm:$0xf0]  ;;  %v170_v18 = vld.sshfl [vmem:[#allocation1 + $0x20] sm:$0xff pattern:$0x73625140] }
 0x18b   :  { %5685 = vmatpush.bf16.msrb.mxu2 %v9612_v26  ;;  %v9587_v26 = vld [vmem:[#allocation3 + $0x1700] sm:$0xf]  ;;  %v9524_v59 = vor.u32 %v10562_v32, %v9523_v16  ;;  %v173_v3 = vld.sshfl [vmem:[#allocation1 + $0x38] sm:$0xff pattern:$0x73625140]  ;;  %v11010_v32 = vpack.c.bf16 %v172_v9, %v172_v9 }
 0x18c   :  { %5698 = vmatpush.bf16.msrb.mxu3 %v9676_v11  ;;  %v9771_v11 = vld [vmem:[#allocation3 + $0x1870] sm:$0xf]  ;;  %v171_v58 = vld.sshfl [vmem:[#allocation1 + $0x28] sm:$0xff pattern:$0x73625140]  ;;  %v11014_v62 = vpack.c.bf16 %v173_v3, %v173_v3 }
 0x18d   :  { %5660 = vmatpush.bf16.msrb.mxu0 %v9476_v61  ;;  %v6701_v61 = vld [vmem:[#allocation3 + $0x78] sm:$0xf0]  ;;  %v9772_v39 = vor.u32 %v10624_v19, %v9771_v11  ;;  %v6693_v16 = vld [vmem:[#allocation3 + $0x68] sm:$0xf0]  ;;  %11279 = vst [vmem:[#allocation28_spill] sm:$0xff] %v11010_v32  ;;  %v9764_v11 = vor.u32 %v10622_v1, %v9763_v50 }
 0x18e   :  { %5673 = vmatpush.bf16.msrb.mxu1 %v9540_v14  ;;  %v9460_v14 = vor.u32 %v10546_v8, %v9459_v31  ;;  %v6704_v55 = vor.u32 %v9855_v53, %v6701_v61  ;;  %v11008_v8 = vpack.c.bf16 %v170_v18, %v170_v18  ;;  %11280 = vst [vmem:[#allocation29_spill] sm:$0xff] %v11014_v62  ;;  %v9819_v53 = vld [vmem:[#allocation3 + $0x18d0] sm:$0xf]  ;;  %v6749_v1 = vld [vmem:[#allocation3 + $0xd8] sm:$0xf0] }
 0x18f   :  { %5686 = vmatpush.bf16.msrb.mxu2 %v9604_v2  ;;  %v9871_v2 = vld [vmem:[#allocation3 + $0xf4] sm:$0xf]  ;;  %v9820_v50 = vor.u32 %v10636_v15, %v9819_v53  ;;  %v9811_v18 = vld [vmem:[#allocation3 + $0x18c0] sm:$0xf]  ;;  %v10632_v53 = vld [vmem:[#allocation3 + $0x18b4] sm:$0xf0] }
 0x190   :  { %5699 = vmatpush.bf16.msrb.mxu3 %v9668_v27  ;;  %v9588_v27 = vor.u32 %v10578_v54, %v9587_v26  ;;  %v6768_v31 = vor.u32 %v9871_v2, %v6765_v49  ;;  %v11012_v26 = vpack.c.bf16 %v171_v58, %v171_v58  ;;  %v9869_v54 = vld [vmem:[#allocation3 + $0xe4] sm:$0xf]  ;;  %v6685_v2 = vld [vmem:[#allocation3 + $0x58] sm:$0xf0]  ;;  %v9867_v49 = vld [vmem:[#allocation3 + $0xd4] sm:$0xf] }
 0x191   :  { %5661 = vmatpush.bf16.msrb.mxu0 %v9468_v21  ;;  %v9827_v21 = vld [vmem:[#allocation3 + $0x18e0] sm:$0xf]  ;;  %v6760_v61 = vor.u32 %v9869_v54, %v6757_v57  ;;  %v6752_v9 = vor.u32 %v9867_v49, %v6749_v1  ;;  %v6677_v58 = vld [vmem:[#allocation3 + $0x48] sm:$0xf0]  ;;  %v6669_v15 = vld [vmem:[#allocation3 + $0x38] sm:$0xf0] }
 0x192   :  { %5674 = vmatpush.bf16.msrb.mxu1 %v9532_v47  ;;  %v10638_v47 = vld [vmem:[#allocation3 + $0x18e4] sm:$0xf0] }
 0x193   :  { %5687 = vmatpush.bf16.msrb.mxu2 %v9596_v52  ;;  %v9853_v52 = vld [vmem:[#allocation3 + $0x64] sm:$0xf] }
 0x194   :  { %5700 = vmatpush.bf16.msrb.mxu3 %v9660_v60  ;;  %v9828_v60 = vor.u32 %v10638_v47, %v9827_v21  ;;  %v6696_v19 = vor.u32 %v9853_v52, %v6693_v16  ;;  %v9865_v21 = vld [vmem:[#allocation3 + $0xc4] sm:$0xf] }
 0x195   :  { %5662 = vmatpush.bf16.msrb.mxu0 %v9460_v14  ;;  %v9851_v14 = vld [vmem:[#allocation3 + $0x54] sm:$0xf]  ;;  %v5456_v3 = vpop.f32.mrf.mxu0 }
 0x196   :  { %5675 = vmatpush.bf16.msrb.mxu1 %v9524_v59  ;;  %v9747_v59 = vld [vmem:[#allocation3 + $0x1840] sm:$0xf]  ;;  %v5457_v47 = vadd.f32 %v5456_v3, %v11003_v42  ;;  %v5469_v16 = vpop.f32.mrf.mxu1  ;;  %v9861_v3 = vld [vmem:[#allocation3 + $0xa4] sm:$0xf] }
 0x197   :  { %5688 = vmatpush.bf16.msrb.mxu2 %v9588_v27  ;;  %v10618_v27 = vld [vmem:[#allocation3 + $0x1844] sm:$0xf0] }
 0x198   :  { %5701 = vmatpush.bf16.msrb.mxu3 %v9652_v48  ;;  %5663 = vmatmul.bf16.vlgmr.msrb.gmra.mxu0 %v11008_v8  ;;  %v10634_v48 = vld [vmem:[#allocation3 + $0x18c4] sm:$0xf0]  ;;  %v9748_v52 = vor.u32 %v10618_v27, %v9747_v59 }
 0x199   :  { %5707 = vmatpush.bf16.msra.mxu0 %v9772_v39  ;;  %5676 = vmatmul.bf16.vlgmr.msrb.gmra.mxu1 %v11012_v26  ;;  %v9849_v39 = vld [vmem:[#allocation3 + $0x44] sm:$0xf]  ;;  %v9812_v54 = vor.u32 %v10634_v48, %v9811_v18  ;;  %v10630_v18 = vld [vmem:[#allocation3 + $0x18a4] sm:$0xf0]  ;;  %v6661_v48 = vld [vmem:[#allocation3 + $0x28] sm:$0xf0] }
 0x19a   :  { %5720 = vmatpush.bf16.msra.mxu1 %v9836_v51  ;;  %5689 = vmatmul.bf16.vlgmr.msrb.gmra.mxu2 %v11010_v32  ;;  %v6688_v51 = vor.u32 %v9851_v14, %v6685_v2  ;;  %v6680_v57 = vor.u32 %v9849_v39, %v6677_v58  ;;  %v9863_v14 = vld [vmem:[#allocation3 + $0xb4] sm:$0xf]  ;;  %v6733_v2 = vld [vmem:[#allocation3 + $0xb8] sm:$0xf0]  ;;  %v6821_v32 = vld [vmem:[#allocation3 + $0x168] sm:$0xf0] }
 0x19b   :  { %5733 = vmatpush.bf16.msra.mxu2 %v6704_v55  ;;  %5702 = vmatmul.bf16.vlgmr.msrb.gmra.mxu3 %v11014_v62  ;;  %v9756_v55 = vor.u32 %v10620_v56, %v9755_v33  ;;  %v5470_v56 = vadd.f32 %v5469_v16, %v5457_v47  ;;  %v6736_v59 = vor.u32 %v9863_v14, %v6733_v2  ;;  %v6717_v14 = vld [vmem:[#allocation3 + $0x98] sm:$0xf0]  ;;  %v9885_v62 = vld [vmem:[#allocation3 + $0x164] sm:$0xf] }
 0x19c   :  { %5746 = vmatpush.bf16.msra.mxu3 %v6768_v31  ;;  %v6741_v31 = vld [vmem:[#allocation3 + $0xc8] sm:$0xf0] }
 0x19d   :  { %5708 = vmatpush.bf16.msra.mxu0 %v9764_v11  ;;  %v9739_v11 = vld [vmem:[#allocation3 + $0x1830] sm:$0xf]  ;;  %v6744_v33 = vor.u32 %v9865_v21, %v6741_v31  ;;  %v5482_v27 = vpop.f32.mrf.mxu2  ;;  %v6725_v21 = vld [vmem:[#allocation3 + $0xa8] sm:$0xf0]  ;;  %v5458_v31 = vpop.f32.mrf.mxu0 }
 0x19e   :  { %5721 = vmatpush.bf16.msra.mxu1 %v9828_v60  ;;  %v10616_v60 = vld [vmem:[#allocation3 + $0x1834] sm:$0xf0]  ;;  %v5483_v39 = vadd.f32 %v5482_v27, %v5470_v56  ;;  %v5495_v58 = vpop.f32.mrf.mxu3  ;;  %v9843_v56 = vld [vmem:[#allocation3 + $0x14] sm:$0xf]  ;;  %v9841_v27 = vld [vmem:[#allocation3 + $0x4] sm:$0xf] }
 0x19f   :  { %5734 = vmatpush.bf16.msra.mxu2 %v6696_v19  ;;  %v9803_v19 = vld [vmem:[#allocation3 + $0x18b0] sm:$0xf]  ;;  %v9740_v49 = vor.u32 %v10616_v60, %v9739_v11  ;;  %v10612_v60 = vld [vmem:[#allocation3 + $0x1814] sm:$0xf0]  ;;  %v6893_v31 = vld [vmem:[#allocation3 + $0x1f8] sm:$0xf0] }
 0x1a0   :  { %5747 = vmatpush.bf16.msra.mxu3 %v6760_v61  ;;  %v9847_v61 = vld [vmem:[#allocation3 + $0x34] sm:$0xf]  ;;  %v9804_v42 = vor.u32 %v10632_v53, %v9803_v19  ;;  %v11021_v16 = vadd.f32 %v5495_v58, %v5483_v39  ;;  %v9723_v11 = vld [vmem:[#allocation3 + $0x1810] sm:$0xf]  ;;  %v10628_v53 = vld [vmem:[#allocation3 + $0x1894] sm:$0xf0] }
 0x1a1   :  { %5709 = vmatpush.bf16.msra.mxu0 %v9756_v55  ;;  %v6672_v1 = vor.u32 %v9847_v61, %v6669_v15  ;;  %v9731_v55 = vld [vmem:[#allocation3 + $0x1820] sm:$0xf]  ;;  %v9787_v19 = vld [vmem:[#allocation3 + $0x1890] sm:$0xf]  ;;  %v6653_v61 = vld [vmem:[#allocation3 + $0x18] sm:$0xf0]  ;;  %v9724_v2 = vor.u32 %v10612_v60, %v9723_v11 }
 0x1a2   :  { %5722 = vmatpush.bf16.msra.mxu1 %v9820_v50  ;;  %v10614_v50 = vld [vmem:[#allocation3 + $0x1824] sm:$0xf0]  ;;  %v9859_v15 = vld [vmem:[#allocation3 + $0x94] sm:$0xf] }
 0x1a3   :  { %5735 = vmatpush.bf16.msra.mxu2 %v6688_v51  ;;  %v9795_v51 = vld [vmem:[#allocation3 + $0x18a0] sm:$0xf]  ;;  %v9732_v47 = vor.u32 %v10614_v50, %v9731_v55  ;;  %v10610_v55 = vld [vmem:[#allocation3 + $0x1804] sm:$0xf0]  ;;  %v6656_v50 = vor.u32 %v9843_v56, %v6653_v61  ;;  %v9887_v39 = vld [vmem:[#allocation3 + $0x174] sm:$0xf] }
 0x1a4   :  { %5748 = vmatpush.bf16.msra.mxu3 %v6752_v9  ;;  %v9845_v9 = vld [vmem:[#allocation3 + $0x24] sm:$0xf]  ;;  %v9919_v11 = vld [vmem:[#allocation3 + $0x274] sm:$0xf] }
 0x1a5   :  { %5710 = vmatpush.bf16.msra.mxu0 %v9748_v52  ;;  %v5471_v52 = vpop.f32.mrf.mxu1  ;;  %v5484_v58 = vpop.f32.mrf.mxu2 }
 0x1a6   :  { %5723 = vmatpush.bf16.msra.mxu1 %v9812_v54  ;;  %v9796_v54 = vor.u32 %v10630_v18, %v9795_v51  ;;  %v10626_v51 = vld [vmem:[#allocation3 + $0x1884] sm:$0xf0]  ;;  %v6645_v18 = vld [vmem:[#allocation3 + $0x8] sm:$0xf0] }
 0x1a7   :  { %5736 = vmatpush.bf16.msra.mxu2 %v6680_v57  ;;  %v6664_v57 = vor.u32 %v9845_v9, %v6661_v48  ;;  %v9857_v9 = vld [vmem:[#allocation3 + $0x84] sm:$0xf]  ;;  %v6709_v48 = vld [vmem:[#allocation3 + $0x88] sm:$0xf0] }
 0x1a8   :  { %5749 = vmatpush.bf16.msra.mxu3 %v6744_v33  ;;  %v6728_v33 = vor.u32 %v9861_v3, %v6725_v21  ;;  %v6829_v3 = vld [vmem:[#allocation3 + $0x178] sm:$0xf0]  ;;  %v9903_v21 = vld [vmem:[#allocation3 + $0x1f4] sm:$0xf]  ;;  %v6712_v56 = vor.u32 %v9857_v9, %v6709_v48 }
 0x1a9   :  { %5711 = vmatpush.bf16.msra.mxu0 %v9740_v49  ;;  %v9715_v49 = vld [vmem:[#allocation3 + $0x1800] sm:$0xf]  ;;  %v6832_v61 = vor.u32 %v9887_v39, %v6829_v3  ;;  %v9883_v48 = vld [vmem:[#allocation3 + $0x154] sm:$0xf]  ;;  %v6813_v39 = vld [vmem:[#allocation3 + $0x158] sm:$0xf0] }
 0x1aa   :  { %5724 = vmatpush.bf16.msra.mxu1 %v9804_v42  ;;  %v9779_v42 = vld [vmem:[#allocation3 + $0x1880] sm:$0xf]  ;;  %v9716_v52 = vor.u32 %v10610_v55, %v9715_v49  ;;  %v6885_v55 = vld [vmem:[#allocation3 + $0x1e8] sm:$0xf0]  ;;  %v9899_v3 = vld [vmem:[#allocation3 + $0x1d4] sm:$0xf] }
 0x1ab   :  { %5737 = vmatpush.bf16.msra.mxu2 %v6672_v1  ;;  %v9788_v1 = vor.u32 %v10628_v53, %v9787_v19  ;;  %v9780_v60 = vor.u32 %v10626_v51, %v9779_v42  ;;  %v6648_v19 = vor.u32 %v9841_v27, %v6645_v18  ;;  %v7021_v53 = vld [vmem:[#allocation3 + $0x2f8] sm:$0xf0]  ;;  %v9933_v51 = vld [vmem:[#allocation3 + $0x2e4] sm:$0xf]  ;;  %v7013_v27 = vld [vmem:[#allocation3 + $0x2e8] sm:$0xf0]  ;;  %v6824_v18 = vor.u32 %v9885_v62, %v6821_v32 }
 0x1ac   :  { %5750 = vmatpush.bf16.msra.mxu3 %v6736_v59  ;;  %v6720_v59 = vor.u32 %v9859_v15, %v6717_v14  ;;  %v176_v15 = vld.sshfl [vmem:[#allocation1 + $0x8] sm:$0xff pattern:$0x73625140]  ;;  %v6896_v14 = vor.u32 %v9903_v21, %v6893_v31  ;;  %v7016_v21 = vor.u32 %v9933_v51, %v7013_v27  ;;  %v6816_v32 = vor.u32 %v9883_v48, %v6813_v39  ;;  %v9879_v51 = vld [vmem:[#allocation3 + $0x134] sm:$0xf] }
 0x1ad   :  { %5712 = vmatpush.bf16.msra.mxu0 %v9732_v47  ;;  %v5497_v47 = vpop.f32.mrf.mxu3  ;;  %v11025_v42 = vpack.c.bf16 %v176_v15, %v176_v15  ;;  %v6877_v31 = vld [vmem:[#allocation3 + $0x1d8] sm:$0xf0]  ;;  %v9913_v15 = vld [vmem:[#allocation3 + $0x244] sm:$0xf]  ;;  %v9911_v39 = vld [vmem:[#allocation3 + $0x234] sm:$0xf] }
 0x1ae   :  { %5725 = vmatpush.bf16.msra.mxu1 %v9796_v54  ;;  %v6957_v54 = vld [vmem:[#allocation3 + $0x278] sm:$0xf0]  ;;  %v9901_v47 = vld [vmem:[#allocation3 + $0x1e4] sm:$0xf]  ;;  %v6880_v62 = vor.u32 %v9899_v3, %v6877_v31 }
 0x1af   :  { %5738 = vmatpush.bf16.msra.mxu2 %v6664_v57  ;;  %v9935_v57 = vld [vmem:[#allocation3 + $0x2f4] sm:$0xf]  ;;  %v6960_v58 = vor.u32 %v9919_v11, %v6957_v54  ;;  %v6941_v11 = vld [vmem:[#allocation3 + $0x258] sm:$0xf0] }
 0x1b0   :  { %5751 = vmatpush.bf16.msra.mxu3 %v6728_v33  ;;  %v175_v33 = vld.sshfl [vmem:[#allocation1] sm:$0xff pattern:$0x73625140] }
 0x1b1   :  { %5713 = vmatpush.bf16.msra.mxu0 %v9724_v2  ;;  %v7024_v2 = vor.u32 %v9935_v57, %v7021_v53  ;;  %v11023_v49 = vpack.c.bf16 %v175_v33, %v175_v33  ;;  %v9931_v54 = vld [vmem:[#allocation3 + $0x2d4] sm:$0xf]  ;;  %v7005_v57 = vld [vmem:[#allocation3 + $0x2d8] sm:$0xf0]  ;;  %v6805_v53 = vld [vmem:[#allocation3 + $0x148] sm:$0xf0] }
 0x1b2   :  { %5726 = vmatpush.bf16.msra.mxu1 %v9788_v1  ;;  %v9917_v1 = vld [vmem:[#allocation3 + $0x264] sm:$0xf]  ;;  %v6797_v27 = vld [vmem:[#allocation3 + $0x138] sm:$0xf0] }
 0x1b3   :  { %5739 = vmatpush.bf16.msra.mxu2 %v6656_v50  ;;  %v6949_v50 = vld [vmem:[#allocation3 + $0x268] sm:$0xf0]  ;;  %v9897_v33 = vld [vmem:[#allocation3 + $0x1c4] sm:$0xf]  ;;  %v6861_v48 = vld [vmem:[#allocation3 + $0x1b8] sm:$0xf0] }
 0x1b4   :  { %5752 = vmatpush.bf16.msra.mxu3 %v6720_v59  ;;  %v6888_v59 = vor.u32 %v9901_v47, %v6885_v55  ;;  %v6952_v9 = vor.u32 %v9917_v1, %v6949_v50  ;;  %v9929_v47 = vld [vmem:[#allocation3 + $0x2c4] sm:$0xf]  ;;  %v6925_v3 = vld [vmem:[#allocation3 + $0x238] sm:$0xf0] }
 0x1b5   :  { %5714 = vmatpush.bf16.msra.mxu0 %v9716_v52  ;;  %v9915_v52 = vld [vmem:[#allocation3 + $0x254] sm:$0xf]  ;;  %v6989_v31 = vld [vmem:[#allocation3 + $0x2b8] sm:$0xf0] }
 0x1b6   :  { %5727 = vmatpush.bf16.msra.mxu1 %v9780_v60  ;;  %v6944_v60 = vor.u32 %v9915_v52, %v6941_v11  ;;  %v6800_v52 = vor.u32 %v9879_v51, %v6797_v27  ;;  %v6928_v11 = vor.u32 %v9911_v39, %v6925_v3  ;;  %v9891_v51 = vld [vmem:[#allocation3 + $0x194] sm:$0xf]  ;;  %v6973_v39 = vld [vmem:[#allocation3 + $0x298] sm:$0xf0] }
 0x1b7   :  { %5740 = vmatpush.bf16.msra.mxu2 %v6648_v19  ;;  %v9881_v19 = vld [vmem:[#allocation3 + $0x144] sm:$0xf] }
 0x1b8   :  { %5753 = vmatpush.bf16.msra.mxu3 %v6712_v56  ;;  %5715 = vmatmul.bf16.vlgmr.msra.gmra.mxu0 %v11023_v49  ;;  %v7008_v56 = vor.u32 %v9931_v54, %v7005_v57  ;;  %v6808_v55 = vor.u32 %v9881_v19, %v6805_v53  ;;  %v9877_v54 = vld [vmem:[#allocation3 + $0x124] sm:$0xf]  ;;  %v6789_v57 = vld [vmem:[#allocation3 + $0x128] sm:$0xf0] }
 0x1b9   :  { %5759 = vmatpush.bf16.msrb.mxu0 %v6832_v61  ;;  %5728 = vmatmul.bf16.vlgmr.msra.gmra.mxu1 %v11025_v42  ;;  %v6869_v61 = vld [vmem:[#allocation3 + $0x1c8] sm:$0xf0]  ;;  %v9909_v53 = vld [vmem:[#allocation3 + $0x224] sm:$0xf] }
 0x1ba   :  { %5772 = vmatpush.bf16.msrb.mxu1 %v6896_v14  ;;  %5741 = vmatmul.bf16.vlgmr.msra.gmra.mxu2 %v10828_v37  ;;  %v6933_v14 = vld [vmem:[#allocation3 + $0x248] sm:$0xf0]  ;;  %v6872_v1 = vor.u32 %v9897_v33, %v6869_v61 }
 0x1bb   :  { %5785 = vmatpush.bf16.msrb.mxu2 %v6960_v58  ;;  %5754 = vmatmul.bf16.vlgmr.msra.gmra.mxu3 %v10832_v44  ;;  %v5508_v58 = vpop.f32.mrf.mxu0  ;;  %v5521_v44 = vpop.f32.mrf.mxu1  ;;  %v6936_v50 = vor.u32 %v9913_v15, %v6933_v14  ;;  %v6853_v19 = vld [vmem:[#allocation3 + $0x1a8] sm:$0xf0]  ;;  %v9925_v15 = vld [vmem:[#allocation3 + $0x2a4] sm:$0xf] }
 0x1bc   :  { %5798 = vmatpush.bf16.msrb.mxu3 %v7024_v2  ;;  %v6997_v2 = vld [vmem:[#allocation3 + $0x2c8] sm:$0xf0]  ;;  %v5509_v37 = vadd.f32 %v5508_v58, %v11021_v16 }
 0x1bd   :  { %5760 = vmatpush.bf16.msrb.mxu0 %v6824_v18  ;;  %v9895_v18 = vld [vmem:[#allocation3 + $0x1b4] sm:$0xf]  ;;  %v6917_v33 = vld [vmem:[#allocation3 + $0x228] sm:$0xf0] }
 0x1be   :  { %5773 = vmatpush.bf16.msrb.mxu1 %v6888_v59  ;;  %v7000_v59 = vor.u32 %v9929_v47, %v6997_v2  ;;  %v6864_v16 = vor.u32 %v9895_v18, %v6861_v48  ;;  %v5547_v61 = vpop.f32.mrf.mxu3  ;;  %v6981_v14 = vld [vmem:[#allocation3 + $0x2a8] sm:$0xf0]  ;;  %v6792_v47 = vor.u32 %v9877_v54, %v6789_v57  ;;  %v6845_v18 = vld [vmem:[#allocation3 + $0x198] sm:$0xf0]  ;;  %v9923_v48 = vld [vmem:[#allocation3 + $0x294] sm:$0xf] }
 0x1bf   :  { %5786 = vmatpush.bf16.msrb.mxu2 %v6952_v9  ;;  %v5522_v9 = vadd.f32 %v5521_v44, %v5509_v37  ;;  %v6920_v44 = vor.u32 %v9909_v53, %v6917_v33  ;;  %v6984_v27 = vor.u32 %v9925_v15, %v6981_v14  ;;  %v6837_v54 = vld [vmem:[#allocation3 + $0x188] sm:$0xf0]  ;;  %v9905_v57 = vld [vmem:[#allocation3 + $0x204] sm:$0xf]  ;;  %v9951_v33 = vld [vmem:[#allocation3 + $0x374] sm:$0xf] }
 0x1c0   :  { %5799 = vmatpush.bf16.msrb.mxu3 %v7016_v21  ;;  %v9927_v21 = vld [vmem:[#allocation3 + $0x2b4] sm:$0xf] }
 0x1c1   :  { %5761 = vmatpush.bf16.msrb.mxu0 %v6816_v32  ;;  %v9893_v32 = vld [vmem:[#allocation3 + $0x1a4] sm:$0xf] }
 0x1c2   :  { %5774 = vmatpush.bf16.msrb.mxu1 %v6880_v62  ;;  %v6992_v62 = vor.u32 %v9927_v21, %v6989_v31  ;;  %v9873_v21 = vld [vmem:[#allocation3 + $0x104] sm:$0xf]  ;;  %v6773_v31 = vld [vmem:[#allocation3 + $0x108] sm:$0xf0] }
 0x1c3   :  { %5787 = vmatpush.bf16.msrb.mxu2 %v6944_v60  ;;  %v5534_v60 = vpop.f32.mrf.mxu2  ;;  %v5510_v58 = vpop.f32.mrf.mxu0  ;;  %v6776_v14 = vor.u32 %v9873_v21, %v6773_v31  ;;  %v7141_v21 = vld [vmem:[#allocation3 + $0x3e8] sm:$0xf0]  ;;  %v9981_v31 = vld [vmem:[#allocation3 + $0x464] sm:$0xf] }
 0x1c4   :  { %5800 = vmatpush.bf16.msrb.mxu3 %v7008_v56  ;;  %v5535_v56 = vadd.f32 %v5534_v60, %v5522_v9  ;;  %v5523_v2 = vpop.f32.mrf.mxu1  ;;  %v6909_v9 = vld [vmem:[#allocation3 + $0x218] sm:$0xf0]  ;;  %v9921_v60 = vld [vmem:[#allocation3 + $0x284] sm:$0xf] }
 0x1c5   :  { %5762 = vmatpush.bf16.msrb.mxu0 %v6808_v55  ;;  %v6856_v55 = vor.u32 %v9893_v32, %v6853_v19  ;;  %v6976_v32 = vor.u32 %v9923_v48, %v6973_v39  ;;  %v6965_v19 = vld [vmem:[#allocation3 + $0x288] sm:$0xf0]  ;;  %v7149_v58 = vld [vmem:[#allocation3 + $0x3f8] sm:$0xf0]  ;;  %v9965_v39 = vld [vmem:[#allocation3 + $0x3e4] sm:$0xf] }
 0x1c6   :  { %5775 = vmatpush.bf16.msrb.mxu1 %v6872_v1  ;;  %v11032_v37 = vadd.f32 %v5547_v61, %v5535_v56  ;;  %v9875_v1 = vld [vmem:[#allocation3 + $0x114] sm:$0xf]  ;;  %v7085_v56 = vld [vmem:[#allocation3 + $0x378] sm:$0xf0]  ;;  %v5549_v15 = vpop.f32.mrf.mxu3  ;;  %v7077_v48 = vld [vmem:[#allocation3 + $0x368] sm:$0xf0] }
 0x1c7   :  { %5788 = vmatpush.bf16.msrb.mxu2 %v6936_v50  ;;  %v6781_v50 = vld [vmem:[#allocation3 + $0x118] sm:$0xf0]  ;;  %v9967_v61 = vld [vmem:[#allocation3 + $0x3f4] sm:$0xf] }
 0x1c8   :  { %5801 = vmatpush.bf16.msrb.mxu3 %v7000_v59  ;;  %v9907_v59 = vld [vmem:[#allocation3 + $0x214] sm:$0xf]  ;;  %v6784_v3 = vor.u32 %v9875_v1, %v6781_v50  ;;  %v7213_v2 = vld [vmem:[#allocation3 + $0x478] sm:$0xf0] }
 0x1c9   :  { %5763 = vmatpush.bf16.msrb.mxu0 %v6800_v52  ;;  %v6848_v52 = vor.u32 %v9891_v51, %v6845_v18  ;;  %v9999_v1 = vld [vmem:[#allocation3 + $0x4f4] sm:$0xf]  ;;  %v7277_v50 = vld [vmem:[#allocation3 + $0x4f8] sm:$0xf0]  ;;  %v6968_v51 = vor.u32 %v9921_v60, %v6965_v19  ;;  %v7152_v18 = vor.u32 %v9967_v61, %v7149_v58 }
 0x1ca   :  { %5776 = vmatpush.bf16.msrb.mxu1 %v6864_v16  ;;  %v6912_v16 = vor.u32 %v9907_v59, %v6909_v9  ;;  %v9949_v9 = vld [vmem:[#allocation3 + $0x364] sm:$0xf]  ;;  %v9963_v60 = vld [vmem:[#allocation3 + $0x3d4] sm:$0xf]  ;;  %v7197_v61 = vld [vmem:[#allocation3 + $0x458] sm:$0xf0] }
 0x1cb   :  { %5789 = vmatpush.bf16.msrb.mxu2 %v6928_v11  ;;  %v9889_v11 = vld [vmem:[#allocation3 + $0x184] sm:$0xf]  ;;  %v5536_v53 = vpop.f32.mrf.mxu2  ;;  %v9995_v15 = vld [vmem:[#allocation3 + $0x4d4] sm:$0xf] }
 0x1cc   :  { %5802 = vmatpush.bf16.msrb.mxu3 %v6992_v62  ;;  %v6901_v62 = vld [vmem:[#allocation3 + $0x208] sm:$0xf0] }
 0x1cd   :  { %5764 = vmatpush.bf16.msrb.mxu0 %v6792_v47  ;;  %v9983_v47 = vld [vmem:[#allocation3 + $0x474] sm:$0xf]  ;;  %v7205_v53 = vld [vmem:[#allocation3 + $0x468] sm:$0xf0] }
 0x1ce   :  { %5777 = vmatpush.bf16.msrb.mxu1 %v6856_v55  ;;  %v6840_v55 = vor.u32 %v9889_v11, %v6837_v54  ;;  %v7216_v59 = vor.u32 %v9983_v47, %v7213_v2  ;;  %v7080_v11 = vor.u32 %v9949_v9, %v7077_v48  ;;  %v7144_v54 = vor.u32 %v9965_v39, %v7141_v21  ;;  %v7053_v21 = vld [vmem:[#allocation3 + $0x338] sm:$0xf0] }
 0x1cf   :  { %5790 = vmatpush.bf16.msrb.mxu2 %v6920_v44  ;;  %v6904_v44 = vor.u32 %v9905_v57, %v6901_v62  ;;  %v7208_v57 = vor.u32 %v9981_v31, %v7205_v53  ;;  %v7069_v62 = vld [vmem:[#allocation3 + $0x358] sm:$0xf0]  ;;  %v9959_v31 = vld [vmem:[#allocation3 + $0x3b4] sm:$0xf] }
 0x1d0   :  { %5803 = vmatpush.bf16.msrb.mxu3 %v6984_v27  ;;  %v7088_v27 = vor.u32 %v9951_v33, %v7085_v56  ;;  %v7133_v33 = vld [vmem:[#allocation3 + $0x3d8] sm:$0xf0]  ;;  %v9979_v56 = vld [vmem:[#allocation3 + $0x454] sm:$0xf] }
 0x1d1   :  { %5765 = vmatpush.bf16.msrb.mxu0 %v6784_v3  ;;  %v7280_v3 = vor.u32 %v9999_v1, %v7277_v50  ;;  %v7136_v47 = vor.u32 %v9963_v60, %v7133_v33  ;;  %v7200_v2 = vor.u32 %v9979_v56, %v7197_v61  ;;  %v7125_v50 = vld [vmem:[#allocation3 + $0x3c8] sm:$0xf0]  ;;  %v9957_v56 = vld [vmem:[#allocation3 + $0x3a4] sm:$0xf] }
 0x1d2   :  { %5778 = vmatpush.bf16.msrb.mxu1 %v6848_v52  ;;  %v9997_v52 = vld [vmem:[#allocation3 + $0x4e4] sm:$0xf]  ;;  %v7045_v33 = vld [vmem:[#allocation3 + $0x328] sm:$0xf0] }
 0x1d3   :  { %5791 = vmatpush.bf16.msrb.mxu2 %v6912_v16  ;;  %v7269_v16 = vld [vmem:[#allocation3 + $0x4e8] sm:$0xf0] }
 0x1d4   :  { %5804 = vmatpush.bf16.msrb.mxu3 %v6976_v32  ;;  %v9947_v32 = vld [vmem:[#allocation3 + $0x354] sm:$0xf]  ;;  %v7272_v19 = vor.u32 %v9997_v52, %v7269_v16  ;;  %v7117_v16 = vld [vmem:[#allocation3 + $0x3b8] sm:$0xf0] }
 0x1d5   :  { %5766 = vmatpush.bf16.msrb.mxu0 %v6776_v14  ;;  %v7261_v14 = vld [vmem:[#allocation3 + $0x4d8] sm:$0xf0]  ;;  %v7072_v58 = vor.u32 %v9947_v32, %v7069_v62 }
 0x1d6   :  { %5779 = vmatpush.bf16.msrb.mxu1 %v6840_v55  ;;  %v9945_v55 = vld [vmem:[#allocation3 + $0x344] sm:$0xf]  ;;  %v7264_v1 = vor.u32 %v9995_v15, %v7261_v14  ;;  %v7245_v32 = vld [vmem:[#allocation3 + $0x4b8] sm:$0xf0]  ;;  %v7109_v14 = vld [vmem:[#allocation3 + $0x3a8] sm:$0xf0] }
 0x1d7   :  { %5792 = vmatpush.bf16.msrb.mxu2 %v6904_v44  ;;  %v7061_v44 = vld [vmem:[#allocation3 + $0x348] sm:$0xf0] }
 0x1d8   :  { %5805 = vmatpush.bf16.msrb.mxu3 %v6968_v51  ;;  %5767 = vmatmul.bf16.vlgmr.msrb.gmra.mxu0 %v10826_v36  ;;  %v9977_v51 = vld [vmem:[#allocation3 + $0x444] sm:$0xf]  ;;  %v7064_v9 = vor.u32 %v9945_v55, %v7061_v44 }
 0x1d9   :  { %5811 = vmatpush.bf16.msra.mxu0 %v7088_v27  ;;  %5780 = vmatmul.bf16.vlgmr.msrb.gmra.mxu1 %v10830_v43  ;;  %v7189_v27 = vld [vmem:[#allocation3 + $0x448] sm:$0xf0]  ;;  %v9993_v36 = vld [vmem:[#allocation3 + $0x4c4] sm:$0xf]  ;;  %v5573_v43 = vpop.f32.mrf.mxu1 }
 0x1da   :  { %5824 = vmatpush.bf16.msra.mxu1 %v7152_v18  ;;  %5793 = vmatmul.bf16.vlgmr.msrb.gmra.mxu2 %v10846_v40  ;;  %v9961_v40 = vld [vmem:[#allocation3 + $0x3c4] sm:$0xf]  ;;  %v5560_v18 = vpop.f32.mrf.mxu0  ;;  %v7192_v39 = vor.u32 %v9977_v51, %v7189_v27 }
 0x1db   :  { %5837 = vmatpush.bf16.msra.mxu2 %v7216_v59  ;;  %5806 = vmatmul.bf16.vlgmr.msrb.gmra.mxu3 %v10850_v45  ;;  %v7253_v59 = vld [vmem:[#allocation3 + $0x4c8] sm:$0xf0]  ;;  %v5561_v45 = vadd.f32 %v5560_v18, %v11032_v37  ;;  %v7128_v48 = vor.u32 %v9961_v40, %v7125_v50  ;;  %v7120_v37 = vor.u32 %v9959_v31, %v7117_v16  ;;  %v9989_v44 = vld [vmem:[#allocation3 + $0x4a4] sm:$0xf]  ;;  %v7229_v31 = vld [vmem:[#allocation3 + $0x498] sm:$0xf0] }
 0x1dc   :  { %5850 = vmatpush.bf16.msra.mxu3 %v7280_v3  ;;  %v9943_v3 = vld [vmem:[#allocation3 + $0x334] sm:$0xf]  ;;  %v7256_v53 = vor.u32 %v9993_v36, %v7253_v59  ;;  %v7237_v40 = vld [vmem:[#allocation3 + $0x4a8] sm:$0xf0]  ;;  %v7112_v18 = vor.u32 %v9957_v56, %v7109_v14 }
 0x1dd   :  { %5812 = vmatpush.bf16.msra.mxu0 %v7080_v11  ;;  %v5574_v52 = vadd.f32 %v5573_v43, %v5561_v45  ;;  %v9975_v11 = vld [vmem:[#allocation3 + $0x434] sm:$0xf]  ;;  %v7056_v62 = vor.u32 %v9943_v3, %v7053_v21  ;;  %v5586_v15 = vpop.f32.mrf.mxu2  ;;  %v7037_v45 = vld [vmem:[#allocation3 + $0x318] sm:$0xf0]  ;;  %v7240_v43 = vor.u32 %v9989_v44, %v7237_v40  ;;  %v7029_v16 = vld [vmem:[#allocation3 + $0x308] sm:$0xf0] }
 0x1de   :  { %5825 = vmatpush.bf16.msra.mxu1 %v7144_v54  ;;  %v7181_v54 = vld [vmem:[#allocation3 + $0x438] sm:$0xf0]  ;;  %v5599_v55 = vpop.f32.mrf.mxu3  ;;  %v9939_v59 = vld [vmem:[#allocation3 + $0x314] sm:$0xf] }
 0x1df   :  { %5838 = vmatpush.bf16.msra.mxu2 %v7208_v57  ;;  %v9991_v57 = vld [vmem:[#allocation3 + $0x4b4] sm:$0xf]  ;;  %v7184_v60 = vor.u32 %v9975_v11, %v7181_v54  ;;  %v7165_v3 = vld [vmem:[#allocation3 + $0x418] sm:$0xf0] }
 0x1e0   :  { %5851 = vmatpush.bf16.msra.mxu3 %v7272_v19  ;;  %v9941_v19 = vld [vmem:[#allocation3 + $0x324] sm:$0xf]  ;;  %v7248_v61 = vor.u32 %v9991_v57, %v7245_v32  ;;  %v9987_v21 = vld [vmem:[#allocation3 + $0x494] sm:$0xf]  ;;  %v7093_v32 = vld [vmem:[#allocation3 + $0x388] sm:$0xf0] }
 0x1e1   :  { %5813 = vmatpush.bf16.msra.mxu0 %v7072_v58  ;;  %v9973_v58 = vld [vmem:[#allocation3 + $0x424] sm:$0xf]  ;;  %v7048_v50 = vor.u32 %v9941_v19, %v7045_v33  ;;  %v5575_v51 = vpop.f32.mrf.mxu1  ;;  %v7221_v33 = vld [vmem:[#allocation3 + $0x488] sm:$0xf0]  ;;  %v10031_v14 = vld [vmem:[#allocation3 + $0x5f4] sm:$0xf] }
 0x1e2   :  { %5826 = vmatpush.bf16.msra.mxu1 %v7136_v47  ;;  %v7173_v47 = vld [vmem:[#allocation3 + $0x428] sm:$0xf0]  ;;  %v9953_v57 = vld [vmem:[#allocation3 + $0x384] sm:$0xf]  ;;  %v7469_v44 = vld [vmem:[#allocation3 + $0x678] sm:$0xf0] }
 0x1e3   :  { %5839 = vmatpush.bf16.msra.mxu2 %v7200_v2  ;;  %v5587_v2 = vadd.f32 %v5586_v15, %v5574_v52  ;;  %v7176_v36 = vor.u32 %v9973_v58, %v7173_v47  ;;  %v9937_v52 = vld [vmem:[#allocation3 + $0x304] sm:$0xf]  ;;  %v7341_v15 = vld [vmem:[#allocation3 + $0x578] sm:$0xf0]  ;;  %v7096_v40 = vor.u32 %v9953_v57, %v7093_v32  ;;  %v10011_v57 = vld [vmem:[#allocation3 + $0x554] sm:$0xf] }
 0x1e4   :  { %5852 = vmatpush.bf16.msra.mxu3 %v7264_v1  ;;  %v5562_v1 = vpop.f32.mrf.mxu0  ;;  %v9985_v19 = vld [vmem:[#allocation3 + $0x484] sm:$0xf]  ;;  %v7032_v47 = vor.u32 %v9937_v52, %v7029_v16  ;;  %v7533_v51 = vld [vmem:[#allocation3 + $0x6f8] sm:$0xf0]  ;;  %v7525_v52 = vld [vmem:[#allocation3 + $0x6e8] sm:$0xf0] }
 0x1e5   :  { %5814 = vmatpush.bf16.msra.mxu0 %v7064_v9  ;;  %v11039_v27 = vadd.f32 %v5599_v55, %v5587_v2  ;;  %v9955_v9 = vld [vmem:[#allocation3 + $0x394] sm:$0xf]  ;;  %v5588_v56 = vpop.f32.mrf.mxu2  ;;  %v7405_v2 = vld [vmem:[#allocation3 + $0x5f8] sm:$0xf0] }
 0x1e6   :  { %5827 = vmatpush.bf16.msra.mxu1 %v7128_v48  ;;  %v7101_v48 = vld [vmem:[#allocation3 + $0x398] sm:$0xf0]  ;;  %v5601_v58 = vpop.f32.mrf.mxu3  ;;  %v10047_v55 = vld [vmem:[#allocation3 + $0x674] sm:$0xf] }
 0x1e7   :  { %5840 = vmatpush.bf16.msra.mxu2 %v7192_v39  ;;  %v9971_v39 = vld [vmem:[#allocation3 + $0x414] sm:$0xf]  ;;  %v7104_v11 = vor.u32 %v9955_v9, %v7101_v48  ;;  %v10013_v9 = vld [vmem:[#allocation3 + $0x564] sm:$0xf]  ;;  %v7325_v32 = vld [vmem:[#allocation3 + $0x558] sm:$0xf0] }
 0x1e8   :  { %5853 = vmatpush.bf16.msra.mxu3 %v7256_v53  ;;  %v7040_v53 = vor.u32 %v9939_v59, %v7037_v45  ;;  %v7168_v54 = vor.u32 %v9971_v39, %v7165_v3  ;;  %v7408_v59 = vor.u32 %v10031_v14, %v7405_v2  ;;  %v7472_v45 = vor.u32 %v10047_v55, %v7469_v44  ;;  %v10029_v48 = vld [vmem:[#allocation3 + $0x5e4] sm:$0xf]  ;;  %v7397_v3 = vld [vmem:[#allocation3 + $0x5e8] sm:$0xf0]  ;;  %v10059_v56 = vld [vmem:[#allocation3 + $0x6d4] sm:$0xf] }
 0x1e9   :  { %5815 = vmatpush.bf16.msra.mxu0 %v7056_v62  ;;  %v9969_v62 = vld [vmem:[#allocation3 + $0x404] sm:$0xf]  ;;  %v7381_v44 = vld [vmem:[#allocation3 + $0x5c8] sm:$0xf0] }
 0x1ea   :  { %5828 = vmatpush.bf16.msra.mxu1 %v7120_v37  ;;  %v7232_v37 = vor.u32 %v9987_v21, %v7229_v31  ;;  %v10045_v21 = vld [vmem:[#allocation3 + $0x664] sm:$0xf]  ;;  %v7461_v31 = vld [vmem:[#allocation3 + $0x668] sm:$0xf0] }
 0x1eb   :  { %5841 = vmatpush.bf16.msra.mxu2 %v7184_v60  ;;  %v7157_v60 = vld [vmem:[#allocation3 + $0x408] sm:$0xf0]  ;;  %v10025_v2 = vld [vmem:[#allocation3 + $0x5c4] sm:$0xf] }
 0x1ec   :  { %5854 = vmatpush.bf16.msra.mxu3 %v7248_v61  ;;  %v10015_v61 = vld [vmem:[#allocation3 + $0x574] sm:$0xf]  ;;  %v7160_v1 = vor.u32 %v9969_v62, %v7157_v60  ;;  %v7389_v60 = vld [vmem:[#allocation3 + $0x5d8] sm:$0xf0] }
 0x1ed   :  { %5816 = vmatpush.bf16.msra.mxu0 %v7048_v50  ;;  %v10063_v50 = vld [vmem:[#allocation3 + $0x6f4] sm:$0xf] }
 0x1ee   :  { %5829 = vmatpush.bf16.msra.mxu1 %v7112_v18  ;;  %v7224_v18 = vor.u32 %v9985_v19, %v7221_v33  ;;  %v7536_v39 = vor.u32 %v10063_v50, %v7533_v51  ;;  %v10027_v62 = vld [vmem:[#allocation3 + $0x5d4] sm:$0xf]  ;;  %v7453_v33 = vld [vmem:[#allocation3 + $0x658] sm:$0xf0]  ;;  %v7509_v50 = vld [vmem:[#allocation3 + $0x6c8] sm:$0xf0] }
 0x1ef   :  { %5842 = vmatpush.bf16.msra.mxu2 %v7176_v36  ;;  %v7344_v36 = vor.u32 %v10015_v61, %v7341_v15  ;;  %v10043_v19 = vld [vmem:[#allocation3 + $0x654] sm:$0xf]  ;;  %v7517_v61 = vld [vmem:[#allocation3 + $0x6d8] sm:$0xf0]  ;;  %v7328_v15 = vor.u32 %v10011_v57, %v7325_v32  ;;  %v7392_v14 = vor.u32 %v10027_v62, %v7389_v60  ;;  %v7301_v57 = vld [vmem:[#allocation3 + $0x528] sm:$0xf0] }
 0x1f0   :  { %5855 = vmatpush.bf16.msra.mxu3 %v7240_v43  ;;  %v7333_v43 = vld [vmem:[#allocation3 + $0x568] sm:$0xf0]  ;;  %v7456_v58 = vor.u32 %v10043_v19, %v7453_v33  ;;  %v7520_v55 = vor.u32 %v10059_v56, %v7517_v61  ;;  %v10021_v32 = vld [vmem:[#allocation3 + $0x5a4] sm:$0xf] }
 0x1f1   :  { %5817 = vmatpush.bf16.msra.mxu0 %v7040_v53  ;;  %v10061_v53 = vld [vmem:[#allocation3 + $0x6e4] sm:$0xf]  ;;  %v7336_v16 = vor.u32 %v10013_v9, %v7333_v43  ;;  %v7309_v9 = vld [vmem:[#allocation3 + $0x538] sm:$0xf0]  ;;  %v10023_v43 = vld [vmem:[#allocation3 + $0x5b4] sm:$0xf] }
 0x1f2   :  { %5830 = vmatpush.bf16.msra.mxu1 %v7104_v11  ;;  %v7400_v11 = vor.u32 %v10029_v48, %v7397_v3  ;;  %v7373_v3 = vld [vmem:[#allocation3 + $0x5b8] sm:$0xf0]  ;;  %v7365_v60 = vld [vmem:[#allocation3 + $0x5a8] sm:$0xf0]  ;;  %v10037_v19 = vld [vmem:[#allocation3 + $0x624] sm:$0xf] }
 0x1f3   :  { %5843 = vmatpush.bf16.msra.mxu2 %v7168_v54  ;;  %v7464_v54 = vor.u32 %v10045_v21, %v7461_v31  ;;  %v10039_v21 = vld [vmem:[#allocation3 + $0x634] sm:$0xf]  ;;  %v7437_v31 = vld [vmem:[#allocation3 + $0x638] sm:$0xf0]  ;;  %v7429_v33 = vld [vmem:[#allocation3 + $0x628] sm:$0xf0] }
 0x1f4   :  { %5856 = vmatpush.bf16.msra.mxu3 %v7232_v37  ;;  %v7528_v37 = vor.u32 %v10061_v53, %v7525_v52  ;;  %v10055_v53 = vld [vmem:[#allocation3 + $0x6b4] sm:$0xf]  ;;  %v7501_v52 = vld [vmem:[#allocation3 + $0x6b8] sm:$0xf0] }
 0x1f5   :  { %5818 = vmatpush.bf16.msra.mxu0 %v7032_v47  ;;  %v10009_v47 = vld [vmem:[#allocation3 + $0x544] sm:$0xf]  ;;  %v7504_v62 = vor.u32 %v10055_v53, %v7501_v52  ;;  %v7413_v53 = vld [vmem:[#allocation3 + $0x608] sm:$0xf0] }
 0x1f6   :  { %5831 = vmatpush.bf16.msra.mxu1 %v7096_v40  ;;  %v10041_v40 = vld [vmem:[#allocation3 + $0x644] sm:$0xf] }
 0x1f7   :  { %5844 = vmatpush.bf16.msra.mxu2 %v7160_v1  ;;  %v5612_v1 = vpop.f32.mrf.mxu0  ;;  %v10049_v52 = vld [vmem:[#allocation3 + $0x684] sm:$0xf] }
 0x1f8   :  { %5857 = vmatpush.bf16.msra.mxu3 %v7224_v18  ;;  %5819 = vmatmul.bf16.vlgmr.msra.gmra.mxu0 %v10844_v35  ;;  %v7317_v35 = vld [vmem:[#allocation3 + $0x548] sm:$0xf0]  ;;  %v5625_v18 = vpop.f32.mrf.mxu1 }
 0x1f9   :  { %5863 = vmatpush.bf16.msrb.mxu0 %v7344_v36  ;;  %5832 = vmatmul.bf16.vlgmr.msra.gmra.mxu1 %v10848_v41  ;;  %v10057_v41 = vld [vmem:[#allocation3 + $0x6c4] sm:$0xf]  ;;  %v7320_v51 = vor.u32 %v10009_v47, %v7317_v35  ;;  %v7384_v36 = vor.u32 %v10025_v2, %v7381_v44  ;;  %v7432_v44 = vor.u32 %v10037_v19, %v7429_v33  ;;  %v7725_v19 = vld [vmem:[#allocation3 + $0x878] sm:$0xf0] }
 0x1fa   :  { %5876 = vmatpush.bf16.msrb.mxu1 %v7408_v59  ;;  %5845 = vmatmul.bf16.vlgmr.msra.gmra.mxu2 %v10856_v20  ;;  %v7445_v20 = vld [vmem:[#allocation3 + $0x648] sm:$0xf0]  ;;  %v7512_v48 = vor.u32 %v10057_v41, %v7509_v50  ;;  %v7357_v50 = vld [vmem:[#allocation3 + $0x598] sm:$0xf0] }
 0x1fb   :  { %5889 = vmatpush.bf16.msrb.mxu2 %v7472_v45  ;;  %5858 = vmatmul.bf16.vlgmr.msra.gmra.mxu3 %v10860_v25  ;;  %v5613_v25 = vadd.f32 %v5612_v1, %v11039_v27  ;;  %v7448_v59 = vor.u32 %v10041_v40, %v7445_v20  ;;  %v10007_v45 = vld [vmem:[#allocation3 + $0x534] sm:$0xf]  ;;  %v7376_v27 = vor.u32 %v10023_v43, %v7373_v3  ;;  %v7293_v20 = vld [vmem:[#allocation3 + $0x518] sm:$0xf0]  ;;  %v7349_v3 = vld [vmem:[#allocation3 + $0x588] sm:$0xf0] }
 0x1fc   :  { %5902 = vmatpush.bf16.msrb.mxu3 %v7536_v39  ;;  %v10003_v40 = vld [vmem:[#allocation3 + $0x514] sm:$0xf] }
 0x1fd   :  { %5864 = vmatpush.bf16.msrb.mxu0 %v7336_v16  ;;  %v5626_v39 = vadd.f32 %v5625_v18, %v5613_v25  ;;  %v7312_v16 = vor.u32 %v10007_v45, %v7309_v9  ;;  %v10019_v1 = vld [vmem:[#allocation3 + $0x594] sm:$0xf]  ;;  %v10001_v45 = vld [vmem:[#allocation3 + $0x504] sm:$0xf]  ;;  %v7285_v9 = vld [vmem:[#allocation3 + $0x508] sm:$0xf0] }
 0x1fe   :  { %5877 = vmatpush.bf16.msrb.mxu1 %v7400_v11  ;;  %v7440_v11 = vor.u32 %v10039_v21, %v7437_v31  ;;  %v5651_v61 = vpop.f32.mrf.mxu3  ;;  %v10035_v25 = vld [vmem:[#allocation3 + $0x614] sm:$0xf]  ;;  %v7360_v43 = vor.u32 %v10019_v1, %v7357_v50  ;;  %v10033_v21 = vld [vmem:[#allocation3 + $0x604] sm:$0xf]  ;;  %v7653_v1 = vld [vmem:[#allocation3 + $0x7e8] sm:$0xf0] }
 0x1ff   :  { %5890 = vmatpush.bf16.msrb.mxu2 %v7464_v54  ;;  %v10005_v54 = vld [vmem:[#allocation3 + $0x524] sm:$0xf]  ;;  %v10051_v18 = vld [vmem:[#allocation3 + $0x694] sm:$0xf]  ;;  %v7717_v50 = vld [vmem:[#allocation3 + $0x868] sm:$0xf0] }
 0x200   :  { %5903 = vmatpush.bf16.msrb.mxu3 %v7528_v37  ;;  %v5638_v37 = vpop.f32.mrf.mxu2  ;;  %v7304_v47 = vor.u32 %v10005_v54, %v7301_v57  ;;  %v5627_v35 = vpop.f32.mrf.mxu1  ;;  %v7597_v54 = vld [vmem:[#allocation3 + $0x778] sm:$0xf0]  ;;  %v10095_v57 = vld [vmem:[#allocation3 + $0x7f4] sm:$0xf] }
 0x201   :  { %5865 = vmatpush.bf16.msrb.mxu0 %v7328_v15  ;;  %v5639_v56 = vadd.f32 %v5638_v37, %v5626_v39  ;;  %v10053_v15 = vld [vmem:[#allocation3 + $0x6a4] sm:$0xf]  ;;  %v7661_v37 = vld [vmem:[#allocation3 + $0x7f8] sm:$0xf0] }
 0x202   :  { %5878 = vmatpush.bf16.msrb.mxu1 %v7392_v14  ;;  %v7493_v14 = vld [vmem:[#allocation3 + $0x6a8] sm:$0xf0]  ;;  %v10017_v39 = vld [vmem:[#allocation3 + $0x584] sm:$0xf] }
 0x203   :  { %5891 = vmatpush.bf16.msrb.mxu2 %v7456_v58  ;;  %v5614_v58 = vpop.f32.mrf.mxu0  ;;  %v11046_v2 = vadd.f32 %v5651_v61, %v5639_v56  ;;  %v7496_v41 = vor.u32 %v10053_v15, %v7493_v14  ;;  %v7352_v33 = vor.u32 %v10017_v39, %v7349_v3  ;;  %v7416_v56 = vor.u32 %v10033_v21, %v7413_v53  ;;  %v10127_v61 = vld [vmem:[#allocation3 + $0x8f4] sm:$0xf]  ;;  %v7789_v15 = vld [vmem:[#allocation3 + $0x8f8] sm:$0xf0] }
 0x204   :  { %5904 = vmatpush.bf16.msrb.mxu3 %v7520_v55  ;;  %v7368_v55 = vor.u32 %v10021_v32, %v7365_v60  ;;  %v10111_v60 = vld [vmem:[#allocation3 + $0x874] sm:$0xf]  ;;  %v7645_v39 = vld [vmem:[#allocation3 + $0x7d8] sm:$0xf0] }
 0x205   :  { %5866 = vmatpush.bf16.msrb.mxu0 %v7320_v51  ;;  %v7421_v51 = vld [vmem:[#allocation3 + $0x618] sm:$0xf0]  ;;  %v7728_v35 = vor.u32 %v10111_v60, %v7725_v19  ;;  %v10107_v3 = vld [vmem:[#allocation3 + $0x854] sm:$0xf]  ;;  %v7765_v60 = vld [vmem:[#allocation3 + $0x8c8] sm:$0xf0] }
 0x206   :  { %5879 = vmatpush.bf16.msrb.mxu1 %v7384_v36  ;;  %v7485_v36 = vld [vmem:[#allocation3 + $0x698] sm:$0xf0]  ;;  %v5653_v32 = vpop.f32.mrf.mxu3 }
 0x207   :  { %5892 = vmatpush.bf16.msrb.mxu2 %v7448_v59  ;;  %v7296_v59 = vor.u32 %v10003_v40, %v7293_v20  ;;  %v7488_v31 = vor.u32 %v10051_v18, %v7485_v36  ;;  %v10093_v40 = vld [vmem:[#allocation3 + $0x7e4] sm:$0xf]  ;;  %v7792_v20 = vor.u32 %v10127_v61, %v7789_v15  ;;  %v7709_v21 = vld [vmem:[#allocation3 + $0x858] sm:$0xf0]  ;;  %v7637_v32 = vld [vmem:[#allocation3 + $0x7c8] sm:$0xf0] }
 0x208   :  { %5905 = vmatpush.bf16.msrb.mxu3 %v7512_v48  ;;  %v7424_v48 = vor.u32 %v10035_v25, %v7421_v51  ;;  %v10125_v25 = vld [vmem:[#allocation3 + $0x8e4] sm:$0xf]  ;;  %v7781_v51 = vld [vmem:[#allocation3 + $0x8e8] sm:$0xf0]  ;;  %v7656_v36 = vor.u32 %v10093_v40, %v7653_v1  ;;  %v7773_v53 = vld [vmem:[#allocation3 + $0x8d8] sm:$0xf0] }
 0x209   :  { %5867 = vmatpush.bf16.msrb.mxu0 %v7312_v16  ;;  %v7477_v16 = vld [vmem:[#allocation3 + $0x688] sm:$0xf0]  ;;  %v10071_v15 = vld [vmem:[#allocation3 + $0x734] sm:$0xf]  ;;  %v7693_v40 = vld [vmem:[#allocation3 + $0x838] sm:$0xf0] }
 0x20a   :  { %5880 = vmatpush.bf16.msrb.mxu1 %v7376_v27  ;;  %v5640_v27 = vpop.f32.mrf.mxu2  ;;  %v7480_v14 = vor.u32 %v10049_v52, %v7477_v16  ;;  %v7757_v1 = vld [vmem:[#allocation3 + $0x8b8] sm:$0xf0] }
 0x20b   :  { %5893 = vmatpush.bf16.msrb.mxu2 %v7440_v11  ;;  %v10079_v11 = vld [vmem:[#allocation3 + $0x774] sm:$0xf]  ;;  %v7712_v27 = vor.u32 %v10107_v3, %v7709_v21  ;;  %v10117_v3 = vld [vmem:[#allocation3 + $0x8a4] sm:$0xf]  ;;  %v7749_v21 = vld [vmem:[#allocation3 + $0x8a8] sm:$0xf0] }
 0x20c   :  { %5906 = vmatpush.bf16.msrb.mxu3 %v7504_v62  ;;  %v7288_v62 = vor.u32 %v10001_v45, %v7285_v9  ;;  %v7600_v58 = vor.u32 %v10079_v11, %v7597_v54  ;;  %v10075_v45 = vld [vmem:[#allocation3 + $0x754] sm:$0xf]  ;;  %v7581_v9 = vld [vmem:[#allocation3 + $0x758] sm:$0xf0]  ;;  %v10073_v11 = vld [vmem:[#allocation3 + $0x744] sm:$0xf] }
 0x20d   :  { %5868 = vmatpush.bf16.msrb.mxu0 %v7304_v47  ;;  %v7664_v47 = vor.u32 %v10095_v57, %v7661_v37  ;;  %v7584_v52 = vor.u32 %v10075_v45, %v7581_v9  ;;  %v10089_v54 = vld [vmem:[#allocation3 + $0x7c4] sm:$0xf]  ;;  %v7621_v45 = vld [vmem:[#allocation3 + $0x7a8] sm:$0xf0] }
 0x20e   :  { %5881 = vmatpush.bf16.msrb.mxu1 %v7368_v55  ;;  %v10077_v55 = vld [vmem:[#allocation3 + $0x764] sm:$0xf] }
 0x20f   :  { %5894 = vmatpush.bf16.msrb.mxu2 %v7432_v44  ;;  %v7589_v44 = vld [vmem:[#allocation3 + $0x768] sm:$0xf0]  ;;  %v10101_v9 = vld [vmem:[#allocation3 + $0x824] sm:$0xf] }
 0x210   :  { %5907 = vmatpush.bf16.msrb.mxu3 %v7496_v41  ;;  %v10109_v41 = vld [vmem:[#allocation3 + $0x864] sm:$0xf]  ;;  %v7592_v18 = vor.u32 %v10077_v55, %v7589_v44  ;;  %v7629_v55 = vld [vmem:[#allocation3 + $0x7b8] sm:$0xf0]  ;;  %v10103_v44 = vld [vmem:[#allocation3 + $0x834] sm:$0xf] }
 0x211   :  { %5869 = vmatpush.bf16.msrb.mxu0 %v7296_v59  ;;  %v7720_v59 = vor.u32 %v10109_v41, %v7717_v50  ;;  %v7696_v50 = vor.u32 %v10103_v44, %v7693_v40  ;;  %v7733_v44 = vld [vmem:[#allocation3 + $0x888] sm:$0xf0] }
 0x212   :  { %5882 = vmatpush.bf16.msrb.mxu1 %v7360_v43  ;;  %v10091_v43 = vld [vmem:[#allocation3 + $0x7d4] sm:$0xf] }
 0x213   :  { %5895 = vmatpush.bf16.msrb.mxu2 %v7424_v48  ;;  %v7784_v48 = vor.u32 %v10125_v25, %v7781_v51  ;;  %v7648_v16 = vor.u32 %v10091_v43, %v7645_v39  ;;  %v10069_v25 = vld [vmem:[#allocation3 + $0x724] sm:$0xf]  ;;  %v7557_v51 = vld [vmem:[#allocation3 + $0x728] sm:$0xf0] }
 0x214   :  { %5908 = vmatpush.bf16.msrb.mxu3 %v7488_v31  ;;  %v10123_v31 = vld [vmem:[#allocation3 + $0x8d4] sm:$0xf]  ;;  %v7685_v43 = vld [vmem:[#allocation3 + $0x828] sm:$0xf0] }
 0x215   :  { %5870 = vmatpush.bf16.msrb.mxu0 %v7288_v62  ;;  %v7776_v57 = vor.u32 %v10123_v31, %v7773_v53  ;;  %v10105_v62 = vld [vmem:[#allocation3 + $0x844] sm:$0xf]  ;;  %v5664_v37 = vpop.f32.mrf.mxu0  ;;  %v7560_v53 = vor.u32 %v10069_v25, %v7557_v51  ;;  %v7917_v25 = vld [vmem:[#allocation3 + $0x9f8] sm:$0xf0]  ;;  %v10175_v51 = vld [vmem:[#allocation3 + $0xa74] sm:$0xf] }
 0x216   :  { %5883 = vmatpush.bf16.msrb.mxu1 %v7352_v33  ;;  %v5677_v33 = vpop.f32.mrf.mxu1 }
 0x217   :  { %5896 = vmatpush.bf16.msrb.mxu2 %v7416_v56  ;;  %v7640_v56 = vor.u32 %v10089_v54, %v7637_v32  ;;  %v7549_v54 = vld [vmem:[#allocation3 + $0x718] sm:$0xf0]  ;;  %v7752_v32 = vor.u32 %v10117_v3, %v7749_v21  ;;  %v10141_v21 = vld [vmem:[#allocation3 + $0x964] sm:$0xf] }
 0x218   :  { %5909 = vmatpush.bf16.msrb.mxu3 %v7480_v14  ;;  %5871 = vmatmul.bf16.vlgmr.msrb.gmra.mxu0 %v10858_v24  ;;  %v7573_v24 = vld [vmem:[#allocation3 + $0x748] sm:$0xf0]  ;;  %v7565_v14 = vld [vmem:[#allocation3 + $0x738] sm:$0xf0] }
 0x219   :  { %5915 = vmatpush.bf16.msra.mxu0 %v7600_v58  ;;  %5884 = vmatmul.bf16.vlgmr.msrb.gmra.mxu1 %v10862_v28  ;;  %v10121_v28 = vld [vmem:[#allocation3 + $0x8c4] sm:$0xf]  ;;  %v7576_v19 = vor.u32 %v10073_v11, %v7573_v24  ;;  %v10087_v58 = vld [vmem:[#allocation3 + $0x7b4] sm:$0xf]  ;;  %v7568_v41 = vor.u32 %v10071_v15, %v7565_v14  ;;  %v7688_v11 = vor.u32 %v10101_v9, %v7685_v43  ;;  %v7605_v14 = vld [vmem:[#allocation3 + $0x788] sm:$0xf0] }
 0x21a   :  { %5928 = vmatpush.bf16.msra.mxu1 %v7664_v47  ;;  %5897 = vmatmul.bf16.vlgmr.msrb.gmra.mxu2 %v10871_v17  ;;  %v7701_v17 = vld [vmem:[#allocation3 + $0x848] sm:$0xf0]  ;;  %v7768_v47 = vor.u32 %v10121_v28, %v7765_v60  ;;  %v10067_v24 = vld [vmem:[#allocation3 + $0x714] sm:$0xf]  ;;  %v7741_v60 = vld [vmem:[#allocation3 + $0x898] sm:$0xf0] }
 0x21b   :  { %5941 = vmatpush.bf16.msra.mxu2 %v7728_v35  ;;  %5910 = vmatmul.bf16.vlgmr.msrb.gmra.mxu3 %v10875_v23  ;;  %v5665_v23 = vadd.f32 %v5664_v37, %v11046_v2  ;;  %v7704_v61 = vor.u32 %v10105_v62, %v7701_v17  ;;  %v7632_v2 = vor.u32 %v10087_v58, %v7629_v55  ;;  %v7613_v62 = vld [vmem:[#allocation3 + $0x798] sm:$0xf0]  ;;  %v10099_v17 = vld [vmem:[#allocation3 + $0x814] sm:$0xf]  ;;  %v10081_v15 = vld [vmem:[#allocation3 + $0x784] sm:$0xf] }
 0x21c   :  { %5954 = vmatpush.bf16.msra.mxu3 %v7792_v20  ;;  %v10119_v20 = vld [vmem:[#allocation3 + $0x8b4] sm:$0xf]  ;;  %v7677_v37 = vld [vmem:[#allocation3 + $0x818] sm:$0xf0]  ;;  %v10097_v58 = vld [vmem:[#allocation3 + $0x804] sm:$0xf] }
 0x21d   :  { %5916 = vmatpush.bf16.msra.mxu0 %v7592_v18  ;;  %v5678_v35 = vadd.f32 %v5677_v33, %v5665_v23  ;;  %v10085_v18 = vld [vmem:[#allocation3 + $0x7a4] sm:$0xf]  ;;  %v5666_v31 = vpop.f32.mrf.mxu0  ;;  %v10115_v28 = vld [vmem:[#allocation3 + $0x894] sm:$0xf]  ;;  %v7552_v23 = vor.u32 %v10067_v24, %v7549_v54  ;;  %v7541_v33 = vld [vmem:[#allocation3 + $0x708] sm:$0xf0] }
 0x21e   :  { %5929 = vmatpush.bf16.msra.mxu1 %v7656_v36  ;;  %v7760_v36 = vor.u32 %v10119_v20, %v7757_v1  ;;  %v5703_v39 = vpop.f32.mrf.mxu3  ;;  %v10113_v55 = vld [vmem:[#allocation3 + $0x884] sm:$0xf]  ;;  %v10143_v20 = vld [vmem:[#allocation3 + $0x974] sm:$0xf]  ;;  %v7853_v1 = vld [vmem:[#allocation3 + $0x978] sm:$0xf0] }
 0x21f   :  { %5942 = vmatpush.bf16.msra.mxu2 %v7720_v59  ;;  %v5690_v59 = vpop.f32.mrf.mxu2  ;;  %v8045_v9 = vld [vmem:[#allocation3 + $0xaf8] sm:$0xf0]  ;;  %v7736_v43 = vor.u32 %v10113_v55, %v7733_v44  ;;  %v7845_v31 = vld [vmem:[#allocation3 + $0x968] sm:$0xf0]  ;;  %v10189_v54 = vld [vmem:[#allocation3 + $0xae4] sm:$0xf] }
 0x220   :  { %5955 = vmatpush.bf16.msra.mxu3 %v7784_v48  ;;  %v5691_v48 = vadd.f32 %v5690_v59, %v5678_v35  ;;  %v7669_v35 = vld [vmem:[#allocation3 + $0x808] sm:$0xf0]  ;;  %v10153_v55 = vld [vmem:[#allocation3 + $0x9c4] sm:$0xf] }
 0x221   :  { %5917 = vmatpush.bf16.msra.mxu0 %v7584_v52  ;;  %v5679_v52 = vpop.f32.mrf.mxu1  ;;  %v7672_v59 = vor.u32 %v10097_v58, %v7669_v35  ;;  %v7973_v24 = vld [vmem:[#allocation3 + $0xa68] sm:$0xf0]  ;;  %v10137_v35 = vld [vmem:[#allocation3 + $0x944] sm:$0xf] }
 0x222   :  { %5930 = vmatpush.bf16.msra.mxu1 %v7648_v16  ;;  %v11053_v16 = vadd.f32 %v5703_v39, %v5691_v48  ;;  %v7856_v48 = vor.u32 %v10143_v20, %v7853_v1  ;;  %v10169_v20 = vld [vmem:[#allocation3 + $0xa44] sm:$0xf] }
 0x223   :  { %5943 = vmatpush.bf16.msra.mxu2 %v7712_v27  ;;  %v7624_v27 = vor.u32 %v10085_v18, %v7621_v45  ;;  %v7981_v18 = vld [vmem:[#allocation3 + $0xa78] sm:$0xf0]  ;;  %v10191_v45 = vld [vmem:[#allocation3 + $0xaf4] sm:$0xf] }
 0x224   :  { %5956 = vmatpush.bf16.msra.mxu3 %v7776_v57  ;;  %v10083_v57 = vld [vmem:[#allocation3 + $0x794] sm:$0xf]  ;;  %v7984_v3 = vor.u32 %v10175_v51, %v7981_v18  ;;  %v8048_v52 = vor.u32 %v10191_v45, %v8045_v9 }
 0x225   :  { %5918 = vmatpush.bf16.msra.mxu0 %v7576_v19  ;;  %v10065_v19 = vld [vmem:[#allocation3 + $0x704] sm:$0xf]  ;;  %v10135_v18 = vld [vmem:[#allocation3 + $0x934] sm:$0xf] }
 0x226   :  { %5931 = vmatpush.bf16.msra.mxu1 %v7640_v56  ;;  %v7616_v56 = vor.u32 %v10083_v57, %v7613_v62  ;;  %v8037_v57 = vld [vmem:[#allocation3 + $0xae8] sm:$0xf0] }
 0x227   :  { %5944 = vmatpush.bf16.msra.mxu2 %v7704_v61  ;;  %v7680_v61 = vor.u32 %v10099_v17, %v7677_v37  ;;  %v5692_v40 = vpop.f32.mrf.mxu2  ;;  %v10139_v37 = vld [vmem:[#allocation3 + $0x954] sm:$0xf] }
 0x228   :  { %5957 = vmatpush.bf16.msra.mxu3 %v7768_v47  ;;  %v7744_v47 = vor.u32 %v10115_v28, %v7741_v60  ;;  %v7837_v28 = vld [vmem:[#allocation3 + $0x958] sm:$0xf0]  ;;  %v10155_v60 = vld [vmem:[#allocation3 + $0x9d4] sm:$0xf]  ;;  %v7893_v40 = vld [vmem:[#allocation3 + $0x9c8] sm:$0xf0] }
 0x229   :  { %5919 = vmatpush.bf16.msra.mxu0 %v7568_v41  ;;  %v10159_v41 = vld [vmem:[#allocation3 + $0x9f4] sm:$0xf] }
 0x22a   :  { %5932 = vmatpush.bf16.msra.mxu1 %v7632_v2  ;;  %v5705_v2 = vpop.f32.mrf.mxu3  ;;  %v7920_v39 = vor.u32 %v10159_v41, %v7917_v25  ;;  %v8021_v41 = vld [vmem:[#allocation3 + $0xac8] sm:$0xf0]  ;;  %v7896_v25 = vor.u32 %v10153_v55, %v7893_v40  ;;  %v10163_v40 = vld [vmem:[#allocation3 + $0xa14] sm:$0xf] }
 0x22b   :  { %5945 = vmatpush.bf16.msra.mxu2 %v7696_v50  ;;  %v7544_v50 = vor.u32 %v10065_v19, %v7541_v33  ;;  %v7901_v19 = vld [vmem:[#allocation3 + $0x9d8] sm:$0xf0]  ;;  %v10171_v33 = vld [vmem:[#allocation3 + $0xa54] sm:$0xf] }
 0x22c   :  { %5958 = vmatpush.bf16.msra.mxu3 %v7760_v36  ;;  %v7608_v36 = vor.u32 %v10081_v15, %v7605_v14  ;;  %v8029_v15 = vld [vmem:[#allocation3 + $0xad8] sm:$0xf0]  ;;  %v7840_v14 = vor.u32 %v10139_v37, %v7837_v28  ;;  %v7904_v58 = vor.u32 %v10155_v60, %v7901_v19  ;;  %v10181_v28 = vld [vmem:[#allocation3 + $0xaa4] sm:$0xf]  ;;  %v8005_v60 = vld [vmem:[#allocation3 + $0xaa8] sm:$0xf0] }
 0x22d   :  { %5920 = vmatpush.bf16.msra.mxu0 %v7560_v53  ;;  %v10157_v53 = vld [vmem:[#allocation3 + $0x9e4] sm:$0xf]  ;;  %v8008_v55 = vor.u32 %v10181_v28, %v8005_v60  ;;  %v8101_v60 = vld [vmem:[#allocation3 + $0xb68] sm:$0xf0] }
 0x22e   :  { %5933 = vmatpush.bf16.msra.mxu1 %v7624_v27  ;;  %v7909_v27 = vld [vmem:[#allocation3 + $0x9e8] sm:$0xf0]  ;;  %v10205_v28 = vld [vmem:[#allocation3 + $0xb64] sm:$0xf] }
 0x22f   :  { %5946 = vmatpush.bf16.msra.mxu2 %v7688_v11  ;;  %v10173_v11 = vld [vmem:[#allocation3 + $0xa64] sm:$0xf]  ;;  %v7912_v62 = vor.u32 %v10157_v53, %v7909_v27 }
 0x230   :  { %5959 = vmatpush.bf16.msra.mxu3 %v7752_v32  ;;  %v7848_v32 = vor.u32 %v10141_v21, %v7845_v31  ;;  %v7976_v17 = vor.u32 %v10173_v11, %v7973_v24  ;;  %v8013_v21 = vld [vmem:[#allocation3 + $0xab8] sm:$0xf0]  ;;  %v10654_v31 = vld [vmem:[#allocation5] sm:$0x3]  ;;  %v10133_v11 = vld [vmem:[#allocation3 + $0x924] sm:$0xf] }
 0x231   :  { %5921 = vmatpush.bf16.msra.mxu0 %v7552_v23  ;;  %v8040_v23 = vor.u32 %v10189_v54, %v8037_v57  ;;  %v7813_v24 = vld [vmem:[#allocation3 + $0x928] sm:$0xf0]  ;;  %v10149_v54 = vld [vmem:[#allocation3 + $0x9a4] sm:$0xf] }
 0x232   :  { %5934 = vmatpush.bf16.msra.mxu1 %v7616_v56  ;;  %v7965_v56 = vld [vmem:[#allocation3 + $0xa58] sm:$0xf0] }
 0x233   :  { %5947 = vmatpush.bf16.msra.mxu2 %v7680_v61  ;;  %v10187_v61 = vld [vmem:[#allocation3 + $0xad4] sm:$0xf] }
 0x234   :  { %5960 = vmatpush.bf16.msra.mxu3 %v7744_v47  ;;  %v7968_v47 = vor.u32 %v10171_v33, %v7965_v56  ;;  %v8032_v44 = vor.u32 %v10187_v61, %v8029_v15  ;;  %v7816_v56 = vor.u32 %v10133_v11, %v7813_v24 }
 0x235   :  { %5922 = vmatpush.bf16.msra.mxu0 %v7544_v50  ;;  %v5716_v1 = vpop.f32.mrf.mxu0 }
 0x236   :  { %5935 = vmatpush.bf16.msra.mxu1 %v7608_v36  ;;  %v5729_v50 = vpop.f32.mrf.mxu1  ;;  %v7821_v36 = vld [vmem:[#allocation3 + $0x938] sm:$0xf0] }
 0x237   :  { %5948 = vmatpush.bf16.msra.mxu2 %v7672_v59  ;;  %v10151_v59 = vld [vmem:[#allocation3 + $0x9b4] sm:$0xf]  ;;  %v7824_v53 = vor.u32 %v10135_v18, %v7821_v36  ;;  %v10161_v18 = vld [vmem:[#allocation3 + $0xa04] sm:$0xf] }
 0x238   :  { %5961 = vmatpush.bf16.msra.mxu3 %v7736_v43  ;;  %5923 = vmatmul.bf16.vlgmr.msra.gmra.mxu0 %v10873_v22  ;;  %v7829_v22 = vld [vmem:[#allocation3 + $0x948] sm:$0xf0]  ;;  %v7885_v43 = vld [vmem:[#allocation3 + $0x9b8] sm:$0xf0] }
 0x239   :  { %5967 = vmatpush.bf16.msrb.mxu0 %v7856_v48  ;;  %5936 = vmatmul.bf16.vlgmr.msra.gmra.mxu1 %v10877_v29  ;;  %v10185_v29 = vld [vmem:[#allocation3 + $0xac4] sm:$0xf]  ;;  %v7832_v2 = vor.u32 %v10137_v35, %v7829_v22  ;;  %v10167_v48 = vld [vmem:[#allocation3 + $0xa34] sm:$0xf] }
 0x23a   :  { %5980 = vmatpush.bf16.msrb.mxu1 %v7920_v39  ;;  %5949 = vmatmul.bf16.vlgmr.msra.gmra.mxu2 %v10886_v30  ;;  %v7957_v30 = vld [vmem:[#allocation3 + $0xa48] sm:$0xf0]  ;;  %v8024_v45 = vor.u32 %v10185_v29, %v8021_v41  ;;  %v7949_v39 = vld [vmem:[#allocation3 + $0xa38] sm:$0xf0]  ;;  %v10147_v35 = vld [vmem:[#allocation3 + $0x994] sm:$0xf] }
 0x23b   :  { %5993 = vmatpush.bf16.msrb.mxu2 %v7984_v3  ;;  %5962 = vmatmul.bf16.vlgmr.msra.gmra.mxu3 %v10890_v38  ;;  %v5717_v38 = vadd.f32 %v5716_v1, %v11053_v16  ;;  %v7960_v51 = vor.u32 %v10169_v20, %v7957_v30  ;;  %v10183_v3 = vld [vmem:[#allocation3 + $0xab4] sm:$0xf]  ;;  %v1080_v16 = vperm.slane %v10654_v31, 1  ;;  %v7952_v27 = vor.u32 %v10167_v48, %v7949_v39  ;;  %v7933_v20 = vld [vmem:[#allocation3 + $0xa18] sm:$0xf0] }
 0x23c   :  { %6006 = vmatpush.bf16.msrb.mxu3 %v8048_v52  ;;  %v7888_v52 = vor.u32 %v10151_v59, %v7885_v43  ;;  %v8016_v57 = vor.u32 %v10183_v3, %v8013_v21  ;;  %v10179_v30 = vld [vmem:[#allocation3 + $0xa94] sm:$0xf]  ;;  %v7997_v1 = vld [vmem:[#allocation3 + $0xa98] sm:$0xf0]  ;;  %v10129_v41 = vld [vmem:[#allocation3 + $0x904] sm:$0xf] }
 0x23d   :  { %5968 = vmatpush.bf16.msrb.mxu0 %v7848_v32  ;;  %v11060_v9 = vadd.f32 %v5729_v50, %v5717_v38  ;;  %v7877_v32 = vld [vmem:[#allocation3 + $0x9a8] sm:$0xf0]  ;;  %v5742_v37 = vpop.f32.mrf.mxu2  ;;  %v5718_v33 = vpop.f32.mrf.mxu0  ;;  %v7936_v50 = vor.u32 %v10163_v40, %v7933_v20  ;;  %v8000_v36 = vor.u32 %v10179_v30, %v7997_v1  ;;  %v10207_v39 = vld [vmem:[#allocation3 + $0xb74] sm:$0xf]  ;;  %v8109_v3 = vld [vmem:[#allocation3 + $0xb78] sm:$0xf0] }
 0x23e   :  { %5981 = vmatpush.bf16.msrb.mxu1 %v7912_v62  ;;  %v10165_v62 = vld [vmem:[#allocation3 + $0xa24] sm:$0xf]  ;;  %v5755_v19 = vpop.f32.mrf.mxu3  ;;  %v5731_v61 = vpop.f32.mrf.mxu1  ;;  %v7880_v15 = vor.u32 %v10149_v54, %v7877_v32  ;;  %v7797_v38 = vld [vmem:[#allocation3 + $0x908] sm:$0xf0]  ;;  %v10223_v21 = vld [vmem:[#allocation3 + $0xbf4] sm:$0xf] }
 0x23f   :  { %5994 = vmatpush.bf16.msrb.mxu2 %v7976_v17  ;;  %v7941_v17 = vld [vmem:[#allocation3 + $0xa28] sm:$0xf0]  ;;  %v10255_v54 = vld [vmem:[#allocation3 + $0xcf4] sm:$0xf]  ;;  %v8157_v30 = vld [vmem:[#allocation3 + $0xbd8] sm:$0xf0] }
 0x240   :  { %6007 = vmatpush.bf16.msrb.mxu3 %v8040_v23  ;;  %v5743_v23 = vadd.f32 %v5742_v37, %v1080_v16  ;;  %v7925_v59 = vld [vmem:[#allocation3 + $0xa08] sm:$0xf0]  ;;  %v7800_v16 = vor.u32 %v10129_v41, %v7797_v38  ;;  %v10219_v40 = vld [vmem:[#allocation3 + $0xbd4] sm:$0xf]  ;;  %v8285_v38 = vld [vmem:[#allocation3 + $0xcd8] sm:$0xf0] }
 0x241   :  { %5969 = vmatpush.bf16.msrb.mxu0 %v7840_v14  ;;  %v7944_v14 = vor.u32 %v10165_v62, %v7941_v17  ;;  %v7989_v43 = vld [vmem:[#allocation3 + $0xa88] sm:$0xf0]  ;;  %v7928_v24 = vor.u32 %v10161_v18, %v7925_v59  ;;  %v8112_v62 = vor.u32 %v10207_v39, %v8109_v3  ;;  %v10235_v1 = vld [vmem:[#allocation3 + $0xc54] sm:$0xf]  ;;  %v10217_v18 = vld [vmem:[#allocation3 + $0xbc4] sm:$0xf] }
 0x242   :  { %5982 = vmatpush.bf16.msrb.mxu1 %v7904_v58  ;;  %v10131_v58 = vld [vmem:[#allocation3 + $0x914] sm:$0xf]  ;;  %v11062_v22 = vadd.f32 %v5755_v19, %v5743_v23  ;;  %v10221_v23 = vld [vmem:[#allocation3 + $0xbe4] sm:$0xf]  ;;  %v8165_v33 = vld [vmem:[#allocation3 + $0xbe8] sm:$0xf0] }
 0x243   :  { %5995 = vmatpush.bf16.msrb.mxu2 %v7968_v47  ;;  %v7805_v47 = vld [vmem:[#allocation3 + $0x918] sm:$0xf0]  ;;  %v8229_v61 = vld [vmem:[#allocation3 + $0xc68] sm:$0xf0]  ;;  %v10251_v41 = vld [vmem:[#allocation3 + $0xcd4] sm:$0xf] }
 0x244   :  { %6008 = vmatpush.bf16.msrb.mxu3 %v8032_v44  ;;  %v7869_v44 = vld [vmem:[#allocation3 + $0x998] sm:$0xf0]  ;;  %v7808_v29 = vor.u32 %v10131_v58, %v7805_v47  ;;  %v8104_v58 = vor.u32 %v10205_v28, %v8101_v60  ;;  %v8168_v47 = vor.u32 %v10221_v23, %v8165_v33  ;;  %v8149_v59 = vld [vmem:[#allocation3 + $0xbc8] sm:$0xf0]  ;;  %v10213_v60 = vld [vmem:[#allocation3 + $0xba4] sm:$0xf] }
 0x245   :  { %5970 = vmatpush.bf16.msrb.mxu0 %v7832_v2  ;;  %v7872_v2 = vor.u32 %v10147_v35, %v7869_v44  ;;  %v5744_v48 = vpop.f32.mrf.mxu2  ;;  %v8093_v44 = vld [vmem:[#allocation3 + $0xb58] sm:$0xf0]  ;;  %v8069_v28 = vld [vmem:[#allocation3 + $0xb28] sm:$0xf0] }
 0x246   :  { %5983 = vmatpush.bf16.msrb.mxu1 %v7896_v25  ;;  %v10145_v25 = vld [vmem:[#allocation3 + $0x984] sm:$0xf]  ;;  %v5757_v31 = vpop.f32.mrf.mxu3  ;;  %v8133_v33 = vld [vmem:[#allocation3 + $0xba8] sm:$0xf0] }
 0x247   :  { %5996 = vmatpush.bf16.msrb.mxu2 %v7960_v51  ;;  %v7861_v51 = vld [vmem:[#allocation3 + $0x988] sm:$0xf0]  ;;  %v8077_v31 = vld [vmem:[#allocation3 + $0xb38] sm:$0xf0] }
 0x248   :  { %6009 = vmatpush.bf16.msrb.mxu3 %v8024_v45  ;;  %v10177_v45 = vld [vmem:[#allocation3 + $0xa84] sm:$0xf]  ;;  %v7864_v11 = vor.u32 %v10145_v25, %v7861_v51 }
 0x249   :  { %5971 = vmatpush.bf16.msrb.mxu0 %v7824_v53  ;;  %v8173_v53 = vld [vmem:[#allocation3 + $0xbf8] sm:$0xf0]  ;;  %v7992_v32 = vor.u32 %v10177_v45, %v7989_v43  ;;  %v10201_v51 = vld [vmem:[#allocation3 + $0xb44] sm:$0xf] }
 0x24a   :  { %5984 = vmatpush.bf16.msrb.mxu1 %v7888_v52  ;;  %v10239_v52 = vld [vmem:[#allocation3 + $0xc74] sm:$0xf]  ;;  %v8176_v17 = vor.u32 %v10223_v21, %v8173_v53  ;;  %v10233_v45 = vld [vmem:[#allocation3 + $0xc44] sm:$0xf] }
 0x24b   :  { %5997 = vmatpush.bf16.msrb.mxu2 %v7952_v27  ;;  %v8237_v27 = vld [vmem:[#allocation3 + $0xc78] sm:$0xf0]  ;;  %v10249_v43 = vld [vmem:[#allocation3 + $0xcc4] sm:$0xf]  ;;  %v10199_v21 = vld [vmem:[#allocation3 + $0xb34] sm:$0xf] }
 0x24c   :  { %6010 = vmatpush.bf16.msrb.mxu3 %v8016_v57  ;;  %v8301_v57 = vld [vmem:[#allocation3 + $0xcf8] sm:$0xf0]  ;;  %v8240_v37 = vor.u32 %v10239_v52, %v8237_v27 }
 0x24d   :  { %5972 = vmatpush.bf16.msrb.mxu0 %v7816_v56  ;;  %v8304_v19 = vor.u32 %v10255_v54, %v8301_v57  ;;  %v10237_v56 = vld [vmem:[#allocation3 + $0xc64] sm:$0xf]  ;;  %v8141_v27 = vld [vmem:[#allocation3 + $0xbb8] sm:$0xf0]  ;;  %v10247_v54 = vld [vmem:[#allocation3 + $0xcb4] sm:$0xf] }
 0x24e   :  { %5985 = vmatpush.bf16.msrb.mxu1 %v7880_v15  ;;  %v10253_v15 = vld [vmem:[#allocation3 + $0xce4] sm:$0xf]  ;;  %v8232_v35 = vor.u32 %v10237_v56, %v8229_v61  ;;  %v8269_v57 = vld [vmem:[#allocation3 + $0xcb8] sm:$0xf0]  ;;  %v8197_v61 = vld [vmem:[#allocation3 + $0xc28] sm:$0xf0] }
 0x24f   :  { %5998 = vmatpush.bf16.msrb.mxu2 %v7944_v14  ;;  %v8293_v14 = vld [vmem:[#allocation3 + $0xce8] sm:$0xf0]  ;;  %v10229_v56 = vld [vmem:[#allocation3 + $0xc24] sm:$0xf] }
 0x250   :  { %6011 = vmatpush.bf16.msrb.mxu3 %v8008_v55  ;;  %v10203_v55 = vld [vmem:[#allocation3 + $0xb54] sm:$0xf]  ;;  %v8296_v20 = vor.u32 %v10253_v15, %v8293_v14  ;;  %v10245_v14 = vld [vmem:[#allocation3 + $0xca4] sm:$0xf] }
 0x251   :  { %5973 = vmatpush.bf16.msrb.mxu0 %v7808_v29  ;;  %v8221_v29 = vld [vmem:[#allocation3 + $0xc58] sm:$0xf0] }
 0x252   :  { %5986 = vmatpush.bf16.msrb.mxu1 %v7872_v2  ;;  %v8096_v2 = vor.u32 %v10203_v55, %v8093_v44  ;;  %v8224_v25 = vor.u32 %v10235_v1, %v8221_v29  ;;  %v8136_v55 = vor.u32 %v10213_v60, %v8133_v33  ;;  %v8200_v44 = vor.u32 %v10229_v56, %v8197_v61  ;;  %v10269_v61 = vld [vmem:[#allocation3 + $0xd64] sm:$0xf] }
 0x253   :  { %5999 = vmatpush.bf16.msrb.mxu2 %v7936_v50  ;;  %v8160_v50 = vor.u32 %v10219_v40, %v8157_v30  ;;  %v10195_v40 = vld [vmem:[#allocation3 + $0xb14] sm:$0xf] }
 0x254   :  { %6012 = vmatpush.bf16.msrb.mxu3 %v8000_v36  ;;  %v8288_v36 = vor.u32 %v10251_v41, %v8285_v38  ;;  %v10211_v30 = vld [vmem:[#allocation3 + $0xb94] sm:$0xf]  ;;  %v8125_v41 = vld [vmem:[#allocation3 + $0xb98] sm:$0xf0] }
 0x255   :  { %5974 = vmatpush.bf16.msrb.mxu0 %v7800_v16  ;;  %v11068_v39 = vpop.f32.mrf.mxu0  ;;  %v10215_v16 = vld [vmem:[#allocation3 + $0xbb4] sm:$0xf] }
 0x256   :  { %5987 = vmatpush.bf16.msrb.mxu1 %v7864_v11  ;;  %v11070_v53 = vpop.f32.mrf.mxu1  ;;  %v10231_v11 = vld [vmem:[#allocation3 + $0xc34] sm:$0xf] }
 0x257   :  { %6000 = vmatpush.bf16.msrb.mxu2 %v7928_v24  ;;  %v8205_v24 = vld [vmem:[#allocation3 + $0xc38] sm:$0xf0]  ;;  %v10227_v38 = vld [vmem:[#allocation3 + $0xc14] sm:$0xf] }
 0x258   :  { %6013 = vmatpush.bf16.msrb.mxu3 %v7992_v32  ;;  %5975 = vmatmul.bf16.vlgmr.msrb.gmra.mxu0 %v10888_v34  ;;  %v8085_v34 = vld [vmem:[#allocation3 + $0xb48] sm:$0xf0]  ;;  %v8080_v32 = vor.u32 %v10199_v21, %v8077_v31 }
 0x259   :  { %6019 = vmatpush.bf16.msra.mxu0 %v8112_v62  ;;  %5988 = vmatmul.bf16.vlgmr.msrb.gmra.mxu1 %v10892_v46  ;;  %v8277_v46 = vld [vmem:[#allocation3 + $0xcc8] sm:$0xf0]  ;;  %v8088_v48 = vor.u32 %v10201_v51, %v8085_v34  ;;  %v8144_v62 = vor.u32 %v10215_v16, %v8141_v27  ;;  %v10193_v34 = vld [vmem:[#allocation3 + $0xb04] sm:$0xf]  ;;  %v10271_v16 = vld [vmem:[#allocation3 + $0xd74] sm:$0xf] }
 0x25a   :  { %6032 = vmatpush.bf16.msra.mxu1 %v8176_v17  ;;  %6001 = vmatmul.bf16.vlgmr.msrb.gmra.mxu2 %v10901_v0  ;;  %v8213_v0 = vld [vmem:[#allocation3 + $0xc48] sm:$0xf0]  ;;  %v8280_v52 = vor.u32 %v10249_v43, %v8277_v46  ;;  %v8208_v17 = vor.u32 %v10231_v11, %v8205_v24  ;;  %v10225_v43 = vld [vmem:[#allocation3 + $0xc04] sm:$0xf]  ;;  %v10287_v27 = vld [vmem:[#allocation3 + $0xdf4] sm:$0xf]  ;;  %v5769_v11 = vadd.f32 %v11068_v39, %v11062_v22 }
 0x25b   :  { %6045 = vmatpush.bf16.msra.mxu2 %v8240_v37  ;;  %6014 = vmatmul.bf16.vlgmr.msrb.gmra.mxu3 %v10905_v6  ;;  %v8152_v6 = vor.u32 %v10217_v18, %v8149_v59  ;;  %v8216_v3 = vor.u32 %v10233_v45, %v8213_v0  ;;  %v10197_v37 = vld [vmem:[#allocation3 + $0xb24] sm:$0xf]  ;;  %v8053_v18 = vld [vmem:[#allocation3 + $0xb08] sm:$0xf0] }
 0x25c   :  { %6058 = vmatpush.bf16.msra.mxu3 %v8304_v19  ;;  %v8272_v19 = vor.u32 %v10247_v54, %v8269_v57  ;;  %v10209_v45 = vld [vmem:[#allocation3 + $0xb84] sm:$0xf]  ;;  %v8117_v0 = vld [vmem:[#allocation3 + $0xb88] sm:$0xf0]  ;;  %v8056_v24 = vor.u32 %v10193_v34, %v8053_v18  ;;  %v8429_v54 = vld [vmem:[#allocation3 + $0xdf8] sm:$0xf0]  ;;  %v5782_v22 = vadd.f32 %v11070_v53, %v5769_v11 }
 0x25d   :  { %6020 = vmatpush.bf16.msra.mxu0 %v8104_v58  ;;  %v11072_v23 = vpop.f32.mrf.mxu2  ;;  %v8261_v58 = vld [vmem:[#allocation3 + $0xca8] sm:$0xf0]  ;;  %v10303_v57 = vld [vmem:[#allocation3 + $0xe74] sm:$0xf]  ;;  %v8432_v33 = vor.u32 %v10287_v27, %v8429_v54  ;;  %v8541_v18 = vld [vmem:[#allocation3 + $0xed8] sm:$0xf0] }
 0x25e   :  { %6033 = vmatpush.bf16.msra.mxu1 %v8168_v47  ;;  %v11074_v15 = vpop.f32.mrf.mxu3  ;;  %v8072_v47 = vor.u32 %v10197_v37, %v8069_v28  ;;  %v5783_v1 = vpop.f32.mrf.mxu1  ;;  %v8264_v29 = vor.u32 %v10245_v14, %v8261_v58  ;;  %v8245_v21 = vld [vmem:[#allocation3 + $0xc88] sm:$0xf0]  ;;  %v10319_v37 = vld [vmem:[#allocation3 + $0xef4] sm:$0xf]  ;;  %v8557_v28 = vld [vmem:[#allocation3 + $0xef8] sm:$0xf0]  ;;  %v5795_v53 = vadd.f32 %v11072_v23, %v5782_v22 }
 0x25f   :  { %6046 = vmatpush.bf16.msra.mxu2 %v8232_v35  ;;  %v5770_v35 = vpop.f32.mrf.mxu0  ;;  %v8357_v14 = vld [vmem:[#allocation3 + $0xd68] sm:$0xf0]  ;;  %v10285_v58 = vld [vmem:[#allocation3 + $0xde4] sm:$0xf]  ;;  %v8560_v39 = vor.u32 %v10319_v37, %v8557_v28  ;;  %v10315_v34 = vld [vmem:[#allocation3 + $0xed4] sm:$0xf] }
 0x260   :  { %6059 = vmatpush.bf16.msra.mxu3 %v8296_v20  ;;  %v8061_v20 = vld [vmem:[#allocation3 + $0xb18] sm:$0xf0]  ;;  %v10301_v35 = vld [vmem:[#allocation3 + $0xe64] sm:$0xf]  ;;  %v10263_v11 = vld [vmem:[#allocation3 + $0xd34] sm:$0xf] }
 0x261   :  { %6021 = vmatpush.bf16.msra.mxu0 %v8096_v2  ;;  %v8189_v2 = vld [vmem:[#allocation3 + $0xc18] sm:$0xf0]  ;;  %v8064_v51 = vor.u32 %v10195_v40, %v8061_v20  ;;  %v8549_v40 = vld [vmem:[#allocation3 + $0xee8] sm:$0xf0]  ;;  %v8360_v20 = vor.u32 %v10269_v61, %v8357_v14  ;;  %v10279_v54 = vld [vmem:[#allocation3 + $0xdb4] sm:$0xf] }
 0x262   :  { %6034 = vmatpush.bf16.msra.mxu1 %v8160_v50  ;;  %v10243_v50 = vld [vmem:[#allocation3 + $0xc94] sm:$0xf]  ;;  %v8192_v59 = vor.u32 %v10227_v38, %v8189_v2  ;;  %v8525_v28 = vld [vmem:[#allocation3 + $0xeb8] sm:$0xf0]  ;;  %v8325_v61 = vld [vmem:[#allocation3 + $0xd28] sm:$0xf0] }
 0x263   :  { %6047 = vmatpush.bf16.msra.mxu2 %v8224_v25  ;;  %v8253_v25 = vld [vmem:[#allocation3 + $0xc98] sm:$0xf0]  ;;  %v10283_v38 = vld [vmem:[#allocation3 + $0xdd4] sm:$0xf]  ;;  %v10277_v14 = vld [vmem:[#allocation3 + $0xda4] sm:$0xf] }
 0x264   :  { %6060 = vmatpush.bf16.msra.mxu3 %v8288_v36  ;;  %v8128_v36 = vor.u32 %v10211_v30, %v8125_v41  ;;  %v8349_v41 = vld [vmem:[#allocation3 + $0xd58] sm:$0xf0]  ;;  %v10311_v37 = vld [vmem:[#allocation3 + $0xeb4] sm:$0xf] }
 0x265   :  { %6022 = vmatpush.bf16.msra.mxu0 %v8088_v48  ;;  %v5796_v46 = vpop.f32.mrf.mxu2  ;;  %v8256_v48 = vor.u32 %v10243_v50, %v8253_v25  ;;  %v8413_v50 = vld [vmem:[#allocation3 + $0xdd8] sm:$0xf0]  ;;  %v10299_v25 = vld [vmem:[#allocation3 + $0xe54] sm:$0xf] }
 0x266   :  { %6035 = vmatpush.bf16.msra.mxu1 %v8152_v6  ;;  %v8181_v6 = vld [vmem:[#allocation3 + $0xc08] sm:$0xf0]  ;;  %v5809_v31 = vpop.f32.mrf.mxu3  ;;  %v8416_v23 = vor.u32 %v10283_v38, %v8413_v50  ;;  %v8544_v46 = vor.u32 %v10315_v34, %v8541_v18  ;;  %v8317_v50 = vld [vmem:[#allocation3 + $0xd18] sm:$0xf0]  ;;  %v10291_v18 = vld [vmem:[#allocation3 + $0xe14] sm:$0xf] }
 0x267   :  { %6048 = vmatpush.bf16.msra.mxu2 %v8216_v3  ;;  %v10241_v3 = vld [vmem:[#allocation3 + $0xc84] sm:$0xf]  ;;  %v8381_v34 = vld [vmem:[#allocation3 + $0xd98] sm:$0xf0] }
 0x268   :  { %6061 = vmatpush.bf16.msra.mxu3 %v8280_v52  ;;  %v8365_v52 = vld [vmem:[#allocation3 + $0xd78] sm:$0xf0]  ;;  %v8248_v60 = vor.u32 %v10241_v3, %v8245_v21  ;;  %v10313_v3 = vld [vmem:[#allocation3 + $0xec4] sm:$0xf]  ;;  %v8533_v21 = vld [vmem:[#allocation3 + $0xec8] sm:$0xf0] }
 0x269   :  { %6023 = vmatpush.bf16.msra.mxu0 %v8080_v32  ;;  %v8493_v32 = vld [vmem:[#allocation3 + $0xe78] sm:$0xf0] }
 0x26a   :  { %6036 = vmatpush.bf16.msra.mxu1 %v8144_v62  ;;  %v8120_v62 = vor.u32 %v10209_v45, %v8117_v0  ;;  %v8496_v56 = vor.u32 %v10303_v57, %v8493_v32  ;;  %v10265_v45 = vld [vmem:[#allocation3 + $0xd44] sm:$0xf]  ;;  %v8397_v32 = vld [vmem:[#allocation3 + $0xdb8] sm:$0xf0] }
 0x26b   :  { %6049 = vmatpush.bf16.msra.mxu2 %v8208_v17  ;;  %v8184_v17 = vor.u32 %v10225_v43, %v8181_v6  ;;  %v10281_v0 = vld [vmem:[#allocation3 + $0xdc4] sm:$0xf]  ;;  %v5808_v43 = vadd.f32 %v11074_v15, %v5795_v53  ;;  %v8536_v15 = vor.u32 %v10313_v3, %v8533_v21  ;;  %v8437_v3 = vld [vmem:[#allocation3 + $0xe08] sm:$0xf0] }
 0x26c   :  { %6062 = vmatpush.bf16.msra.mxu3 %v8272_v19  ;;  %v8368_v19 = vor.u32 %v10271_v16, %v8365_v52  ;;  %v10305_v21 = vld [vmem:[#allocation3 + $0xe84] sm:$0xf] }
 0x26d   :  { %6024 = vmatpush.bf16.msra.mxu0 %v8072_v47  ;;  %v8421_v47 = vld [vmem:[#allocation3 + $0xde8] sm:$0xf0] }
 0x26e   :  { %6037 = vmatpush.bf16.msra.mxu1 %v8136_v55  ;;  %v8485_v55 = vld [vmem:[#allocation3 + $0xe68] sm:$0xf0]  ;;  %v8424_v30 = vor.u32 %v10285_v58, %v8421_v47  ;;  %v8528_v58 = vor.u32 %v10311_v37, %v8525_v28  ;;  %v10293_v47 = vld [vmem:[#allocation3 + $0xe24] sm:$0xf]  ;;  %v8813_v37 = vld [vmem:[#allocation3 + $0x10f8] sm:$0xf0] }
 0x26f   :  { %6050 = vmatpush.bf16.msra.mxu2 %v8200_v44  ;;  %v10317_v44 = vld [vmem:[#allocation3 + $0xee4] sm:$0xf]  ;;  %v8488_v1 = vor.u32 %v10301_v35, %v8485_v55  ;;  %v8453_v35 = vld [vmem:[#allocation3 + $0xe28] sm:$0xf0] }
 0x270   :  { %6063 = vmatpush.bf16.msra.mxu3 %v8264_v29  ;;  %v10267_v29 = vld [vmem:[#allocation3 + $0xd54] sm:$0xf]  ;;  %v8552_v2 = vor.u32 %v10317_v44, %v8549_v40  ;;  %v10309_v40 = vld [vmem:[#allocation3 + $0xea4] sm:$0xf]  ;;  %v8456_v53 = vor.u32 %v10293_v47, %v8453_v35  ;;  %v8741_v47 = vld [vmem:[#allocation3 + $0x1068] sm:$0xf0] }
 0x271   :  { %6025 = vmatpush.bf16.msra.mxu0 %v8064_v51  ;;  %v8477_v51 = vld [vmem:[#allocation3 + $0xe58] sm:$0xf0]  ;;  %v10381_v35 = vld [vmem:[#allocation3 + $0x10e4] sm:$0xf] }
 0x272   :  { %6038 = vmatpush.bf16.msra.mxu1 %v8128_v36  ;;  %v8352_v36 = vor.u32 %v10267_v29, %v8349_v41 }
 0x273   :  { %6051 = vmatpush.bf16.msra.mxu2 %v8192_v59  ;;  %v8480_v59 = vor.u32 %v10299_v25, %v8477_v51  ;;  %v10275_v25 = vld [vmem:[#allocation3 + $0xd94] sm:$0xf] }
 0x274   :  { %6064 = vmatpush.bf16.msra.mxu3 %v8256_v48  ;;  %v10297_v48 = vld [vmem:[#allocation3 + $0xe44] sm:$0xf] }
 0x275   :  { %6026 = vmatpush.bf16.msra.mxu0 %v8056_v24  ;;  %v5820_v6 = vpop.f32.mrf.mxu0  ;;  %v8333_v24 = vld [vmem:[#allocation3 + $0xd38] sm:$0xf0] }
 0x276   :  { %6039 = vmatpush.bf16.msra.mxu1 %v8120_v62  ;;  %v5833_v16 = vpop.f32.mrf.mxu1  ;;  %v10295_v62 = vld [vmem:[#allocation3 + $0xe34] sm:$0xf] }
 0x277   :  { %6052 = vmatpush.bf16.msra.mxu2 %v8184_v17  ;;  %v8461_v17 = vld [vmem:[#allocation3 + $0xe38] sm:$0xf0] }
 0x278   :  { %6065 = vmatpush.bf16.msra.mxu3 %v8248_v60  ;;  %6027 = vmatmul.bf16.vlgmr.msra.gmra.mxu0 %v10903_v5  ;;  %v8341_v5 = vld [vmem:[#allocation3 + $0xd48] sm:$0xf0]  ;;  %v8336_v60 = vor.u32 %v10263_v11, %v8333_v24 }
 0x279   :  { %6071 = vmatpush.bf16.msrb.mxu0 %v8368_v19  ;;  %6040 = vmatmul.bf16.vlgmr.msra.gmra.mxu1 %v10907_v10  ;;  %v8469_v10 = vld [vmem:[#allocation3 + $0xe48] sm:$0xf0]  ;;  %v8344_v31 = vor.u32 %v10265_v45, %v8341_v5  ;;  %v8400_v19 = vor.u32 %v10279_v54, %v8397_v32  ;;  %v10257_v5 = vld [vmem:[#allocation3 + $0xd04] sm:$0xf]  ;;  %v8685_v54 = vld [vmem:[#allocation3 + $0xff8] sm:$0xf0] }
 0x27a   :  { %6084 = vmatpush.bf16.msrb.mxu1 %v8432_v33  ;;  %6053 = vmatmul.bf16.vlgmr.msra.gmra.mxu2 %v10918_v63  ;;  %v8405_v63 = vld [vmem:[#allocation3 + $0xdc8] sm:$0xf0]  ;;  %v8472_v27 = vor.u32 %v10297_v48, %v8469_v10  ;;  %v8464_v33 = vor.u32 %v10295_v62, %v8461_v17  ;;  %v10289_v10 = vld [vmem:[#allocation3 + $0xe04] sm:$0xf]  ;;  %v10383_v17 = vld [vmem:[#allocation3 + $0x10f4] sm:$0xf] }
 0x27b   :  { %6097 = vmatpush.bf16.msrb.mxu2 %v8496_v56  ;;  %6066 = vmatmul.bf16.vlgmr.msra.gmra.mxu3 %v10922_v7  ;;  %v5821_v7 = vadd.f32 %v5820_v6, %v5808_v43  ;;  %v8408_v52 = vor.u32 %v10281_v0, %v8405_v63  ;;  %v10261_v56 = vld [vmem:[#allocation3 + $0xd24] sm:$0xf]  ;;  %v8309_v0 = vld [vmem:[#allocation3 + $0xd08] sm:$0xf0]  ;;  %v8384_v43 = vor.u32 %v10275_v25, %v8381_v34  ;;  %v10379_v25 = vld [vmem:[#allocation3 + $0x10d4] sm:$0xf] }
 0x27c   :  { %6110 = vmatpush.bf16.msrb.mxu3 %v8560_v39  ;;  %v8389_v39 = vld [vmem:[#allocation3 + $0xda8] sm:$0xf0]  ;;  %v10273_v63 = vld [vmem:[#allocation3 + $0xd84] sm:$0xf]  ;;  %v8312_v24 = vor.u32 %v10257_v5, %v8309_v0  ;;  %v8440_v62 = vor.u32 %v10289_v10, %v8437_v3 }
 0x27d   :  { %6072 = vmatpush.bf16.msrb.mxu0 %v8360_v20  ;;  %v5834_v57 = vadd.f32 %v5833_v16, %v5821_v7  ;;  %v5846_v22 = vpop.f32.mrf.mxu2  ;;  %v8517_v20 = vld [vmem:[#allocation3 + $0xea8] sm:$0xf0]  ;;  %v8392_v38 = vor.u32 %v10277_v14, %v8389_v39  ;;  %v10335_v16 = vld [vmem:[#allocation3 + $0xf74] sm:$0xf]  ;;  %v10349_v14 = vld [vmem:[#allocation3 + $0xfe4] sm:$0xf] }
 0x27e   :  { %6085 = vmatpush.bf16.msrb.mxu1 %v8424_v30  ;;  %v5859_v44 = vpop.f32.mrf.mxu3  ;;  %v5822_v30 = vpop.f32.mrf.mxu0  ;;  %v8520_v51 = vor.u32 %v10309_v40, %v8517_v20  ;;  %v8373_v48 = vld [vmem:[#allocation3 + $0xd88] sm:$0xf0]  ;;  %v10365_v39 = vld [vmem:[#allocation3 + $0x1064] sm:$0xf] }
 0x27f   :  { %6098 = vmatpush.bf16.msrb.mxu2 %v8488_v1  ;;  %v5847_v55 = vadd.f32 %v5846_v22, %v5834_v57  ;;  %v8328_v1 = vor.u32 %v10261_v56, %v8325_v61  ;;  %v5835_v29 = vpop.f32.mrf.mxu1  ;;  %v8501_v7 = vld [vmem:[#allocation3 + $0xe88] sm:$0xf0]  ;;  %v8749_v57 = vld [vmem:[#allocation3 + $0x1078] sm:$0xf0]  ;;  %v8376_v32 = vor.u32 %v10273_v63, %v8373_v48  ;;  %v10333_v56 = vld [vmem:[#allocation3 + $0xf64] sm:$0xf]  ;;  %v8744_v20 = vor.u32 %v10365_v39, %v8741_v47 }
 0x280   :  { %6111 = vmatpush.bf16.msrb.mxu3 %v8552_v2  ;;  %v10259_v2 = vld [vmem:[#allocation3 + $0xd14] sm:$0xf]  ;;  %v8504_v28 = vor.u32 %v10305_v21, %v8501_v7  ;;  %v8613_v61 = vld [vmem:[#allocation3 + $0xf68] sm:$0xf0] }
 0x281   :  { %6073 = vmatpush.bf16.msrb.mxu0 %v8352_v36  ;;  %v11085_v41 = vadd.f32 %v5859_v44, %v5847_v55  ;;  %v8445_v36 = vld [vmem:[#allocation3 + $0xe18] sm:$0xf0]  ;;  %v8320_v45 = vor.u32 %v10259_v2, %v8317_v50  ;;  %v8677_v22 = vld [vmem:[#allocation3 + $0xfe8] sm:$0xf0]  ;;  %v8616_v44 = vor.u32 %v10333_v56, %v8613_v61  ;;  %v10331_v30 = vld [vmem:[#allocation3 + $0xf54] sm:$0xf] }
 0x282   :  { %6086 = vmatpush.bf16.msrb.mxu1 %v8416_v23  ;;  %v10307_v23 = vld [vmem:[#allocation3 + $0xe94] sm:$0xf]  ;;  %v8805_v55 = vld [vmem:[#allocation3 + $0x10e8] sm:$0xf0]  ;;  %v8680_v40 = vor.u32 %v10349_v14, %v8677_v22  ;;  %v8733_v50 = vld [vmem:[#allocation3 + $0x1058] sm:$0xf0] }
 0x283   :  { %6099 = vmatpush.bf16.msrb.mxu2 %v8480_v59  ;;  %v8509_v59 = vld [vmem:[#allocation3 + $0xe98] sm:$0xf0]  ;;  %v10347_v29 = vld [vmem:[#allocation3 + $0xfd4] sm:$0xf]  ;;  %v11281_v34 = vld [vmem:[#allocation14_spill] sm:$0xff] }
 0x284   :  { %6112 = vmatpush.bf16.msrb.mxu3 %v8544_v46  ;;  %v8448_v46 = vor.u32 %v10291_v18, %v8445_v36  ;;  %v8512_v6 = vor.u32 %v10307_v23, %v8509_v59  ;;  %v10363_v2 = vld [vmem:[#allocation3 + $0x1054] sm:$0xf]  ;;  %v10329_v59 = vld [vmem:[#allocation3 + $0xf44] sm:$0xf]  ;;  %v8661_v0 = vld [vmem:[#allocation3 + $0xfc8] sm:$0xf0] }
 0x285   :  { %6074 = vmatpush.bf16.msrb.mxu0 %v8344_v31  ;;  %v5848_v31 = vpop.f32.mrf.mxu2  ;;  %v8736_v23 = vor.u32 %v10363_v2, %v8733_v50  ;;  %v8789_v63 = vld [vmem:[#allocation3 + $0x10c8] sm:$0xf0]  ;;  %v10327_v7 = vld [vmem:[#allocation3 + $0xf34] sm:$0xf]  ;;  %v10357_v56 = vld [vmem:[#allocation3 + $0x1024] sm:$0xf] }
 0x286   :  { %6087 = vmatpush.bf16.msrb.mxu1 %v8408_v52  ;;  %v8621_v52 = vld [vmem:[#allocation3 + $0xf78] sm:$0xf0]  ;;  %v5861_v11 = vpop.f32.mrf.mxu3  ;;  %v8709_v61 = vld [vmem:[#allocation3 + $0x1028] sm:$0xf0]  ;;  %v10373_v22 = vld [vmem:[#allocation3 + $0x10a4] sm:$0xf] }
 0x287   :  { %6100 = vmatpush.bf16.msrb.mxu2 %v8472_v27  ;;  %v10351_v27 = vld [vmem:[#allocation3 + $0xff4] sm:$0xf]  ;;  %v8589_v31 = vld [vmem:[#allocation3 + $0xf38] sm:$0xf0]  ;;  %v8773_v39 = vld [vmem:[#allocation3 + $0x10a8] sm:$0xf0] }
 0x288   :  { %6113 = vmatpush.bf16.msrb.mxu3 %v8536_v15  ;;  %v10367_v15 = vld [vmem:[#allocation3 + $0x1074] sm:$0xf]  ;;  %v8653_v11 = vld [vmem:[#allocation3 + $0xfb8] sm:$0xf0] }
 0x289   :  { %6075 = vmatpush.bf16.msrb.mxu0 %v8336_v60  ;;  %v8624_v60 = vor.u32 %v10335_v16, %v8621_v52  ;;  %v10343_v16 = vld [vmem:[#allocation3 + $0xfb4] sm:$0xf]  ;;  %v8701_v50 = vld [vmem:[#allocation3 + $0x1018] sm:$0xf0] }
 0x28a   :  { %6088 = vmatpush.bf16.msrb.mxu1 %v8400_v19  ;;  %v8688_v19 = vor.u32 %v10351_v27, %v8685_v54  ;;  %v8717_v54 = vld [vmem:[#allocation3 + $0x1038] sm:$0xf0]  ;;  %v10355_v2 = vld [vmem:[#allocation3 + $0x1014] sm:$0xf] }
 0x28b   :  { %6101 = vmatpush.bf16.msrb.mxu2 %v8464_v33  ;;  %v8752_v33 = vor.u32 %v10367_v15, %v8749_v57  ;;  %v10375_v15 = vld [vmem:[#allocation3 + $0x10b4] sm:$0xf]  ;;  %v8781_v57 = vld [vmem:[#allocation3 + $0x10b8] sm:$0xf0] }
 0x28c   :  { %6114 = vmatpush.bf16.msrb.mxu3 %v8528_v58  ;;  %v8816_v58 = vor.u32 %v10383_v17, %v8813_v37  ;;  %v10325_v17 = vld [vmem:[#allocation3 + $0xf24] sm:$0xf]  ;;  %v8581_v37 = vld [vmem:[#allocation3 + $0xf28] sm:$0xf0] }
 0x28d   :  { %6076 = vmatpush.bf16.msrb.mxu0 %v8328_v1  ;;  %v8605_v1 = vld [vmem:[#allocation3 + $0xf58] sm:$0xf0] }
 0x28e   :  { %6089 = vmatpush.bf16.msrb.mxu1 %v8392_v38  ;;  %v8808_v38 = vor.u32 %v10381_v35, %v8805_v55  ;;  %v8608_v18 = vor.u32 %v10331_v30, %v8605_v1  ;;  %v8584_v35 = vor.u32 %v10325_v17, %v8581_v37  ;;  %v10323_v30 = vld [vmem:[#allocation3 + $0xf14] sm:$0xf]  ;;  %v8573_v1 = vld [vmem:[#allocation3 + $0xf18] sm:$0xf0]  ;;  %v8933_v37 = vld [vmem:[#allocation3 + $0x11e8] sm:$0xf0] }
 0x28f   :  { %6102 = vmatpush.bf16.msrb.mxu2 %v8456_v53  ;;  %v8669_v53 = vld [vmem:[#allocation3 + $0xfd8] sm:$0xf0] }
 0x290   :  { %6115 = vmatpush.bf16.msrb.mxu3 %v8520_v51  ;;  %v8797_v51 = vld [vmem:[#allocation3 + $0x10d8] sm:$0xf0]  ;;  %v8672_v36 = vor.u32 %v10347_v29, %v8669_v53  ;;  %v10339_v29 = vld [vmem:[#allocation3 + $0xf94] sm:$0xf] }
 0x291   :  { %6077 = vmatpush.bf16.msrb.mxu0 %v8320_v45  ;;  %v10345_v45 = vld [vmem:[#allocation3 + $0xfc4] sm:$0xf]  ;;  %v8800_v5 = vor.u32 %v10379_v25, %v8797_v51  ;;  %v8637_v53 = vld [vmem:[#allocation3 + $0xf98] sm:$0xf0]  ;;  %v10371_v25 = vld [vmem:[#allocation3 + $0x1094] sm:$0xf] }
 0x292   :  { %6090 = vmatpush.bf16.msrb.mxu1 %v8384_v43  ;;  %v10361_v43 = vld [vmem:[#allocation3 + $0x1044] sm:$0xf]  ;;  %v8664_v3 = vor.u32 %v10345_v45, %v8661_v0  ;;  %v8765_v51 = vld [vmem:[#allocation3 + $0x1098] sm:$0xf0]  ;;  %v8629_v45 = vld [vmem:[#allocation3 + $0xf88] sm:$0xf0] }
 0x293   :  { %6103 = vmatpush.bf16.msrb.mxu2 %v8448_v46  ;;  %v8768_v0 = vor.u32 %v10371_v25, %v8765_v51  ;;  %v10393_v51 = vld [vmem:[#allocation3 + $0x1144] sm:$0xf] }
 0x294   :  { %6116 = vmatpush.bf16.msrb.mxu3 %v8512_v6 }
 0x295   :  { %6078 = vmatpush.bf16.msrb.mxu0 %v8312_v24  ;;  %v5872_v46 = vpop.f32.mrf.mxu0  ;;  %v10359_v24 = vld [vmem:[#allocation3 + $0x1034] sm:$0xf] }
 0x296   :  { %6091 = vmatpush.bf16.msrb.mxu1 %v8376_v32  ;;  %v5873_v48 = vadd.f32 %v5872_v46, %v11085_v41  ;;  %v5885_v6 = vpop.f32.mrf.mxu1  ;;  %v8592_v32 = vor.u32 %v10327_v7, %v8589_v31  ;;  %v8656_v41 = vor.u32 %v10343_v16, %v8653_v11  ;;  %v8757_v46 = vld [vmem:[#allocation3 + $0x1088] sm:$0xf0]  ;;  %v10431_v7 = vld [vmem:[#allocation3 + $0x1274] sm:$0xf]  ;;  %v9005_v31 = vld [vmem:[#allocation3 + $0x1278] sm:$0xf0] }
 0x297   :  { %6104 = vmatpush.bf16.msrb.mxu2 %v8440_v62  ;;  %v8720_v62 = vor.u32 %v10359_v24, %v8717_v54  ;;  %v9069_v11 = vld [vmem:[#allocation3 + $0x12f8] sm:$0xf0] }
 0x298   :  { %6117 = vmatpush.bf16.msrb.mxu3 %v8504_v28  ;;  %6079 = vmatmul.bf16.vlgmr.msrb.gmra.mxu0 %v10920_v4  ;;  %v8597_v4 = vld [vmem:[#allocation3 + $0xf48] sm:$0xf0]  ;;  %v5886_v27 = vadd.f32 %v5885_v6, %v5873_v48  ;;  %v10341_v28 = vld [vmem:[#allocation3 + $0xfa4] sm:$0xf]  ;;  %v8877_v48 = vld [vmem:[#allocation3 + $0x1178] sm:$0xf0] }
 0x299   :  { %6123 = vmatpush.bf16.msra.mxu0 %v8624_v60  ;;  %6092 = vmatmul.bf16.vlgmr.msrb.gmra.mxu1 %v10924_v12  ;;  %v10377_v12 = vld [vmem:[#allocation3 + $0x10c4] sm:$0xf]  ;;  %v8600_v10 = vor.u32 %v10329_v59, %v8597_v4  ;;  %v8784_v60 = vor.u32 %v10375_v15, %v8781_v57  ;;  %v8704_v59 = vor.u32 %v10355_v2, %v8701_v50 }
 0x29a   :  { %6136 = vmatpush.bf16.msra.mxu1 %v8688_v19  ;;  %6105 = vmatmul.bf16.vlgmr.msrb.gmra.mxu2 %v10936_v13  ;;  %v8725_v13 = vld [vmem:[#allocation3 + $0x1048] sm:$0xf0]  ;;  %v8792_v52 = vor.u32 %v10377_v12, %v8789_v63  ;;  %v10337_v4 = vld [vmem:[#allocation3 + $0xf84] sm:$0xf]  ;;  %v10399_v63 = vld [vmem:[#allocation3 + $0x1174] sm:$0xf]  ;;  %v9008_v57 = vor.u32 %v10431_v7, %v9005_v31 }
 0x29b   :  { %6149 = vmatpush.bf16.msra.mxu2 %v8752_v33  ;;  %6118 = vmatmul.bf16.vlgmr.msrb.gmra.mxu3 %v11281_v34  ;;  %v8728_v21 = vor.u32 %v10361_v43, %v8725_v13  ;;  %v8645_v33 = vld [vmem:[#allocation3 + $0xfa8] sm:$0xf0]  ;;  %v8576_v34 = vor.u32 %v10323_v30, %v8573_v1  ;;  %v10369_v13 = vld [vmem:[#allocation3 + $0x1084] sm:$0xf]  ;;  %v8632_v16 = vor.u32 %v10337_v4, %v8629_v45  ;;  %v11283_v30 = vld [vmem:[#allocation16_spill] sm:$0xff] }
 0x29c   :  { %6162 = vmatpush.bf16.msra.mxu3 %v8816_v58  ;;  %v8693_v43 = vld [vmem:[#allocation3 + $0x1008] sm:$0xf0]  ;;  %v8760_v24 = vor.u32 %v10369_v13, %v8757_v46  ;;  %v8880_v54 = vor.u32 %v10399_v63, %v8877_v48  ;;  %v11284_v1 = vld [vmem:[#allocation15_spill] sm:$0xff]  ;;  %v8909_v7 = vld [vmem:[#allocation3 + $0x11b8] sm:$0xf0] }
 0x29d   :  { %6124 = vmatpush.bf16.msra.mxu0 %v8616_v44  ;;  %v5898_v19 = vpop.f32.mrf.mxu2  ;;  %v5874_v47 = vpop.f32.mrf.mxu0  ;;  %v8981_v4 = vld [vmem:[#allocation3 + $0x1248] sm:$0xf0]  ;;  %v10391_v48 = vld [vmem:[#allocation3 + $0x1134] sm:$0xf] }
 0x29e   :  { %6137 = vmatpush.bf16.msra.mxu1 %v8680_v40  ;;  %v5899_v14 = vadd.f32 %v5898_v19, %v5886_v27  ;;  %v5911_v58 = vpop.f32.mrf.mxu3  ;;  %v5887_v55 = vpop.f32.mrf.mxu1  ;;  %v8648_v40 = vor.u32 %v10341_v28, %v8645_v33  ;;  %v10447_v27 = vld [vmem:[#allocation3 + $0x12f4] sm:$0xf]  ;;  %v10429_v28 = vld [vmem:[#allocation3 + $0x1264] sm:$0xf]  ;;  %v9061_v33 = vld [vmem:[#allocation3 + $0x12e8] sm:$0xf0] }
 0x29f   :  { %6150 = vmatpush.bf16.msra.mxu2 %v8744_v20  ;;  %v8712_v20 = vor.u32 %v10357_v56, %v8709_v61  ;;  %v9072_v17 = vor.u32 %v10447_v27, %v9069_v11  ;;  %v10445_v19 = vld [vmem:[#allocation3 + $0x12e4] sm:$0xf]  ;;  %v8925_v55 = vld [vmem:[#allocation3 + $0x11d8] sm:$0xf0]  ;;  %v10423_v31 = vld [vmem:[#allocation3 + $0x1234] sm:$0xf] }
 0x2a0   :  { %6163 = vmatpush.bf16.msra.mxu3 %v8808_v38  ;;  %v11092_v44 = vadd.f32 %v5911_v58, %v5899_v14  ;;  %v8776_v38 = vor.u32 %v10373_v22, %v8773_v39  ;;  %v10395_v58 = vld [vmem:[#allocation3 + $0x1154] sm:$0xf]  ;;  %v8861_v22 = vld [vmem:[#allocation3 + $0x1158] sm:$0xf0]  ;;  %v11282_v47 = vld [vmem:[#allocation13_spill] sm:$0xff] }
 0x2a1   :  { %6125 = vmatpush.bf16.msra.mxu0 %v8608_v18  ;;  %v10321_v18 = vld [vmem:[#allocation3 + $0xf04] sm:$0xf]  ;;  %v10411_v39 = vld [vmem:[#allocation3 + $0x11d4] sm:$0xf]  ;;  %v8864_v2 = vor.u32 %v10395_v58, %v8861_v22  ;;  %v9037_v27 = vld [vmem:[#allocation3 + $0x12b8] sm:$0xf0] }
 0x2a2   :  { %6138 = vmatpush.bf16.msra.mxu1 %v8672_v36  ;;  %v8565_v36 = vld [vmem:[#allocation3 + $0xf08] sm:$0xf0]  ;;  %v8928_v50 = vor.u32 %v10411_v39, %v8925_v55  ;;  %v10403_v55 = vld [vmem:[#allocation3 + $0x1194] sm:$0xf] }
 0x2a3   :  { %6151 = vmatpush.bf16.msra.mxu2 %v8736_v23  ;;  %v8640_v23 = vor.u32 %v10339_v29, %v8637_v53  ;;  %v10443_v29 = vld [vmem:[#allocation3 + $0x12d4] sm:$0xf]  ;;  %v11285_v53 = vld [vmem:[#allocation18_spill] sm:$0xff] }
 0x2a4   :  { %6164 = vmatpush.bf16.msra.mxu3 %v8800_v5  ;;  %v10353_v5 = vld [vmem:[#allocation3 + $0x1004] sm:$0xf] }
 0x2a5   :  { %6126 = vmatpush.bf16.msra.mxu0 %v8600_v10  ;;  %v5900_v12 = vpop.f32.mrf.mxu2  ;;  %v10415_v10 = vld [vmem:[#allocation3 + $0x11f4] sm:$0xf] }
 0x2a6   :  { %6139 = vmatpush.bf16.msra.mxu1 %v8664_v3  ;;  %v5913_v6 = vpop.f32.mrf.mxu3  ;;  %v8568_v3 = vor.u32 %v10321_v18, %v8565_v36  ;;  %v10409_v18 = vld [vmem:[#allocation3 + $0x11c4] sm:$0xf] }
 0x2a7   :  { %6152 = vmatpush.bf16.msra.mxu2 %v8728_v21  ;;  %v8941_v21 = vld [vmem:[#allocation3 + $0x11f8] sm:$0xf0]  ;;  %v10407_v6 = vld [vmem:[#allocation3 + $0x11b4] sm:$0xf] }
 0x2a8   :  { %6165 = vmatpush.bf16.msra.mxu3 %v8792_v52  ;;  %v8696_v52 = vor.u32 %v10353_v5, %v8693_v43  ;;  %v8944_v15 = vor.u32 %v10415_v10, %v8941_v21  ;;  %v10441_v5 = vld [vmem:[#allocation3 + $0x12c4] sm:$0xf]  ;;  %v8845_v10 = vld [vmem:[#allocation3 + $0x1138] sm:$0xf0] }
 0x2a9   :  { %6127 = vmatpush.bf16.msra.mxu0 %v8592_v32  ;;  %v10397_v32 = vld [vmem:[#allocation3 + $0x1164] sm:$0xf]  ;;  %v8848_v11 = vor.u32 %v10391_v48, %v8845_v10  ;;  %v10495_v48 = vld [vmem:[#allocation3 + $0x1474] sm:$0xf]  ;;  %v9261_v10 = vld [vmem:[#allocation3 + $0x1478] sm:$0xf0] }
 0x2aa   :  { %6140 = vmatpush.bf16.msra.mxu1 %v8656_v41  ;;  %v8869_v41 = vld [vmem:[#allocation3 + $0x1168] sm:$0xf0] }
 0x2ab   :  { %6153 = vmatpush.bf16.msra.mxu2 %v8720_v62  ;;  %v10413_v62 = vld [vmem:[#allocation3 + $0x11e4] sm:$0xf]  ;;  %v8872_v56 = vor.u32 %v10397_v32, %v8869_v41 }
 0x2ac   :  { %6166 = vmatpush.bf16.msra.mxu3 %v8784_v60  ;;  %v8997_v60 = vld [vmem:[#allocation3 + $0x1268] sm:$0xf0]  ;;  %v8936_v61 = vor.u32 %v10413_v62, %v8933_v37 }
 0x2ad   :  { %6128 = vmatpush.bf16.msra.mxu0 %v8584_v35  ;;  %v9000_v14 = vor.u32 %v10429_v28, %v8997_v60  ;;  %v9064_v35 = vor.u32 %v10445_v19, %v9061_v33  ;;  %v8901_v62 = vld [vmem:[#allocation3 + $0x11a8] sm:$0xf0]  ;;  %v10437_v19 = vld [vmem:[#allocation3 + $0x12a4] sm:$0xf] }
 0x2ae   :  { %6141 = vmatpush.bf16.msra.mxu1 %v8648_v40  ;;  %v10427_v40 = vld [vmem:[#allocation3 + $0x1254] sm:$0xf]  ;;  %v8965_v37 = vld [vmem:[#allocation3 + $0x1228] sm:$0xf0] }
 0x2af   :  { %6154 = vmatpush.bf16.msra.mxu2 %v8712_v20  ;;  %v8989_v20 = vld [vmem:[#allocation3 + $0x1258] sm:$0xf0]  ;;  %v9029_v33 = vld [vmem:[#allocation3 + $0x12a8] sm:$0xf0] }
 0x2b0   :  { %6167 = vmatpush.bf16.msra.mxu3 %v8776_v38  ;;  %v9053_v38 = vld [vmem:[#allocation3 + $0x12d8] sm:$0xf0]  ;;  %v8992_v25 = vor.u32 %v10427_v40, %v8989_v20  ;;  %v9032_v40 = vor.u32 %v10437_v19, %v9029_v33  ;;  %v10475_v33 = vld [vmem:[#allocation3 + $0x13d4] sm:$0xf] }
 0x2b1   :  { %6129 = vmatpush.bf16.msra.mxu0 %v8576_v34  ;;  %v8853_v34 = vld [vmem:[#allocation3 + $0x1148] sm:$0xf0]  ;;  %v9056_v36 = vor.u32 %v10443_v29, %v9053_v38  ;;  %v8893_v20 = vld [vmem:[#allocation3 + $0x1198] sm:$0xf0]  ;;  %v10435_v29 = vld [vmem:[#allocation3 + $0x1294] sm:$0xf] }
 0x2b2   :  { %6142 = vmatpush.bf16.msra.mxu1 %v8640_v23  ;;  %v8917_v23 = vld [vmem:[#allocation3 + $0x11c8] sm:$0xf0]  ;;  %v8856_v13 = vor.u32 %v10393_v51, %v8853_v34  ;;  %v9021_v38 = vld [vmem:[#allocation3 + $0x1298] sm:$0xf0]  ;;  %v10401_v34 = vld [vmem:[#allocation3 + $0x1184] sm:$0xf] }
 0x2b3   :  { %6155 = vmatpush.bf16.msra.mxu2 %v8704_v59  ;;  %v10425_v59 = vld [vmem:[#allocation3 + $0x1244] sm:$0xf]  ;;  %v8920_v12 = vor.u32 %v10409_v18, %v8917_v23  ;;  %v8885_v18 = vld [vmem:[#allocation3 + $0x1188] sm:$0xf0]  ;;  %v9024_v23 = vor.u32 %v10435_v29, %v9021_v38  ;;  %v9117_v19 = vld [vmem:[#allocation3 + $0x1358] sm:$0xf0] }
 0x2b4   :  { %6168 = vmatpush.bf16.msra.mxu3 %v8768_v0  ;;  %v9045_v0 = vld [vmem:[#allocation3 + $0x12c8] sm:$0xf0]  ;;  %v8984_v63 = vor.u32 %v10425_v59, %v8981_v4  ;;  %v10433_v4 = vld [vmem:[#allocation3 + $0x1284] sm:$0xf] }
 0x2b5   :  { %6130 = vmatpush.bf16.msra.mxu0 %v8568_v3  ;;  %v5924_v45 = vpop.f32.mrf.mxu0  ;;  %v9048_v3 = vor.u32 %v10441_v5, %v9045_v0  ;;  %v8949_v59 = vld [vmem:[#allocation3 + $0x1208] sm:$0xf0]  ;;  %v10463_v0 = vld [vmem:[#allocation3 + $0x1374] sm:$0xf]  ;;  %v10457_v38 = vld [vmem:[#allocation3 + $0x1344] sm:$0xf] }
 0x2b6   :  { %6143 = vmatpush.bf16.msra.mxu1 %v8632_v16  ;;  %v5925_v43 = vadd.f32 %v5924_v45, %v11092_v44  ;;  %v5937_v46 = vpop.f32.mrf.mxu1  ;;  %v8973_v16 = vld [vmem:[#allocation3 + $0x1238] sm:$0xf0]  ;;  %v8912_v44 = vor.u32 %v10407_v6, %v8909_v7  ;;  %v9013_v45 = vld [vmem:[#allocation3 + $0x1288] sm:$0xf0]  ;;  %v8888_v6 = vor.u32 %v10401_v34, %v8885_v18 }
 0x2b7   :  { %6156 = vmatpush.bf16.msra.mxu2 %v8696_v52  ;;  %v10439_v52 = vld [vmem:[#allocation3 + $0x12b4] sm:$0xf]  ;;  %v9325_v7 = vld [vmem:[#allocation3 + $0x14f8] sm:$0xf0]  ;;  %v9237_v34 = vld [vmem:[#allocation3 + $0x1448] sm:$0xf0] }
 0x2b8   :  { %6169 = vmatpush.bf16.msra.mxu3 %v8760_v24  ;;  %6131 = vmatmul.bf16.vlgmr.msra.gmra.mxu0 %v11282_v47  ;;  %v5938_v21 = vadd.f32 %v5937_v46, %v5925_v43  ;;  %v8976_v24 = vor.u32 %v10423_v31, %v8973_v16  ;;  %v9040_v32 = vor.u32 %v10439_v52, %v9037_v27  ;;  %v10387_v47 = vld [vmem:[#allocation3 + $0x1114] sm:$0xf]  ;;  %v9133_v43 = vld [vmem:[#allocation3 + $0x1378] sm:$0xf0] }
 0x2b9   :  { %6175 = vmatpush.bf16.msrb.mxu0 %v8880_v54  ;;  %6144 = vmatmul.bf16.vlgmr.msra.gmra.mxu1 %v11284_v1  ;;  %v10389_v54 = vld [vmem:[#allocation3 + $0x1124] sm:$0xf]  ;;  %v8957_v1 = vld [vmem:[#allocation3 + $0x1218] sm:$0xf0]  ;;  %v9016_v31 = vor.u32 %v10433_v4, %v9013_v45  ;;  %v9136_v16 = vor.u32 %v10463_v0, %v9133_v43  ;;  %v9264_v27 = vor.u32 %v10495_v48, %v9261_v10  ;;  %v10455_v43 = vld [vmem:[#allocation3 + $0x1334] sm:$0xf] }
 0x2ba   :  { %6188 = vmatpush.bf16.msrb.mxu1 %v8944_v15  ;;  %6157 = vmatmul.bf16.vlgmr.msra.gmra.mxu2 %v11283_v30  ;;  %v8837_v15 = vld [vmem:[#allocation3 + $0x1128] sm:$0xf0]  ;;  %v10419_v30 = vld [vmem:[#allocation3 + $0x1214] sm:$0xf]  ;;  %v9165_v48 = vld [vmem:[#allocation3 + $0x13b8] sm:$0xf0] }
 0x2bb   :  { %6201 = vmatpush.bf16.msrb.mxu2 %v9008_v57  ;;  %6170 = vmatmul.bf16.vlgmr.msra.gmra.mxu3 %v11285_v53  ;;  %v10405_v57 = vld [vmem:[#allocation3 + $0x11a4] sm:$0xf]  ;;  %v8960_v51 = vor.u32 %v10419_v30, %v8957_v1  ;;  %v10487_v10 = vld [vmem:[#allocation3 + $0x1434] sm:$0xf] }
 0x2bc   :  { %6214 = vmatpush.bf16.msrb.mxu3 %v9072_v17  ;;  %v10421_v17 = vld [vmem:[#allocation3 + $0x1224] sm:$0xf]  ;;  %v8904_v22 = vor.u32 %v10405_v57, %v8901_v62  ;;  %v9317_v62 = vld [vmem:[#allocation3 + $0x14e8] sm:$0xf0] }
 0x2bd   :  { %6176 = vmatpush.bf16.msrb.mxu0 %v8872_v56  ;;  %v5950_v41 = vpop.f32.mrf.mxu2  ;;  %v5926_v56 = vpop.f32.mrf.mxu0  ;;  %v8968_v39 = vor.u32 %v10421_v17, %v8965_v37  ;;  %v10493_v57 = vld [vmem:[#allocation3 + $0x1464] sm:$0xf] }
 0x2be   :  { %6189 = vmatpush.bf16.msrb.mxu1 %v8936_v61  ;;  %v5951_v28 = vadd.f32 %v5950_v41, %v5938_v21  ;;  %v5963_v60 = vpop.f32.mrf.mxu3  ;;  %v8840_v61 = vor.u32 %v10389_v54, %v8837_v15  ;;  %v10511_v21 = vld [vmem:[#allocation3 + $0x14f4] sm:$0xf]  ;;  %v9189_v15 = vld [vmem:[#allocation3 + $0x13e8] sm:$0xf0]  ;;  %v10509_v41 = vld [vmem:[#allocation3 + $0x14e4] sm:$0xf] }
 0x2bf   :  { %6202 = vmatpush.bf16.msrb.mxu2 %v9000_v14  ;;  %v5939_v14 = vpop.f32.mrf.mxu1  ;;  %v9328_v54 = vor.u32 %v10511_v21, %v9325_v7  ;;  %v11286_v56 = vld [vmem:[#allocation17_spill] sm:$0xff]  ;;  %v9293_v21 = vld [vmem:[#allocation3 + $0x14b8] sm:$0xf0] }
 0x2c0   :  { %6215 = vmatpush.bf16.msrb.mxu3 %v9064_v35  ;;  %v11099_v58 = vadd.f32 %v5963_v60, %v5951_v28  ;;  %v8829_v35 = vld [vmem:[#allocation3 + $0x1118] sm:$0xf0]  ;;  %v10459_v60 = vld [vmem:[#allocation3 + $0x1354] sm:$0xf] }
 0x2c1   :  { %6177 = vmatpush.bf16.msrb.mxu0 %v8864_v2  ;;  %v8832_v53 = vor.u32 %v10387_v47, %v8829_v35  ;;  %v10385_v2 = vld [vmem:[#allocation3 + $0x1104] sm:$0xf]  ;;  %v9181_v14 = vld [vmem:[#allocation3 + $0x13d8] sm:$0xf0]  ;;  %v11288_v35 = vld [vmem:[#allocation19_spill] sm:$0xff]  ;;  %v9120_v30 = vor.u32 %v10459_v60, %v9117_v19 }
 0x2c2   :  { %6190 = vmatpush.bf16.msrb.mxu1 %v8928_v50  ;;  %v8821_v50 = vld [vmem:[#allocation3 + $0x1108] sm:$0xf0]  ;;  %v11287_v47 = vld [vmem:[#allocation20_spill] sm:$0xff]  ;;  %v9184_v1 = vor.u32 %v10475_v33, %v9181_v14  ;;  %v10467_v14 = vld [vmem:[#allocation3 + $0x1394] sm:$0xf] }
 0x2c3   :  { %6203 = vmatpush.bf16.msrb.mxu2 %v8992_v25  ;;  %v8896_v25 = vor.u32 %v10403_v55, %v8893_v20  ;;  %v10507_v55 = vld [vmem:[#allocation3 + $0x14d4] sm:$0xf]  ;;  %v11289_v20 = vld [vmem:[#allocation22_spill] sm:$0xff] }
 0x2c4   :  { %6216 = vmatpush.bf16.msrb.mxu3 %v9056_v36  ;;  %v10417_v36 = vld [vmem:[#allocation3 + $0x1204] sm:$0xf] }
 0x2c5   :  { %6178 = vmatpush.bf16.msrb.mxu0 %v8856_v13  ;;  %v5952_v5 = vpop.f32.mrf.mxu2  ;;  %v10479_v13 = vld [vmem:[#allocation3 + $0x13f4] sm:$0xf] }
 0x2c6   :  { %6191 = vmatpush.bf16.msrb.mxu1 %v8920_v12  ;;  %v5965_v46 = vpop.f32.mrf.mxu3  ;;  %v8824_v12 = vor.u32 %v10385_v2, %v8821_v50  ;;  %v10473_v2 = vld [vmem:[#allocation3 + $0x13c4] sm:$0xf] }
 0x2c7   :  { %6204 = vmatpush.bf16.msrb.mxu2 %v8984_v63  ;;  %v9197_v63 = vld [vmem:[#allocation3 + $0x13f8] sm:$0xf0]  ;;  %v10471_v46 = vld [vmem:[#allocation3 + $0x13b4] sm:$0xf] }
 0x2c8   :  { %6217 = vmatpush.bf16.msrb.mxu3 %v9048_v3  ;;  %v8952_v3 = vor.u32 %v10417_v36, %v8949_v59  ;;  %v9200_v52 = vor.u32 %v10479_v13, %v9197_v63  ;;  %v10505_v36 = vld [vmem:[#allocation3 + $0x14c4] sm:$0xf]  ;;  %v9101_v13 = vld [vmem:[#allocation3 + $0x1338] sm:$0xf0] }
 0x2c9   :  { %6179 = vmatpush.bf16.msrb.mxu0 %v8848_v11  ;;  %v10461_v11 = vld [vmem:[#allocation3 + $0x1364] sm:$0xf]  ;;  %v9104_v7 = vor.u32 %v10455_v43, %v9101_v13  ;;  %v10559_v43 = vld [vmem:[#allocation3 + $0x1674] sm:$0xf]  ;;  %v9517_v13 = vld [vmem:[#allocation3 + $0x1678] sm:$0xf0] }
 0x2ca   :  { %6192 = vmatpush.bf16.msrb.mxu1 %v8912_v44  ;;  %v9125_v44 = vld [vmem:[#allocation3 + $0x1368] sm:$0xf0] }
 0x2cb   :  { %6205 = vmatpush.bf16.msrb.mxu2 %v8976_v24  ;;  %v10477_v24 = vld [vmem:[#allocation3 + $0x13e4] sm:$0xf]  ;;  %v9128_v17 = vor.u32 %v10461_v11, %v9125_v44 }
 0x2cc   :  { %6218 = vmatpush.bf16.msrb.mxu3 %v9040_v32  ;;  %v9253_v32 = vld [vmem:[#allocation3 + $0x1468] sm:$0xf0]  ;;  %v9192_v37 = vor.u32 %v10477_v24, %v9189_v15 }
 0x2cd   :  { %6180 = vmatpush.bf16.msrb.mxu0 %v8840_v61  ;;  %v9256_v28 = vor.u32 %v10493_v57, %v9253_v32  ;;  %v9320_v61 = vor.u32 %v10509_v41, %v9317_v62  ;;  %v9157_v24 = vld [vmem:[#allocation3 + $0x13a8] sm:$0xf0]  ;;  %v10501_v41 = vld [vmem:[#allocation3 + $0x14a4] sm:$0xf] }
 0x2ce   :  { %6193 = vmatpush.bf16.msrb.mxu1 %v8904_v22  ;;  %v10491_v22 = vld [vmem:[#allocation3 + $0x1454] sm:$0xf]  ;;  %v9221_v15 = vld [vmem:[#allocation3 + $0x1428] sm:$0xf0] }
 0x2cf   :  { %6206 = vmatpush.bf16.msrb.mxu2 %v8968_v39  ;;  %v9245_v39 = vld [vmem:[#allocation3 + $0x1458] sm:$0xf0]  ;;  %v9285_v62 = vld [vmem:[#allocation3 + $0x14a8] sm:$0xf0] }
 0x2d0   :  { %6219 = vmatpush.bf16.msrb.mxu3 %v9032_v40  ;;  %v9309_v40 = vld [vmem:[#allocation3 + $0x14d8] sm:$0xf0]  ;;  %v9248_v29 = vor.u32 %v10491_v22, %v9245_v39  ;;  %v9288_v22 = vor.u32 %v10501_v41, %v9285_v62  ;;  %v10539_v62 = vld [vmem:[#allocation3 + $0x15d4] sm:$0xf] }
 0x2d1   :  { %6181 = vmatpush.bf16.msrb.mxu0 %v8832_v53  ;;  %v9109_v53 = vld [vmem:[#allocation3 + $0x1348] sm:$0xf0]  ;;  %v9312_v50 = vor.u32 %v10507_v55, %v9309_v40  ;;  %v9149_v39 = vld [vmem:[#allocation3 + $0x1398] sm:$0xf0]  ;;  %v10499_v55 = vld [vmem:[#allocation3 + $0x1494] sm:$0xf] }
 0x2d2   :  { %6194 = vmatpush.bf16.msrb.mxu1 %v8896_v25  ;;  %v9173_v25 = vld [vmem:[#allocation3 + $0x13c8] sm:$0xf0]  ;;  %v9112_v4 = vor.u32 %v10457_v38, %v9109_v53  ;;  %v9277_v40 = vld [vmem:[#allocation3 + $0x1498] sm:$0xf0]  ;;  %v10465_v53 = vld [vmem:[#allocation3 + $0x1384] sm:$0xf] }
 0x2d3   :  { %6207 = vmatpush.bf16.msrb.mxu2 %v8960_v51  ;;  %v10489_v51 = vld [vmem:[#allocation3 + $0x1444] sm:$0xf]  ;;  %v9176_v5 = vor.u32 %v10473_v2, %v9173_v25  ;;  %v9141_v2 = vld [vmem:[#allocation3 + $0x1388] sm:$0xf0]  ;;  %v9280_v25 = vor.u32 %v10499_v55, %v9277_v40  ;;  %v9373_v41 = vld [vmem:[#allocation3 + $0x1558] sm:$0xf0] }
 0x2d4   :  { %6220 = vmatpush.bf16.msrb.mxu3 %v9024_v23  ;;  %v9301_v23 = vld [vmem:[#allocation3 + $0x14c8] sm:$0xf0]  ;;  %v9240_v0 = vor.u32 %v10489_v51, %v9237_v34  ;;  %v10497_v34 = vld [vmem:[#allocation3 + $0x1484] sm:$0xf] }
 0x2d5   :  { %6182 = vmatpush.bf16.msrb.mxu0 %v8824_v12  ;;  %v5976_v18 = vpop.f32.mrf.mxu0  ;;  %v9304_v12 = vor.u32 %v10505_v36, %v9301_v23  ;;  %v9205_v51 = vld [vmem:[#allocation3 + $0x1408] sm:$0xf0]  ;;  %v10527_v23 = vld [vmem:[#allocation3 + $0x1574] sm:$0xf]  ;;  %v10521_v40 = vld [vmem:[#allocation3 + $0x1544] sm:$0xf] }
 0x2d6   :  { %6195 = vmatpush.bf16.msrb.mxu1 %v8888_v6  ;;  %v5977_v59 = vadd.f32 %v5976_v18, %v11099_v58  ;;  %v5989_v45 = vpop.f32.mrf.mxu1  ;;  %v9229_v6 = vld [vmem:[#allocation3 + $0x1438] sm:$0xf0]  ;;  %v9168_v58 = vor.u32 %v10471_v46, %v9165_v48  ;;  %v9269_v18 = vld [vmem:[#allocation3 + $0x1488] sm:$0xf0]  ;;  %v9144_v46 = vor.u32 %v10465_v53, %v9141_v2 }
 0x2d7   :  { %6208 = vmatpush.bf16.msrb.mxu2 %v8952_v3  ;;  %v10503_v3 = vld [vmem:[#allocation3 + $0x14b4] sm:$0xf]  ;;  %v9581_v48 = vld [vmem:[#allocation3 + $0x16f8] sm:$0xf0]  ;;  %v9493_v53 = vld [vmem:[#allocation3 + $0x1648] sm:$0xf0] }
 0x2d8   :  { %6221 = vmatpush.bf16.msrb.mxu3 %v9016_v31  ;;  %6183 = vmatmul.bf16.vlgmr.msrb.gmra.mxu0 %v11286_v56  ;;  %v5990_v63 = vadd.f32 %v5989_v45, %v5977_v59  ;;  %v9232_v31 = vor.u32 %v10487_v10, %v9229_v6  ;;  %v9296_v11 = vor.u32 %v10503_v3, %v9293_v21  ;;  %v10451_v56 = vld [vmem:[#allocation3 + $0x1314] sm:$0xf]  ;;  %v9389_v59 = vld [vmem:[#allocation3 + $0x1578] sm:$0xf0] }
 0x2d9   :  { %6227 = vmatpush.bf16.msra.mxu0 %v9136_v16  ;;  %6196 = vmatmul.bf16.vlgmr.msrb.gmra.mxu1 %v11288_v35  ;;  %v10453_v16 = vld [vmem:[#allocation3 + $0x1324] sm:$0xf]  ;;  %v9213_v35 = vld [vmem:[#allocation3 + $0x1418] sm:$0xf0]  ;;  %v9272_v10 = vor.u32 %v10497_v34, %v9269_v18  ;;  %v9392_v6 = vor.u32 %v10527_v23, %v9389_v59  ;;  %v9520_v21 = vor.u32 %v10559_v43, %v9517_v13  ;;  %v10519_v59 = vld [vmem:[#allocation3 + $0x1534] sm:$0xf] }
 0x2da   :  { %6240 = vmatpush.bf16.msra.mxu1 %v9200_v52  ;;  %6209 = vmatmul.bf16.vlgmr.msrb.gmra.mxu2 %v11287_v47  ;;  %v9093_v52 = vld [vmem:[#allocation3 + $0x1328] sm:$0xf0]  ;;  %v10483_v47 = vld [vmem:[#allocation3 + $0x1414] sm:$0xf]  ;;  %v9421_v43 = vld [vmem:[#allocation3 + $0x15b8] sm:$0xf0] }
 0x2db   :  { %6253 = vmatpush.bf16.msra.mxu2 %v9264_v27  ;;  %6222 = vmatmul.bf16.vlgmr.msrb.gmra.mxu3 %v11289_v20  ;;  %v10469_v27 = vld [vmem:[#allocation3 + $0x13a4] sm:$0xf]  ;;  %v9216_v38 = vor.u32 %v10483_v47, %v9213_v35  ;;  %v10551_v13 = vld [vmem:[#allocation3 + $0x1634] sm:$0xf] }
 0x2dc   :  { %6266 = vmatpush.bf16.msra.mxu3 %v9328_v54  ;;  %v10485_v54 = vld [vmem:[#allocation3 + $0x1424] sm:$0xf]  ;;  %v9160_v19 = vor.u32 %v10469_v27, %v9157_v24  ;;  %v9573_v24 = vld [vmem:[#allocation3 + $0x16e8] sm:$0xf0] }
 0x2dd   :  { %6228 = vmatpush.bf16.msra.mxu0 %v9128_v17  ;;  %v6002_v44 = vpop.f32.mrf.mxu2  ;;  %v5978_v17 = vpop.f32.mrf.mxu0  ;;  %v9224_v33 = vor.u32 %v10485_v54, %v9221_v15  ;;  %v10557_v27 = vld [vmem:[#allocation3 + $0x1664] sm:$0xf] }
 0x2de   :  { %6241 = vmatpush.bf16.msra.mxu1 %v9192_v37  ;;  %v6003_v57 = vadd.f32 %v6002_v44, %v5990_v63  ;;  %v6015_v32 = vpop.f32.mrf.mxu3  ;;  %v9096_v37 = vor.u32 %v10453_v16, %v9093_v52  ;;  %v10575_v63 = vld [vmem:[#allocation3 + $0x16f4] sm:$0xf]  ;;  %v9445_v52 = vld [vmem:[#allocation3 + $0x15e8] sm:$0xf0]  ;;  %v10573_v44 = vld [vmem:[#allocation3 + $0x16e4] sm:$0xf] }
 0x2df   :  { %6254 = vmatpush.bf16.msra.mxu2 %v9256_v28  ;;  %v5991_v28 = vpop.f32.mrf.mxu1  ;;  %v9584_v16 = vor.u32 %v10575_v63, %v9581_v48  ;;  %v11290_v17 = vld [vmem:[#allocation21_spill] sm:$0xff]  ;;  %v9549_v63 = vld [vmem:[#allocation3 + $0x16b8] sm:$0xf0] }
 0x2e0   :  { %6267 = vmatpush.bf16.msra.mxu3 %v9320_v61  ;;  %v11106_v60 = vadd.f32 %v6015_v32, %v6003_v57  ;;  %v9085_v61 = vld [vmem:[#allocation3 + $0x1318] sm:$0xf0]  ;;  %v10523_v32 = vld [vmem:[#allocation3 + $0x1554] sm:$0xf] }
 0x2e1   :  { %6229 = vmatpush.bf16.msra.mxu0 %v9120_v30  ;;  %v9088_v20 = vor.u32 %v10451_v56, %v9085_v61  ;;  %v10449_v30 = vld [vmem:[#allocation3 + $0x1304] sm:$0xf]  ;;  %v9437_v28 = vld [vmem:[#allocation3 + $0x15d8] sm:$0xf0]  ;;  %v11292_v61 = vld [vmem:[#allocation23_spill] sm:$0xff]  ;;  %v9376_v47 = vor.u32 %v10523_v32, %v9373_v41 }
 0x2e2   :  { %6242 = vmatpush.bf16.msra.mxu1 %v9184_v1  ;;  %v9077_v1 = vld [vmem:[#allocation3 + $0x1308] sm:$0xf0]  ;;  %v11291_v56 = vld [vmem:[#allocation24_spill] sm:$0xff]  ;;  %v9440_v35 = vor.u32 %v10539_v62, %v9437_v28  ;;  %v10531_v28 = vld [vmem:[#allocation3 + $0x1594] sm:$0xf] }
 0x2e3   :  { %6255 = vmatpush.bf16.msra.mxu2 %v9248_v29  ;;  %v9152_v29 = vor.u32 %v10467_v14, %v9149_v39  ;;  %v10571_v14 = vld [vmem:[#allocation3 + $0x16d4] sm:$0xf]  ;;  %v11293_v39 = vld [vmem:[#allocation26_spill] sm:$0xff] }
 0x2e4   :  { %6268 = vmatpush.bf16.msra.mxu3 %v9312_v50  ;;  %v10481_v50 = vld [vmem:[#allocation3 + $0x1404] sm:$0xf] }
 0x2e5   :  { %6230 = vmatpush.bf16.msra.mxu0 %v9112_v4  ;;  %v6004_v36 = vpop.f32.mrf.mxu2  ;;  %v10543_v4 = vld [vmem:[#allocation3 + $0x15f4] sm:$0xf] }
 0x2e6   :  { %6243 = vmatpush.bf16.msra.mxu1 %v9176_v5  ;;  %v6017_v45 = vpop.f32.mrf.mxu3  ;;  %v9080_v5 = vor.u32 %v10449_v30, %v9077_v1  ;;  %v10537_v30 = vld [vmem:[#allocation3 + $0x15c4] sm:$0xf] }
 0x2e7   :  { %6256 = vmatpush.bf16.msra.mxu2 %v9240_v0  ;;  %v9453_v0 = vld [vmem:[#allocation3 + $0x15f8] sm:$0xf0]  ;;  %v10535_v45 = vld [vmem:[#allocation3 + $0x15b4] sm:$0xf] }
 0x2e8   :  { %6269 = vmatpush.bf16.msra.mxu3 %v9304_v12  ;;  %v9208_v12 = vor.u32 %v10481_v50, %v9205_v51  ;;  %v9456_v3 = vor.u32 %v10543_v4, %v9453_v0  ;;  %v10569_v50 = vld [vmem:[#allocation3 + $0x16c4] sm:$0xf]  ;;  %v9357_v4 = vld [vmem:[#allocation3 + $0x1538] sm:$0xf0] }
 0x2e9   :  { %6231 = vmatpush.bf16.msra.mxu0 %v9104_v7  ;;  %v10525_v7 = vld [vmem:[#allocation3 + $0x1564] sm:$0xf]  ;;  %v9360_v48 = vor.u32 %v10519_v59, %v9357_v4  ;;  %v10623_v59 = vld [vmem:[#allocation3 + $0x1874] sm:$0xf]  ;;  %v9773_v4 = vld [vmem:[#allocation3 + $0x1878] sm:$0xf0] }
 0x2ea   :  { %6244 = vmatpush.bf16.msra.mxu1 %v9168_v58  ;;  %v9381_v58 = vld [vmem:[#allocation3 + $0x1568] sm:$0xf0] }
 0x2eb   :  { %6257 = vmatpush.bf16.msra.mxu2 %v9232_v31  ;;  %v10541_v31 = vld [vmem:[#allocation3 + $0x15e4] sm:$0xf]  ;;  %v9384_v54 = vor.u32 %v10525_v7, %v9381_v58 }
 0x2ec   :  { %6270 = vmatpush.bf16.msra.mxu3 %v9296_v11  ;;  %v9509_v11 = vld [vmem:[#allocation3 + $0x1668] sm:$0xf0]  ;;  %v9448_v15 = vor.u32 %v10541_v31, %v9445_v52 }
 0x2ed   :  { %6232 = vmatpush.bf16.msra.mxu0 %v9096_v37  ;;  %v9512_v57 = vor.u32 %v10557_v27, %v9509_v11  ;;  %v9576_v37 = vor.u32 %v10573_v44, %v9573_v24  ;;  %v9413_v31 = vld [vmem:[#allocation3 + $0x15a8] sm:$0xf0]  ;;  %v10565_v44 = vld [vmem:[#allocation3 + $0x16a4] sm:$0xf] }
 0x2ee   :  { %6245 = vmatpush.bf16.msra.mxu1 %v9160_v19  ;;  %v10555_v19 = vld [vmem:[#allocation3 + $0x1654] sm:$0xf]  ;;  %v9477_v52 = vld [vmem:[#allocation3 + $0x1628] sm:$0xf0] }
 0x2ef   :  { %6258 = vmatpush.bf16.msra.mxu2 %v9224_v33  ;;  %v9501_v33 = vld [vmem:[#allocation3 + $0x1658] sm:$0xf0]  ;;  %v9541_v24 = vld [vmem:[#allocation3 + $0x16a8] sm:$0xf0] }
 0x2f0   :  { %6271 = vmatpush.bf16.msra.mxu3 %v9288_v22  ;;  %v9565_v22 = vld [vmem:[#allocation3 + $0x16d8] sm:$0xf0]  ;;  %v9504_v55 = vor.u32 %v10555_v19, %v9501_v33  ;;  %v9544_v19 = vor.u32 %v10565_v44, %v9541_v24  ;;  %v10603_v24 = vld [vmem:[#allocation3 + $0x17d4] sm:$0xf] }
 0x2f1   :  { %6233 = vmatpush.bf16.msra.mxu0 %v9088_v20  ;;  %v9365_v20 = vld [vmem:[#allocation3 + $0x1548] sm:$0xf0]  ;;  %v9568_v1 = vor.u32 %v10571_v14, %v9565_v22  ;;  %v9405_v33 = vld [vmem:[#allocation3 + $0x1598] sm:$0xf0]  ;;  %v10563_v14 = vld [vmem:[#allocation3 + $0x1694] sm:$0xf] }
 0x2f2   :  { %6246 = vmatpush.bf16.msra.mxu1 %v9152_v29  ;;  %v9429_v29 = vld [vmem:[#allocation3 + $0x15c8] sm:$0xf0]  ;;  %v9368_v34 = vor.u32 %v10521_v40, %v9365_v20  ;;  %v9533_v22 = vld [vmem:[#allocation3 + $0x1698] sm:$0xf0]  ;;  %v10529_v20 = vld [vmem:[#allocation3 + $0x1584] sm:$0xf] }
 0x2f3   :  { %6259 = vmatpush.bf16.msra.mxu2 %v9216_v38  ;;  %v10553_v38 = vld [vmem:[#allocation3 + $0x1644] sm:$0xf]  ;;  %v9432_v36 = vor.u32 %v10537_v30, %v9429_v29  ;;  %v9397_v30 = vld [vmem:[#allocation3 + $0x1588] sm:$0xf0]  ;;  %v9536_v29 = vor.u32 %v10563_v14, %v9533_v22  ;;  %v9629_v44 = vld [vmem:[#allocation3 + $0x1758] sm:$0xf0] }
 0x2f4   :  { %6272 = vmatpush.bf16.msra.mxu3 %v9280_v25  ;;  %v9557_v25 = vld [vmem:[#allocation3 + $0x16c8] sm:$0xf0]  ;;  %v9496_v23 = vor.u32 %v10553_v38, %v9493_v53  ;;  %v10561_v53 = vld [vmem:[#allocation3 + $0x1684] sm:$0xf] }
 0x2f5   :  { %6234 = vmatpush.bf16.msra.mxu0 %v9080_v5  ;;  %v6028_v2 = vpop.f32.mrf.mxu0  ;;  %v9560_v5 = vor.u32 %v10569_v50, %v9557_v25  ;;  %v9461_v38 = vld [vmem:[#allocation3 + $0x1608] sm:$0xf0]  ;;  %v10591_v25 = vld [vmem:[#allocation3 + $0x1774] sm:$0xf]  ;;  %v10601_v22 = vld [vmem:[#allocation3 + $0x17c4] sm:$0xf] }
 0x2f6   :  { %6247 = vmatpush.bf16.msra.mxu1 %v9144_v46  ;;  %v6029_v51 = vadd.f32 %v6028_v2, %v11106_v60  ;;  %v6041_v18 = vpop.f32.mrf.mxu1  ;;  %v9485_v46 = vld [vmem:[#allocation3 + $0x1638] sm:$0xf0]  ;;  %v9424_v60 = vor.u32 %v10535_v45, %v9421_v43  ;;  %v9525_v2 = vld [vmem:[#allocation3 + $0x1688] sm:$0xf0]  ;;  %v9400_v45 = vor.u32 %v10529_v20, %v9397_v30 }
 0x2f7   :  { %6260 = vmatpush.bf16.msra.mxu2 %v9208_v12  ;;  %v10567_v12 = vld [vmem:[#allocation3 + $0x16b4] sm:$0xf]  ;;  %v9837_v43 = vld [vmem:[#allocation3 + $0x18f8] sm:$0xf0]  ;;  %v9621_v14 = vld [vmem:[#allocation3 + $0x1748] sm:$0xf0] }
 0x2f8   :  { %6273 = vmatpush.bf16.msra.mxu3 %v9272_v10  ;;  %6235 = vmatmul.bf16.vlgmr.msra.gmra.mxu0 %v11290_v17  ;;  %v6042_v0 = vadd.f32 %v6041_v18, %v6029_v51  ;;  %v9488_v10 = vor.u32 %v10551_v13, %v9485_v46  ;;  %v9552_v7 = vor.u32 %v10567_v12, %v9549_v63  ;;  %v10515_v17 = vld [vmem:[#allocation3 + $0x1514] sm:$0xf]  ;;  %v9645_v51 = vld [vmem:[#allocation3 + $0x1778] sm:$0xf0]  ;;  %v9813_v20 = vld [vmem:[#allocation3 + $0x18c8] sm:$0xf0] }
 0x2f9   :  { %6279 = vmatpush.bf16.msrb.mxu0 %v9392_v6  ;;  %6248 = vmatmul.bf16.vlgmr.msra.gmra.mxu1 %v11292_v61  ;;  %v10517_v6 = vld [vmem:[#allocation3 + $0x1524] sm:$0xf]  ;;  %v9469_v61 = vld [vmem:[#allocation3 + $0x1618] sm:$0xf0]  ;;  %v9528_v13 = vor.u32 %v10561_v53, %v9525_v2  ;;  %v9648_v46 = vor.u32 %v10591_v25, %v9645_v51  ;;  %v9776_v63 = vor.u32 %v10623_v59, %v9773_v4  ;;  %v10583_v53 = vld [vmem:[#allocation3 + $0x1734] sm:$0xf] }
 0x2fa   :  { %6292 = vmatpush.bf16.msrb.mxu1 %v9456_v3  ;;  %6261 = vmatmul.bf16.vlgmr.msra.gmra.mxu2 %v11291_v56  ;;  %v9349_v3 = vld [vmem:[#allocation3 + $0x1528] sm:$0xf0]  ;;  %v10547_v56 = vld [vmem:[#allocation3 + $0x1614] sm:$0xf]  ;;  %v9613_v2 = vld [vmem:[#allocation3 + $0x1738] sm:$0xf0] }
 0x2fb   :  { %6305 = vmatpush.bf16.msrb.mxu2 %v9520_v21  ;;  %6274 = vmatmul.bf16.vlgmr.msra.gmra.mxu3 %v11293_v39  ;;  %v10533_v21 = vld [vmem:[#allocation3 + $0x15a4] sm:$0xf]  ;;  %v9472_v40 = vor.u32 %v10547_v56, %v9469_v61  ;;  %v9805_v59 = vld [vmem:[#allocation3 + $0x18b8] sm:$0xf0]  ;;  %v9616_v4 = vor.u32 %v10583_v53, %v9613_v2  ;;  %v6414_v2 = vld [vmem:[#allocation7 + $0xe8] sm:$0xff] }
 0x2fc   :  { %6318 = vmatpush.bf16.msrb.mxu3 %v9584_v16  ;;  %v10549_v16 = vld [vmem:[#allocation3 + $0x1624] sm:$0xf]  ;;  %v9416_v41 = vor.u32 %v10533_v21, %v9413_v31  ;;  %v9829_v31 = vld [vmem:[#allocation3 + $0x18e8] sm:$0xf0]  ;;  %v11296_v53 = vld [vmem:[#allocation28_spill] sm:$0xff] }
 0x2fd   :  { %6280 = vmatpush.bf16.msrb.mxu0 %v9384_v54  ;;  %v6054_v58 = vpop.f32.mrf.mxu2  ;;  %v6030_v54 = vpop.f32.mrf.mxu0  ;;  %v9480_v62 = vor.u32 %v10549_v16, %v9477_v52  ;;  %v10621_v21 = vld [vmem:[#allocation3 + $0x1864] sm:$0xf] }
 0x2fe   :  { %6293 = vmatpush.bf16.msrb.mxu1 %v9448_v15  ;;  %v6055_v27 = vadd.f32 %v6054_v58, %v6042_v0  ;;  %v6067_v11 = vpop.f32.mrf.mxu3  ;;  %v9352_v15 = vor.u32 %v10517_v6, %v9349_v3  ;;  %v10639_v0 = vld [vmem:[#allocation3 + $0x18f4] sm:$0xf]  ;;  %v9701_v3 = vld [vmem:[#allocation3 + $0x17e8] sm:$0xf0]  ;;  %v10637_v58 = vld [vmem:[#allocation3 + $0x18e4] sm:$0xf] }
 0x2ff   :  { %6306 = vmatpush.bf16.msrb.mxu2 %v9512_v57  ;;  %v6043_v57 = vpop.f32.mrf.mxu1  ;;  %v9840_v6 = vor.u32 %v10639_v0, %v9837_v43  ;;  %v11294_v54 = vld [vmem:[#allocation25_spill] sm:$0xff]  ;;  %v9605_v0 = vld [vmem:[#allocation3 + $0x1728] sm:$0xf0] }
 0x300   :  { %6319 = vmatpush.bf16.msrb.mxu3 %v9576_v37  ;;  %v11113_v32 = vadd.f32 %v6067_v11, %v6055_v27  ;;  %v9341_v37 = vld [vmem:[#allocation3 + $0x1518] sm:$0xf0]  ;;  %v10587_v11 = vld [vmem:[#allocation3 + $0x1754] sm:$0xf]  ;;  %v10585_v61 = vld [vmem:[#allocation3 + $0x1744] sm:$0xf] }
 0x301   :  { %6281 = vmatpush.bf16.msrb.mxu0 %v9376_v47  ;;  %v9344_v39 = vor.u32 %v10515_v17, %v9341_v37  ;;  %v10513_v47 = vld [vmem:[#allocation3 + $0x1504] sm:$0xf]  ;;  %v9693_v57 = vld [vmem:[#allocation3 + $0x17d8] sm:$0xf0]  ;;  %v11295_v17 = vld [vmem:[#allocation27_spill] sm:$0xff]  ;;  %v9624_v30 = vor.u32 %v10585_v61, %v9621_v14 }
 0x302   :  { %6294 = vmatpush.bf16.msrb.mxu1 %v9440_v35  ;;  %v9333_v35 = vld [vmem:[#allocation3 + $0x1508] sm:$0xf0]  ;;  %v10635_v37 = vld [vmem:[#allocation3 + $0x18d4] sm:$0xf]  ;;  %v10597_v43 = vld [vmem:[#allocation3 + $0x17a4] sm:$0xf] }
 0x303   :  { %6307 = vmatpush.bf16.msrb.mxu2 %v9504_v55  ;;  %v9408_v55 = vor.u32 %v10531_v28, %v9405_v33  ;;  %v9821_v28 = vld [vmem:[#allocation3 + $0x18d8] sm:$0xf0]  ;;  %v9696_v33 = vor.u32 %v10603_v24, %v9693_v57  ;;  %v9653_v14 = vld [vmem:[#allocation3 + $0x1788] sm:$0xf0] }
 0x304   :  { %6320 = vmatpush.bf16.msrb.mxu3 %v9568_v1  ;;  %v10545_v1 = vld [vmem:[#allocation3 + $0x1604] sm:$0xf]  ;;  %v9725_v57 = vld [vmem:[#allocation3 + $0x1818] sm:$0xf0] }
 0x305   :  { %6282 = vmatpush.bf16.msrb.mxu0 %v9368_v34  ;;  %v6056_v50 = vpop.f32.mrf.mxu2  ;;  %v10607_v34 = vld [vmem:[#allocation3 + $0x17f4] sm:$0xf] }
 0x306   :  { %6295 = vmatpush.bf16.msrb.mxu1 %v9432_v36  ;;  %v6069_v18 = vpop.f32.mrf.mxu3  ;;  %v9336_v36 = vor.u32 %v10513_v47, %v9333_v35  ;;  %v9685_v47 = vld [vmem:[#allocation3 + $0x17c8] sm:$0xf0]  ;;  %v10617_v35 = vld [vmem:[#allocation3 + $0x1844] sm:$0xf]  ;;  %v10599_v50 = vld [vmem:[#allocation3 + $0x17b4] sm:$0xf] }
 0x307   :  { %6308 = vmatpush.bf16.msrb.mxu2 %v9496_v23  ;;  %v9709_v23 = vld [vmem:[#allocation3 + $0x17f8] sm:$0xf0]  ;;  %v10615_v18 = vld [vmem:[#allocation3 + $0x1834] sm:$0xf] }
 0x308   :  { %6321 = vmatpush.bf16.msrb.mxu3 %v9560_v5  ;;  %v9464_v5 = vor.u32 %v10545_v1, %v9461_v38  ;;  %v9712_v12 = vor.u32 %v10607_v34, %v9709_v23  ;;  %v9677_v34 = vld [vmem:[#allocation3 + $0x17b8] sm:$0xf0]  ;;  %v10631_v23 = vld [vmem:[#allocation3 + $0x18b4] sm:$0xf] }
 0x309   :  { %6283 = vmatpush.bf16.msrb.mxu0 %v9360_v48  ;;  %v10589_v48 = vld [vmem:[#allocation3 + $0x1764] sm:$0xf] }
 0x30a   :  { %6296 = vmatpush.bf16.msrb.mxu1 %v9424_v60  ;;  %v9637_v60 = vld [vmem:[#allocation3 + $0x1768] sm:$0xf0] }
 0x30b   :  { %6309 = vmatpush.bf16.msrb.mxu2 %v9488_v10  ;;  %v10605_v10 = vld [vmem:[#allocation3 + $0x17e4] sm:$0xf]  ;;  %v9640_v16 = vor.u32 %v10589_v48, %v9637_v60  ;;  %v9733_v48 = vld [vmem:[#allocation3 + $0x1828] sm:$0xf0] }
 0x30c   :  { %6322 = vmatpush.bf16.msrb.mxu3 %v9552_v7  ;;  %v9765_v7 = vld [vmem:[#allocation3 + $0x1868] sm:$0xf0]  ;;  %v9704_v52 = vor.u32 %v10605_v10, %v9701_v3 }
 0x30d   :  { %6284 = vmatpush.bf16.msrb.mxu0 %v9352_v15  ;;  %v9768_v27 = vor.u32 %v10621_v21, %v9765_v7  ;;  %v9832_v15 = vor.u32 %v10637_v58, %v9829_v31  ;;  %v9797_v3 = vld [vmem:[#allocation3 + $0x18a8] sm:$0xf0] }
 0x30e   :  { %6297 = vmatpush.bf16.msrb.mxu1 %v9416_v41  ;;  %v10619_v41 = vld [vmem:[#allocation3 + $0x1854] sm:$0xf] }
 0x30f   :  { %6310 = vmatpush.bf16.msrb.mxu2 %v9480_v62  ;;  %v9757_v62 = vld [vmem:[#allocation3 + $0x1858] sm:$0xf0] }
 0x310   :  { %6323 = vmatpush.bf16.msrb.mxu3 %v9544_v19  ;;  %v9632_v19 = vor.u32 %v10587_v11, %v9629_v44  ;;  %v9760_v56 = vor.u32 %v10619_v41, %v9757_v62  ;;  %v9597_v11 = vld [vmem:[#allocation3 + $0x1718] sm:$0xf0]  ;;  %v10595_v44 = vld [vmem:[#allocation3 + $0x1794] sm:$0xf] }
 0x311   :  { %6285 = vmatpush.bf16.msrb.mxu0 %v9344_v39  ;;  %v9824_v39 = vor.u32 %v10635_v37, %v9821_v28  ;;  %v10627_v41 = vld [vmem:[#allocation3 + $0x1894] sm:$0xf]  ;;  %v9789_v62 = vld [vmem:[#allocation3 + $0x1898] sm:$0xf0] }
 0x312   :  { %6298 = vmatpush.bf16.msrb.mxu1 %v9408_v55  ;;  %v9792_v61 = vor.u32 %v10627_v41, %v9789_v62  ;;  %v6388_v41 = vld [vmem:[#allocation7 + $0x18] sm:$0xff]  ;;  %v6385_v62 = vld [vmem:[#allocation7] sm:$0xff] }
 0x313   :  { %6311 = vmatpush.bf16.msrb.mxu2 %v9472_v40  ;;  %v10633_v40 = vld [vmem:[#allocation3 + $0x18c4] sm:$0xf] }
 0x314   :  { %6324 = vmatpush.bf16.msrb.mxu3 %v9536_v29  ;;  %v9688_v29 = vor.u32 %v10601_v22, %v9685_v47  ;;  %v9816_v25 = vor.u32 %v10633_v40, %v9813_v20  ;;  %v10609_v22 = vld [vmem:[#allocation3 + $0x1804] sm:$0xf] }
 0x315   :  { %6286 = vmatpush.bf16.msrb.mxu0 %v9336_v36  ;;  %v6080_v55 = vpop.f32.mrf.mxu0  ;;  %v9741_v36 = vld [vmem:[#allocation3 + $0x1838] sm:$0xf0] }
 0x316   :  { %6299 = vmatpush.bf16.msrb.mxu1 %v9400_v45  ;;  %v6093_v1 = vpop.f32.mrf.mxu1  ;;  %v9744_v45 = vor.u32 %v10615_v18, %v9741_v36  ;;  %v6410_v18 = vld [vmem:[#allocation7 + $0xc8] sm:$0xff]  ;;  %v6407_v36 = vld [vmem:[#allocation7 + $0xb0] sm:$0xff] }
 0x317   :  { %6312 = vmatpush.bf16.msrb.mxu2 %v9464_v5  ;;  %v10581_v5 = vld [vmem:[#allocation3 + $0x1724] sm:$0xf] }
 0x318   :  { %6325 = vmatpush.bf16.msrb.mxu3 %v9528_v13  ;;  %6287 = vmatmul.bf16.vlgmr.msrb.gmra.mxu0 %v11294_v54  ;;  %v9808_v13 = vor.u32 %v10631_v23, %v9805_v59  ;;  %v9608_v7 = vor.u32 %v10581_v5, %v9605_v0  ;;  %v9661_v54 = vld [vmem:[#allocation3 + $0x1798] sm:$0xf0] }
 0x319   :  { %6331 = vmatpush.bf16.msra.mxu0 %v9648_v46  ;;  %6300 = vmatmul.bf16.vlgmr.msrb.gmra.mxu1 %v11295_v17  ;;  %v9664_v37 = vor.u32 %v10595_v44, %v9661_v54  ;;  %v6408_v23 = vld [vmem:[#allocation7 + $0xb8] sm:$0xff]  ;;  %v6389_v54 = vld [vmem:[#allocation7 + $0x20] sm:$0xff] }
 0x31a   :  { %6344 = vmatpush.bf16.msra.mxu1 %v9712_v12  ;;  %6313 = vmatmul.bf16.vlgmr.msrb.gmra.mxu2 %v11008_v8  ;;  %v9749_v8 = vld [vmem:[#allocation3 + $0x1848] sm:$0xf0]  ;;  %v6404_v0 = vld [vmem:[#allocation7 + $0x98] sm:$0xff] }
 0x31b   :  { %6357 = vmatpush.bf16.msra.mxu2 %v9776_v63  ;;  %6326 = vmatmul.bf16.vlgmr.msrb.gmra.mxu3 %v11012_v26  ;;  %v6081_v26 = vadd.f32 %v6080_v55, %v11113_v32  ;;  %v9752_v38 = vor.u32 %v10617_v35, %v9749_v8  ;;  %v9680_v32 = vor.u32 %v10599_v50, %v9677_v34  ;;  %v9669_v12 = vld [vmem:[#allocation3 + $0x17a8] sm:$0xf0]  ;;  %v10613_v63 = vld [vmem:[#allocation3 + $0x1824] sm:$0xf]  ;;  %v6392_v44 = vld [vmem:[#allocation7 + $0x38] sm:$0xff] }
 0x31c   :  { %6370 = vmatpush.bf16.msra.mxu3 %v9840_v6  ;;  %v10629_v6 = vld [vmem:[#allocation3 + $0x18a4] sm:$0xf]  ;;  %v9781_v8 = vld [vmem:[#allocation3 + $0x1888] sm:$0xf0] }
 0x31d   :  { %6332 = vmatpush.bf16.msra.mxu0 %v9640_v16  ;;  %v6094_v51 = vadd.f32 %v6093_v1, %v6081_v26  ;;  %v6106_v46 = vpop.f32.mrf.mxu2  ;;  %v6082_v21 = vpop.f32.mrf.mxu0  ;;  %v9672_v16 = vor.u32 %v10597_v43, %v9669_v12  ;;  %v9800_v24 = vor.u32 %v10629_v6, %v9797_v3  ;;  %v10625_v35 = vld [vmem:[#allocation3 + $0x1884] sm:$0xf]  ;;  %v6415_v1 = vld [vmem:[#allocation7 + $0xf0] sm:$0xff] }
 0x31e   :  { %6345 = vmatpush.bf16.msra.mxu1 %v9704_v52  ;;  %v6119_v10 = vpop.f32.mrf.mxu3  ;;  %v6095_v58 = vpop.f32.mrf.mxu1  ;;  %v9736_v52 = vor.u32 %v10613_v63, %v9733_v48  ;;  %v11297_v50 = vld [vmem:[#allocation29_spill] sm:$0xff]  ;;  %v6400_v63 = vld [vmem:[#allocation7 + $0x78] sm:$0xff] }
 0x31f   :  { %6358 = vmatpush.bf16.msra.mxu2 %v9768_v27  ;;  %v6107_v60 = vadd.f32 %v6106_v46, %v6094_v51  ;;  %v10579_v27 = vld [vmem:[#allocation3 + $0x1714] sm:$0xf]  ;;  %v6412_v51 = vld [vmem:[#allocation7 + $0xd8] sm:$0xff]  ;;  %v6409_v34 = vld [vmem:[#allocation7 + $0xc0] sm:$0xff] }
 0x320   :  { %6371 = vmatpush.bf16.msra.mxu3 %v9832_v15  ;;  %v10611_v15 = vld [vmem:[#allocation3 + $0x1814] sm:$0xf]  ;;  %v9600_v17 = vor.u32 %v10579_v27, %v9597_v11  ;;  %v6401_v43 = vld [vmem:[#allocation7 + $0x80] sm:$0xff]  ;;  %v6398_v21 = vld [vmem:[#allocation7 + $0x68] sm:$0xff] }
 0x321   :  { %6333 = vmatpush.bf16.msra.mxu0 %v9632_v19  ;;  %v11120_v31 = vadd.f32 %v6119_v10, %v6107_v60  ;;  %v9728_v28 = vor.u32 %v10611_v15, %v9725_v57  ;;  %v10577_v19 = vld [vmem:[#allocation3 + $0x1704] sm:$0xf]  ;;  %v6399_v46 = vld [vmem:[#allocation7 + $0x70] sm:$0xff]  ;;  %v6390_v15 = vld [vmem:[#allocation7 + $0x28] sm:$0xff] }
 0x322   :  { %6346 = vmatpush.bf16.msra.mxu1 %v9696_v33  ;;  %v9589_v33 = vld [vmem:[#allocation3 + $0x1708] sm:$0xf0]  ;;  %v6397_v6 = vld [vmem:[#allocation7 + $0x60] sm:$0xff]  ;;  %v6395_v58 = vld [vmem:[#allocation7 + $0x50] sm:$0xff] }
 0x323   :  { %6359 = vmatpush.bf16.msra.mxu2 %v9760_v56  ;;  %v10593_v56 = vld [vmem:[#allocation3 + $0x1784] sm:$0xf]  ;;  %v9592_v40 = vor.u32 %v10577_v19, %v9589_v33  ;;  %v6391_v27 = vld [vmem:[#allocation7 + $0x30] sm:$0xff] }
 0x324   :  { %6372 = vmatpush.bf16.msra.mxu3 %v9824_v39  ;;  %v9717_v39 = vld [vmem:[#allocation3 + $0x1808] sm:$0xf0]  ;;  %v9656_v20 = vor.u32 %v10593_v56, %v9653_v14  ;;  %v6387_v57 = vld [vmem:[#allocation7 + $0x10] sm:$0xff] }
 0x325   :  { %6334 = vmatpush.bf16.msra.mxu0 %v9624_v30  ;;  %v6108_v47 = vpop.f32.mrf.mxu2  ;;  %v9720_v26 = vor.u32 %v10609_v22, %v9717_v39  ;;  %v9784_v30 = vor.u32 %v10625_v35, %v9781_v8 }
 0x326   :  { %6347 = vmatpush.bf16.msra.mxu1 %v9688_v29  ;;  %v6121_v55 = vpop.f32.mrf.mxu3  ;;  %v6416_v29 = vld [vmem:[#allocation7 + $0xf8] sm:$0xff] }
 0x327   :  { %6360 = vmatpush.bf16.msra.mxu2 %v9752_v38  ;;  %v6413_v38 = vld [vmem:[#allocation7 + $0xe0] sm:$0xff] }
 0x328   :  { %6373 = vmatpush.bf16.msra.mxu3 %v9816_v25  ;;  %v6411_v25 = vld [vmem:[#allocation7 + $0xd0] sm:$0xff] }
 0x329   :  { %6335 = vmatpush.bf16.msra.mxu0 %v9616_v4  ;;  %v6405_v4 = vld [vmem:[#allocation7 + $0xa0] sm:$0xff] }
 0x32a   :  { %6348 = vmatpush.bf16.msra.mxu1 %v9680_v32 }
 0x32b   :  { %6361 = vmatpush.bf16.msra.mxu2 %v9744_v45 }
 0x32c   :  { %6374 = vmatpush.bf16.msra.mxu3 %v9808_v13  ;;  %v6402_v13 = vld [vmem:[#allocation7 + $0x88] sm:$0xff] }
 0x32d   :  { %6336 = vmatpush.bf16.msra.mxu0 %v9608_v7 }
 0x32e   :  { %6349 = vmatpush.bf16.msra.mxu1 %v9672_v16  ;;  %v6393_v16 = vld [vmem:[#allocation7 + $0x40] sm:$0xff] }
 0x32f   :  { %6362 = vmatpush.bf16.msra.mxu2 %v9736_v52  ;;  %v6394_v52 = vld [vmem:[#allocation7 + $0x48] sm:$0xff] }
 0x330   :  { %6375 = vmatpush.bf16.msra.mxu3 %v9800_v24 }
 0x331   :  { %6337 = vmatpush.bf16.msra.mxu0 %v9600_v17  ;;  %v6386_v17 = vld [vmem:[#allocation7 + $0x8] sm:$0xff] }
 0x332   :  { %6350 = vmatpush.bf16.msra.mxu1 %v9664_v37  ;;  %v6383_v37 = vmax.f32 %v11060_v9, 0.0 }
 0x333   :  { %6363 = vmatpush.bf16.msra.mxu2 %v9728_v28 }
 0x334   :  { %6376 = vmatpush.bf16.msra.mxu3 %v9792_v61 }
 0x335   :  { %6338 = vmatpush.bf16.msra.mxu0 %v9592_v40  ;;  %v6132_v59 = vpop.f32.mrf.mxu0 }
 0x336   :  { %6351 = vmatpush.bf16.msra.mxu1 %v9656_v20  ;;  %v6133_v32 = vadd.f32 %v6132_v59, %v11120_v31  ;;  %v6145_v45 = vpop.f32.mrf.mxu1  ;;  %v6396_v31 = vld [vmem:[#allocation7 + $0x58] sm:$0xff] }
 0x337   :  { %6364 = vmatpush.bf16.msra.mxu2 %v9720_v26 }
 0x338   :  { %6377 = vmatpush.bf16.msra.mxu3 %v9784_v30  ;;  %6339 = vmatmul.bf16.vlgmr.msra.gmra.mxu0 %v11296_v53  ;;  %v6146_v5 = vadd.f32 %v6145_v45, %v6133_v32  ;;  %v6438_v32 = vld [vmem:[#allocation7 + $0x1a8] sm:$0xff]  ;;  %v6435_v45 = vld [vmem:[#allocation7 + $0x190] sm:$0xff] }
 0x339   :  { %6455 = vmatpush.msrb.mxu0 %v6415_v1  ;;  %6352 = vmatmul.bf16.vlgmr.msra.gmra.mxu1 %v11297_v50  ;;  %v6447_v1 = vld [vmem:[#allocation7 + $0x1f0] sm:$0xff] }
 0x33a   :  { %6365 = vmatmul.bf16.vlgmr.msra.gmra.mxu2 %v11023_v49  ;;  %v6406_v49 = vld [vmem:[#allocation7 + $0xa8] sm:$0xff]  ;;  %6475 = vmatpush.msrb.mxu1 %v6447_v1  ;;  %v6443_v50 = vld [vmem:[#allocation7 + $0x1d0] sm:$0xff] }
 0x33b   :  { %6495 = vmatpush.msrb.mxu2 %v6416_v29  ;;  %6378 = vmatmul.bf16.vlgmr.msra.gmra.mxu3 %v11025_v42  ;;  %v6403_v42 = vld [vmem:[#allocation7 + $0x90] sm:$0xff]  ;;  %v6448_v29 = vld [vmem:[#allocation7 + $0x1f8] sm:$0xff]  ;;  %v6567_v1 = vld [vmem:[%s11244_s5 + $0xf0] sm:$0xff] }
 0x33c   :  { %6456 = vmatpush.msrb.mxu0 %v6413_v38  ;;  %v6445_v38 = vld [vmem:[#allocation7 + $0x1e0] sm:$0xff]  ;;  %6515 = vmatpush.msrb.mxu3 %v6448_v29 }
 0x33d   :  { %6496 = vmatpush.msrb.mxu2 %v6414_v2  ;;  %v6158_v12 = vpop.f32.mrf.mxu2  ;;  %v6134_v10 = vpop.f32.mrf.mxu0  ;;  %v6446_v2 = vld [vmem:[#allocation7 + $0x1e8] sm:$0xff]  ;;  %6476 = vmatpush.msrb.mxu1 %v6445_v38  ;;  %v6566_v38 = vld [vmem:[%s11244_s5 + $0xe8] sm:$0xff] }
 0x33e   :  { %6457 = vmatpush.msrb.mxu0 %v6411_v25  ;;  %v6159_v48 = vadd.f32 %v6158_v12, %v6146_v5  ;;  %v6171_v60 = vpop.f32.mrf.mxu3  ;;  %v6147_v3 = vpop.f32.mrf.mxu1  ;;  %v6444_v25 = vld [vmem:[#allocation7 + $0x1d8] sm:$0xff]  ;;  %6516 = vmatpush.msrb.mxu3 %v6446_v2  ;;  %v6434_v5 = vld [vmem:[#allocation7 + $0x188] sm:$0xff]  ;;  %v6425_v10 = vld [vmem:[#allocation7 + $0x140] sm:$0xff] }
 0x33f   :  { %6497 = vmatpush.msrb.mxu2 %v6412_v51  ;;  %v6441_v51 = vld [vmem:[#allocation7 + $0x1c0] sm:$0xff]  ;;  %6477 = vmatpush.msrb.mxu1 %v6443_v50  ;;  %v6423_v3 = vld [vmem:[#allocation7 + $0x130] sm:$0xff] }
 0x340   :  { %6458 = vmatpush.msrb.mxu0 %v6409_v34  ;;  %v6172_v7 = vadd.f32 %v6171_v60, %v6159_v48  ;;  %v6442_v34 = vld [vmem:[#allocation7 + $0x1c8] sm:$0xff]  ;;  %6517 = vmatpush.msrb.mxu3 %v6444_v25  ;;  %v6428_v48 = vld [vmem:[#allocation7 + $0x158] sm:$0xff] }
 0x341   :  { %6498 = vmatpush.msrb.mxu2 %v6410_v18  ;;  %v6439_v18 = vld [vmem:[#allocation7 + $0x1b0] sm:$0xff]  ;;  %6478 = vmatpush.msrb.mxu1 %v6441_v51 }
 0x342   :  { %6459 = vmatpush.msrb.mxu0 %v6407_v36  ;;  %v6440_v36 = vld [vmem:[#allocation7 + $0x1b8] sm:$0xff]  ;;  %6518 = vmatpush.msrb.mxu3 %v6442_v34  ;;  %v6548_v25 = vld [vmem:[%s11244_s5 + $0x58] sm:$0xff] }
 0x343   :  { %6499 = vmatpush.msrb.mxu2 %v6408_v23  ;;  %6479 = vmatpush.msrb.mxu1 %v6439_v18  ;;  %v6549_v2 = vld [vmem:[%s11244_s5 + $0x60] sm:$0xff]  ;;  %v6564_v51 = vld [vmem:[%s11244_s5 + $0xd8] sm:$0xff] }
 0x344   :  { %6460 = vmatpush.msrb.mxu0 %v6405_v4  ;;  %v6437_v4 = vld [vmem:[#allocation7 + $0x1a0] sm:$0xff]  ;;  %6519 = vmatpush.msrb.mxu3 %v6440_v36  ;;  %v6565_v50 = vld [vmem:[%s11244_s5 + $0xe0] sm:$0xff] }
 0x345   :  { %6500 = vmatpush.msrb.mxu2 %v6406_v49  ;;  %v6160_v11 = vpop.f32.mrf.mxu2  ;;  %v6436_v49 = vld [vmem:[#allocation7 + $0x198] sm:$0xff]  ;;  %6480 = vmatpush.msrb.mxu1 %v6437_v4  ;;  %v6547_v36 = vld [vmem:[%s11244_s5 + $0x50] sm:$0xff] }
 0x346   :  { %6461 = vmatpush.msrb.mxu0 %v6403_v42  ;;  %v6173_v24 = vpop.f32.mrf.mxu3  ;;  %6520 = vmatpush.msrb.mxu3 %v6438_v32  ;;  %v6433_v42 = vld [vmem:[#allocation7 + $0x180] sm:$0xff]  ;;  %v6545_v32 = vld [vmem:[%s11244_s5 + $0x40] sm:$0xff] }
 0x347   :  { %6501 = vmatpush.msrb.mxu2 %v6404_v0  ;;  %6481 = vmatpush.msrb.mxu1 %v6435_v45  ;;  %v6431_v0 = vld [vmem:[#allocation7 + $0x170] sm:$0xff]  ;;  %v6420_v24 = vld [vmem:[#allocation7 + $0x118] sm:$0xff] }
 0x348   :  { %6462 = vmatpush.msrb.mxu0 %v6401_v43  ;;  %6521 = vmatpush.msrb.mxu3 %v6436_v49  ;;  %v6432_v43 = vld [vmem:[#allocation7 + $0x178] sm:$0xff]  ;;  %v6544_v49 = vld [vmem:[%s11244_s5 + $0x38] sm:$0xff] }
 0x349   :  { %6502 = vmatpush.msrb.mxu2 %v6402_v13  ;;  %6482 = vmatpush.msrb.mxu1 %v6433_v42  ;;  %v6429_v13 = vld [vmem:[#allocation7 + $0x160] sm:$0xff]  ;;  %v6561_v45 = vld [vmem:[%s11244_s5 + $0xc0] sm:$0xff]  ;;  %v6560_v42 = vld [vmem:[%s11244_s5 + $0xb8] sm:$0xff] }
 0x34a   :  { %6463 = vmatpush.msrb.mxu0 %v6399_v46  ;;  %6522 = vmatpush.msrb.mxu3 %v6434_v5  ;;  %v6430_v46 = vld [vmem:[#allocation7 + $0x168] sm:$0xff]  ;;  %v6562_v4 = vld [vmem:[%s11244_s5 + $0xc8] sm:$0xff] }
 0x34b   :  { %6503 = vmatpush.msrb.mxu2 %v6400_v63  ;;  %6483 = vmatpush.msrb.mxu1 %v6431_v0  ;;  %v6427_v63 = vld [vmem:[#allocation7 + $0x150] sm:$0xff]  ;;  %v6543_v5 = vld [vmem:[%s11244_s5 + $0x30] sm:$0xff] }
 0x34c   :  { %6464 = vmatpush.msrb.mxu0 %v6397_v6  ;;  %6523 = vmatpush.msrb.mxu3 %v6432_v43  ;;  %v6426_v6 = vld [vmem:[#allocation7 + $0x148] sm:$0xff]  ;;  %v6542_v43 = vld [vmem:[%s11244_s5 + $0x28] sm:$0xff] }
 0x34d   :  { %6504 = vmatpush.msrb.mxu2 %v6398_v21  ;;  %6484 = vmatpush.msrb.mxu1 %v6429_v13  ;;  %v6424_v21 = vld [vmem:[#allocation7 + $0x138] sm:$0xff]  ;;  %v6559_v0 = vld [vmem:[%s11244_s5 + $0xb0] sm:$0xff] }
 0x34e   :  { %6465 = vmatpush.msrb.mxu0 %v6395_v58  ;;  %6524 = vmatpush.msrb.mxu3 %v6430_v46  ;;  %v6541_v13 = vld [vmem:[%s11244_s5 + $0x20] sm:$0xff]  ;;  %v6540_v46 = vld [vmem:[%s11244_s5 + $0x18] sm:$0xff] }
 0x34f   :  { %6505 = vmatpush.msrb.mxu2 %v6396_v31  ;;  %6485 = vmatpush.msrb.mxu1 %v6427_v63  ;;  %v6421_v31 = vld [vmem:[#allocation7 + $0x120] sm:$0xff] }
 0x350   :  { %6466 = vmatpush.msrb.mxu0 %v6393_v16  ;;  %6525 = vmatpush.msrb.mxu3 %v6428_v48  ;;  %v6422_v16 = vld [vmem:[#allocation7 + $0x128] sm:$0xff]  ;;  %v6558_v63 = vld [vmem:[%s11244_s5 + $0xa8] sm:$0xff] }
 0x351   :  { %6506 = vmatpush.msrb.mxu2 %v6394_v52  ;;  %6486 = vmatpush.msrb.mxu1 %v6425_v10  ;;  %v6538_v48 = vld [vmem:[%s11244_s5 + $0x8] sm:$0xff]  ;;  %v6537_v10 = vld [vmem:[%s11244_s5] sm:$0xff] }
 0x352   :  { %6467 = vmatpush.msrb.mxu0 %v6391_v27  ;;  %6526 = vmatpush.msrb.mxu3 %v6426_v6  ;;  %v6556_v6 = vld [vmem:[%s11244_s5 + $0x98] sm:$0xff] }
 0x353   :  { %6507 = vmatpush.msrb.mxu2 %v6392_v44  ;;  %6487 = vmatpush.msrb.mxu1 %v6423_v3  ;;  %v6419_v44 = vld [vmem:[#allocation7 + $0x110] sm:$0xff]  ;;  %v6555_v3 = vld [vmem:[%s11244_s5 + $0x90] sm:$0xff] }
 0x354   :  { %6468 = vmatpush.msrb.mxu0 %v6389_v54  ;;  %6527 = vmatpush.msrb.mxu3 %v6424_v21  ;;  %v6417_v54 = vld [vmem:[#allocation7 + $0x100] sm:$0xff] }
 0x355   :  { %6508 = vmatpush.msrb.mxu2 %v6390_v15  ;;  %v6184_v28 = vpop.f32.mrf.mxu0  ;;  %6488 = vmatpush.msrb.mxu1 %v6421_v31  ;;  %v6418_v15 = vld [vmem:[#allocation7 + $0x108] sm:$0xff]  ;;  %v6554_v21 = vld [vmem:[%s11244_s5 + $0x88] sm:$0xff] }
 0x356   :  { %6469 = vmatpush.msrb.mxu0 %v6387_v57  ;;  %v6185_v19 = vadd.f32 %v6184_v28, %v6172_v7  ;;  %v6197_v33 = vpop.f32.mrf.mxu1  ;;  %6528 = vmatpush.msrb.mxu3 %v6422_v16 }
 0x357   :  { %6509 = vmatpush.msrb.mxu2 %v6388_v41  ;;  %6489 = vmatpush.msrb.mxu1 %v6419_v44 }
 0x358   :  { %6470 = vmatpush.msrb.mxu0 %v6385_v62  ;;  %v6198_v56 = vadd.f32 %v6197_v33, %v6185_v19  ;;  %6529 = vmatpush.msrb.mxu3 %v6420_v24 }
 0x359   :  { %6510 = vmatpush.msrb.mxu2 %v6386_v17  ;;  %6471 = vmatmul.f32.vlgmr.msrb.gmra.mxu0 %v6383_v37 }
 0x35a   :  { %6511 = vmatmul.f32.vlgmr.msrb.gmra.mxu2 %v6383_v37  ;;  %6490 = vmatpush.msrb.mxu1 %v6417_v54 }
 0x35b   :  { %6530 = vmatpush.msrb.mxu3 %v6418_v15 }
 0x35d   :  { %v6210_v61 = vpop.f32.mrf.mxu2  ;;  %v6186_v39 = vpop.f32.mrf.mxu0 }
 0x35e   :  { %v6211_v14 = vadd.f32 %v6210_v61, %v6198_v56  ;;  %v6223_v22 = vpop.f32.mrf.mxu3  ;;  %v6199_v47 = vpop.f32.mrf.mxu1 }
 0x360   :  { %v11128_v35 = vadd.f32 %v6223_v22, %v6211_v14 }
 0x365   :  { %v6212_v8 = vpop.f32.mrf.mxu2 }
 0x366   :  { %v6225_v55 = vpop.f32.mrf.mxu3  ;;  %v6551_v8 = vld [vmem:[%s11244_s5 + $0x70] sm:$0xff] }
 0x375   :  { %v6236_v40 = vpop.f32.mrf.mxu0 }
 0x376   :  { %v11130_v9 = vpop.f32.mrf.mxu1  ;;  %v6237_v7 = vadd.f32 %v6236_v40, %v11128_v35  ;;  %v6552_v35 = vld [vmem:[%s11244_s5 + $0x78] sm:$0xff] }
 0x377   :  { %6573 = vmatpush.msra.mxu0 %v6552_v35 }
 0x378   :  { %v6250_v57 = vadd.f32 %v11130_v9, %v6237_v7  ;;  %v6553_v7 = vld [vmem:[%s11244_s5 + $0x80] sm:$0xff] }
 0x379   :  { %6574 = vmatpush.msra.mxu0 %v6551_v8 }
 0x37d   :  { %v11132_v20 = vpop.f32.mrf.mxu2  ;;  %v6238_v30 = vpop.f32.mrf.mxu0 }
 0x37e   :  { %v11134_v26 = vpop.f32.mrf.mxu3  ;;  %v6251_v53 = vpop.f32.mrf.mxu1  ;;  %v6263_v41 = vadd.f32 %v11132_v20, %v6250_v57  ;;  %v6568_v20 = vld [vmem:[%s11244_s5 + $0xf8] sm:$0xff]  ;;  %v6550_v30 = vld [vmem:[%s11244_s5 + $0x68] sm:$0xff] }
 0x37f   :  { %6593 = vmatpush.msra.mxu1 %v6568_v20  ;;  %6575 = vmatpush.msra.mxu0 %v6550_v30 }
 0x380   :  { %v6276_v37 = vadd.f32 %v11134_v26, %v6263_v41 }
 0x381   :  { %6594 = vmatpush.msra.mxu1 %v6567_v1  ;;  %6576 = vmatpush.msra.mxu0 %v6549_v2 }
 0x383   :  { %6595 = vmatpush.msra.mxu1 %v6566_v38  ;;  %6577 = vmatpush.msra.mxu0 %v6548_v25 }
 0x385   :  { %v6264_v23 = vpop.f32.mrf.mxu2  ;;  %6596 = vmatpush.msra.mxu1 %v6565_v50  ;;  %6578 = vmatpush.msra.mxu0 %v6547_v36 }
 0x386   :  { %v6277_v59 = vpop.f32.mrf.mxu3  ;;  %v6563_v23 = vld [vmem:[%s11244_s5 + $0xd0] sm:$0xff] }
 0x387   :  { %6597 = vmatpush.msra.mxu1 %v6564_v51  ;;  %v6546_v59 = vld [vmem:[%s11244_s5 + $0x48] sm:$0xff] }
 0x388   :  { %6579 = vmatpush.msra.mxu0 %v6546_v59 }
 0x389   :  { %6598 = vmatpush.msra.mxu1 %v6563_v23 }
 0x38a   :  { %6580 = vmatpush.msra.mxu0 %v6545_v32 }
 0x38b   :  { %6599 = vmatpush.msra.mxu1 %v6562_v4 }
 0x38c   :  { %6581 = vmatpush.msra.mxu0 %v6544_v49 }
 0x38d   :  { %6600 = vmatpush.msra.mxu1 %v6561_v45 }
 0x38e   :  { %6582 = vmatpush.msra.mxu0 %v6543_v5 }
 0x38f   :  { %6601 = vmatpush.msra.mxu1 %v6560_v42 }
 0x390   :  { %6583 = vmatpush.msra.mxu0 %v6542_v43 }
 0x391   :  { %6602 = vmatpush.msra.mxu1 %v6559_v0 }
 0x392   :  { %6584 = vmatpush.msra.mxu0 %v6541_v13 }
 0x393   :  { %6603 = vmatpush.msra.mxu1 %v6558_v63 }
 0x394   :  { %6585 = vmatpush.msra.mxu0 %v6540_v46 }
 0x395   :  { %v6288_v12 = vpop.f32.mrf.mxu0 }
 0x396   :  { %v6301_v60 = vpop.f32.mrf.mxu1  ;;  %v6289_v28 = vadd.f32 %v6288_v12, %v6276_v37  ;;  %v6539_v12 = vld [vmem:[%s11244_s5 + $0x10] sm:$0xff] }
 0x397   :  { %6586 = vmatpush.msra.mxu0 %v6539_v12 }
 0x398   :  { %v6302_v19 = vadd.f32 %v6301_v60, %v6289_v28  ;;  %v6557_v60 = vld [vmem:[%s11244_s5 + $0xa0] sm:$0xff] }
 0x399   :  { %6587 = vmatpush.msra.mxu0 %v6538_v48  ;;  %6604 = vmatpush.msra.mxu1 %v6557_v60 }
 0x39b   :  { %6588 = vmatpush.msra.mxu0 %v6537_v10  ;;  %6605 = vmatpush.msra.mxu1 %v6556_v6 }
 0x39d   :  { %v6314_v58 = vpop.f32.mrf.mxu2  ;;  %v6290_v27 = vpop.f32.mrf.mxu0  ;;  %6606 = vmatpush.msra.mxu1 %v6555_v3 }
 0x39e   :  { %v6327_v52 = vpop.f32.mrf.mxu3  ;;  %v6303_v11 = vpop.f32.mrf.mxu1  ;;  %v6315_v33 = vadd.f32 %v6314_v58, %v6302_v19  ;;  %v6449_v58 = vld [vmem:[#allocation8] sm:$0x3] }
 0x39f   :  { %6607 = vmatpush.msra.mxu1 %v6554_v21  ;;  %v6451_v31 = vperm.slane %v6449_v58, 0  ;;  %v6452_v11 = vperm.slane %v6449_v58, 1 }
 0x3a0   :  { %v6328_v56 = vadd.f32 %v6327_v52, %v6315_v33 }
 0x3a1   :  { %6608 = vmatpush.msra.mxu1 %v6553_v7 }
 0x3a5   :  { %v6316_v62 = vpop.f32.mrf.mxu2 }
 0x3a6   :  { %v6329_v17 = vpop.f32.mrf.mxu3 }
 0x3a7   :  { %v10649_v17 = vld [vmem:[#allocation2] ss:$0 sm:$0xff] }
 0x3b5   :  { %v6340_v61 = vpop.f32.mrf.mxu0 }
 0x3b6   :  { %v6353_v14 = vpop.f32.mrf.mxu1  ;;  %v6341_v22 = vadd.f32 %v6340_v61, %v6328_v56 }
 0x3b8   :  { %v6354_v39 = vadd.f32 %v6353_v14, %v6341_v22 }
 0x3bd   :  { %v6366_v47 = vpop.f32.mrf.mxu2  ;;  %v6342_v9 = vpop.f32.mrf.mxu0 }
 0x3be   :  { %v6367_v55 = vadd.f32 %v6366_v47, %v6354_v39  ;;  %v6379_v40 = vpop.f32.mrf.mxu3  ;;  %v6355_v26 = vpop.f32.mrf.mxu1 }
 0x3c0   :  { %v6380_v29 = vadd.f32 %v6379_v40, %v6367_v55 }
 0x3c2   :  { %v6384_v53 = vmax.f32 %v6380_v29, 0.0 }
 0x3c4   :  { %6491 = vmatmul.f32.vlgmr.msrb.gmra.mxu1 %v6384_v53  ;;  %6531 = vmatmul.f32.vlgmr.msrb.gmra.mxu3 %v6384_v53 }
 0x3c5   :  { %v6368_v34 = vpop.f32.mrf.mxu2 }
 0x3c6   :  { %v6381_v18 = vpop.f32.mrf.mxu3 }
 0x3d6   :  { %v6472_v16 = vpop.f32.mrf.mxu0 }
 0x3d7   :  { %v6473_v52 = vadd.f32 %v6472_v16, %v6451_v31 }
 0x3dd   :  { %v6512_v24 = vpop.f32.mrf.mxu2 }
 0x3de   :  { %v6513_v15 = vadd.f32 %v6512_v24, %v6452_v11 }
 0x441   :  { %v6492_v27 = vpop.f32.mrf.mxu1 }
 0x442   :  { %v6493_v44 = vadd.f32 %v6492_v27, %v6473_v52 }
 0x444   :  { %v6535_v54 = vmax.f32 %v6493_v44, 0.0 }
 0x446   :  { %6589 = vmatmul.f32.vlgmr.msra.gmra.mxu0 %v6535_v54 }
 0x447   :  { %v6532_v57 = vpop.f32.mrf.mxu3 }
 0x448   :  { %v6533_v41 = vadd.f32 %v6532_v57, %v6513_v15 }
 0x44a   :  { %v6536_v62 = vmax.f32 %v6533_v41, 0.0 }
 0x44c   :  { %6609 = vmatmul.f32.vlgmr.msra.gmra.mxu1 %v6536_v62 }
 0x4c3   :  { %v6590_v37 = vpop.f32.mrf.mxu0 }
 0x4c4   :  { %v6591_v28 = vadd.f32 %v10649_v17, %v6590_v37 }
 0x4c9   :  { %v6610_v19 = vpop.f32.mrf.mxu1 }
 0x4ca   :  { %v6611_v33 = vadd.f32 %v6610_v19, %v6591_v28 }
 0x4cc   :  { %v6613_v56 = vsub.f32 0.0, %v6611_v33 }
 0x4ce   :  { %v6614_v61 = vmul.f32 1.442695, %v6613_v56 }
 0x4d0   :  { %10650 = vpow2.f32 %v6614_v61 }
 0x4d6   :  { %v10651_v14 = vpop.eup %10650 }
 0x4d7   :  { %v6616_v22 = vadd.f32 1.0, %v10651_v14 }
 0x4d9   :  { %10652 = vrcp.f32 %v6616_v22  ;;  %v6628_v8 = vand.u32 2147483648, %v6616_v22  ;;  %v6626_v40 = vand.u32 2147483647, %v6616_v22  ;;  %vm6622_vm1 = vweird.f32 %v6616_v22 }
 0x4db   :  { %v6629_v20 = vor.u32 1.1754944e-38, %v6628_v8  ;;  %vm6627_vm4 = vcmp.eq.f32.partialorder %v6626_v40, 8.507059e+37 }
 0x4df   :  { %v10653_v39 = vpop.eup %10652 }
 0x4e0   :  { %v6618_v47 = vmul.f32 %v10653_v39, %v6616_v22  ;;  %vm6623_vm0 = vweird.f32 %v10653_v39 }
 0x4e1   :  { %vm6624_vm2 = vmor %vm6622_vm1, %vm6623_vm0 }
 0x4e2   :  { %v6619_v35 = vsub.f32 1.0, %v6618_v47 }
 0x4e4   :  { %v6620_v55 = vmul.f32 %v10653_v39, %v6619_v35 }
 0x4e6   :  { %v6621_v9 = vadd.f32 %v10653_v39, %v6620_v55 }
 0x4e8   :  { %v6625_v26 = vsel %vm6624_vm2, %v10653_v39, %v6621_v9 }
 0x4e9   :  { %v6630_v30 = vsel %vm6627_vm4, %v6629_v20, %v6625_v26 }
 0x4ea   :  { %6633 = vst.msk [vmem:[%s11246_s7] sm:$0x3] %vm6632_vm3, %v6630_v30 }
 0x4eb   :  { %6638 = vsyncpa [#allocation4], 1 }
 0x4ec   :  { %6639 = vsyncpa [#allocation6], 1 }
 0x4ed   :  { %6640 = vsyncpa [#allocation9], 1 }

</bundles_post_ra>
